<compile_context>
chip_gen: v6e
topology: v6e:2x2x1
jax: 0.10.0
libtpu: 0.0.40
codegen_flags: <defaults>
</compile_context>

<pallas_src>
import math
from functools import partial

import jax
import jax.numpy as jnp
from jax.experimental import pallas as pl
from jax.experimental.pallas import tpu as pltpu

LANE = 128


def _round_up(n, m):
    return ((n + m - 1) // m) * m


def _pick_chunk(tb, target=256):
    """Largest multiple of 16 that divides tb and is <= target (tb is a mult of 16)."""
    best = 16
    c = 16
    while c <= tb:
        if tb % c == 0 and c <= target:
            best = c
        c += 16
    return best


# ------------- fused "3x3 conv + ReLU + BN + 1x1 conv + ReLU + BN" ----------

def _fused_stage_kernel(x_ref, h_ref, wc_ref, bc_ref, sc_ref, tc_ref,
                        wp_ref, bp_ref, sp_ref, tp_ref, o_ref, *,
                        Wp, CT, depthwise):
    """One row-block of: 3x3 conv (+bias,ReLU,BN) then 1x1 conv (+bias,ReLU,BN).

    x_ref : (1, TB, Cin)  bf16  current row-block of the flat padded image
    h_ref : (1, HT, Cin)  bf16  halo tokens immediately after the block
    wc_ref: (9, Cin) f32 (depthwise) or (9, Cin, Cin) bf16 (block-diag grouped)
    wp_ref: (Cin, Dout) bf16  fused 1x1 conv weight
    o_ref : (1, TB, Dout) bf16
    """
    TB = x_ref.shape[1]
    Cc = bc_ref.shape[-1]
    # Halo-extended window (TB + HT, Cin); TB is 16-aligned so the concat is
    # tile-aligned for bf16.
    buf = jnp.concatenate([x_ref[0], h_ref[0]], axis=0)
    nchunks = TB // CT
    for c in range(nchunks):                      # small static loop (<= ~4)
        base = c * CT
        acc = jnp.zeros((CT, Cc), jnp.float32)    # bounded live accumulator
        for i in range(3):
            for j in range(3):
                off = base + (i + 1) * Wp + (j - 1)
                slab = buf[off:off + CT]          # contiguous shifted slab
                if depthwise:
                    # per-channel tap weight on the VPU, f32 accumulate
                    acc = acc + slab.astype(jnp.float32) * \
                        wc_ref[i * 3 + j:i * 3 + j + 1, :]
                else:
                    # block-diagonal (Cin, Cin) tap weight on the MXU
                    # TODO(synk): for embed_dim < 128 most of this padded tap
                    # weight is zeros; a per-group VPU contraction would avoid
                    # the wasted MXU flops (irrelevant at this toy size).
                    acc = acc + jnp.dot(slab, wc_ref[i * 3 + j],
                                        preferred_element_type=jnp.float32)
        y = jnp.maximum(acc + bc_ref[...], 0.0)   # conv bias + ReLU
        y = y * sc_ref[...] + tc_ref[...]         # eval-mode BatchNorm (folded)
        z = jnp.dot(y.astype(jnp.bfloat16), wp_ref[...],
                    preferred_element_type=jnp.float32)   # fused 1x1 conv (MXU)
        z = jnp.maximum(z + bp_ref[...], 0.0)     # 1x1 bias + ReLU
        z = z * sp_ref[...] + tp_ref[...]         # eval-mode BatchNorm (folded)
        o_ref[0, base:base + CT, :] = z.astype(o_ref.dtype)


def fused_stage(x, wc, bc, sc, tc, wpw, bp, sp, tp, *, depthwise,
                target_tokens=512):
    """NHWC bf16 in -> NHWC bf16 out. 3x3 conv (stride 1, pad 1) + ReLU + BN,
    then 1x1 conv + ReLU + BN, in a single spatially-tiled Pallas kernel."""
    B, H, W, C = x.shape
    Dout = wpw.shape[-1]
    Hp, Wp = H + 2, W + 2

    # Halo granularity: h rows such that h*Wp is a multiple of 16 (bf16 tile).
    h = max(4, 16 // math.gcd(Wp, 16))
    # Row block: multiple of h, ~target_tokens tokens, no bigger than needed.
    RB = max(h, min(((target_tokens // Wp) // h) * h, _round_up(Hp, h)))
    Mrows = _round_up(Hp, RB)
    nR = Mrows // RB
    TB = RB * Wp                       # tokens per block (multiple of 16)
    HT = h * Wp                        # halo tokens     (multiple of 16)
    CT = _pick_chunk(TB, 256)          # accumulator chunk (multiple of 16)
    Ls = (Mrows + h) * Wp

    # Single pad: 3 apron/pad rows on top, enough zero rows at the bottom to
    # cover the conv pad, row-block round-up and the last halo block.
    xs = jnp.pad(x, ((0, 0), (3, Mrows + h - 3 - H), (1, 1), (0, 0)))
    xs = xs.reshape(B, Ls, C)

    Cc = bc.shape[-1]
    tokens = B * Mrows * Wp
    conv_flops = 2 * tokens * 9 * (Cc if depthwise else C * Cc)
    pw_flops = 2 * tokens * Cc * Dout
    bytes_acc = (B * nR * TB * C * 2 + B * nR * HT * C * 2
                 + wc.size * (4 if depthwise else 2) + wpw.size * 2
                 + tokens * Dout * 2 + 6 * (Cc + Dout) * 4)
    cost = pl.CostEstimate(flops=conv_flops + pw_flops, transcendentals=0,
                           bytes_accessed=bytes_acc)

    out = pl.pallas_call(
        partial(_fused_stage_kernel, Wp=Wp, CT=CT, depthwise=depthwise),
        out_shape=jax.ShapeDtypeStruct((B, Mrows * Wp, Dout), jnp.bfloat16),
        grid=(B, nR),
        in_specs=[
            pl.BlockSpec((1, TB, C), lambda b, r: (b, r, 0)),
            pl.BlockSpec((1, HT, C), lambda b, r: (b, (r + 1) * (RB // h), 0)),
            pl.BlockSpec(wc.shape, lambda b, r: (0,) * wc.ndim),
            pl.BlockSpec((1, Cc), lambda b, r: (0, 0)),
            pl.BlockSpec((1, Cc), lambda b, r: (0, 0)),
            pl.BlockSpec((1, Cc), lambda b, r: (0, 0)),
            pl.BlockSpec(wpw.shape, lambda b, r: (0, 0)),
            pl.BlockSpec((1, Dout), lambda b, r: (0, 0)),
            pl.BlockSpec((1, Dout), lambda b, r: (0, 0)),
            pl.BlockSpec((1, Dout), lambda b, r: (0, 0)),
        ],
        out_specs=pl.BlockSpec((1, TB, Dout), lambda b, r: (b, r, 0)),
        compiler_params=pltpu.CompilerParams(
            dimension_semantics=("parallel", "parallel")),
        cost_estimate=cost,
    )(xs, xs, wc, bc.reshape(1, Cc), sc.reshape(1, Cc), tc.reshape(1, Cc),
      wpw, bp.reshape(1, Dout), sp.reshape(1, Dout), tp.reshape(1, Dout))

    # drop the padded ring / junk rows, back to NHWC
    return out.reshape(B, Mrows, Wp, Dout)[:, 1:H + 1, 1:W + 1, :]


# ----------------------------- forward pass --------------------------------

def parallel_conv_forward(q, x_nchw, in_chans, embed_dim):
    """ParallelConv.forward, NCHW f32 in / NCHW f32 out (PyTorch convention)."""
    Cp = _round_up(in_chans, LANE)
    B, C, H, W = x_nchw.shape
    assert C == in_chans and H % 2 == 0 and W % 2 == 0
    x = jnp.transpose(x_nchw, (0, 2, 3, 1))                   # NCHW -> NHWC (once)
    x = jnp.pad(x, ((0, 0), (0, 0), (0, 0), (0, Cp - in_chans)))
    x = x.astype(jnp.bfloat16)
    # Stage 1: depthwise 3x3 + ReLU + BN1  ->  1x1 + ReLU + BN2   (one kernel)
    x = fused_stage(x, q["dw_w"], q["dw_b"], q["dw_s"], q["dw_t"],
                    q["pw1_w"], q["pw1_b"], q["pw1_s"], q["pw1_t"],
                    depthwise=True)
    # AvgPool2d(2, 2) + ReLU  (bf16 traffic, mean computed in f32)
    # TODO(synk): could be folded into stage-2 input staging to save one HBM pass.
    Bh, Hh, Wh, Ch = x.shape
    x = x.astype(jnp.float32).reshape(Bh, Hh // 2, 2, Wh // 2, 2, Ch).mean(axis=(2, 4))
    x = jnp.maximum(x, 0.0).astype(jnp.bfloat16)
    # Stage 2: grouped 3x3 + ReLU + BN3  ->  1x1 + ReLU + BN4     (one kernel)
    x = fused_stage(x, q["gc_w"], q["gc_b"], q["gc_s"], q["gc_t"],
                    q["pw2_w"], q["pw2_b"], q["pw2_s"], q["pw2_t"],
                    depthwise=False)
    x = x[..., :embed_dim].astype(jnp.float32)                 # strip lane padding
    return jnp.transpose(x, (0, 3, 1, 2))                      # NHWC -> NCHW (once)


# --------------------------- params / packing ------------------------------

def init_parallel_conv_params(key, in_chans, embed_dim):
    """Matches PyTorch init: Conv2d ~ N(0, sqrt(2/fan_out)), bias=0, BN defaults."""
    def conv_w(k, cout, cin_g, kh, kw, groups=1):
        fan_out = (kh * kw * cout) // groups
        return jax.random.normal(k, (cout, cin_g, kh, kw), jnp.float32) * math.sqrt(2.0 / fan_out)

    def bn(c):
        return {"g": jnp.ones((c,), jnp.float32), "b": jnp.zeros((c,), jnp.float32),
                "rm": jnp.zeros((c,), jnp.float32), "rv": jnp.ones((c,), jnp.float32)}

    ks = jax.random.split(key, 4)
    p = {}
    p["dw_w"] = conv_w(ks[0], in_chans, 1, 3, 3, groups=in_chans)
    p["dw_b"] = jnp.zeros((in_chans,), jnp.float32)
    p["bn1"] = bn(in_chans)
    p["pw1_w"] = conv_w(ks[1], embed_dim, in_chans, 1, 1)
    p["pw1_b"] = jnp.zeros((embed_dim,), jnp.float32)
    p["bn2"] = bn(embed_dim)
    p["gc_w"] = conv_w(ks[2], embed_dim, embed_dim // in_chans, 3, 3, groups=in_chans)
    p["gc_b"] = jnp.zeros((embed_dim,), jnp.float32)
    p["bn3"] = bn(embed_dim)
    p["pw2_w"] = conv_w(ks[3], embed_dim, embed_dim, 1, 1)
    p["pw2_b"] = jnp.zeros((embed_dim,), jnp.float32)
    p["bn4"] = bn(embed_dim)
    return p


def _bn_fold(bn, eps=1e-5):
    # TODO(synk): eval-mode BatchNorm only (running statistics); training-mode
    # batch statistics are not implemented.
    scale = bn["g"] / jnp.sqrt(bn["rv"] + eps)
    shift = bn["b"] - bn["rm"] * scale
    return scale, shift


def _pad_vec(v, n):
    return jnp.pad(v, (0, n - v.shape[0]))


def _pad_mat(m, r, c):
    return jnp.pad(m, ((0, r - m.shape[0]), (0, c - m.shape[1])))


def pack_params(p, in_chans, embed_dim, eps=1e-5):
    """Fold BN, pad channels to LANE multiples, convert weights to kernel layouts."""
    assert embed_dim % in_chans == 0, "grouped conv requires embed_dim % in_chans == 0"
    Cp = _round_up(in_chans, LANE)
    Dp = _round_up(embed_dim, LANE)
    groups = in_chans
    cin_g = embed_dim // groups
    cout_g = embed_dim // groups
    q = {}
    # depthwise 3x3: (C,1,3,3) -> (9, Cp) f32
    w9 = p["dw_w"].transpose(2, 3, 0, 1).reshape(9, in_chans)
    q["dw_w"] = jnp.pad(w9, ((0, 0), (0, Cp - in_chans)))
    s, t = _bn_fold(p["bn1"], eps)
    q["dw_b"], q["dw_s"], q["dw_t"] = _pad_vec(p["dw_b"], Cp), _pad_vec(s, Cp), _pad_vec(t, Cp)
    # 1x1 conv #1: (D, C, 1, 1) -> (Cp, Dp) bf16
    w = p["pw1_w"][:, :, 0, 0].T
    q["pw1_w"] = _pad_mat(w, Cp, Dp).astype(jnp.bfloat16)
    s, t = _bn_fold(p["bn2"], eps)
    q["pw1_b"], q["pw1_s"], q["pw1_t"] = _pad_vec(p["pw1_b"], Dp), _pad_vec(s, Dp), _pad_vec(t, Dp)
    # grouped 3x3: (D, D/g, 3, 3), groups=g -> per-tap block-diagonal (9, Dp, Dp) bf16
    wg = p["gc_w"].reshape(groups, cout_g, cin_g, 3, 3)
    v = wg.transpose(0, 3, 4, 2, 1).reshape(groups, 9, cin_g, cout_g)   # V[g,t,ci,co]
    eye = jnp.eye(groups, dtype=jnp.float32)
    w9g = jnp.einsum("gtio,gh->tgiho", v, eye).reshape(9, embed_dim, embed_dim)
    q["gc_w"] = jnp.pad(w9g, ((0, 0), (0, Dp - embed_dim),
                              (0, Dp - embed_dim))).astype(jnp.bfloat16)
    s, t = _bn_fold(p["bn3"], eps)
    q["gc_b"], q["gc_s"], q["gc_t"] = _pad_vec(p["gc_b"], Dp), _pad_vec(s, Dp), _pad_vec(t, Dp)
    # 1x1 conv #2: (D, D, 1, 1) -> (Dp, Dp) bf16
    w = p["pw2_w"][:, :, 0, 0].T
    q["pw2_w"] = _pad_mat(w, Dp, Dp).astype(jnp.bfloat16)
    s, t = _bn_fold(p["bn4"], eps)
    q["pw2_b"], q["pw2_s"], q["pw2_t"] = _pad_vec(p["pw2_b"], Dp), _pad_vec(s, Dp), _pad_vec(t, Dp)
    return q


# --------------------------- pure-JAX reference -----------------------------

def _conv_ref(x, w, b, stride=1, padding=0, groups=1):
    y = jax.lax.conv_general_dilated(
        x, w, window_strides=(stride, stride),
        padding=[(padding, padding), (padding, padding)],
        dimension_numbers=("NCHW", "OIHW", "NCHW"),
        feature_group_count=groups)
    return y + b[None, :, None, None]


def reference_forward(p, x, in_chans, eps=1e-5):
    def bn(y, bp):
        s = bp["g"] / jnp.sqrt(bp["rv"] + eps)
        t = bp["b"] - bp["rm"] * s
        return y * s[None, :, None, None] + t[None, :, None, None]

    y = _conv_ref(x, p["dw_w"], p["dw_b"], padding=1, groups=in_chans)
    y = bn(jnp.maximum(y, 0.0), p["bn1"])
    y = _conv_ref(y, p["pw1_w"], p["pw1_b"])
    y = bn(jnp.maximum(y, 0.0), p["bn2"])
    B, C, H, W = y.shape
    y = y.reshape(B, C, H // 2, 2, W // 2, 2).mean(axis=(3, 5))
    y = jnp.maximum(y, 0.0)
    y = _conv_ref(y, p["gc_w"], p["gc_b"], padding=1, groups=in_chans)
    y = bn(jnp.maximum(y, 0.0), p["bn3"])
    y = _conv_ref(y, p["pw2_w"], p["pw2_b"])
    y = bn(jnp.maximum(y, 0.0), p["bn4"])
    return y


# --------------------------------- main -------------------------------------

if __name__ == "__main__":
    IN_CHANS, EMBED_DIM = 4, 32
    B, H, W = 2, 16, 16

    key = jax.random.PRNGKey(0)
    kp, kx = jax.random.split(key)
    params = init_parallel_conv_params(kp, IN_CHANS, EMBED_DIM)
    packed = pack_params(params, IN_CHANS, EMBED_DIM)
    x = jax.random.normal(kx, (B, IN_CHANS, H, W), jnp.float32)

    fwd = jax.jit(partial(parallel_conv_forward, in_chans=IN_CHANS, embed_dim=EMBED_DIM))
    out = fwd(packed, x)
    jax.block_until_ready(out)

    assert out.shape == (B, EMBED_DIM, H // 2, W // 2)
    assert bool(jnp.all(jnp.isfinite(out)))
    ref = reference_forward(params, x, IN_CHANS)
    assert bool(jnp.allclose(out, ref, atol=5e-2, rtol=5e-2)), \
        float(jnp.max(jnp.abs(out - ref)))
    print("KERNEL_OK")
</pallas_src>

<mosaic_0001>
module attributes {stable_mosaic.version = 11 : i64} {
  func.func @_fused_stage_kernel(%arg0: i32, %arg1: i32, %arg2: memref<1x432x128xbf16, #tpu.memory_space<vmem>>, %arg3: memref<1x144x128xbf16, #tpu.memory_space<vmem>>, %arg4: memref<9x128xf32, #tpu.memory_space<vmem>>, %arg5: memref<1x128xf32, #tpu.memory_space<vmem>>, %arg6: memref<1x128xf32, #tpu.memory_space<vmem>>, %arg7: memref<1x128xf32, #tpu.memory_space<vmem>>, %arg8: memref<128x128xbf16, #tpu.memory_space<vmem>>, %arg9: memref<1x128xf32, #tpu.memory_space<vmem>>, %arg10: memref<1x128xf32, #tpu.memory_space<vmem>>, %arg11: memref<1x128xf32, #tpu.memory_space<vmem>>, %arg12: memref<1x432x128xbf16, #tpu.memory_space<vmem>>) attributes {dimension_semantics = [#tpu.dimension_semantics<parallel>, #tpu.dimension_semantics<parallel>], iteration_bounds = array<i64: 2, 1>, scalar_prefetch = 0 : i64, scratch_operands = 0 : i64, tpu.core_type = #tpu.core_type<tc>, window_params = [{transform_indices = @transform_0, window_bounds = array<i64: 1, 432, 128>}, {transform_indices = @transform_1, window_bounds = array<i64: 1, 144, 128>}, {pipeline_mode = #tpu.pipeline_mode<synchronous>, transform_indices = @transform_2, window_bounds = array<i64: 9, 128>}, {pipeline_mode = #tpu.pipeline_mode<synchronous>, transform_indices = @transform_3, window_bounds = array<i64: 1, 128>}, {pipeline_mode = #tpu.pipeline_mode<synchronous>, transform_indices = @transform_4, window_bounds = array<i64: 1, 128>}, {pipeline_mode = #tpu.pipeline_mode<synchronous>, transform_indices = @transform_5, window_bounds = array<i64: 1, 128>}, {pipeline_mode = #tpu.pipeline_mode<synchronous>, transform_indices = @transform_6, window_bounds = array<i64: 128, 128>}, {pipeline_mode = #tpu.pipeline_mode<synchronous>, transform_indices = @transform_7, window_bounds = array<i64: 1, 128>}, {pipeline_mode = #tpu.pipeline_mode<synchronous>, transform_indices = @transform_8, window_bounds = array<i64: 1, 128>}, {pipeline_mode = #tpu.pipeline_mode<synchronous>, transform_indices = @transform_9, window_bounds = array<i64: 1, 128>}, {transform_indices = @transform_10, window_bounds = array<i64: 1, 432, 128>}]} {
    %c0 = arith.constant 0 : index
    %c0_0 = arith.constant 0 : index
    %c0_1 = arith.constant 0 : index
    %0 = vector.load %arg2[%c0, %c0_0, %c0_1] : memref<1x432x128xbf16, #tpu.memory_space<vmem>>, vector<1x432x128xbf16>
    %1 = vector.shape_cast %0 : vector<1x432x128xbf16> to vector<432x128xbf16>
    %c0_2 = arith.constant 0 : index
    %c0_3 = arith.constant 0 : index
    %c0_4 = arith.constant 0 : index
    %2 = vector.load %arg3[%c0_2, %c0_3, %c0_4] : memref<1x144x128xbf16, #tpu.memory_space<vmem>>, vector<1x144x128xbf16>
    %3 = vector.shape_cast %2 : vector<1x144x128xbf16> to vector<144x128xbf16>
    %4 = tpu.concatenate %1, %3 in 0 : vector<432x128xbf16>, vector<144x128xbf16> -> vector<576x128xbf16>
    %cst = arith.constant 0.000000e+00 : f32
    %5 = vector.broadcast %cst : f32 to vector<144x128xf32>
    %6 = vector.extract_strided_slice %4 {offsets = [17, 0], sizes = [144, 128], strides = [1, 1]} : vector<576x128xbf16> to vector<144x128xbf16>
    %7 = arith.extf %6 : vector<144x128xbf16> to vector<144x128xf32>
    %c0_5 = arith.constant 0 : index
    %c0_6 = arith.constant 0 : index
    %8 = vector.load %arg4[%c0_5, %c0_6] : memref<9x128xf32, #tpu.memory_space<vmem>>, vector<1x128xf32>
    %9 = vector.broadcast %8 : vector<1x128xf32> to vector<144x128xf32>
    %10 = arith.mulf %7, %9 : vector<144x128xf32>
    %11 = arith.addf %5, %10 : vector<144x128xf32>
    %12 = vector.extract_strided_slice %4 {offsets = [18, 0], sizes = [144, 128], strides = [1, 1]} : vector<576x128xbf16> to vector<144x128xbf16>
    %13 = arith.extf %12 : vector<144x128xbf16> to vector<144x128xf32>
    %c1 = arith.constant 1 : index
    %c0_7 = arith.constant 0 : index
    %14 = vector.load %arg4[%c1, %c0_7] : memref<9x128xf32, #tpu.memory_space<vmem>>, vector<1x128xf32>
    %15 = vector.broadcast %14 : vector<1x128xf32> to vector<144x128xf32>
    %16 = arith.mulf %13, %15 : vector<144x128xf32>
    %17 = arith.addf %11, %16 : vector<144x128xf32>
    %18 = vector.extract_strided_slice %4 {offsets = [19, 0], sizes = [144, 128], strides = [1, 1]} : vector<576x128xbf16> to vector<144x128xbf16>
    %19 = arith.extf %18 : vector<144x128xbf16> to vector<144x128xf32>
    %c2 = arith.constant 2 : index
    %c0_8 = arith.constant 0 : index
    %20 = vector.load %arg4[%c2, %c0_8] : memref<9x128xf32, #tpu.memory_space<vmem>>, vector<1x128xf32>
    %21 = vector.broadcast %20 : vector<1x128xf32> to vector<144x128xf32>
    %22 = arith.mulf %19, %21 : vector<144x128xf32>
    %23 = arith.addf %17, %22 : vector<144x128xf32>
    %24 = vector.extract_strided_slice %4 {offsets = [35, 0], sizes = [144, 128], strides = [1, 1]} : vector<576x128xbf16> to vector<144x128xbf16>
    %25 = arith.extf %24 : vector<144x128xbf16> to vector<144x128xf32>
    %c3 = arith.constant 3 : index
    %c0_9 = arith.constant 0 : index
    %26 = vector.load %arg4[%c3, %c0_9] : memref<9x128xf32, #tpu.memory_space<vmem>>, vector<1x128xf32>
    %27 = vector.broadcast %26 : vector<1x128xf32> to vector<144x128xf32>
    %28 = arith.mulf %25, %27 : vector<144x128xf32>
    %29 = arith.addf %23, %28 : vector<144x128xf32>
    %30 = vector.extract_strided_slice %4 {offsets = [36, 0], sizes = [144, 128], strides = [1, 1]} : vector<576x128xbf16> to vector<144x128xbf16>
    %31 = arith.extf %30 : vector<144x128xbf16> to vector<144x128xf32>
    %c4 = arith.constant 4 : index
    %c0_10 = arith.constant 0 : index
    %32 = vector.load %arg4[%c4, %c0_10] : memref<9x128xf32, #tpu.memory_space<vmem>>, vector<1x128xf32>
    %33 = vector.broadcast %32 : vector<1x128xf32> to vector<144x128xf32>
    %34 = arith.mulf %31, %33 : vector<144x128xf32>
    %35 = arith.addf %29, %34 : vector<144x128xf32>
    %36 = vector.extract_strided_slice %4 {offsets = [37, 0], sizes = [144, 128], strides = [1, 1]} : vector<576x128xbf16> to vector<144x128xbf16>
    %37 = arith.extf %36 : vector<144x128xbf16> to vector<144x128xf32>
    %c5 = arith.constant 5 : index
    %c0_11 = arith.constant 0 : index
    %38 = vector.load %arg4[%c5, %c0_11] : memref<9x128xf32, #tpu.memory_space<vmem>>, vector<1x128xf32>
    %39 = vector.broadcast %38 : vector<1x128xf32> to vector<144x128xf32>
    %40 = arith.mulf %37, %39 : vector<144x128xf32>
    %41 = arith.addf %35, %40 : vector<144x128xf32>
    %42 = vector.extract_strided_slice %4 {offsets = [53, 0], sizes = [144, 128], strides = [1, 1]} : vector<576x128xbf16> to vector<144x128xbf16>
    %43 = arith.extf %42 : vector<144x128xbf16> to vector<144x128xf32>
    %c6 = arith.constant 6 : index
    %c0_12 = arith.constant 0 : index
    %44 = vector.load %arg4[%c6, %c0_12] : memref<9x128xf32, #tpu.memory_space<vmem>>, vector<1x128xf32>
    %45 = vector.broadcast %44 : vector<1x128xf32> to vector<144x128xf32>
    %46 = arith.mulf %43, %45 : vector<144x128xf32>
    %47 = arith.addf %41, %46 : vector<144x128xf32>
    %48 = vector.extract_strided_slice %4 {offsets = [54, 0], sizes = [144, 128], strides = [1, 1]} : vector<576x128xbf16> to vector<144x128xbf16>
    %49 = arith.extf %48 : vector<144x128xbf16> to vector<144x128xf32>
    %c7 = arith.constant 7 : index
    %c0_13 = arith.constant 0 : index
    %50 = vector.load %arg4[%c7, %c0_13] : memref<9x128xf32, #tpu.memory_space<vmem>>, vector<1x128xf32>
    %51 = vector.broadcast %50 : vector<1x128xf32> to vector<144x128xf32>
    %52 = arith.mulf %49, %51 : vector<144x128xf32>
    %53 = arith.addf %47, %52 : vector<144x128xf32>
    %54 = vector.extract_strided_slice %4 {offsets = [55, 0], sizes = [144, 128], strides = [1, 1]} : vector<576x128xbf16> to vector<144x128xbf16>
    %55 = arith.extf %54 : vector<144x128xbf16> to vector<144x128xf32>
    %c8 = arith.constant 8 : index
    %c0_14 = arith.constant 0 : index
    %56 = vector.load %arg4[%c8, %c0_14] : memref<9x128xf32, #tpu.memory_space<vmem>>, vector<1x128xf32>
    %57 = vector.broadcast %56 : vector<1x128xf32> to vector<144x128xf32>
    %58 = arith.mulf %55, %57 : vector<144x128xf32>
    %59 = arith.addf %53, %58 : vector<144x128xf32>
    %c0_15 = arith.constant 0 : index
    %c0_16 = arith.constant 0 : index
    %60 = vector.load %arg5[%c0_15, %c0_16] : memref<1x128xf32, #tpu.memory_space<vmem>>, vector<1x128xf32>
    %61 = vector.broadcast %60 : vector<1x128xf32> to vector<144x128xf32>
    %62 = arith.addf %59, %61 : vector<144x128xf32>
    %cst_17 = arith.constant 0.000000e+00 : f32
    %63 = vector.broadcast %cst_17 : f32 to vector<144x128xf32>
    %64 = arith.maximumf %62, %63 : vector<144x128xf32>
    %c0_18 = arith.constant 0 : index
    %c0_19 = arith.constant 0 : index
    %65 = vector.load %arg6[%c0_18, %c0_19] : memref<1x128xf32, #tpu.memory_space<vmem>>, vector<1x128xf32>
    %66 = vector.broadcast %65 : vector<1x128xf32> to vector<144x128xf32>
    %67 = arith.mulf %64, %66 : vector<144x128xf32>
    %c0_20 = arith.constant 0 : index
    %c0_21 = arith.constant 0 : index
    %68 = vector.load %arg7[%c0_20, %c0_21] : memref<1x128xf32, #tpu.memory_space<vmem>>, vector<1x128xf32>
    %69 = vector.broadcast %68 : vector<1x128xf32> to vector<144x128xf32>
    %70 = arith.addf %67, %69 : vector<144x128xf32>
    %71 = arith.truncf %70 : vector<144x128xf32> to vector<144x128xbf16>
    %c0_22 = arith.constant 0 : index
    %c0_23 = arith.constant 0 : index
    %72 = vector.load %arg8[%c0_22, %c0_23] : memref<128x128xbf16, #tpu.memory_space<vmem>>, vector<128x128xbf16>
    %cst_24 = arith.constant dense<0.000000e+00> : vector<144x128xf32>
    %73 = tpu.matmul %71, %72, %cst_24 {dimension_numbers = #tpu.dot_dimension_numbers<[1], [0], [0], [1], [0, 0, 1, 1], [], []>} : vector<144x128xbf16>, vector<128x128xbf16>, vector<144x128xf32> -> vector<144x128xf32>
    %c0_25 = arith.constant 0 : index
    %c0_26 = arith.constant 0 : index
    %74 = vector.load %arg9[%c0_25, %c0_26] : memref<1x128xf32, #tpu.memory_space<vmem>>, vector<1x128xf32>
    %75 = vector.broadcast %74 : vector<1x128xf32> to vector<144x128xf32>
    %76 = arith.addf %73, %75 : vector<144x128xf32>
    %cst_27 = arith.constant 0.000000e+00 : f32
    %77 = vector.broadcast %cst_27 : f32 to vector<144x128xf32>
    %78 = arith.maximumf %76, %77 : vector<144x128xf32>
    %c0_28 = arith.constant 0 : index
    %c0_29 = arith.constant 0 : index
    %79 = vector.load %arg10[%c0_28, %c0_29] : memref<1x128xf32, #tpu.memory_space<vmem>>, vector<1x128xf32>
    %80 = vector.broadcast %79 : vector<1x128xf32> to vector<144x128xf32>
    %81 = arith.mulf %78, %80 : vector<144x128xf32>
    %c0_30 = arith.constant 0 : index
    %c0_31 = arith.constant 0 : index
    %82 = vector.load %arg11[%c0_30, %c0_31] : memref<1x128xf32, #tpu.memory_space<vmem>>, vector<1x128xf32>
    %83 = vector.broadcast %82 : vector<1x128xf32> to vector<144x128xf32>
    %84 = arith.addf %81, %83 : vector<144x128xf32>
    %85 = arith.truncf %84 : vector<144x128xf32> to vector<144x128xbf16>
    %c0_32 = arith.constant 0 : index
    %c0_33 = arith.constant 0 : index
    %c0_34 = arith.constant 0 : index
    %86 = vector.load %arg12[%c0_32, %c0_33, %c0_34] : memref<1x432x128xbf16, #tpu.memory_space<vmem>>, vector<1x144x128xbf16>
    %87 = vector.shape_cast %86 : vector<1x144x128xbf16> to vector<144x128xbf16>
    %88 = vector.shape_cast %85 : vector<144x128xbf16> to vector<1x144x128xbf16>
    tpu.vector_store %arg12[%c0_32, %c0_33, %c0_34], %88 {strides = array<i32>} : memref<1x432x128xbf16, #tpu.memory_space<vmem>>, vector<1x144x128xbf16>,
    %cst_35 = arith.constant 0.000000e+00 : f32
    %89 = vector.broadcast %cst_35 : f32 to vector<144x128xf32>
    %90 = vector.extract_strided_slice %4 {offsets = [161, 0], sizes = [144, 128], strides = [1, 1]} : vector<576x128xbf16> to vector<144x128xbf16>
    %91 = arith.extf %90 : vector<144x128xbf16> to vector<144x128xf32>
    %c0_36 = arith.constant 0 : index
    %c0_37 = arith.constant 0 : index
    %92 = vector.load %arg4[%c0_36, %c0_37] : memref<9x128xf32, #tpu.memory_space<vmem>>, vector<1x128xf32>
    %93 = vector.broadcast %92 : vector<1x128xf32> to vector<144x128xf32>
    %94 = arith.mulf %91, %93 : vector<144x128xf32>
    %95 = arith.addf %89, %94 : vector<144x128xf32>
    %96 = vector.extract_strided_slice %4 {offsets = [162, 0], sizes = [144, 128], strides = [1, 1]} : vector<576x128xbf16> to vector<144x128xbf16>
    %97 = arith.extf %96 : vector<144x128xbf16> to vector<144x128xf32>
    %c1_38 = arith.constant 1 : index
    %c0_39 = arith.constant 0 : index
    %98 = vector.load %arg4[%c1_38, %c0_39] : memref<9x128xf32, #tpu.memory_space<vmem>>, vector<1x128xf32>
    %99 = vector.broadcast %98 : vector<1x128xf32> to vector<144x128xf32>
    %100 = arith.mulf %97, %99 : vector<144x128xf32>
    %101 = arith.addf %95, %100 : vector<144x128xf32>
    %102 = vector.extract_strided_slice %4 {offsets = [163, 0], sizes = [144, 128], strides = [1, 1]} : vector<576x128xbf16> to vector<144x128xbf16>
    %103 = arith.extf %102 : vector<144x128xbf16> to vector<144x128xf32>
    %c2_40 = arith.constant 2 : index
    %c0_41 = arith.constant 0 : index
    %104 = vector.load %arg4[%c2_40, %c0_41] : memref<9x128xf32, #tpu.memory_space<vmem>>, vector<1x128xf32>
    %105 = vector.broadcast %104 : vector<1x128xf32> to vector<144x128xf32>
    %106 = arith.mulf %103, %105 : vector<144x128xf32>
    %107 = arith.addf %101, %106 : vector<144x128xf32>
    %108 = vector.extract_strided_slice %4 {offsets = [179, 0], sizes = [144, 128], strides = [1, 1]} : vector<576x128xbf16> to vector<144x128xbf16>
    %109 = arith.extf %108 : vector<144x128xbf16> to vector<144x128xf32>
    %c3_42 = arith.constant 3 : index
    %c0_43 = arith.constant 0 : index
    %110 = vector.load %arg4[%c3_42, %c0_43] : memref<9x128xf32, #tpu.memory_space<vmem>>, vector<1x128xf32>
    %111 = vector.broadcast %110 : vector<1x128xf32> to vector<144x128xf32>
    %112 = arith.mulf %109, %111 : vector<144x128xf32>
    %113 = arith.addf %107, %112 : vector<144x128xf32>
    %114 = vector.extract_strided_slice %4 {offsets = [180, 0], sizes = [144, 128], strides = [1, 1]} : vector<576x128xbf16> to vector<144x128xbf16>
    %115 = arith.extf %114 : vector<144x128xbf16> to vector<144x128xf32>
    %c4_44 = arith.constant 4 : index
    %c0_45 = arith.constant 0 : index
    %116 = vector.load %arg4[%c4_44, %c0_45] : memref<9x128xf32, #tpu.memory_space<vmem>>, vector<1x128xf32>
    %117 = vector.broadcast %116 : vector<1x128xf32> to vector<144x128xf32>
    %118 = arith.mulf %115, %117 : vector<144x128xf32>
    %119 = arith.addf %113, %118 : vector<144x128xf32>
    %120 = vector.extract_strided_slice %4 {offsets = [181, 0], sizes = [144, 128], strides = [1, 1]} : vector<576x128xbf16> to vector<144x128xbf16>
    %121 = arith.extf %120 : vector<144x128xbf16> to vector<144x128xf32>
    %c5_46 = arith.constant 5 : index
    %c0_47 = arith.constant 0 : index
    %122 = vector.load %arg4[%c5_46, %c0_47] : memref<9x128xf32, #tpu.memory_space<vmem>>, vector<1x128xf32>
    %123 = vector.broadcast %122 : vector<1x128xf32> to vector<144x128xf32>
    %124 = arith.mulf %121, %123 : vector<144x128xf32>
    %125 = arith.addf %119, %124 : vector<144x128xf32>
    %126 = vector.extract_strided_slice %4 {offsets = [197, 0], sizes = [144, 128], strides = [1, 1]} : vector<576x128xbf16> to vector<144x128xbf16>
    %127 = arith.extf %126 : vector<144x128xbf16> to vector<144x128xf32>
    %c6_48 = arith.constant 6 : index
    %c0_49 = arith.constant 0 : index
    %128 = vector.load %arg4[%c6_48, %c0_49] : memref<9x128xf32, #tpu.memory_space<vmem>>, vector<1x128xf32>
    %129 = vector.broadcast %128 : vector<1x128xf32> to vector<144x128xf32>
    %130 = arith.mulf %127, %129 : vector<144x128xf32>
    %131 = arith.addf %125, %130 : vector<144x128xf32>
    %132 = vector.extract_strided_slice %4 {offsets = [198, 0], sizes = [144, 128], strides = [1, 1]} : vector<576x128xbf16> to vector<144x128xbf16>
    %133 = arith.extf %132 : vector<144x128xbf16> to vector<144x128xf32>
    %c7_50 = arith.constant 7 : index
    %c0_51 = arith.constant 0 : index
    %134 = vector.load %arg4[%c7_50, %c0_51] : memref<9x128xf32, #tpu.memory_space<vmem>>, vector<1x128xf32>
    %135 = vector.broadcast %134 : vector<1x128xf32> to vector<144x128xf32>
    %136 = arith.mulf %133, %135 : vector<144x128xf32>
    %137 = arith.addf %131, %136 : vector<144x128xf32>
    %138 = vector.extract_strided_slice %4 {offsets = [199, 0], sizes = [144, 128], strides = [1, 1]} : vector<576x128xbf16> to vector<144x128xbf16>
    %139 = arith.extf %138 : vector<144x128xbf16> to vector<144x128xf32>
    %c8_52 = arith.constant 8 : index
    %c0_53 = arith.constant 0 : index
    %140 = vector.load %arg4[%c8_52, %c0_53] : memref<9x128xf32, #tpu.memory_space<vmem>>, vector<1x128xf32>
    %141 = vector.broadcast %140 : vector<1x128xf32> to vector<144x128xf32>
    %142 = arith.mulf %139, %141 : vector<144x128xf32>
    %143 = arith.addf %137, %142 : vector<144x128xf32>
    %c0_54 = arith.constant 0 : index
    %c0_55 = arith.constant 0 : index
    %144 = vector.load %arg5[%c0_54, %c0_55] : memref<1x128xf32, #tpu.memory_space<vmem>>, vector<1x128xf32>
    %145 = vector.broadcast %144 : vector<1x128xf32> to vector<144x128xf32>
    %146 = arith.addf %143, %145 : vector<144x128xf32>
    %cst_56 = arith.constant 0.000000e+00 : f32
    %147 = vector.broadcast %cst_56 : f32 to vector<144x128xf32>
    %148 = arith.maximumf %146, %147 : vector<144x128xf32>
    %c0_57 = arith.constant 0 : index
    %c0_58 = arith.constant 0 : index
    %149 = vector.load %arg6[%c0_57, %c0_58] : memref<1x128xf32, #tpu.memory_space<vmem>>, vector<1x128xf32>
    %150 = vector.broadcast %149 : vector<1x128xf32> to vector<144x128xf32>
    %151 = arith.mulf %148, %150 : vector<144x128xf32>
    %c0_59 = arith.constant 0 : index
    %c0_60 = arith.constant 0 : index
    %152 = vector.load %arg7[%c0_59, %c0_60] : memref<1x128xf32, #tpu.memory_space<vmem>>, vector<1x128xf32>
    %153 = vector.broadcast %152 : vector<1x128xf32> to vector<144x128xf32>
    %154 = arith.addf %151, %153 : vector<144x128xf32>
    %155 = arith.truncf %154 : vector<144x128xf32> to vector<144x128xbf16>
    %c0_61 = arith.constant 0 : index
    %c0_62 = arith.constant 0 : index
    %156 = vector.load %arg8[%c0_61, %c0_62] : memref<128x128xbf16, #tpu.memory_space<vmem>>, vector<128x128xbf16>
    %cst_63 = arith.constant dense<0.000000e+00> : vector<144x128xf32>
    %157 = tpu.matmul %155, %156, %cst_63 {dimension_numbers = #tpu.dot_dimension_numbers<[1], [0], [0], [1], [0, 0, 1, 1], [], []>} : vector<144x128xbf16>, vector<128x128xbf16>, vector<144x128xf32> -> vector<144x128xf32>
    %c0_64 = arith.constant 0 : index
    %c0_65 = arith.constant 0 : index
    %158 = vector.load %arg9[%c0_64, %c0_65] : memref<1x128xf32, #tpu.memory_space<vmem>>, vector<1x128xf32>
    %159 = vector.broadcast %158 : vector<1x128xf32> to vector<144x128xf32>
    %160 = arith.addf %157, %159 : vector<144x128xf32>
    %cst_66 = arith.constant 0.000000e+00 : f32
    %161 = vector.broadcast %cst_66 : f32 to vector<144x128xf32>
    %162 = arith.maximumf %160, %161 : vector<144x128xf32>
    %c0_67 = arith.constant 0 : index
    %c0_68 = arith.constant 0 : index
    %163 = vector.load %arg10[%c0_67, %c0_68] : memref<1x128xf32, #tpu.memory_space<vmem>>, vector<1x128xf32>
    %164 = vector.broadcast %163 : vector<1x128xf32> to vector<144x128xf32>
    %165 = arith.mulf %162, %164 : vector<144x128xf32>
    %c0_69 = arith.constant 0 : index
    %c0_70 = arith.constant 0 : index
    %166 = vector.load %arg11[%c0_69, %c0_70] : memref<1x128xf32, #tpu.memory_space<vmem>>, vector<1x128xf32>
    %167 = vector.broadcast %166 : vector<1x128xf32> to vector<144x128xf32>
    %168 = arith.addf %165, %167 : vector<144x128xf32>
    %169 = arith.truncf %168 : vector<144x128xf32> to vector<144x128xbf16>
    %c0_71 = arith.constant 0 : index
    %c144 = arith.constant 144 : index
    %c0_72 = arith.constant 0 : index
    %170 = vector.load %arg12[%c0_71, %c144, %c0_72] : memref<1x432x128xbf16, #tpu.memory_space<vmem>>, vector<1x144x128xbf16>
    %171 = vector.shape_cast %170 : vector<1x144x128xbf16> to vector<144x128xbf16>
    %172 = vector.shape_cast %169 : vector<144x128xbf16> to vector<1x144x128xbf16>
    tpu.vector_store %arg12[%c0_71, %c144, %c0_72], %172 {strides = array<i32>} : memref<1x432x128xbf16, #tpu.memory_space<vmem>>, vector<1x144x128xbf16>,
    %cst_73 = arith.constant 0.000000e+00 : f32
    %173 = vector.broadcast %cst_73 : f32 to vector<144x128xf32>
    %174 = vector.extract_strided_slice %4 {offsets = [305, 0], sizes = [144, 128], strides = [1, 1]} : vector<576x128xbf16> to vector<144x128xbf16>
    %175 = arith.extf %174 : vector<144x128xbf16> to vector<144x128xf32>
    %c0_74 = arith.constant 0 : index
    %c0_75 = arith.constant 0 : index
    %176 = vector.load %arg4[%c0_74, %c0_75] : memref<9x128xf32, #tpu.memory_space<vmem>>, vector<1x128xf32>
    %177 = vector.broadcast %176 : vector<1x128xf32> to vector<144x128xf32>
    %178 = arith.mulf %175, %177 : vector<144x128xf32>
    %179 = arith.addf %173, %178 : vector<144x128xf32>
    %180 = vector.extract_strided_slice %4 {offsets = [306, 0], sizes = [144, 128], strides = [1, 1]} : vector<576x128xbf16> to vector<144x128xbf16>
    %181 = arith.extf %180 : vector<144x128xbf16> to vector<144x128xf32>
    %c1_76 = arith.constant 1 : index
    %c0_77 = arith.constant 0 : index
    %182 = vector.load %arg4[%c1_76, %c0_77] : memref<9x128xf32, #tpu.memory_space<vmem>>, vector<1x128xf32>
    %183 = vector.broadcast %182 : vector<1x128xf32> to vector<144x128xf32>
    %184 = arith.mulf %181, %183 : vector<144x128xf32>
    %185 = arith.addf %179, %184 : vector<144x128xf32>
    %186 = vector.extract_strided_slice %4 {offsets = [307, 0], sizes = [144, 128], strides = [1, 1]} : vector<576x128xbf16> to vector<144x128xbf16>
    %187 = arith.extf %186 : vector<144x128xbf16> to vector<144x128xf32>
    %c2_78 = arith.constant 2 : index
    %c0_79 = arith.constant 0 : index
    %188 = vector.load %arg4[%c2_78, %c0_79] : memref<9x128xf32, #tpu.memory_space<vmem>>, vector<1x128xf32>
    %189 = vector.broadcast %188 : vector<1x128xf32> to vector<144x128xf32>
    %190 = arith.mulf %187, %189 : vector<144x128xf32>
    %191 = arith.addf %185, %190 : vector<144x128xf32>
    %192 = vector.extract_strided_slice %4 {offsets = [323, 0], sizes = [144, 128], strides = [1, 1]} : vector<576x128xbf16> to vector<144x128xbf16>
    %193 = arith.extf %192 : vector<144x128xbf16> to vector<144x128xf32>
    %c3_80 = arith.constant 3 : index
    %c0_81 = arith.constant 0 : index
    %194 = vector.load %arg4[%c3_80, %c0_81] : memref<9x128xf32, #tpu.memory_space<vmem>>, vector<1x128xf32>
    %195 = vector.broadcast %194 : vector<1x128xf32> to vector<144x128xf32>
    %196 = arith.mulf %193, %195 : vector<144x128xf32>
    %197 = arith.addf %191, %196 : vector<144x128xf32>
    %198 = vector.extract_strided_slice %4 {offsets = [324, 0], sizes = [144, 128], strides = [1, 1]} : vector<576x128xbf16> to vector<144x128xbf16>
    %199 = arith.extf %198 : vector<144x128xbf16> to vector<144x128xf32>
    %c4_82 = arith.constant 4 : index
    %c0_83 = arith.constant 0 : index
    %200 = vector.load %arg4[%c4_82, %c0_83] : memref<9x128xf32, #tpu.memory_space<vmem>>, vector<1x128xf32>
    %201 = vector.broadcast %200 : vector<1x128xf32> to vector<144x128xf32>
    %202 = arith.mulf %199, %201 : vector<144x128xf32>
    %203 = arith.addf %197, %202 : vector<144x128xf32>
    %204 = vector.extract_strided_slice %4 {offsets = [325, 0], sizes = [144, 128], strides = [1, 1]} : vector<576x128xbf16> to vector<144x128xbf16>
    %205 = arith.extf %204 : vector<144x128xbf16> to vector<144x128xf32>
    %c5_84 = arith.constant 5 : index
    %c0_85 = arith.constant 0 : index
    %206 = vector.load %arg4[%c5_84, %c0_85] : memref<9x128xf32, #tpu.memory_space<vmem>>, vector<1x128xf32>
    %207 = vector.broadcast %206 : vector<1x128xf32> to vector<144x128xf32>
    %208 = arith.mulf %205, %207 : vector<144x128xf32>
    %209 = arith.addf %203, %208 : vector<144x128xf32>
    %210 = vector.extract_strided_slice %4 {offsets = [341, 0], sizes = [144, 128], strides = [1, 1]} : vector<576x128xbf16> to vector<144x128xbf16>
    %211 = arith.extf %210 : vector<144x128xbf16> to vector<144x128xf32>
    %c6_86 = arith.constant 6 : index
    %c0_87 = arith.constant 0 : index
    %212 = vector.load %arg4[%c6_86, %c0_87] : memref<9x128xf32, #tpu.memory_space<vmem>>, vector<1x128xf32>
    %213 = vector.broadcast %212 : vector<1x128xf32> to vector<144x128xf32>
    %214 = arith.mulf %211, %213 : vector<144x128xf32>
    %215 = arith.addf %209, %214 : vector<144x128xf32>
    %216 = vector.extract_strided_slice %4 {offsets = [342, 0], sizes = [144, 128], strides = [1, 1]} : vector<576x128xbf16> to vector<144x128xbf16>
    %217 = arith.extf %216 : vector<144x128xbf16> to vector<144x128xf32>
    %c7_88 = arith.constant 7 : index
    %c0_89 = arith.constant 0 : index
    %218 = vector.load %arg4[%c7_88, %c0_89] : memref<9x128xf32, #tpu.memory_space<vmem>>, vector<1x128xf32>
    %219 = vector.broadcast %218 : vector<1x128xf32> to vector<144x128xf32>
    %220 = arith.mulf %217, %219 : vector<144x128xf32>
    %221 = arith.addf %215, %220 : vector<144x128xf32>
    %222 = vector.extract_strided_slice %4 {offsets = [343, 0], sizes = [144, 128], strides = [1, 1]} : vector<576x128xbf16> to vector<144x128xbf16>
    %223 = arith.extf %222 : vector<144x128xbf16> to vector<144x128xf32>
    %c8_90 = arith.constant 8 : index
    %c0_91 = arith.constant 0 : index
    %224 = vector.load %arg4[%c8_90, %c0_91] : memref<9x128xf32, #tpu.memory_space<vmem>>, vector<1x128xf32>
    %225 = vector.broadcast %224 : vector<1x128xf32> to vector<144x128xf32>
    %226 = arith.mulf %223, %225 : vector<144x128xf32>
    %227 = arith.addf %221, %226 : vector<144x128xf32>
    %c0_92 = arith.constant 0 : index
    %c0_93 = arith.constant 0 : index
    %228 = vector.load %arg5[%c0_92, %c0_93] : memref<1x128xf32, #tpu.memory_space<vmem>>, vector<1x128xf32>
    %229 = vector.broadcast %228 : vector<1x128xf32> to vector<144x128xf32>
    %230 = arith.addf %227, %229 : vector<144x128xf32>
    %cst_94 = arith.constant 0.000000e+00 : f32
    %231 = vector.broadcast %cst_94 : f32 to vector<144x128xf32>
    %232 = arith.maximumf %230, %231 : vector<144x128xf32>
    %c0_95 = arith.constant 0 : index
    %c0_96 = arith.constant 0 : index
    %233 = vector.load %arg6[%c0_95, %c0_96] : memref<1x128xf32, #tpu.memory_space<vmem>>, vector<1x128xf32>
    %234 = vector.broadcast %233 : vector<1x128xf32> to vector<144x128xf32>
    %235 = arith.mulf %232, %234 : vector<144x128xf32>
    %c0_97 = arith.constant 0 : index
    %c0_98 = arith.constant 0 : index
    %236 = vector.load %arg7[%c0_97, %c0_98] : memref<1x128xf32, #tpu.memory_space<vmem>>, vector<1x128xf32>
    %237 = vector.broadcast %236 : vector<1x128xf32> to vector<144x128xf32>
    %238 = arith.addf %235, %237 : vector<144x128xf32>
    %239 = arith.truncf %238 : vector<144x128xf32> to vector<144x128xbf16>
    %c0_99 = arith.constant 0 : index
    %c0_100 = arith.constant 0 : index
    %240 = vector.load %arg8[%c0_99, %c0_100] : memref<128x128xbf16, #tpu.memory_space<vmem>>, vector<128x128xbf16>
    %cst_101 = arith.constant dense<0.000000e+00> : vector<144x128xf32>
    %241 = tpu.matmul %239, %240, %cst_101 {dimension_numbers = #tpu.dot_dimension_numbers<[1], [0], [0], [1], [0, 0, 1, 1], [], []>} : vector<144x128xbf16>, vector<128x128xbf16>, vector<144x128xf32> -> vector<144x128xf32>
    %c0_102 = arith.constant 0 : index
    %c0_103 = arith.constant 0 : index
    %242 = vector.load %arg9[%c0_102, %c0_103] : memref<1x128xf32, #tpu.memory_space<vmem>>, vector<1x128xf32>
    %243 = vector.broadcast %242 : vector<1x128xf32> to vector<144x128xf32>
    %244 = arith.addf %241, %243 : vector<144x128xf32>
    %cst_104 = arith.constant 0.000000e+00 : f32
    %245 = vector.broadcast %cst_104 : f32 to vector<144x128xf32>
    %246 = arith.maximumf %244, %245 : vector<144x128xf32>
    %c0_105 = arith.constant 0 : index
    %c0_106 = arith.constant 0 : index
    %247 = vector.load %arg10[%c0_105, %c0_106] : memref<1x128xf32, #tpu.memory_space<vmem>>, vector<1x128xf32>
    %248 = vector.broadcast %247 : vector<1x128xf32> to vector<144x128xf32>
    %249 = arith.mulf %246, %248 : vector<144x128xf32>
    %c0_107 = arith.constant 0 : index
    %c0_108 = arith.constant 0 : index
    %250 = vector.load %arg11[%c0_107, %c0_108] : memref<1x128xf32, #tpu.memory_space<vmem>>, vector<1x128xf32>
    %251 = vector.broadcast %250 : vector<1x128xf32> to vector<144x128xf32>
    %252 = arith.addf %249, %251 : vector<144x128xf32>
    %253 = arith.truncf %252 : vector<144x128xf32> to vector<144x128xbf16>
    %c0_109 = arith.constant 0 : index
    %c288 = arith.constant 288 : index
    %c0_110 = arith.constant 0 : index
    %254 = vector.load %arg12[%c0_109, %c288, %c0_110] : memref<1x432x128xbf16, #tpu.memory_space<vmem>>, vector<1x144x128xbf16>
    %255 = vector.shape_cast %254 : vector<1x144x128xbf16> to vector<144x128xbf16>
    %256 = vector.shape_cast %253 : vector<144x128xbf16> to vector<1x144x128xbf16>
    tpu.vector_store %arg12[%c0_109, %c288, %c0_110], %256 {strides = array<i32>} : memref<1x432x128xbf16, #tpu.memory_space<vmem>>, vector<1x144x128xbf16>,
    return
  }
  func.func @transform_0(%arg0: i32, %arg1: i32) -> (i32, i32, i32) {
    %c0_i32 = arith.constant 0 : i32
    %c0_i32_0 = arith.constant 0 : i32
    return %arg0, %arg1, %c0_i32 : i32, i32, i32
  }
  func.func @transform_1(%arg0: i32, %arg1: i32) -> (i32, i32, i32) {
    %c1_i32 = arith.constant 1 : i32
    %0 = arith.addi %arg1, %c1_i32 : i32
    %c3_i32 = arith.constant 3 : i32
    %1 = arith.muli %0, %c3_i32 : i32
    %c0_i32 = arith.constant 0 : i32
    %c0_i32_0 = arith.constant 0 : i32
    return %arg0, %1, %c0_i32 : i32, i32, i32
  }
  func.func @transform_2(%arg0: i32, %arg1: i32) -> (i32, i32) {
    %c0_i32 = arith.constant 0 : i32
    %c0_i32_0 = arith.constant 0 : i32
    %c0_i32_1 = arith.constant 0 : i32
    return %c0_i32, %c0_i32_0 : i32, i32
  }
  func.func @transform_3(%arg0: i32, %arg1: i32) -> (i32, i32) {
    %c0_i32 = arith.constant 0 : i32
    %c0_i32_0 = arith.constant 0 : i32
    %c0_i32_1 = arith.constant 0 : i32
    return %c0_i32, %c0_i32_0 : i32, i32
  }
  func.func @transform_4(%arg0: i32, %arg1: i32) -> (i32, i32) {
    %c0_i32 = arith.constant 0 : i32
    %c0_i32_0 = arith.constant 0 : i32
    %c0_i32_1 = arith.constant 0 : i32
    return %c0_i32, %c0_i32_0 : i32, i32
  }
  func.func @transform_5(%arg0: i32, %arg1: i32) -> (i32, i32) {
    %c0_i32 = arith.constant 0 : i32
    %c0_i32_0 = arith.constant 0 : i32
    %c0_i32_1 = arith.constant 0 : i32
    return %c0_i32, %c0_i32_0 : i32, i32
  }
  func.func @transform_6(%arg0: i32, %arg1: i32) -> (i32, i32) {
    %c0_i32 = arith.constant 0 : i32
    %c0_i32_0 = arith.constant 0 : i32
    %c0_i32_1 = arith.constant 0 : i32
    return %c0_i32, %c0_i32_0 : i32, i32
  }
  func.func @transform_7(%arg0: i32, %arg1: i32) -> (i32, i32) {
    %c0_i32 = arith.constant 0 : i32
    %c0_i32_0 = arith.constant 0 : i32
    %c0_i32_1 = arith.constant 0 : i32
    return %c0_i32, %c0_i32_0 : i32, i32
  }
  func.func @transform_8(%arg0: i32, %arg1: i32) -> (i32, i32) {
    %c0_i32 = arith.constant 0 : i32
    %c0_i32_0 = arith.constant 0 : i32
    %c0_i32_1 = arith.constant 0 : i32
    return %c0_i32, %c0_i32_0 : i32, i32
  }
  func.func @transform_9(%arg0: i32, %arg1: i32) -> (i32, i32) {
    %c0_i32 = arith.constant 0 : i32
    %c0_i32_0 = arith.constant 0 : i32
    %c0_i32_1 = arith.constant 0 : i32
    return %c0_i32, %c0_i32_0 : i32, i32
  }
  func.func @transform_10(%arg0: i32, %arg1: i32) -> (i32, i32, i32) {
    %c0_i32 = arith.constant 0 : i32
    %c0_i32_0 = arith.constant 0 : i32
    return %arg0, %arg1, %c0_i32 : i32, i32, i32
  }
}

module attributes {stable_mosaic.version = 11 : i64} {
  func.func @_fused_stage_kernel(%arg0: i32, %arg1: i32, %arg2: memref<1x160x128xbf16, #tpu.memory_space<vmem>>, %arg3: memref<1x80x128xbf16, #tpu.memory_space<vmem>>, %arg4: memref<9x128x128xbf16, #tpu.memory_space<vmem>>, %arg5: memref<1x128xf32, #tpu.memory_space<vmem>>, %arg6: memref<1x128xf32, #tpu.memory_space<vmem>>, %arg7: memref<1x128xf32, #tpu.memory_space<vmem>>, %arg8: memref<128x128xbf16, #tpu.memory_space<vmem>>, %arg9: memref<1x128xf32, #tpu.memory_space<vmem>>, %arg10: memref<1x128xf32, #tpu.memory_space<vmem>>, %arg11: memref<1x128xf32, #tpu.memory_space<vmem>>, %arg12: memref<1x160x128xbf16, #tpu.memory_space<vmem>>) attributes {dimension_semantics = [#tpu.dimension_semantics<parallel>, #tpu.dimension_semantics<parallel>], iteration_bounds = array<i64: 2, 1>, scalar_prefetch = 0 : i64, scratch_operands = 0 : i64, tpu.core_type = #tpu.core_type<tc>, window_params = [{transform_indices = @transform_0, window_bounds = array<i64: 1, 160, 128>}, {transform_indices = @transform_1, window_bounds = array<i64: 1, 80, 128>}, {pipeline_mode = #tpu.pipeline_mode<synchronous>, transform_indices = @transform_2, window_bounds = array<i64: 9, 128, 128>}, {pipeline_mode = #tpu.pipeline_mode<synchronous>, transform_indices = @transform_3, window_bounds = array<i64: 1, 128>}, {pipeline_mode = #tpu.pipeline_mode<synchronous>, transform_indices = @transform_4, window_bounds = array<i64: 1, 128>}, {pipeline_mode = #tpu.pipeline_mode<synchronous>, transform_indices = @transform_5, window_bounds = array<i64: 1, 128>}, {pipeline_mode = #tpu.pipeline_mode<synchronous>, transform_indices = @transform_6, window_bounds = array<i64: 128, 128>}, {pipeline_mode = #tpu.pipeline_mode<synchronous>, transform_indices = @transform_7, window_bounds = array<i64: 1, 128>}, {pipeline_mode = #tpu.pipeline_mode<synchronous>, transform_indices = @transform_8, window_bounds = array<i64: 1, 128>}, {pipeline_mode = #tpu.pipeline_mode<synchronous>, transform_indices = @transform_9, window_bounds = array<i64: 1, 128>}, {transform_indices = @transform_10, window_bounds = array<i64: 1, 160, 128>}]} {
    %c0 = arith.constant 0 : index
    %c0_0 = arith.constant 0 : index
    %c0_1 = arith.constant 0 : index
    %0 = vector.load %arg2[%c0, %c0_0, %c0_1] : memref<1x160x128xbf16, #tpu.memory_space<vmem>>, vector<1x160x128xbf16>
    %1 = vector.shape_cast %0 : vector<1x160x128xbf16> to vector<160x128xbf16>
    %c0_2 = arith.constant 0 : index
    %c0_3 = arith.constant 0 : index
    %c0_4 = arith.constant 0 : index
    %2 = vector.load %arg3[%c0_2, %c0_3, %c0_4] : memref<1x80x128xbf16, #tpu.memory_space<vmem>>, vector<1x80x128xbf16>
    %3 = vector.shape_cast %2 : vector<1x80x128xbf16> to vector<80x128xbf16>
    %4 = tpu.concatenate %1, %3 in 0 : vector<160x128xbf16>, vector<80x128xbf16> -> vector<240x128xbf16>
    %cst = arith.constant 0.000000e+00 : f32
    %5 = vector.broadcast %cst : f32 to vector<160x128xf32>
    %6 = vector.extract_strided_slice %4 {offsets = [9, 0], sizes = [160, 128], strides = [1, 1]} : vector<240x128xbf16> to vector<160x128xbf16>
    %c0_5 = arith.constant 0 : index
    %c0_6 = arith.constant 0 : index
    %c0_7 = arith.constant 0 : index
    %7 = vector.load %arg4[%c0_5, %c0_6, %c0_7] : memref<9x128x128xbf16, #tpu.memory_space<vmem>>, vector<1x128x128xbf16>
    %8 = vector.shape_cast %7 : vector<1x128x128xbf16> to vector<128x128xbf16>
    %cst_8 = arith.constant dense<0.000000e+00> : vector<160x128xf32>
    %9 = tpu.matmul %6, %8, %cst_8 {dimension_numbers = #tpu.dot_dimension_numbers<[1], [0], [0], [1], [0, 0, 1, 1], [], []>} : vector<160x128xbf16>, vector<128x128xbf16>, vector<160x128xf32> -> vector<160x128xf32>
    %10 = arith.addf %5, %9 : vector<160x128xf32>
    %11 = vector.extract_strided_slice %4 {offsets = [10, 0], sizes = [160, 128], strides = [1, 1]} : vector<240x128xbf16> to vector<160x128xbf16>
    %c1 = arith.constant 1 : index
    %c0_9 = arith.constant 0 : index
    %c0_10 = arith.constant 0 : index
    %12 = vector.load %arg4[%c1, %c0_9, %c0_10] : memref<9x128x128xbf16, #tpu.memory_space<vmem>>, vector<1x128x128xbf16>
    %13 = vector.shape_cast %12 : vector<1x128x128xbf16> to vector<128x128xbf16>
    %cst_11 = arith.constant dense<0.000000e+00> : vector<160x128xf32>
    %14 = tpu.matmul %11, %13, %cst_11 {dimension_numbers = #tpu.dot_dimension_numbers<[1], [0], [0], [1], [0, 0, 1, 1], [], []>} : vector<160x128xbf16>, vector<128x128xbf16>, vector<160x128xf32> -> vector<160x128xf32>
    %15 = arith.addf %10, %14 : vector<160x128xf32>
    %16 = vector.extract_strided_slice %4 {offsets = [11, 0], sizes = [160, 128], strides = [1, 1]} : vector<240x128xbf16> to vector<160x128xbf16>
    %c2 = arith.constant 2 : index
    %c0_12 = arith.constant 0 : index
    %c0_13 = arith.constant 0 : index
    %17 = vector.load %arg4[%c2, %c0_12, %c0_13] : memref<9x128x128xbf16, #tpu.memory_space<vmem>>, vector<1x128x128xbf16>
    %18 = vector.shape_cast %17 : vector<1x128x128xbf16> to vector<128x128xbf16>
    %cst_14 = arith.constant dense<0.000000e+00> : vector<160x128xf32>
    %19 = tpu.matmul %16, %18, %cst_14 {dimension_numbers = #tpu.dot_dimension_numbers<[1], [0], [0], [1], [0, 0, 1, 1], [], []>} : vector<160x128xbf16>, vector<128x128xbf16>, vector<160x128xf32> -> vector<160x128xf32>
    %20 = arith.addf %15, %19 : vector<160x128xf32>
    %21 = vector.extract_strided_slice %4 {offsets = [19, 0], sizes = [160, 128], strides = [1, 1]} : vector<240x128xbf16> to vector<160x128xbf16>
    %c3 = arith.constant 3 : index
    %c0_15 = arith.constant 0 : index
    %c0_16 = arith.constant 0 : index
    %22 = vector.load %arg4[%c3, %c0_15, %c0_16] : memref<9x128x128xbf16, #tpu.memory_space<vmem>>, vector<1x128x128xbf16>
    %23 = vector.shape_cast %22 : vector<1x128x128xbf16> to vector<128x128xbf16>
    %cst_17 = arith.constant dense<0.000000e+00> : vector<160x128xf32>
    %24 = tpu.matmul %21, %23, %cst_17 {dimension_numbers = #tpu.dot_dimension_numbers<[1], [0], [0], [1], [0, 0, 1, 1], [], []>} : vector<160x128xbf16>, vector<128x128xbf16>, vector<160x128xf32> -> vector<160x128xf32>
    %25 = arith.addf %20, %24 : vector<160x128xf32>
    %26 = vector.extract_strided_slice %4 {offsets = [20, 0], sizes = [160, 128], strides = [1, 1]} : vector<240x128xbf16> to vector<160x128xbf16>
    %c4 = arith.constant 4 : index
    %c0_18 = arith.constant 0 : index
    %c0_19 = arith.constant 0 : index
    %27 = vector.load %arg4[%c4, %c0_18, %c0_19] : memref<9x128x128xbf16, #tpu.memory_space<vmem>>, vector<1x128x128xbf16>
    %28 = vector.shape_cast %27 : vector<1x128x128xbf16> to vector<128x128xbf16>
    %cst_20 = arith.constant dense<0.000000e+00> : vector<160x128xf32>
    %29 = tpu.matmul %26, %28, %cst_20 {dimension_numbers = #tpu.dot_dimension_numbers<[1], [0], [0], [1], [0, 0, 1, 1], [], []>} : vector<160x128xbf16>, vector<128x128xbf16>, vector<160x128xf32> -> vector<160x128xf32>
    %30 = arith.addf %25, %29 : vector<160x128xf32>
    %31 = vector.extract_strided_slice %4 {offsets = [21, 0], sizes = [160, 128], strides = [1, 1]} : vector<240x128xbf16> to vector<160x128xbf16>
    %c5 = arith.constant 5 : index
    %c0_21 = arith.constant 0 : index
    %c0_22 = arith.constant 0 : index
    %32 = vector.load %arg4[%c5, %c0_21, %c0_22] : memref<9x128x128xbf16, #tpu.memory_space<vmem>>, vector<1x128x128xbf16>
    %33 = vector.shape_cast %32 : vector<1x128x128xbf16> to vector<128x128xbf16>
    %cst_23 = arith.constant dense<0.000000e+00> : vector<160x128xf32>
    %34 = tpu.matmul %31, %33, %cst_23 {dimension_numbers = #tpu.dot_dimension_numbers<[1], [0], [0], [1], [0, 0, 1, 1], [], []>} : vector<160x128xbf16>, vector<128x128xbf16>, vector<160x128xf32> -> vector<160x128xf32>
    %35 = arith.addf %30, %34 : vector<160x128xf32>
    %36 = vector.extract_strided_slice %4 {offsets = [29, 0], sizes = [160, 128], strides = [1, 1]} : vector<240x128xbf16> to vector<160x128xbf16>
    %c6 = arith.constant 6 : index
    %c0_24 = arith.constant 0 : index
    %c0_25 = arith.constant 0 : index
    %37 = vector.load %arg4[%c6, %c0_24, %c0_25] : memref<9x128x128xbf16, #tpu.memory_space<vmem>>, vector<1x128x128xbf16>
    %38 = vector.shape_cast %37 : vector<1x128x128xbf16> to vector<128x128xbf16>
    %cst_26 = arith.constant dense<0.000000e+00> : vector<160x128xf32>
    %39 = tpu.matmul %36, %38, %cst_26 {dimension_numbers = #tpu.dot_dimension_numbers<[1], [0], [0], [1], [0, 0, 1, 1], [], []>} : vector<160x128xbf16>, vector<128x128xbf16>, vector<160x128xf32> -> vector<160x128xf32>
    %40 = arith.addf %35, %39 : vector<160x128xf32>
    %41 = vector.extract_strided_slice %4 {offsets = [30, 0], sizes = [160, 128], strides = [1, 1]} : vector<240x128xbf16> to vector<160x128xbf16>
    %c7 = arith.constant 7 : index
    %c0_27 = arith.constant 0 : index
    %c0_28 = arith.constant 0 : index
    %42 = vector.load %arg4[%c7, %c0_27, %c0_28] : memref<9x128x128xbf16, #tpu.memory_space<vmem>>, vector<1x128x128xbf16>
    %43 = vector.shape_cast %42 : vector<1x128x128xbf16> to vector<128x128xbf16>
    %cst_29 = arith.constant dense<0.000000e+00> : vector<160x128xf32>
    %44 = tpu.matmul %41, %43, %cst_29 {dimension_numbers = #tpu.dot_dimension_numbers<[1], [0], [0], [1], [0, 0, 1, 1], [], []>} : vector<160x128xbf16>, vector<128x128xbf16>, vector<160x128xf32> -> vector<160x128xf32>
    %45 = arith.addf %40, %44 : vector<160x128xf32>
    %46 = vector.extract_strided_slice %4 {offsets = [31, 0], sizes = [160, 128], strides = [1, 1]} : vector<240x128xbf16> to vector<160x128xbf16>
    %c8 = arith.constant 8 : index
    %c0_30 = arith.constant 0 : index
    %c0_31 = arith.constant 0 : index
    %47 = vector.load %arg4[%c8, %c0_30, %c0_31] : memref<9x128x128xbf16, #tpu.memory_space<vmem>>, vector<1x128x128xbf16>
    %48 = vector.shape_cast %47 : vector<1x128x128xbf16> to vector<128x128xbf16>
    %cst_32 = arith.constant dense<0.000000e+00> : vector<160x128xf32>
    %49 = tpu.matmul %46, %48, %cst_32 {dimension_numbers = #tpu.dot_dimension_numbers<[1], [0], [0], [1], [0, 0, 1, 1], [], []>} : vector<160x128xbf16>, vector<128x128xbf16>, vector<160x128xf32> -> vector<160x128xf32>
    %50 = arith.addf %45, %49 : vector<160x128xf32>
    %c0_33 = arith.constant 0 : index
    %c0_34 = arith.constant 0 : index
    %51 = vector.load %arg5[%c0_33, %c0_34] : memref<1x128xf32, #tpu.memory_space<vmem>>, vector<1x128xf32>
    %52 = vector.broadcast %51 : vector<1x128xf32> to vector<160x128xf32>
    %53 = arith.addf %50, %52 : vector<160x128xf32>
    %cst_35 = arith.constant 0.000000e+00 : f32
    %54 = vector.broadcast %cst_35 : f32 to vector<160x128xf32>
    %55 = arith.maximumf %53, %54 : vector<160x128xf32>
    %c0_36 = arith.constant 0 : index
    %c0_37 = arith.constant 0 : index
    %56 = vector.load %arg6[%c0_36, %c0_37] : memref<1x128xf32, #tpu.memory_space<vmem>>, vector<1x128xf32>
    %57 = vector.broadcast %56 : vector<1x128xf32> to vector<160x128xf32>
    %58 = arith.mulf %55, %57 : vector<160x128xf32>
    %c0_38 = arith.constant 0 : index
    %c0_39 = arith.constant 0 : index
    %59 = vector.load %arg7[%c0_38, %c0_39] : memref<1x128xf32, #tpu.memory_space<vmem>>, vector<1x128xf32>
    %60 = vector.broadcast %59 : vector<1x128xf32> to vector<160x128xf32>
    %61 = arith.addf %58, %60 : vector<160x128xf32>
    %62 = arith.truncf %61 : vector<160x128xf32> to vector<160x128xbf16>
    %c0_40 = arith.constant 0 : index
    %c0_41 = arith.constant 0 : index
    %63 = vector.load %arg8[%c0_40, %c0_41] : memref<128x128xbf16, #tpu.memory_space<vmem>>, vector<128x128xbf16>
    %cst_42 = arith.constant dense<0.000000e+00> : vector<160x128xf32>
    %64 = tpu.matmul %62, %63, %cst_42 {dimension_numbers = #tpu.dot_dimension_numbers<[1], [0], [0], [1], [0, 0, 1, 1], [], []>} : vector<160x128xbf16>, vector<128x128xbf16>, vector<160x128xf32> -> vector<160x128xf32>
    %c0_43 = arith.constant 0 : index
    %c0_44 = arith.constant 0 : index
    %65 = vector.load %arg9[%c0_43, %c0_44] : memref<1x128xf32, #tpu.memory_space<vmem>>, vector<1x128xf32>
    %66 = vector.broadcast %65 : vector<1x128xf32> to vector<160x128xf32>
    %67 = arith.addf %64, %66 : vector<160x128xf32>
    %cst_45 = arith.constant 0.000000e+00 : f32
    %68 = vector.broadcast %cst_45 : f32 to vector<160x128xf32>
    %69 = arith.maximumf %67, %68 : vector<160x128xf32>
    %c0_46 = arith.constant 0 : index
    %c0_47 = arith.constant 0 : index
    %70 = vector.load %arg10[%c0_46, %c0_47] : memref<1x128xf32, #tpu.memory_space<vmem>>, vector<1x128xf32>
    %71 = vector.broadcast %70 : vector<1x128xf32> to vector<160x128xf32>
    %72 = arith.mulf %69, %71 : vector<160x128xf32>
    %c0_48 = arith.constant 0 : index
    %c0_49 = arith.constant 0 : index
    %73 = vector.load %arg11[%c0_48, %c0_49] : memref<1x128xf32, #tpu.memory_space<vmem>>, vector<1x128xf32>
    %74 = vector.broadcast %73 : vector<1x128xf32> to vector<160x128xf32>
    %75 = arith.addf %72, %74 : vector<160x128xf32>
    %76 = arith.truncf %75 : vector<160x128xf32> to vector<160x128xbf16>
    %c0_50 = arith.constant 0 : index
    %c0_51 = arith.constant 0 : index
    %c0_52 = arith.constant 0 : index
    %77 = vector.load %arg12[%c0_50, %c0_51, %c0_52] : memref<1x160x128xbf16, #tpu.memory_space<vmem>>, vector<1x160x128xbf16>
    %78 = vector.shape_cast %77 : vector<1x160x128xbf16> to vector<160x128xbf16>
    %79 = vector.shape_cast %76 : vector<160x128xbf16> to vector<1x160x128xbf16>
    tpu.vector_store %arg12[%c0_50, %c0_51, %c0_52], %79 {strides = array<i32>} : memref<1x160x128xbf16, #tpu.memory_space<vmem>>, vector<1x160x128xbf16>,
    return
  }
  func.func @transform_0(%arg0: i32, %arg1: i32) -> (i32, i32, i32) {
    %c0_i32 = arith.constant 0 : i32
    %c0_i32_0 = arith.constant 0 : i32
    return %arg0, %arg1, %c0_i32 : i32, i32, i32
  }
  func.func @transform_1(%arg0: i32, %arg1: i32) -> (i32, i32, i32) {
    %c1_i32 = arith.constant 1 : i32
    %0 = arith.addi %arg1, %c1_i32 : i32
    %c2_i32 = arith.constant 2 : i32
    %1 = arith.muli %0, %c2_i32 : i32
    %c0_i32 = arith.constant 0 : i32
    %c0_i32_0 = arith.constant 0 : i32
    return %arg0, %1, %c0_i32 : i32, i32, i32
  }
  func.func @transform_2(%arg0: i32, %arg1: i32) -> (i32, i32, i32) {
    %c0_i32 = arith.constant 0 : i32
    %c0_i32_0 = arith.constant 0 : i32
    %c0_i32_1 = arith.constant 0 : i32
    %c0_i32_2 = arith.constant 0 : i32
    return %c0_i32, %c0_i32_0, %c0_i32_1 : i32, i32, i32
  }
  func.func @transform_3(%arg0: i32, %arg1: i32) -> (i32, i32) {
    %c0_i32 = arith.constant 0 : i32
    %c0_i32_0 = arith.constant 0 : i32
    %c0_i32_1 = arith.constant 0 : i32
    return %c0_i32, %c0_i32_0 : i32, i32
  }
  func.func @transform_4(%arg0: i32, %arg1: i32) -> (i32, i32) {
    %c0_i32 = arith.constant 0 : i32
    %c0_i32_0 = arith.constant 0 : i32
    %c0_i32_1 = arith.constant 0 : i32
    return %c0_i32, %c0_i32_0 : i32, i32
  }
  func.func @transform_5(%arg0: i32, %arg1: i32) -> (i32, i32) {
    %c0_i32 = arith.constant 0 : i32
    %c0_i32_0 = arith.constant 0 : i32
    %c0_i32_1 = arith.constant 0 : i32
    return %c0_i32, %c0_i32_0 : i32, i32
  }
  func.func @transform_6(%arg0: i32, %arg1: i32) -> (i32, i32) {
    %c0_i32 = arith.constant 0 : i32
    %c0_i32_0 = arith.constant 0 : i32
    %c0_i32_1 = arith.constant 0 : i32
    return %c0_i32, %c0_i32_0 : i32, i32
  }
  func.func @transform_7(%arg0: i32, %arg1: i32) -> (i32, i32) {
    %c0_i32 = arith.constant 0 : i32
    %c0_i32_0 = arith.constant 0 : i32
    %c0_i32_1 = arith.constant 0 : i32
    return %c0_i32, %c0_i32_0 : i32, i32
  }
  func.func @transform_8(%arg0: i32, %arg1: i32) -> (i32, i32) {
    %c0_i32 = arith.constant 0 : i32
    %c0_i32_0 = arith.constant 0 : i32
    %c0_i32_1 = arith.constant 0 : i32
    return %c0_i32, %c0_i32_0 : i32, i32
  }
  func.func @transform_9(%arg0: i32, %arg1: i32) -> (i32, i32) {
    %c0_i32 = arith.constant 0 : i32
    %c0_i32_0 = arith.constant 0 : i32
    %c0_i32_1 = arith.constant 0 : i32
    return %c0_i32, %c0_i32_0 : i32, i32
  }
  func.func @transform_10(%arg0: i32, %arg1: i32) -> (i32, i32, i32) {
    %c0_i32 = arith.constant 0 : i32
    %c0_i32_0 = arith.constant 0 : i32
    return %arg0, %arg1, %c0_i32 : i32, i32, i32
  }
}

</mosaic_0001>

<bundles_post_ra>
// kernel: parallel_conv_forward.2
= control target key start
LH: loop header
LB: loop body
LE: loop exit
PB: predicated region body
PF: predicated region fallthrough
CT: control target
= control target key end

     0   :  { %s6225_s13 = smov 0   ;;  %s6227_s14 = smov 0   ;;  %s10386_s0 = inlined_call_operand.vmem [shape: bf16[2,576,128], index: 0, kind: input, shape index: {}, may-alias: {0,1}]   ;;  %s10387_s1 = inlined_call_operand.vmem [shape: bf16[2,576,128], index: 1, kind: input, shape index: {}, may-alias: {0,1}]   ;;  %s10388_s2 = inlined_call_operand.vmem [shape: f32[9,128], index: 2, kind: input, shape index: {}]   ;;  %s10389_s3 = inlined_call_operand.vmem [shape: f32[1,128], index: 3, kind: input, shape index: {}]   ;;  %s10390_s4 = inlined_call_operand.vmem [shape: f32[1,128], index: 4, kind: input, shape index: {}]   ;;  %s10391_s5 = inlined_call_operand.vmem [shape: f32[1,128], index: 5, kind: input, shape index: {}]   ;;  %s10392_s6 = inlined_call_operand.vmem [shape: bf16[128,128], index: 6, kind: input, shape index: {}]   ;;  %s10393_s7 = inlined_call_operand.vmem [shape: f32[1,128], index: 7, kind: input, shape index: {}]   ;;  %s10394_s8 = inlined_call_operand.vmem [shape: f32[1,128], index: 8, kind: input, shape index: {}]   ;;  %s10395_s9 = inlined_call_operand.vmem [shape: f32[1,128], index: 9, kind: input, shape index: {}]   ;;  %s10396_s10 = inlined_call_operand.vmem [shape: bf16[2,432,128], index: 10, kind: output, shape index: {}]  }
   0x1   :  { %s6229_s15 = smov 0  }
   0x2 LB: > { %s32_s16 = sadd.s32 1, %s6162_s14  ;;  %p5424_p0 = scmp.ge.s32.totalorder %s6166_s15, 1  ;;  %s6166_s15 = sphi %s6229_s15, %s20_s15   ;;  %s6162_s14 = sphi %s6227_s14, %s10892_s14   ;;  %s6158_s13 = sphi %s6225_s13, %s10891_s13  }
   0x3   : > { %p34_p1 = scmp.ge.s32.totalorder %s32_s16, 2  ;;  %p366_p2 = scmp.lt.s32.totalorder %s6166_s15, 3 }
   0x5   : > { %s10894_s16 = smov (%p34_p1, %s32_s16), 0  ;;  %p367_p3 = pnand %p5424_p0, %p366_p2 }
   0x7   : > { %370 = sbr.rel (%p367_p3) target bundleno = 867 (0x363), region = 60 }
   0xc   : > { %v6053_v0 = vld [vmem:[%s10392_s6 + $0x38] sm:$0xff]   ;;  %v10410_v1 = vmov 0.0   ;;  %v6054_v2 = vld [vmem:[%s10392_s6 + $0x30] sm:$0xff]   ;;  %p432_p4 = scmp.lt.s32.totalorder %s6158_s13, 1  ;;  %vm6169_vm0 = vmmov 0   ;;  %v6055_v3 = vld [vmem:[%s10392_s6 + $0x28] sm:$0xff]  }
   0xd   : > { %6007 = vmatprep.subr.bf16.mxu1 %v10410_v1  ;;  %5851 = vmatprep.subr.bf16.mxu0 %v10410_v1  ;;  %v6056_v4 = vld [vmem:[%s10392_s6 + $0x20] sm:$0xff]   ;;  %vm815_vm1 = vcmask 1046528   ;;  %v6057_v10 = vld [vmem:[%s10392_s6 + $0x18] sm:$0xff]   ;;  %vm934_vm2 = vcmask 1045504   ;;  %v6058_v29 = vld [vmem:[%s10392_s6 + $0x10] sm:$0xff]   ;;  %vm1173_vm3 = vcmask 1044480  }
   0xe   : > { %6015 = vmatpush3.bf16.msra.mxu1 %v6053_v0  ;;  %5852 = vmatpush3.bf16.msra.mxu0 %v6053_v0  ;;  %s10896_s13 = smov (!%p432_p4, %s6158_s13), 1  ;;  %v6284_v9 = vld [vmem:[%s10388_s2] ss:$0 sm:$0xff]  ;;  %v6303_v16 = vld [vmem:[%s10388_s2 + $0x1] ss:$0 sm:$0xff]  ;;  %v6059_v47 = vld [vmem:[%s10392_s6 + $0x8] sm:$0xff]  }
   0xf   : > { %6008 = vmatprep.subr.bf16.mxu1 %v10410_v1  ;;  %5853 = vmatprep.subr.bf16.mxu0 %v10410_v1  ;;  %s6023_s23 = smul.u32 288, %s10896_s13  ;;  %v6316_v20 = vld [vmem:[%s10388_s2 + $0x2] ss:$0 sm:$0xff]  ;;  %v6360_v38 = vld [vmem:[%s10388_s2 + $0x3] ss:$0 sm:$0xff]  ;;  %vm1292_vm4 = vcmask 1043456  }
  0x10   : > { %5883 = vmatprep.mubr.msk.bf16.mxu1 %vm6169_vm0, %v10410_v1  ;;  %5867 = vmatprep.mubr.msk.bf16.mxu0 %vm6169_vm0, %v10410_v1  ;;  %v6401_v0 = vld [vmem:[%s10388_s2 + $0x4] ss:$0 sm:$0xff]  ;;  %vm1531_vm5 = vcmask 1042432   ;;  %vm1650_vm6 = vcmask 1041408   ;;  %vm1856_vm7 = vsmask.f32 7424 }
  0x11   : > { %s6273_s28 = scalar_lea.vmem %s10386_s0, %s6023_s23  ;;  %s5584_s29 = sadd.s32 216, %s6023_s23 }
  0x12   : > { %6016 = vmatpush3.bf16.msra.mxu1 %v6054_v2  ;;  %5854 = vmatpush3.bf16.msra.mxu0 %v6054_v2  ;;  %v6061_v5 = vld [vmem:[%s6273_s28 + $0x28] sm:$0xff]   ;;  %v6062_v6 = vld [vmem:[%s6273_s28 + $0x30] sm:$0xff]   ;;  %v6063_v7 = vld [vmem:[%s6273_s28 + $0x38] sm:$0xff]   ;;  %s7966_s12 = scalar_lea.vmem %s10387_s1, %s5584_s29  ;;  %s6025_s27 = smul.u32 216, %s10896_s13 }
  0x13   : > { %6009 = vmatprep.subr.bf16.mxu1 %v10410_v1  ;;  %5855 = vmatprep.subr.bf16.mxu0 %v10410_v1  ;;  %v6064_v8 = vld [vmem:[%s6273_s28 + $0x40] sm:$0xff]   ;;  %v6290_v11 = vld [vmem:[%s6273_s28 + $0x48] sm:$0xff]   ;;  %v6292_v12 = vunpack.c.l.bf16 %v6061_v5  ;;  %v6294_v13 = vunpack.c.h.bf16 %v6061_v5  ;;  %v6296_v14 = vunpack.c.l.bf16 %v6062_v6  ;;  %v6298_v15 = vunpack.c.h.bf16 %v6062_v6 }
  0x14   : > { %v6307_v17 = vunpack.c.l.bf16 %v6063_v7  ;;  %v6309_v18 = vunpack.c.h.bf16 %v6063_v7  ;;  %v6311_v19 = vunpack.c.l.bf16 %v6064_v8  ;;  %v6318_v21 = vunpack.c.h.bf16 %v6064_v8  ;;  %v6060_v2 = vld [vmem:[%s10392_s6] sm:$0xff]   ;;  %s10136_s30 = scalar_lea.vmem %s10396_s10, %s6025_s27 }
  0x15   : > { %10603 = vst [vmem:[#allocation2_spill] sm:$0xff] %v6294_v13  ;;  %10604 = vst [vmem:[#allocation3_spill] sm:$0xff] %v6296_v14  ;;  %v742_v22 = vmul.f32 %v6284_v9, %v6292_v12  ;;  %v743_v23 = vmul.f32 %v6284_v9, %v6294_v13  ;;  %v744_v24 = vmul.f32 %v6284_v9, %v6296_v14  ;;  %v6340_v30 = vunpack.c.l.bf16 %v6290_v11 }
  0x16   : > { %6017 = vmatpush3.bf16.msra.mxu1 %v6055_v3  ;;  %5856 = vmatpush3.bf16.msra.mxu0 %v6055_v3  ;;  %10605 = vst [vmem:[#allocation4_spill] sm:$0xff] %v6298_v15  ;;  %v745_v25 = vmul.f32 %v6284_v9, %v6298_v15  ;;  %v6330_v26 = vmul.f32 %v6303_v16, %v6292_v12 }
  0x17   : > { %6010 = vmatprep.subr.bf16.mxu1 %v10410_v1  ;;  %5857 = vmatprep.subr.bf16.mxu0 %v10410_v1  ;;  %v786_v27 = vmul.f32 %v6303_v16, %v6294_v13  ;;  %v787_v28 = vmul.f32 %v6303_v16, %v6296_v14  ;;  %v788_v31 = vmul.f32 %v6303_v16, %v6298_v15 }
  0x18   : > { %10606 = vst [vmem:[#allocation5_spill] sm:$0xff] %v6330_v26  ;;  %v6346_v32 = vmul.f32 %v6303_v16, %v6307_v17  ;;  %v6350_v33 = vmul.f32 %v6316_v20, %v6292_v12  ;;  %v10402_v34 = vrot.slane %v6330_v26, 1  ;;  %v905_v37 = vmul.f32 %v6316_v20, %v6294_v13 }
  0x19   : > { %v833_v35 = vrot.slane %v786_v27, 1  ;;  %v835_v36 = vrot.slane %v787_v28, 1  ;;  %v837_v39 = vrot.slane %v788_v31, 1  ;;  %v906_v41 = vmul.f32 %v6316_v20, %v6296_v14  ;;  %v6428_v28 = vld [vmem:[%s10388_s2 + $0x5] ss:$0 sm:$0xff] }
  0x1a   : > { %6018 = vmatpush3.bf16.msra.mxu1 %v6056_v4  ;;  %5858 = vmatpush3.bf16.msra.mxu0 %v6056_v4  ;;  %10607 = vst [vmem:[#allocation6_spill] sm:$0xff] %v6350_v33  ;;  %v10409_v40 = vrot.slane %v6346_v32, 1  ;;  %v907_v42 = vmul.f32 %v6316_v20, %v6298_v15  ;;  %v6373_v45 = vmul.f32 %v6316_v20, %v6307_v17  ;;  %v10401_v46 = vrot.slane %v6350_v33, 2 }
  0x1b   : > { %6011 = vmatprep.subr.bf16.mxu1 %v10410_v1  ;;  %5859 = vmatprep.subr.bf16.mxu0 %v10410_v1  ;;  %v834_v43 = vsel %vm815_vm1, %v10402_v34, %v833_v35  ;;  %v836_v44 = vsel %vm815_vm1, %v833_v35, %v835_v36  ;;  %v838_v48 = vsel %vm815_vm1, %v835_v36, %v837_v39  ;;  %v952_v51 = vrot.slane %v905_v37, 2 }
  0x1c   : > { %v840_v49 = vsel %vm815_vm1, %v837_v39, %v10409_v40  ;;  %v880_v50 = vadd.f32 %v834_v43, %v742_v22  ;;  %v881_v52 = vadd.f32 %v836_v44, %v743_v23  ;;  %v882_v53 = vadd.f32 %v838_v48, %v744_v24 }
  0x1d   : > { %v883_v54 = vadd.f32 %v840_v49, %v745_v25  ;;  %v954_v55 = vrot.slane %v906_v41, 2  ;;  %v953_v56 = vsel %vm934_vm2, %v10401_v46, %v952_v51  ;;  %v956_v57 = vrot.slane %v907_v42, 2 }
  0x1e   : > { %6019 = vmatpush3.bf16.msra.mxu1 %v6057_v10  ;;  %5860 = vmatpush3.bf16.msra.mxu0 %v6057_v10  ;;  %v10408_v58 = vrot.slane %v6373_v45, 2  ;;  %v6391_v59 = vmul.f32 %v6360_v38, %v6296_v14  ;;  %v999_v61 = vadd.f32 %v953_v56, %v880_v50  ;;  %v1026_v62 = vmul.f32 %v6360_v38, %v6298_v15 }
  0x1f   : > { %6012 = vmatprep.subr.bf16.mxu1 %v10410_v1  ;;  %5861 = vmatprep.subr.bf16.mxu0 %v10410_v1  ;;  %v955_v60 = vsel %vm934_vm2, %v952_v51, %v954_v55  ;;  %v1027_v63 = vmul.f32 %v6360_v38, %v6307_v17  ;;  %v957_v3 = vsel %vm934_vm2, %v954_v55, %v956_v57  ;;  %v10615_v13 = vmov 0.0  }
  0x20   : > { %10608 = vst [vmem:[#allocation7_spill] sm:$0xff] %v6391_v59  ;;  %v959_v4 = vsel %vm934_vm2, %v956_v57, %v10408_v58  ;;  %v1000_v5 = vadd.f32 %v955_v60, %v881_v52  ;;  %v10400_v6 = vrot.slane %v6391_v59, 2  ;;  %v1001_v7 = vadd.f32 %v957_v3, %v882_v53  ;;  %v6453_v53 = vld [vmem:[%s10388_s2 + $0x6] ss:$0 sm:$0xff] }
  0x21   : > { %v1002_v8 = vadd.f32 %v959_v4, %v883_v54  ;;  %v1028_v10 = vmul.f32 %v6360_v38, %v6309_v18  ;;  %v1072_v22 = vrot.slane %v1026_v62, 2  ;;  %v6417_v23 = vmul.f32 %v6360_v38, %v6311_v19 }
  0x22   : > { %6020 = vmatpush3.bf16.msra.mxu1 %v6058_v29  ;;  %5862 = vmatpush3.bf16.msra.mxu0 %v6058_v29  ;;  %v1074_v24 = vrot.slane %v1027_v63, 2  ;;  %v6421_v25 = vmul.f32 %v6401_v0, %v6296_v14  ;;  %v1144_v27 = vmul.f32 %v6401_v0, %v6298_v15  ;;  %v1145_v35 = vmul.f32 %v6401_v0, %v6307_v17 }
  0x23   : > { %6013 = vmatprep.subr.bf16.mxu1 %v10410_v1  ;;  %5863 = vmatprep.subr.bf16.mxu0 %v10410_v1  ;;  %v1073_v29 = vsel %vm934_vm2, %v10400_v6, %v1072_v22  ;;  %v1076_v31 = vrot.slane %v1028_v10, 2  ;;  %v1146_v36 = vmul.f32 %v6401_v0, %v6309_v18  ;;  %v10407_v39 = vrot.slane %v6417_v23, 2 }
  0x24   : > { %10609 = vst [vmem:[#allocation8_spill] sm:$0xff] %v6421_v25  ;;  %v1075_v37 = vsel %vm934_vm2, %v1072_v22, %v1074_v24  ;;  %v1119_v41 = vadd.f32 %v1073_v29, %v999_v61  ;;  %v6441_v42 = vmul.f32 %v6401_v0, %v6311_v19  ;;  %v1191_v48 = vrot.slane %v1144_v27, 3 }
  0x25   : > { %v1077_v43 = vsel %vm934_vm2, %v1074_v24, %v1076_v31  ;;  %v1120_v44 = vadd.f32 %v1075_v37, %v1000_v5  ;;  %v1079_v49 = vsel %vm934_vm2, %v1076_v31, %v10407_v39  ;;  %v1193_v51 = vrot.slane %v1145_v35, 3  ;;  %v6488_v35 = vld [vmem:[%s10388_s2 + $0x7] ss:$0 sm:$0xff] }
  0x26   : > { %6021 = vmatpush3.bf16.msra.mxu1 %v6059_v47  ;;  %5864 = vmatpush3.bf16.msra.mxu0 %v6059_v47  ;;  %v10399_v47 = vrot.slane %v6421_v25, 3  ;;  %v1121_v50 = vadd.f32 %v1077_v43, %v1001_v7  ;;  %v1195_v52 = vrot.slane %v1146_v36, 3  ;;  %v1122_v54 = vadd.f32 %v1079_v49, %v1002_v8 }
  0x27   : > { %6014 = vmatprep.subr.bf16.mxu1 %v10410_v1  ;;  %5865 = vmatprep.subr.bf16.mxu0 %v10410_v1  ;;  %v10406_v56 = vrot.slane %v6441_v42, 3  ;;  %v6461_v57 = vmul.f32 %v6428_v28, %v6296_v14  ;;  %v1194_v60 = vsel %vm1173_vm3, %v1191_v48, %v1193_v51  ;;  %v1263_v63 = vmul.f32 %v6428_v28, %v6298_v15 }
  0x28   : > { %v1192_v55 = vsel %vm1173_vm3, %v10399_v47, %v1191_v48  ;;  %v1196_v61 = vsel %vm1173_vm3, %v1193_v51, %v1195_v52  ;;  %v1239_v3 = vadd.f32 %v1194_v60, %v1120_v44  ;;  %v1264_v5 = vmul.f32 %v6428_v28, %v6307_v17 }
  0x29   : > { %10610 = vst [vmem:[#allocation9_spill] sm:$0xff] %v6461_v57  ;;  %v1238_v62 = vadd.f32 %v1192_v55, %v1119_v41  ;;  %v1240_v4 = vadd.f32 %v1196_v61, %v1121_v50  ;;  %v1265_v8 = vmul.f32 %v6428_v28, %v6309_v18  ;;  %v6476_v10 = vmul.f32 %v6428_v28, %v6311_v19 }
  0x2a   : > { %6022 = vmatpush3.bf16.msra.mxu1 %v6060_v2  ;;  %5866 = vmatpush3.bf16.msra.mxu0 %v6060_v2  ;;  %v1198_v2 = vsel %vm1173_vm3, %v1195_v52, %v10406_v56  ;;  %v10398_v22 = vrot.slane %v6461_v57, 4  ;;  %v1310_v24 = vrot.slane %v1263_v63, 4  ;;  %v1312_v27 = vrot.slane %v1264_v5, 4  ;;  %v6511_v5 = vld [vmem:[%s10388_s2 + $0x8] ss:$0 sm:$0xff] }
  0x2b   : > { %5903 = vmatprep.subr.bf16.mxu1 %v10410_v1  ;;  %5955 = vmatprep.subr.bf16.mxu0 %v10410_v1  ;;  %v1241_v7 = vadd.f32 %v1198_v2, %v1122_v54  ;;  %v6481_v29 = vmul.f32 %v6453_v53, %v6307_v17  ;;  %v1384_v31 = vmul.f32 %v6453_v53, %v6309_v18  ;;  %v1314_v36 = vrot.slane %v1265_v8, 4 }
  0x2c   : > { %v10404_v37 = vrot.slane %v6476_v10, 4  ;;  %v1385_v41 = vmul.f32 %v6453_v53, %v6311_v19  ;;  %v1386_v43 = vmul.f32 %v6453_v53, %v6318_v21  ;;  %v1311_v44 = vsel %vm1292_vm4, %v10398_v22, %v1310_v24 }
  0x2d   : > { %10611 = vst [vmem:[#allocation10_spill] sm:$0xff] %v6481_v29  ;;  %v1313_v48 = vsel %vm1292_vm4, %v1310_v24, %v1312_v27  ;;  %v6501_v49 = vmul.f32 %v6453_v53, %v6340_v30  ;;  %v10397_v50 = vrot.slane %v6481_v29, 4  ;;  %v1315_v51 = vsel %vm1292_vm4, %v1312_v27, %v1314_v36 }
  0x2e   : > { %v1317_v52 = vsel %vm1292_vm4, %v1314_v36, %v10404_v37  ;;  %v1357_v54 = vadd.f32 %v1311_v44, %v1238_v62  ;;  %v1358_v55 = vadd.f32 %v1313_v48, %v1239_v3  ;;  %v1359_v60 = vadd.f32 %v1315_v51, %v1240_v4 }
  0x2f   : > { %v1360_v61 = vadd.f32 %v1317_v52, %v1241_v7  ;;  %v1430_v63 = vrot.slane %v1384_v31, 4  ;;  %v1432_v2 = vrot.slane %v1385_v41, 4  ;;  %v1434_v8 = vrot.slane %v1386_v43, 4 }
  0x30   : > { %v10403_v24 = vrot.slane %v6501_v49, 4  ;;  %v6516_v27 = vmul.f32 %v6488_v35, %v6307_v17  ;;  %v1502_v62 = vmul.f32 %v6488_v35, %v6309_v18  ;;  %v1503_v7 = vmul.f32 %v6488_v35, %v6311_v19 }
  0x31   : > { %v1431_v3 = vsel %vm1292_vm4, %v10397_v50, %v1430_v63  ;;  %v1433_v4 = vsel %vm1292_vm4, %v1430_v63, %v1432_v2  ;;  %v1504_v31 = vmul.f32 %v6488_v35, %v6318_v21  ;;  %v1435_v36 = vsel %vm1292_vm4, %v1432_v2, %v1434_v8 }
  0x32   : > { %10612 = vst [vmem:[#allocation11_spill] sm:$0xff] %v6516_v27  ;;  %v1437_v41 = vsel %vm1292_vm4, %v1434_v8, %v10403_v24  ;;  %v1477_v43 = vadd.f32 %v1431_v3, %v1357_v54  ;;  %v1478_v44 = vadd.f32 %v1433_v4, %v1358_v55  ;;  %v1479_v48 = vadd.f32 %v1435_v36, %v1359_v60  ;;  %v6067_v8 = vld [vmem:[%s6273_s28 + $0x8] sm:$0xff]   ;;  %v6069_v36 = vld [vmem:[%s6273_s28 + $0x18] sm:$0xff]  }
  0x33   : > { %v1480_v51 = vadd.f32 %v1437_v41, %v1360_v61  ;;  %v6534_v52 = vmul.f32 %v6488_v35, %v6340_v30  ;;  %v10405_v63 = vrot.slane %v6516_v27, 5  ;;  %v1549_v50 = vrot.slane %v1502_v62, 5  ;;  %v6068_v62 = vld [vmem:[%s6273_s28 + $0x10] sm:$0xff]  }
  0x34   : > { %v1551_v22 = vrot.slane %v1503_v7, 5  ;;  %v1553_v47 = vrot.slane %v1504_v31, 5  ;;  %v6539_v2 = vmul.f32 %v6511_v5, %v6307_v17  ;;  %v1621_v55 = vmul.f32 %v6511_v5, %v6309_v18 }
  0x35   : > { %v10414_v54 = vrot.slane %v6534_v52, 5  ;;  %v1622_v60 = vmul.f32 %v6511_v5, %v6311_v19  ;;  %v1623_v61 = vmul.f32 %v6511_v5, %v6318_v21  ;;  %v1550_v3 = vsel %vm1531_vm5, %v10405_v63, %v1549_v50 }
  0x36   : > { %10613 = vst [vmem:[#allocation12_spill] sm:$0xff] %v6539_v2  ;;  %v1552_v4 = vsel %vm1531_vm5, %v1549_v50, %v1551_v22  ;;  %v1554_v7 = vsel %vm1531_vm5, %v1551_v22, %v1553_v47  ;;  %v6557_v31 = vmul.f32 %v6511_v5, %v6340_v30  ;;  %v1596_v6 = vadd.f32 %v1550_v3, %v1477_v43  ;;  %v6567_v22 = vld [vmem:[%s10389_s3] ss:$0 sm:$0xff] }
  0x37   : > { %v1556_v41 = vsel %vm1531_vm5, %v1553_v47, %v10414_v54  ;;  %v1597_v46 = vadd.f32 %v1552_v4, %v1478_v44  ;;  %v1598_v34 = vadd.f32 %v1554_v7, %v1479_v48  ;;  %v10412_v37 = vrot.slane %v6539_v2, 6  ;;  %v6070_v50 = vld [vmem:[%s6273_s28 + $0x20] sm:$0xff]  }
  0x38   : > { %v1599_v24 = vadd.f32 %v1556_v41, %v1480_v51  ;;  %v1668_v63 = vrot.slane %v1621_v55, 6  ;;  %v1670_v56 = vrot.slane %v1622_v60, 6  ;;  %v1672_v39 = vrot.slane %v1623_v61, 6 }
  0x39   : > { %v10413_v58 = vrot.slane %v6557_v31, 6  ;;  %v710_v40 = vunpack.c.l.bf16 %v6067_v8  ;;  %v711_v1 = vunpack.c.h.bf16 %v6067_v8  ;;  %v6575_v44 = vunpack.c.l.bf16 %v6068_v62 }
  0x3a   : > { %v1669_v47 = vsel %vm1650_vm6, %v10412_v37, %v1668_v63  ;;  %v1671_v43 = vsel %vm1650_vm6, %v1668_v63, %v1670_v56  ;;  %v6577_v48 = vunpack.c.h.bf16 %v6068_v62  ;;  %v1673_v51 = vsel %vm1650_vm6, %v1670_v56, %v1672_v39 }
  0x3b   : > { %v1675_v55 = vsel %vm1650_vm6, %v1672_v39, %v10413_v58  ;;  %v1715_v60 = vadd.f32 %v1669_v47, %v1596_v6  ;;  %v1716_v61 = vadd.f32 %v1671_v43, %v1597_v46  ;;  %v1717_v3 = vadd.f32 %v1673_v51, %v1598_v34  ;;  %v6598_v34 = vld [vmem:[%s10390_s4] ss:$0 sm:$0xff] }
  0x3c   : > { %v1718_v8 = vadd.f32 %v1675_v55, %v1599_v24  ;;  %v6583_v4 = vunpack.c.l.bf16 %v6069_v36  ;;  %v6585_v7 = vunpack.c.h.bf16 %v6069_v36  ;;  %v6589_v62 = vunpack.c.l.bf16 %v6070_v50  ;;  %v6609_v55 = vld [vmem:[%s10391_s5] ss:$0 sm:$0xff] }
  0x3d   : > { %v1741_v63 = vadd.f32 %v6567_v22, %v1715_v60  ;;  %v1742_v41 = vadd.f32 %v6567_v22, %v1716_v61  ;;  %v6591_v37 = vunpack.c.h.bf16 %v6070_v50  ;;  %v1743_v56 = vadd.f32 %v6567_v22, %v1717_v3 }
  0x3e   : > { %v1744_v39 = vadd.f32 %v6567_v22, %v1718_v8  ;;  %v734_v46 = vmul.f32 %v6284_v9, %v710_v40  ;;  %v735_v6 = vmul.f32 %v6284_v9, %v711_v1  ;;  %v736_v47 = vmul.f32 %v6284_v9, %v6575_v44 }
  0x3f   : > { %v1760_v24 = vmax.f32 %v1741_v63, 0.0  ;;  %v1761_v36 = vmax.f32 %v1742_v41, 0.0  ;;  %v737_v50 = vmul.f32 %v6284_v9, %v6577_v48  ;;  %v1762_v43 = vmax.f32 %v1743_v56, 0.0 }
  0x40   : > { %v1763_v51 = vmax.f32 %v1744_v39, 0.0  ;;  %v777_v60 = vmul.f32 %v6303_v16, %v710_v40  ;;  %v778_v61 = vmul.f32 %v6303_v16, %v711_v1  ;;  %v779_v63 = vmul.f32 %v6303_v16, %v6575_v44 }
  0x41   : > { %v1786_v3 = vmul.f32 %v6598_v34, %v1760_v24  ;;  %v1787_v8 = vmul.f32 %v6598_v34, %v1761_v36  ;;  %v780_v41 = vmul.f32 %v6303_v16, %v6577_v48  ;;  %v1788_v56 = vmul.f32 %v6598_v34, %v1762_v43 }
  0x42   : > { %v1789_v39 = vmul.f32 %v6598_v34, %v1763_v51  ;;  %v6623_v58 = vmul.f32 %v6303_v16, %v6583_v4  ;;  %v816_v54 = vrot.slane %v777_v60, 1  ;;  %v817_v2 = vrot.slane %v778_v61, 1 }
  0x43   : > { %v1812_v24 = vadd.f32 %v6609_v55, %v1786_v3  ;;  %v1813_v36 = vadd.f32 %v6609_v55, %v1787_v8  ;;  %v819_v27 = vrot.slane %v779_v63, 1  ;;  %v1814_v29 = vadd.f32 %v6609_v55, %v1788_v56 }
  0x44   : > { %v1815_v57 = vadd.f32 %v6609_v55, %v1789_v39  ;;  %v821_v25 = vrot.slane %v780_v41, 1  ;;  %v10423_v43 = vrot.slane %v6623_v58, 1  ;;  %v818_v59 = vsel %vm815_vm1, %v816_v54, %v817_v2 }
  0x45   : > { %v1827_v51 = vpack.c.bf16 %v1813_v36, %v1812_v24  ;;  %v820_v33 = vsel %vm815_vm1, %v817_v2, %v819_v27  ;;  %v896_v60 = vmul.f32 %v6316_v20, %v710_v40  ;;  %v872_v8 = vadd.f32 %v818_v59, %v734_v46 }
  0x46   : > { %v6633_v26 = vpack.c.bf16 %v1815_v57, %v1814_v29  ;;  %v822_v3 = vsel %vm815_vm1, %v819_v27, %v821_v25  ;;  %v824_v61 = vsel %vm815_vm1, %v821_v25, %v10423_v43  ;;  %v873_v56 = vadd.f32 %v820_v33, %v735_v6 }
  0x47   : > { %v1889_v63 = vshll.u32 %v1827_v51, 16  ;;  %v1893_v41 = vshrl.u32 %v1827_v51, 16  ;;  %v874_v39 = vadd.f32 %v822_v3, %v736_v47  ;;  %v875_v54 = vadd.f32 %v824_v61, %v737_v50  ;;  %v6066_v47 = vld [vmem:[%s10392_s6 + $0x38] sm:$0xff]  }
  0x48   : > { %v1897_v24 = vshll.u32 %v6633_v26, 16  ;;  %v897_v2 = vmul.f32 %v6316_v20, %v711_v1  ;;  %v898_v40 = vmul.f32 %v6316_v20, %v6575_v44  ;;  %v899_v29 = vmul.f32 %v6316_v20, %v6577_v48 }
  0x49   : > { %v6643_v57 = vrot.slane %v1889_v63, 1  ;;  %v6649_v59 = vmul.f32 %v6316_v20, %v6583_v4  ;;  %v935_v25 = vrot.slane %v896_v60, 2  ;;  %v1017_v1 = vmul.f32 %v6360_v38, %v6575_v44 }
  0x4a   : > { %v6651_v33 = vrot.slane %v1897_v24, 1  ;;  %v936_v27 = vrot.slane %v897_v2, 2  ;;  %v938_v46 = vrot.slane %v898_v40, 2  ;;  %v940_v50 = vrot.slane %v899_v29, 2 }
  0x4b   : > { %10614 = vst [vmem:[#allocation13_spill] sm:$0xff] %v6643_v57  ;;  %v1895_v6 = vor.u32 %v1893_v41, %v6643_v57  ;;  %v10431_v36 = vrot.slane %v6649_v59, 2  ;;  %v1018_v51 = vmul.f32 %v6360_v38, %v6577_v48  ;;  %v1019_v61 = vmul.f32 %v6360_v38, %v6583_v4 }
  0x4c   : > { %v937_v60 = vsel %vm934_vm2, %v935_v25, %v936_v27  ;;  %v939_v3 = vsel %vm934_vm2, %v936_v27, %v938_v46  ;;  %v1020_v63 = vmul.f32 %v6360_v38, %v6585_v7  ;;  %v941_v24 = vsel %vm934_vm2, %v938_v46, %v940_v50  ;;  %v6072_v46 = vld [vmem:[%s10392_s6 + $0x30] sm:$0xff]  }
  0x4d   : > { %v1900_v41 = vsel %vm1856_vm7, %v1895_v6, %v6651_v33  ;;  %v943_v2 = vsel %vm934_vm2, %v940_v50, %v10431_v36  ;;  %v991_v40 = vadd.f32 %v937_v60, %v872_v8  ;;  %v992_v29 = vadd.f32 %v939_v3, %v873_v56 }
  0x4e   : > { %5884 = vmatmul.mubr.bf16.vlgmr.msra.gmra.mxu1 %v1900_v41  ;;  %v993_v25 = vadd.f32 %v941_v24, %v874_v39  ;;  %v994_v27 = vadd.f32 %v943_v2, %v875_v54  ;;  %v6676_v43 = vmul.f32 %v6360_v38, %v6589_v62  ;;  %v1055_v57 = vrot.slane %v1017_v1, 2 }
  0x4f   : > { %5904 = vmatpush3.bf16.msra.mxu1 %v6066_v47  ;;  %v1056_v15 = vrot.slane %v1018_v51, 2  ;;  %v1058_v14 = vrot.slane %v1019_v61, 2  ;;  %v1060_v6 = vrot.slane %v1020_v63, 2  ;;  %5887 = vmatprep.mubr.msk.bf16.mxu1 %vm6169_vm0, %v10615_v13  ;;  %v1135_v56 = vmul.f32 %v6401_v0, %v6575_v44 }
  0x50   : > { %v10433_v8 = vrot.slane %v6676_v43, 2  ;;  %v1136_v39 = vmul.f32 %v6401_v0, %v6577_v48  ;;  %v1137_v54 = vmul.f32 %v6401_v0, %v6583_v4  ;;  %5905 = vmatprep.subr.bf16.mxu1 %v10615_v13  ;;  %v1138_v51 = vmul.f32 %v6401_v0, %v6585_v7 }
  0x51   : > { %v1057_v1 = vsel %vm934_vm2, %v1055_v57, %v1056_v15  ;;  %v1059_v47 = vsel %vm934_vm2, %v1056_v15, %v1058_v14  ;;  %v1061_v50 = vsel %vm934_vm2, %v1058_v14, %v1060_v6  ;;  %v6701_v24 = vmul.f32 %v6401_v0, %v6589_v62  ;;  %v6075_v14 = vld [vmem:[%s10392_s6 + $0x28] sm:$0xff]  }
  0x52   : > { %v1063_v60 = vsel %vm934_vm2, %v1060_v6, %v10433_v8  ;;  %v1111_v3 = vadd.f32 %v1057_v1, %v991_v40  ;;  %v1112_v61 = vadd.f32 %v1059_v47, %v992_v29  ;;  %v1113_v63 = vadd.f32 %v1061_v50, %v993_v25 }
  0x53   : > { %v1114_v41 = vadd.f32 %v1063_v60, %v994_v27  ;;  %10616 = vst [vmem:[#allocation14_spill] sm:$0xff] %v6701_v24  ;;  %v1174_v57 = vrot.slane %v1135_v56, 3  ;;  %v1175_v2 = vrot.slane %v1136_v39, 3  ;;  %5906 = vmatpush3.bf16.msra.mxu1 %v6072_v46  ;;  %v1177_v15 = vrot.slane %v1137_v54, 3 }
  0x54   : > { %v1179_v36 = vrot.slane %v1138_v51, 3  ;;  %v1254_v6 = vmul.f32 %v6428_v28, %v6575_v44  ;;  %v1255_v40 = vmul.f32 %v6428_v28, %v6577_v48  ;;  %5907 = vmatprep.subr.bf16.mxu1 %v10615_v13  ;;  %v10432_v25 = vrot.slane %v6701_v24, 3  ;;  %v6077_v51 = vld [vmem:[%s10392_s6 + $0x20] sm:$0xff]  }
  0x55   : > { %v1176_v29 = vsel %vm1173_vm3, %v1174_v57, %v1175_v2  ;;  %v1256_v27 = vmul.f32 %v6428_v28, %v6583_v4  ;;  %v1257_v46 = vmul.f32 %v6428_v28, %v6585_v7  ;;  %v1178_v56 = vsel %vm1173_vm3, %v1175_v2, %v1177_v15 }
  0x56   : > { %v1180_v39 = vsel %vm1173_vm3, %v1177_v15, %v1179_v36  ;;  %v1230_v44 = vadd.f32 %v1176_v29, %v1111_v3  ;;  %v6721_v48 = vmul.f32 %v6428_v28, %v6589_v62  ;;  %v1182_v54 = vsel %vm1173_vm3, %v1179_v36, %v10432_v25 }
  0x57   : > { %v1231_v1 = vadd.f32 %v1178_v56, %v1112_v61  ;;  %v1232_v47 = vadd.f32 %v1180_v39, %v1113_v63  ;;  %v1293_v50 = vrot.slane %v1254_v6, 4  ;;  %5908 = vmatpush3.bf16.msra.mxu1 %v6075_v14  ;;  %v1233_v60 = vadd.f32 %v1182_v54, %v1114_v41  ;;  %v6081_v39 = vld [vmem:[%s10392_s6 + $0x18] sm:$0xff]  }
  0x58   : > { %10617 = vst [vmem:[#allocation15_spill] sm:$0xff] %v6721_v48  ;;  %v1294_v57 = vrot.slane %v1255_v40, 4  ;;  %v1296_v2 = vrot.slane %v1256_v27, 4  ;;  %v1298_v3 = vrot.slane %v1257_v46, 4  ;;  %5909 = vmatprep.subr.bf16.mxu1 %v10615_v13  ;;  %v10434_v15 = vrot.slane %v6721_v48, 4 }
  0x59   : > { %v1375_v29 = vmul.f32 %v6453_v53, %v6583_v4  ;;  %v1376_v36 = vmul.f32 %v6453_v53, %v6585_v7  ;;  %v1377_v61 = vmul.f32 %v6453_v53, %v6589_v62  ;;  %v1378_v6 = vmul.f32 %v6453_v53, %v6591_v37 }
  0x5a   : > { %v1295_v63 = vsel %vm1292_vm4, %v1293_v50, %v1294_v57  ;;  %v1297_v41 = vsel %vm1292_vm4, %v1294_v57, %v1296_v2  ;;  %v1299_v14 = vsel %vm1292_vm4, %v1296_v2, %v1298_v3  ;;  %v1301_v40 = vsel %vm1292_vm4, %v1298_v3, %v10434_v15 }
  0x5b   : > { %v1349_v27 = vadd.f32 %v1295_v63, %v1230_v44  ;;  %v1350_v46 = vadd.f32 %v1297_v41, %v1231_v1  ;;  %v1351_v56 = vadd.f32 %v1299_v14, %v1232_v47  ;;  %5910 = vmatpush3.bf16.msra.mxu1 %v6077_v51  ;;  %v1352_v54 = vadd.f32 %v1301_v40, %v1233_v60 }
  0x5c   : > { %v6750_v50 = vmul.f32 %v6453_v53, %v6292_v12  ;;  %v1413_v57 = vrot.slane %v1375_v29, 4  ;;  %v1414_v2 = vrot.slane %v1376_v36, 4  ;;  %5911 = vmatprep.subr.bf16.mxu1 %v10615_v13  ;;  %v1416_v25 = vrot.slane %v1377_v61, 4 }
  0x5d   : > { %v1418_v8 = vrot.slane %v1378_v6, 4  ;;  %v1493_v44 = vmul.f32 %v6488_v35, %v6583_v4  ;;  %v1494_v1 = vmul.f32 %v6488_v35, %v6585_v7  ;;  %v1495_v60 = vmul.f32 %v6488_v35, %v6589_v62 }
  0x5e   : > { %10618 = vst [vmem:[#allocation16_spill] sm:$0xff] %v6750_v50  ;;  %v1415_v47 = vsel %vm1292_vm4, %v1413_v57, %v1414_v2  ;;  %v10435_v51 = vrot.slane %v6750_v50, 4  ;;  %v1496_v3 = vmul.f32 %v6488_v35, %v6591_v37  ;;  %v1417_v29 = vsel %vm1292_vm4, %v1414_v2, %v1416_v25 }
  0x5f   : > { %v1419_v36 = vsel %vm1292_vm4, %v1416_v25, %v1418_v8  ;;  %v1469_v61 = vadd.f32 %v1415_v47, %v1349_v27  ;;  %v6767_v63 = vmul.f32 %v6488_v35, %v6292_v12  ;;  %5912 = vmatpush3.bf16.msra.mxu1 %v6081_v39  ;;  %v1470_v14 = vadd.f32 %v1417_v29, %v1350_v46  ;;  %v6084_v25 = vld [vmem:[%s10392_s6 + $0x10] sm:$0xff]  }
  0x60   : > { %v1421_v41 = vsel %vm1292_vm4, %v1418_v8, %v10435_v51  ;;  %v1471_v6 = vadd.f32 %v1419_v36, %v1351_v56  ;;  %v1532_v40 = vrot.slane %v1493_v44, 5  ;;  %5913 = vmatprep.subr.bf16.mxu1 %v10615_v13  ;;  %v1533_v57 = vrot.slane %v1494_v1, 5  ;;  %v6784_v56 = vld [vmem:[%s6273_s28 + $0x50] sm:$0xff]  }
  0x61   : > { %10619 = vst [vmem:[#allocation17_spill] sm:$0xff] %v6767_v63  ;;  %v1472_v27 = vadd.f32 %v1421_v41, %v1352_v54  ;;  %v1535_v2 = vrot.slane %v1495_v60, 5  ;;  %v1537_v47 = vrot.slane %v1496_v3, 5  ;;  %v1539_v15 = vrot.slane %v6767_v63, 5  ;;  %v6086_v3 = vld [vmem:[%s10392_s6 + $0x8] sm:$0xff]  }
  0x62   : > { %v1612_v39 = vmul.f32 %v6511_v5, %v6583_v4  ;;  %v1613_v8 = vmul.f32 %v6511_v5, %v6585_v7  ;;  %v1614_v46 = vmul.f32 %v6511_v5, %v6589_v62  ;;  %v1534_v44 = vsel %vm1531_vm5, %v1532_v40, %v1533_v57 }
  0x63   : > { %v1536_v54 = vsel %vm1531_vm5, %v1533_v57, %v1535_v2  ;;  %v1538_v1 = vsel %vm1531_vm5, %v1535_v2, %v1537_v47  ;;  %v1615_v60 = vmul.f32 %v6511_v5, %v6591_v37  ;;  %5914 = vmatpush3.bf16.msra.mxu1 %v6084_v25  ;;  %v1540_v29 = vsel %vm1531_vm5, %v1537_v47, %v1539_v15 }
  0x64   : > { %v1588_v36 = vadd.f32 %v1534_v44, %v1469_v61  ;;  %v1589_v41 = vadd.f32 %v1536_v54, %v1470_v14  ;;  %v1590_v51 = vadd.f32 %v1538_v1, %v1471_v6  ;;  %5915 = vmatprep.subr.bf16.mxu1 %v10615_v13  ;;  %v1591_v40 = vadd.f32 %v1540_v29, %v1472_v27 }
  0x65   : > { %v6800_v57 = vmul.f32 %v6511_v5, %v6292_v12  ;;  %v1651_v2 = vrot.slane %v1612_v39, 6  ;;  %v1652_v25 = vrot.slane %v1613_v8, 6  ;;  %v1654_v50 = vrot.slane %v1614_v46, 6 }
  0x66   : > { %v1656_v48 = vrot.slane %v1615_v60, 6  ;;  %v6803_v24 = vunpack.c.h.bf16 %v6290_v11  ;;  %v6806_v63 = vunpack.c.l.bf16 %v6784_v56  ;;  %v746_v6 = vmul.f32 %v6284_v9, %v6307_v17 }
  0x67   : > { %v1653_v61 = vsel %vm1650_vm6, %v1651_v2, %v1652_v25  ;;  %v1658_v14 = vrot.slane %v6800_v57, 6  ;;  %v747_v27 = vmul.f32 %v6284_v9, %v6309_v18  ;;  %5916 = vmatpush3.bf16.msra.mxu1 %v6086_v3  ;;  %v1655_v47 = vsel %vm1650_vm6, %v1652_v25, %v1654_v50 }
  0x68   : > { %v1657_v39 = vsel %vm1650_vm6, %v1654_v50, %v1656_v48  ;;  %v1707_v11 = vadd.f32 %v1653_v61, %v1588_v36  ;;  %v790_v8 = vmul.f32 %v6303_v16, %v6309_v18  ;;  %5917 = vmatprep.subr.bf16.mxu1 %v10615_v13  ;;  %v1708_v44 = vadd.f32 %v1655_v47, %v1589_v41 }
  0x69   : > { %v1659_v46 = vsel %vm1650_vm6, %v1656_v48, %v1658_v14  ;;  %v1709_v17 = vadd.f32 %v1657_v39, %v1590_v51  ;;  %v6824_v9 = vmul.f32 %v6303_v16, %v6311_v19  ;;  %v909_v60 = vmul.f32 %v6316_v20, %v6309_v18 }
  0x6a   : > { %v1710_v54 = vadd.f32 %v1659_v46, %v1591_v40  ;;  %v1733_v1 = vadd.f32 %v6567_v22, %v1707_v11  ;;  %v841_v50 = vrot.slane %v790_v8, 1  ;;  %v1734_v3 = vadd.f32 %v6567_v22, %v1708_v44 }
  0x6b   : > { %v1735_v29 = vadd.f32 %v6567_v22, %v1709_v17  ;;  %v10450_v36 = vrot.slane %v6824_v9, 1  ;;  %v6834_v48 = vmul.f32 %v6316_v20, %v6311_v19  ;;  %v10620_v41 = vrot.slane %v6346_v32, 1 }
  0x6c   : > { %v1736_v16 = vadd.f32 %v6567_v22, %v1710_v54  ;;  %v1752_v51 = vmax.f32 %v1733_v1, 0.0  ;;  %v960_v2 = vrot.slane %v909_v60, 2  ;;  %v1753_v25 = vmax.f32 %v1734_v3, 0.0 }
  0x6d   : > { %v842_v40 = vsel %vm815_vm1, %v10620_v41, %v841_v50  ;;  %v1754_v18 = vmax.f32 %v1735_v29, 0.0  ;;  %v844_v61 = vsel %vm815_vm1, %v841_v50, %v10450_v36  ;;  %v10621_v8 = vrot.slane %v6373_v45, 2 }
  0x6e   : > { %v884_v47 = vadd.f32 %v842_v40, %v746_v6  ;;  %v1755_v39 = vmax.f32 %v1736_v16, 0.0  ;;  %v1778_v11 = vmul.f32 %v6598_v34, %v1752_v51  ;;  %v885_v20 = vadd.f32 %v844_v61, %v747_v27 }
  0x6f   : > { %v961_v46 = vsel %vm934_vm2, %v10621_v8, %v960_v2  ;;  %v1779_v32 = vmul.f32 %v6598_v34, %v1753_v25  ;;  %v1780_v44 = vmul.f32 %v6598_v34, %v1754_v18  ;;  %v10449_v17 = vrot.slane %v6834_v48, 2 }
  0x70   : > { %v1003_v54 = vadd.f32 %v961_v46, %v884_v47  ;;  %v1781_v1 = vmul.f32 %v6598_v34, %v1755_v39  ;;  %v1804_v50 = vadd.f32 %v6609_v55, %v1778_v11  ;;  %v1030_v6 = vmul.f32 %v6360_v38, %v6318_v21 }
  0x71   : > { %v6856_v27 = vmul.f32 %v6360_v38, %v6340_v30  ;;  %v1805_v45 = vadd.f32 %v6609_v55, %v1779_v32  ;;  %v1806_v60 = vadd.f32 %v6609_v55, %v1780_v44  ;;  %v963_v3 = vsel %vm934_vm2, %v960_v2, %v10449_v17 }
  0x72   : > { %v1148_v29 = vmul.f32 %v6401_v0, %v6318_v21  ;;  %v1807_v16 = vadd.f32 %v6609_v55, %v1781_v1  ;;  %v1004_v51 = vadd.f32 %v963_v3, %v885_v20  ;;  %v1080_v41 = vrot.slane %v1030_v6, 2 }
  0x73   : > { %v10448_v40 = vrot.slane %v6856_v27, 2  ;;  %v1823_v25 = vpack.c.bf16 %v1805_v45, %v1804_v50  ;;  %v6869_v38 = vmul.f32 %v6401_v0, %v6340_v30  ;;  %v1267_v61 = vmul.f32 %v6428_v28, %v6318_v21 }
  0x74   : > { %v1199_v18 = vrot.slane %v1148_v29, 3  ;;  %v6873_v47 = vpack.c.bf16 %v1807_v16, %v1806_v60  ;;  %v10622_v2 = vrot.slane %v6417_v23, 2  ;;  %v6883_v20 = vmul.f32 %v6428_v28, %v6340_v30 }
  0x75   : > { %v1083_v11 = vsel %vm934_vm2, %v1080_v41, %v10448_v40  ;;  %v1858_v0 = vshrl.u32 %v1823_v25, 16  ;;  %v1860_v8 = vshll.u32 %v1823_v25, 16  ;;  %v10623_v1 = vrot.slane %v6441_v42, 3  ;;  %v6071_v25 = vld [vmem:[%s10392_s6 + $0x38] sm:$0xff]  }
  0x76   : > { %v1081_v39 = vsel %vm934_vm2, %v10622_v2, %v1080_v41  ;;  %v1124_v32 = vadd.f32 %v1083_v11, %v1004_v51  ;;  %v1865_v44 = vshll.u32 %v6873_v47, 16  ;;  %v10444_v50 = vrot.slane %v6869_v38, 3 }
  0x77   : > { %v1123_v46 = vadd.f32 %v1081_v39, %v1003_v54  ;;  %v1200_v23 = vsel %vm1173_vm3, %v10623_v1, %v1199_v18  ;;  %v1318_v6 = vrot.slane %v1267_v61, 4  ;;  %v1862_v45 = vrot.slane %v1860_v8, 1 }
  0x78   : > { %v10443_v3 = vrot.slane %v6883_v20, 4  ;;  %v1388_v28 = vmul.f32 %v6453_v53, %v6803_v24  ;;  %v6893_v29 = vrot.slane %v1865_v44, 1  ;;  %v1202_v54 = vsel %vm1173_vm3, %v1199_v18, %v10444_v50 }
  0x79   : > { %v1242_v60 = vadd.f32 %v1200_v23, %v1123_v46  ;;  %v10624_v42 = vrot.slane %v6476_v10, 4  ;;  %v6903_v51 = vmul.f32 %v6453_v53, %v6806_v63  ;;  %v1863_v41 = vor.u32 %v1862_v45, %v1858_v0 }
  0x7a   : > { %v1243_v61 = vadd.f32 %v1202_v54, %v1124_v32  ;;  %v1321_v2 = vsel %vm1292_vm4, %v1318_v6, %v10443_v3  ;;  %v1438_v18 = vrot.slane %v1388_v28, 4  ;;  %v1506_v11 = vmul.f32 %v6488_v35, %v6803_v24  ;;  %v6073_v28 = vld [vmem:[%s10392_s6 + $0x30] sm:$0xff]  }
  0x7b   : > { %v1319_v16 = vsel %vm1292_vm4, %v10624_v42, %v1318_v6  ;;  %v10442_v10 = vrot.slane %v6903_v51, 4  ;;  %v6916_v8 = vmul.f32 %v6488_v35, %v6806_v63  ;;  %v1868_v0 = vsel %vm1856_vm7, %v1863_v41, %v6893_v29 }
  0x7c   : > { %v1361_v39 = vadd.f32 %v1319_v16, %v1242_v60  ;;  %v1362_v46 = vadd.f32 %v1321_v2, %v1243_v61  ;;  %v1625_v32 = vmul.f32 %v6511_v5, %v6803_v24  ;;  %v6924_v44 = vmul.f32 %v6511_v5, %v6806_v63  ;;  %5868 = vmatmul.mubr.bf16.vlgmr.msra.gmra.mxu0 %v1868_v0 }
  0x7d   : > { %v10625_v1 = vrot.slane %v6501_v49, 4  ;;  %v1441_v6 = vsel %vm1292_vm4, %v1438_v18, %v10442_v10  ;;  %v1557_v45 = vrot.slane %v1506_v11, 5  ;;  %v10441_v60 = vrot.slane %v6916_v8, 5  ;;  %5956 = vmatpush3.bf16.msra.mxu0 %v6071_v25  ;;  %5871 = vmatprep.mubr.msk.bf16.mxu0 %vm6169_vm0, %v10615_v13 }
  0x7e   : > { %v1482_v42 = vadd.f32 %v1441_v6, %v1362_v46  ;;  %v1676_v16 = vrot.slane %v1625_v32, 6  ;;  %v10440_v41 = vrot.slane %v6924_v44, 6  ;;  %5957 = vmatprep.subr.bf16.mxu0 %v10615_v13  ;;  %v10626_v49 = vrot.slane %v6534_v52, 5 }
  0x7f   : > { %v1439_v23 = vsel %vm1292_vm4, %v10625_v1, %v1438_v18  ;;  %v1560_v25 = vsel %vm1531_vm5, %v1557_v45, %v10441_v60  ;;  %v1901_v2 = vshrl.u32 %v6633_v26, 16  ;;  %v10627_v52 = vrot.slane %v6557_v31, 6 }
  0x80   : > { %v1481_v54 = vadd.f32 %v1439_v23, %v1361_v39  ;;  %v1558_v61 = vsel %vm1531_vm5, %v10626_v49, %v1557_v45  ;;  %v6950_v39 = vld [vmem:[%s10388_s2] ss:$0 sm:$0xff]  ;;  %v1601_v0 = vadd.f32 %v1560_v25, %v1482_v42  ;;  %v1679_v32 = vsel %vm1650_vm6, %v1676_v16, %v10440_v41 }
  0x81   : > { %v738_v18 = vmul.f32 %v6950_v39, %v6583_v4  ;;  %v1677_v46 = vsel %vm1650_vm6, %v10627_v52, %v1676_v16  ;;  %v6961_v26 = vor.u32 %v1901_v2, %v6651_v33  ;;  %v739_v1 = vmul.f32 %v6950_v39, %v6585_v7  ;;  %v6968_v4 = vld [vmem:[%s10388_s2 + $0x1] ss:$0 sm:$0xff]  ;;  %5958 = vmatpush3.bf16.msra.mxu0 %v6073_v28  ;;  %v6979_v33 = vld [vmem:[%s10388_s2 + $0x2] ss:$0 sm:$0xff]  ;;  %v6076_v16 = vld [vmem:[%s10392_s6 + $0x28] sm:$0xff]  }
  0x82   : > { %v1600_v11 = vadd.f32 %v1558_v61, %v1481_v54  ;;  %v782_v31 = vmul.f32 %v6968_v4, %v6585_v7  ;;  %v6974_v23 = vmul.f32 %v6968_v4, %v6589_v62  ;;  %v1720_v45 = vadd.f32 %v1679_v32, %v1601_v0  ;;  %v6994_v61 = vld [vmem:[%s10388_s2 + $0x3] ss:$0 sm:$0xff]  ;;  %5959 = vmatprep.subr.bf16.mxu0 %v10615_v13 }
  0x83   : > { %v901_v54 = vmul.f32 %v6979_v33, %v6585_v7  ;;  %v6985_v42 = vmul.f32 %v6979_v33, %v6589_v62  ;;  %v1022_v25 = vmul.f32 %v6994_v61, %v6591_v37  ;;  %v7000_v7 = vmul.f32 %v6994_v61, %v6292_v12 }
  0x84   : > { %v1719_v6 = vadd.f32 %v1677_v46, %v1600_v11  ;;  %v825_v49 = vrot.slane %v782_v31, 1  ;;  %v10447_v28 = vrot.slane %v6974_v23, 1  ;;  %v1746_v11 = vadd.f32 %v6567_v22, %v1720_v45  ;;  %v6078_v45 = vld [vmem:[%s10392_s6 + $0x20] sm:$0xff]  }
  0x85   : > { %v944_v0 = vrot.slane %v901_v54, 2  ;;  %v10446_v52 = vrot.slane %v6985_v42, 2  ;;  %v10628_v46 = vrot.slane %v6623_v58, 1  ;;  %v1064_v41 = vrot.slane %v1022_v25, 2  ;;  %5960 = vmatpush3.bf16.msra.mxu0 %v6076_v16 }
  0x86   : > { %v1745_v2 = vadd.f32 %v6567_v22, %v1719_v6  ;;  %v828_v31 = vsel %vm815_vm1, %v825_v49, %v10447_v28  ;;  %v10445_v60 = vrot.slane %v7000_v7, 2  ;;  %v1765_v3 = vmax.f32 %v1746_v11, 0.0  ;;  %5961 = vmatprep.subr.bf16.mxu0 %v10615_v13 }
  0x87   : > { %v826_v32 = vsel %vm815_vm1, %v10628_v46, %v825_v49  ;;  %v877_v6 = vadd.f32 %v828_v31, %v739_v1  ;;  %v10629_v58 = vrot.slane %v6649_v59, 2  ;;  %v947_v49 = vsel %vm934_vm2, %v944_v0, %v10446_v52 }
  0x88   : > { %v1764_v10 = vmax.f32 %v1745_v2, 0.0  ;;  %v876_v50 = vadd.f32 %v826_v32, %v738_v18  ;;  %v10630_v25 = vrot.slane %v6676_v43, 2  ;;  %v1067_v18 = vsel %vm934_vm2, %v1064_v41, %v10445_v60 }
  0x89   : > { %v945_v54 = vsel %vm934_vm2, %v10629_v58, %v944_v0  ;;  %v1791_v59 = vmul.f32 %v6598_v34, %v1765_v3  ;;  %v996_v11 = vadd.f32 %v947_v49, %v877_v6  ;;  %v7034_v0 = vld [vmem:[%s10388_s2 + $0x4] ss:$0 sm:$0xff]  ;;  %5962 = vmatpush3.bf16.msra.mxu0 %v6078_v45  ;;  %v6080_v58 = vld [vmem:[%s10392_s6 + $0x18] sm:$0xff]   ;;  %v7148_v57 = vmul.f32 %v6968_v4, %v6340_v30 }
  0x8a   : > { %v1065_v2 = vsel %vm934_vm2, %v10630_v25, %v1064_v41  ;;  %v1790_v1 = vmul.f32 %v6598_v34, %v1764_v10  ;;  %v995_v16 = vadd.f32 %v945_v54, %v876_v50  ;;  %v1140_v43 = vmul.f32 %v7034_v0, %v6591_v37  ;;  %v7045_v10 = vld [vmem:[%s10388_s2 + $0x5] ss:$0 sm:$0xff]  ;;  %5963 = vmatprep.subr.bf16.mxu0 %v10615_v13 }
  0x8b   : > { %v7040_v46 = vmul.f32 %v7034_v0, %v6292_v12  ;;  %v1259_v50 = vmul.f32 %v7045_v10, %v6591_v37  ;;  %v7051_v3 = vmul.f32 %v7045_v10, %v6292_v12  ;;  %v1817_v32 = vadd.f32 %v6609_v55, %v1791_v59 }
  0x8c   : > { %v1816_v41 = vadd.f32 %v6609_v55, %v1790_v1  ;;  %v1115_v31 = vadd.f32 %v1065_v2, %v995_v16  ;;  %v1116_v6 = vadd.f32 %v1067_v18, %v996_v11  ;;  %v1183_v54 = vrot.slane %v1140_v43, 3  ;;  %v10631_v1 = vld [vmem:[#allocation2_spill] sm:$0xff]  ;;  %v10632_v2 = vld [vmem:[#allocation3_spill] sm:$0xff] }
  0x8d   : > { %v10463_v49 = vrot.slane %v7040_v46, 3  ;;  %v1302_v25 = vrot.slane %v1259_v50, 4  ;;  %v10451_v60 = vrot.slane %v7051_v3, 4  ;;  %v1380_v59 = vmul.f32 %v6453_v53, %v10631_v1  ;;  %v10633_v16 = vld [vmem:[#allocation14_spill] sm:$0xff]  ;;  %5964 = vmatpush3.bf16.msra.mxu0 %v6080_v58 }
  0x8e   : > { %v7061_v12 = vpack.c.bf16 %v1817_v32, %v1816_v41  ;;  %v7067_v45 = vmul.f32 %v6453_v53, %v10632_v2  ;;  %v1498_v18 = vmul.f32 %v6488_v35, %v10631_v1  ;;  %v10634_v11 = vrot.slane %v10633_v16, 3  ;;  %v10635_v41 = vld [vmem:[#allocation15_spill] sm:$0xff]  ;;  %v6082_v16 = vld [vmem:[%s10392_s6 + $0x10] sm:$0xff]   ;;  %5965 = vmatprep.subr.bf16.mxu0 %v10615_v13 }
  0x8f   : > { %v1186_v50 = vsel %vm1173_vm3, %v1183_v54, %v10463_v49  ;;  %v10636_v32 = vrot.slane %v10635_v41, 4  ;;  %v1305_v53 = vsel %vm1292_vm4, %v1302_v25, %v10451_v60  ;;  %v1422_v36 = vrot.slane %v1380_v59, 4  ;;  %v10637_v59 = vld [vmem:[#allocation16_spill] sm:$0xff] }
  0x90   : > { %v1184_v43 = vsel %vm1173_vm3, %v10634_v11, %v1183_v54  ;;  %v1905_v28 = vshll.u32 %v7061_v12, 16  ;;  %v1235_v17 = vadd.f32 %v1186_v50, %v1116_v6  ;;  %v10462_v54 = vrot.slane %v7067_v45, 4 }
  0x91   : > { %v1303_v52 = vsel %vm1292_vm4, %v10636_v32, %v1302_v25  ;;  %v1234_v40 = vadd.f32 %v1184_v43, %v1115_v31  ;;  %v7090_v11 = vmul.f32 %v6488_v35, %v10632_v2  ;;  %v1541_v41 = vrot.slane %v1498_v18, 5  ;;  %5966 = vmatpush3.bf16.msra.mxu0 %v6082_v16 }
  0x92   : > { %v1617_v25 = vmul.f32 %v6511_v5, %v10631_v1  ;;  %v7095_v31 = vrot.slane %v1905_v28, 1  ;;  %v1354_v58 = vadd.f32 %v1305_v53, %v1235_v17  ;;  %v10638_v43 = vrot.slane %v10637_v59, 4  ;;  %v6093_v17 = vld [vmem:[%s10392_s6] sm:$0xff]   ;;  %5967 = vmatprep.subr.bf16.mxu0 %v10615_v13 }
  0x93   : > { %v1353_v6 = vadd.f32 %v1303_v52, %v1234_v40  ;;  %v1425_v35 = vsel %vm1292_vm4, %v1422_v36, %v10462_v54  ;;  %v1542_v18 = vsel %vm1531_vm5, %v1539_v15, %v1541_v41  ;;  %v10461_v60 = vrot.slane %v7090_v11, 5  ;;  %v6085_v15 = vld [vmem:[%s10392_s6 + $0x8] sm:$0xff]   ;;  %5918 = vmatpush3.bf16.msra.mxu1 %v6093_v17  ;;  %v10654_v54 = vld [vmem:[#allocation6_spill] sm:$0xff] }
  0x94   : > { %v1423_v50 = vsel %vm1292_vm4, %v10638_v43, %v1422_v36  ;;  %v7109_v28 = vmul.f32 %v6511_v5, %v10632_v2  ;;  %v1908_v40 = vsel %vm1856_vm7, %v6961_v26, %v7095_v31  ;;  %v1474_v36 = vadd.f32 %v1425_v35, %v1354_v58  ;;  %v7126_v43 = vld [vmem:[%s6273_s28 + $0x58] sm:$0xff]  }
  0x95   : > { %v1473_v52 = vadd.f32 %v1423_v50, %v1353_v6  ;;  %v1660_v53 = vrot.slane %v1617_v25, 6  ;;  %5888 = vmatmul.mubr.bf16.gmra.mxu1 %v1908_v40  ;;  %v1544_v5 = vsel %vm1531_vm5, %v1541_v41, %v10461_v60  ;;  %v1869_v59 = vshrl.u32 %v6873_v47, 16  ;;  %5968 = vmatpush3.bf16.msra.mxu0 %v6085_v15 }
  0x96   : > { %v10455_v2 = vrot.slane %v7109_v28, 6  ;;  %v748_v26 = vmul.f32 %v6950_v39, %v6311_v19  ;;  %v1593_v25 = vadd.f32 %v1544_v5, %v1474_v36  ;;  %5891 = vmatprep.mubr.msk.bf16.mxu1 %vm6169_vm0, %v10615_v13  ;;  %v749_v41 = vmul.f32 %v6950_v39, %v6318_v21  ;;  %5969 = vmatprep.subr.bf16.mxu0 %v10615_v13 }
  0x97   : > { %v1592_v16 = vadd.f32 %v1542_v18, %v1473_v52  ;;  %v1661_v6 = vsel %vm1650_vm6, %v1658_v14, %v1660_v53  ;;  %v7142_v19 = vor.u32 %v1869_v59, %v6893_v29  ;;  %v792_v58 = vmul.f32 %v6968_v4, %v6318_v21  ;;  %v6087_v29 = vld [vmem:[%s10392_s6] sm:$0xff]  }
  0x98   : > { %v1663_v47 = vsel %vm1650_vm6, %v1660_v53, %v10455_v2  ;;  %v911_v35 = vmul.f32 %v6979_v33, %v6318_v21  ;;  %v7154_v32 = vmul.f32 %v6979_v33, %v6340_v30  ;;  %v10452_v40 = vrot.slane %v7148_v57, 1 }
  0x99   : > { %v1711_v14 = vadd.f32 %v1661_v6, %v1592_v16  ;;  %v1712_v50 = vadd.f32 %v1663_v47, %v1593_v25  ;;  %v845_v18 = vrot.slane %v792_v58, 1  ;;  %v7161_v52 = vunpack.c.h.bf16 %v6784_v56  ;;  %5970 = vmatpush3.bf16.msra.mxu0 %v6087_v29 }
  0x9a   : > { %v7164_v17 = vunpack.c.l.bf16 %v7126_v43  ;;  %v964_v53 = vrot.slane %v911_v35, 2  ;;  %v10454_v15 = vrot.slane %v7154_v32, 2  ;;  %v10640_v5 = vrot.slane %v6824_v9, 1 }
  0x9b   : > { %v1737_v21 = vadd.f32 %v6567_v22, %v1711_v14  ;;  %v1738_v36 = vadd.f32 %v6567_v22, %v1712_v50  ;;  %v848_v56 = vsel %vm815_vm1, %v845_v18, %v10452_v40  ;;  %v1032_v16 = vmul.f32 %v6994_v61, %v6803_v24 }
  0x9c   : > { %v846_v59 = vsel %vm815_vm1, %v10640_v5, %v845_v18  ;;  %v7180_v25 = vmul.f32 %v6994_v61, %v6806_v63  ;;  %v887_v58 = vadd.f32 %v848_v56, %v749_v41  ;;  %v10641_v9 = vrot.slane %v6834_v48, 2 }
  0x9d   : > { %v1756_v6 = vmax.f32 %v1737_v21, 0.0  ;;  %v1757_v22 = vmax.f32 %v1738_v36, 0.0  ;;  %v886_v47 = vadd.f32 %v846_v59, %v748_v26  ;;  %v967_v50 = vsel %vm934_vm2, %v964_v53, %v10454_v15 }
  0x9e   : > { %v965_v14 = vsel %vm934_vm2, %v10641_v9, %v964_v53  ;;  %v1084_v35 = vrot.slane %v1032_v16, 2  ;;  %v10453_v18 = vrot.slane %v7180_v25, 2  ;;  %v1006_v36 = vadd.f32 %v967_v50, %v887_v58 }
  0x9f   : > { %v1782_v5 = vmul.f32 %v6598_v34, %v1756_v6  ;;  %v1783_v40 = vmul.f32 %v6598_v34, %v1757_v22  ;;  %v1005_v21 = vadd.f32 %v965_v14, %v886_v47  ;;  %v10642_v26 = vrot.slane %v6856_v27, 2  ;;  %v7217_v14 = vld [vmem:[%s10388_s2 + $0x6] ss:$0 sm:$0xff] }
  0xa0   : > { %v1087_v48 = vsel %vm934_vm2, %v1084_v35, %v10453_v18  ;;  %v1150_v29 = vmul.f32 %v7034_v0, %v6803_v24  ;;  %v7201_v53 = vmul.f32 %v7034_v0, %v6806_v63  ;;  %v1269_v47 = vmul.f32 %v7045_v10, %v6803_v24 }
  0xa1   : > { %v1085_v41 = vsel %vm934_vm2, %v10642_v26, %v1084_v35  ;;  %v1808_v59 = vadd.f32 %v6609_v55, %v1782_v5  ;;  %v1809_v56 = vadd.f32 %v6609_v55, %v1783_v40  ;;  %v1126_v6 = vadd.f32 %v1087_v48, %v1006_v36  ;;  %v7228_v35 = vld [vmem:[%s10388_s2 + $0x7] ss:$0 sm:$0xff] }
  0xa2   : > { %v1125_v16 = vadd.f32 %v1085_v41, %v1005_v21  ;;  %v1203_v27 = vrot.slane %v1150_v29, 3  ;;  %v10456_v22 = vrot.slane %v7201_v53, 3  ;;  %v7210_v58 = vmul.f32 %v7045_v10, %v6806_v63 }
  0xa3   : > { %v7212_v9 = vpack.c.bf16 %v1809_v56, %v1808_v59  ;;  %v1390_v40 = vmul.f32 %v7217_v14, %v7161_v52  ;;  %v7223_v50 = vmul.f32 %v7217_v14, %v7164_v17  ;;  %v1508_v5 = vmul.f32 %v7228_v35, %v7161_v52 }
  0xa4   : > { %v10643_v21 = vrot.slane %v6869_v38, 3  ;;  %v1206_v26 = vsel %vm1173_vm3, %v1203_v27, %v10456_v22  ;;  %v1322_v41 = vrot.slane %v1269_v47, 4  ;;  %v10460_v48 = vrot.slane %v7210_v58, 4 }
  0xa5   : > { %v1873_v29 = vshll.u32 %v7212_v9, 16  ;;  %v1245_v56 = vadd.f32 %v1206_v26, %v1126_v6  ;;  %v1442_v18 = vrot.slane %v1390_v40, 4  ;;  %v10644_v15 = vrot.slane %v6883_v20, 4  ;;  %v7263_v26 = vld [vmem:[%s10388_s2 + $0x8] ss:$0 sm:$0xff] }
  0xa6   : > { %v1204_v36 = vsel %vm1173_vm3, %v10643_v21, %v1203_v27  ;;  %v1325_v38 = vsel %vm1292_vm4, %v1322_v41, %v10460_v48  ;;  %v10457_v21 = vrot.slane %v7223_v50, 4  ;;  %v7249_v27 = vmul.f32 %v7228_v35, %v7164_v17 }
  0xa7   : > { %v1244_v59 = vadd.f32 %v1204_v36, %v1125_v16  ;;  %v1323_v2 = vsel %vm1292_vm4, %v10644_v15, %v1322_v41  ;;  %v7251_v47 = vrot.slane %v1873_v29, 1  ;;  %v1364_v16 = vadd.f32 %v1325_v38, %v1245_v56 }
  0xa8   : > { %v10645_v6 = vrot.slane %v6903_v51, 4  ;;  %v1445_v15 = vsel %vm1292_vm4, %v1442_v18, %v10457_v21  ;;  %v1561_v40 = vrot.slane %v1508_v5, 5  ;;  %v10459_v36 = vrot.slane %v7249_v27, 5 }
  0xa9   : > { %v1363_v22 = vadd.f32 %v1323_v2, %v1244_v59  ;;  %v1627_v2 = vmul.f32 %v7263_v26, %v7161_v52  ;;  %v1876_v51 = vsel %vm1856_vm7, %v7142_v19, %v7251_v47  ;;  %v1484_v29 = vadd.f32 %v1445_v15, %v1364_v16 }
  0xaa   : > { %v1443_v20 = vsel %vm1292_vm4, %v10645_v6, %v1442_v18  ;;  %v7272_v18 = vmul.f32 %v7263_v26, %v7164_v17  ;;  %5872 = vmatmul.mubr.bf16.gmra.mxu0 %v1876_v51  ;;  %v10647_v5 = vrot.slane %v6916_v8, 5  ;;  %v1564_v56 = vsel %vm1531_vm5, %v1561_v40, %v10459_v36 }
  0xab   : > { %v1483_v41 = vadd.f32 %v1443_v20, %v1363_v22  ;;  %v1680_v38 = vrot.slane %v1627_v2, 6  ;;  %v1909_v6 = vshrl.u32 %v7061_v12, 16  ;;  %v1603_v19 = vadd.f32 %v1564_v56, %v1484_v29  ;;  %5875 = vmatprep.mubr.msk.bf16.mxu0 %vm6169_vm0, %v10615_v13 }
  0xac   : > { %10646 = vst [vmem:[#allocation2_spill] sm:$0xff] %v7272_v18  ;;  %v1562_v59 = vsel %vm1531_vm5, %v10647_v5, %v1561_v40  ;;  %v10458_v22 = vrot.slane %v7272_v18, 6  ;;  %v740_v16 = vmul.f32 %v6950_v39, %v6589_v62  ;;  %v10648_v8 = vrot.slane %v6924_v44, 6 }
  0xad   : > { %v1602_v21 = vadd.f32 %v1562_v59, %v1483_v41  ;;  %v7290_v15 = vor.u32 %v1909_v6, %v7095_v31  ;;  %v741_v12 = vmul.f32 %v6950_v39, %v6591_v37  ;;  %v784_v40 = vmul.f32 %v6968_v4, %v6591_v37  ;;  %v7310_v59 = vld [vmem:[%s10389_s3] ss:$0 sm:$0xff] }
  0xae   : > { %v1681_v20 = vsel %vm1650_vm6, %v10648_v8, %v1680_v38  ;;  %v1683_v2 = vsel %vm1650_vm6, %v1680_v38, %v10458_v22  ;;  %v903_v62 = vmul.f32 %v6979_v33, %v6591_v37  ;;  %v1024_v44 = vmul.f32 %v6994_v61, %v10631_v1  ;;  %v10649_v38 = vld [vmem:[#allocation4_spill] sm:$0xff] }
  0xaf   : > { %v1721_v51 = vadd.f32 %v1681_v20, %v1602_v21  ;;  %v1722_v41 = vadd.f32 %v1683_v2, %v1603_v19  ;;  %v829_v31 = vrot.slane %v784_v40, 1  ;;  %v1142_v29 = vmul.f32 %v7034_v0, %v10631_v1  ;;  %v10651_v40 = vld [vmem:[#allocation5_spill] sm:$0xff] }
  0xb0   : > { %v1261_v5 = vmul.f32 %v7045_v10, %v10631_v1  ;;  %v948_v56 = vrot.slane %v903_v62, 2  ;;  %v1068_v37 = vrot.slane %v1024_v44, 2  ;;  %v1382_v6 = vmul.f32 %v7217_v14, %v10649_v38 }
  0xb1   : > { %v1747_v21 = vadd.f32 %v7310_v59, %v1721_v51  ;;  %v1748_v19 = vadd.f32 %v7310_v59, %v1722_v41  ;;  %v10650_v8 = vrot.slane %v6974_v23, 1  ;;  %v10652_v1 = vrot.slane %v10651_v40, 1  ;;  %v10657_v40 = vld [vmem:[#allocation7_spill] sm:$0xff] }
  0xb2   : > { %v1187_v22 = vrot.slane %v1142_v29, 3  ;;  %v10653_v51 = vrot.slane %v6985_v42, 2  ;;  %v10655_v49 = vrot.slane %v10654_v54, 2  ;;  %v10656_v23 = vrot.slane %v7000_v7, 2  ;;  %v10660_v54 = vld [vmem:[#allocation8_spill] sm:$0xff] }
  0xb3   : > { %v830_v20 = vsel %vm815_vm1, %v10650_v8, %v829_v31  ;;  %v832_v2 = vsel %vm815_vm1, %v829_v31, %v10652_v1  ;;  %v1766_v36 = vmax.f32 %v1747_v21, 0.0  ;;  %v1767_v44 = vmax.f32 %v1748_v19, 0.0 }
  0xb4   : > { %v878_v48 = vadd.f32 %v830_v20, %v740_v16  ;;  %v879_v60 = vadd.f32 %v832_v2, %v741_v12  ;;  %v949_v62 = vsel %vm934_vm2, %v10653_v51, %v948_v56  ;;  %v951_v41 = vsel %vm934_vm2, %v948_v56, %v10655_v49  ;;  %v7341_v49 = vld [vmem:[%s10390_s4] ss:$0 sm:$0xff] }
  0xb5   : > { %v1069_v8 = vsel %vm934_vm2, %v10656_v23, %v1068_v37  ;;  %v10658_v18 = vrot.slane %v10657_v40, 2  ;;  %v1792_v16 = vmul.f32 %v6598_v34, %v1766_v36  ;;  %v10659_v42 = vrot.slane %v7040_v46, 3  ;;  %v7353_v36 = vld [vmem:[%s10391_s5] ss:$0 sm:$0xff] }
  0xb6   : > { %v997_v12 = vadd.f32 %v949_v62, %v878_v48  ;;  %v998_v29 = vadd.f32 %v951_v41, %v879_v60  ;;  %v1793_v7 = vmul.f32 %v7341_v49, %v1767_v44  ;;  %v10661_v56 = vrot.slane %v10660_v54, 3  ;;  %v10666_v41 = vld [vmem:[#allocation10_spill] sm:$0xff] }
  0xb7   : > { %v1071_v31 = vsel %vm934_vm2, %v1068_v37, %v10658_v18  ;;  %v1188_v21 = vsel %vm1173_vm3, %v10659_v42, %v1187_v22  ;;  %v1306_v18 = vrot.slane %v1261_v5, 4  ;;  %v1426_v37 = vrot.slane %v1382_v6, 4  ;;  %v10663_v5 = vld [vmem:[#allocation9_spill] sm:$0xff] }
  0xb8   : > { %v1190_v19 = vsel %vm1173_vm3, %v1187_v22, %v10661_v56  ;;  %v1818_v34 = vadd.f32 %v6609_v55, %v1792_v16  ;;  %v1117_v60 = vadd.f32 %v1069_v8, %v997_v12  ;;  %v1118_v48 = vadd.f32 %v1071_v31, %v998_v29 }
  0xb9   : > { %v1500_v46 = vmul.f32 %v7228_v35, %v10649_v38  ;;  %v1819_v20 = vadd.f32 %v7353_v36, %v1793_v7  ;;  %v10662_v1 = vrot.slane %v7051_v3, 4  ;;  %v10664_v6 = vrot.slane %v10663_v5, 4  ;;  %v10669_v7 = vld [vmem:[#allocation11_spill] sm:$0xff] }
  0xba   : > { %v10665_v2 = vrot.slane %v7067_v45, 4  ;;  %v1236_v62 = vadd.f32 %v1188_v21, %v1117_v60  ;;  %v1237_v44 = vadd.f32 %v1190_v19, %v1118_v48  ;;  %v10667_v23 = vrot.slane %v10666_v41, 4 }
  0xbb   : > { %v1307_v22 = vsel %vm1292_vm4, %v10662_v1, %v1306_v18  ;;  %v1309_v55 = vsel %vm1292_vm4, %v1306_v18, %v10664_v6  ;;  %v1545_v40 = vrot.slane %v1500_v46, 5  ;;  %v7368_v31 = vpack.c.bf16 %v1819_v20, %v1818_v34 }
  0xbc   : > { %v1427_v51 = vsel %vm1292_vm4, %v10665_v2, %v1426_v37  ;;  %v1429_v8 = vsel %vm1292_vm4, %v1426_v37, %v10667_v23  ;;  %v1619_v3 = vmul.f32 %v7263_v26, %v10649_v38  ;;  %v1877_v16 = vshrl.u32 %v7212_v9, 16 }
  0xbd   : > { %v750_v12 = vmul.f32 %v6950_v39, %v6340_v30  ;;  %v1355_v45 = vadd.f32 %v1307_v22, %v1236_v62  ;;  %v1356_v29 = vadd.f32 %v1309_v55, %v1237_v44  ;;  %v10668_v42 = vrot.slane %v7090_v11, 5 }
  0xbe   : > { %v10670_v54 = vrot.slane %v10669_v7, 5  ;;  %v1913_v19 = vshll.u32 %v7368_v31, 16  ;;  %v1664_v18 = vrot.slane %v1619_v3, 6  ;;  %v7383_v38 = vor.u32 %v1877_v16, %v7251_v47  ;;  %v10672_v47 = vld [vmem:[#allocation12_spill] sm:$0xff] }
  0xbf   : > { %v1546_v21 = vsel %vm1531_vm5, %v10668_v42, %v1545_v40  ;;  %v751_v9 = vmul.f32 %v6950_v39, %v6803_v24  ;;  %v1475_v30 = vadd.f32 %v1427_v51, %v1355_v45  ;;  %v1476_v37 = vadd.f32 %v1429_v8, %v1356_v29 }
  0xc0   : > { %v1548_v56 = vsel %vm1531_vm5, %v1545_v40, %v10670_v54  ;;  %v794_v11 = vmul.f32 %v6968_v4, %v6803_v24  ;;  %v7391_v34 = vmul.f32 %v6968_v4, %v6806_v63  ;;  %v7393_v60 = vrot.slane %v1913_v19, 1 }
  0xc1   : > { %v10671_v48 = vrot.slane %v7109_v28, 6  ;;  %v10673_v20 = vrot.slane %v10672_v47, 6  ;;  %v913_v22 = vmul.f32 %v6979_v33, %v6803_v24  ;;  %v1594_v5 = vadd.f32 %v1546_v21, %v1475_v30 }
  0xc2   : > { %v1595_v6 = vadd.f32 %v1548_v56, %v1476_v37  ;;  %v849_v55 = vrot.slane %v794_v11, 1  ;;  %v851_v2 = vrot.slane %v7391_v34, 1  ;;  %v1916_v4 = vsel %vm1856_vm7, %v7290_v15, %v7393_v60  ;;  %v7565_v34 = vld [vmem:[%s10388_s2 + $0x1] ss:$0 sm:$0xff] }
  0xc3   : > { %v1665_v46 = vsel %vm1650_vm6, %v10671_v48, %v1664_v18  ;;  %v1667_v1 = vsel %vm1650_vm6, %v1664_v18, %v10673_v20  ;;  %v7409_v28 = vmul.f32 %v6979_v33, %v6806_v63  ;;  %v968_v51 = vrot.slane %v913_v22, 2  ;;  %5892 = vmatmul.mubr.bf16.gmra.mxu1 %v1916_v4 }
  0xc4   : > { %v1034_v62 = vmul.f32 %v6994_v61, %v7161_v52  ;;  %v1713_v44 = vadd.f32 %v1665_v46, %v1594_v5  ;;  %v1714_v24 = vadd.f32 %v1667_v1, %v1595_v6  ;;  %v10674_v41 = vrot.slane %v7148_v57, 1  ;;  %5895 = vmatprep.mubr.msk.bf16.mxu1 %vm6169_vm0, %v10615_v13 }
  0xc5   : > { %v852_v8 = vsel %vm815_vm1, %v849_v55, %v851_v2  ;;  %v10675_v40 = vrot.slane %v7154_v32, 2  ;;  %v970_v16 = vrot.slane %v7409_v28, 2  ;;  %v7429_v29 = vmul.f32 %v6994_v61, %v7164_v17 }
  0xc6   : > { %v850_v23 = vsel %vm815_vm1, %v10674_v41, %v849_v55  ;;  %v889_v15 = vadd.f32 %v852_v8, %v751_v9  ;;  %v1739_v57 = vadd.f32 %v7310_v59, %v1713_v44  ;;  %v1740_v45 = vadd.f32 %v7310_v59, %v1714_v24  ;;  %v7444_v9 = vld [vmem:[%s6273_s28 + $0x60] sm:$0xff]  }
  0xc7   : > { %v888_v33 = vadd.f32 %v850_v23, %v750_v12  ;;  %v969_v3 = vsel %vm934_vm2, %v10675_v40, %v968_v51  ;;  %v1088_v42 = vrot.slane %v1034_v62, 2  ;;  %v971_v12 = vsel %vm934_vm2, %v968_v51, %v970_v16 }
  0xc8   : > { %v1152_v32 = vmul.f32 %v7034_v0, %v7161_v52  ;;  %v7438_v7 = vmul.f32 %v7034_v0, %v7164_v17  ;;  %v1758_v54 = vmax.f32 %v1739_v57, 0.0  ;;  %v1759_v56 = vmax.f32 %v1740_v45, 0.0 }
  0xc9   : > { %v1007_v21 = vadd.f32 %v969_v3, %v888_v33  ;;  %v1008_v19 = vadd.f32 %v971_v12, %v889_v15  ;;  %v10676_v18 = vrot.slane %v7180_v25, 2  ;;  %v1090_v30 = vrot.slane %v7429_v29, 2  ;;  %v7599_v29 = vld [vmem:[%s10388_s2 + $0x2] ss:$0 sm:$0xff] }
  0xca   : > { %v1207_v11 = vrot.slane %v1152_v32, 3  ;;  %v1209_v48 = vrot.slane %v7438_v7, 3  ;;  %v1784_v46 = vmul.f32 %v7341_v49, %v1758_v54  ;;  %v1785_v0 = vmul.f32 %v7341_v49, %v1759_v56 }
  0xcb   : > { %v1089_v61 = vsel %vm934_vm2, %v10676_v18, %v1088_v42  ;;  %v1271_v47 = vmul.f32 %v7045_v10, %v7161_v52  ;;  %v7454_v25 = vmul.f32 %v7045_v10, %v7164_v17  ;;  %v1091_v20 = vsel %vm934_vm2, %v1088_v42, %v1090_v30 }
  0xcc   : > { %v1127_v37 = vadd.f32 %v1089_v61, %v1007_v21  ;;  %v10677_v1 = vrot.slane %v7201_v53, 3  ;;  %v1210_v5 = vsel %vm1173_vm3, %v1207_v11, %v1209_v48  ;;  %v7466_v6 = vunpack.c.h.bf16 %v7126_v43 }
  0xcd   : > { %v1810_v55 = vadd.f32 %v7353_v36, %v1784_v46  ;;  %v1811_v10 = vadd.f32 %v7353_v36, %v1785_v0  ;;  %v1128_v4 = vadd.f32 %v1091_v20, %v1008_v19  ;;  %v1326_v62 = vrot.slane %v1271_v47, 4  ;;  %v6089_v47 = vld [vmem:[%s6273_s28 + $0xa0] sm:$0xff]  }
  0xce   : > { %v1208_v22 = vsel %vm1173_vm3, %v10677_v1, %v1207_v11  ;;  %v1328_v44 = vrot.slane %v7454_v25, 4  ;;  %v7472_v53 = vunpack.c.l.bf16 %v7444_v9  ;;  %v1392_v24 = vmul.f32 %v7217_v14, %v7466_v6  ;;  %v6088_v11 = vld [vmem:[%s6273_s28 + $0x98] sm:$0xff]  }
  0xcf   : > { %v1246_v51 = vadd.f32 %v1208_v22, %v1127_v37  ;;  %v1826_v41 = vpack.c.bf16 %v1811_v10, %v1810_v55  ;;  %v1247_v23 = vadd.f32 %v1210_v5, %v1128_v4  ;;  %v1510_v43 = vmul.f32 %v7228_v35, %v7466_v6  ;;  %v6090_v55 = vld [vmem:[%s6273_s28 + $0xa8] sm:$0xff]  }
  0xd0   : > { %v1629_v8 = vmul.f32 %v7263_v26, %v7466_v6  ;;  %v10678_v33 = vrot.slane %v7210_v58, 4  ;;  %v1329_v40 = vsel %vm1292_vm4, %v1326_v62, %v1328_v44  ;;  %v7488_v3 = vmul.f32 %v7217_v14, %v7472_v53 }
  0xd1   : > { %v1446_v57 = vrot.slane %v1392_v24, 4  ;;  %v1881_v45 = vshll.u32 %v1826_v41, 16  ;;  %v1366_v12 = vadd.f32 %v1329_v40, %v1247_v23  ;;  %v7492_v21 = vmul.f32 %v7228_v35, %v7472_v53 }
  0xd2   : > { %v1327_v15 = vsel %vm1292_vm4, %v10678_v33, %v1326_v62  ;;  %v10679_v58 = vrot.slane %v7223_v50, 4  ;;  %v1448_v54 = vrot.slane %v7488_v3, 4  ;;  %v1565_v56 = vrot.slane %v1510_v43, 5  ;;  %v6091_v62 = vld [vmem:[%s6273_s28 + $0xb0] sm:$0xff]  }
  0xd3   : > { %v1365_v42 = vadd.f32 %v1327_v15, %v1246_v51  ;;  %v7500_v14 = vmul.f32 %v7263_v26, %v7472_v53  ;;  %v1883_v19 = vrot.slane %v1881_v45, 1  ;;  %v1567_v61 = vrot.slane %v7492_v21, 5 }
  0xd4   : > { %v1447_v32 = vsel %vm1292_vm4, %v10679_v58, %v1446_v57  ;;  %v1684_v37 = vrot.slane %v1629_v8, 6  ;;  %v1449_v50 = vsel %vm1292_vm4, %v1446_v57, %v1448_v54  ;;  %v10680_v35 = vrot.slane %v7249_v27, 5  ;;  %v10681_v27 = vld [vmem:[#allocation2_spill] sm:$0xff]  ;;  %v7534_v8 = vld [vmem:[%s6273_s28 + $0xb8] sm:$0xff]  }
  0xd5   : > { %v1485_v18 = vadd.f32 %v1447_v32, %v1365_v42  ;;  %v1686_v0 = vrot.slane %v7500_v14, 6  ;;  %v1917_v26 = vshrl.u32 %v7368_v31, 16  ;;  %v1884_v20 = vsel %vm1856_vm7, %v7383_v38, %v1883_v19  ;;  %v10688_v58 = vld [vmem:[#allocation13_spill] sm:$0xff] }
  0xd6   : > { %v1566_v46 = vsel %vm1531_vm5, %v10680_v35, %v1565_v56  ;;  %v1486_v1 = vadd.f32 %v1449_v50, %v1366_v12  ;;  %v1568_v22 = vsel %vm1531_vm5, %v1565_v56, %v1567_v61  ;;  %5876 = vmatmul.mubr.bf16.gmra.mxu0 %v1884_v20  ;;  %v10682_v10 = vrot.slane %v10681_v27, 6 }
  0xd7   : > { %v1604_v5 = vadd.f32 %v1566_v46, %v1485_v18  ;;  %v1687_v31 = vsel %vm1650_vm6, %v1684_v37, %v1686_v0  ;;  %v7526_v51 = vor.u32 %v1917_v26, %v7393_v60  ;;  %v1885_v38 = vshrl.u32 %v1826_v41, 16  ;;  %5879 = vmatprep.mubr.msk.bf16.mxu0 %vm6169_vm0, %v10615_v13 }
  0xd8   : > { %v1685_v4 = vsel %vm1650_vm6, %v10682_v10, %v1684_v37  ;;  %v1605_v24 = vadd.f32 %v1568_v22, %v1486_v1  ;;  %v752_v43 = vmul.f32 %v6950_v39, %v6806_v63  ;;  %v7536_v33 = vunpack.c.l.bf16 %v6088_v11  ;;  %v7552_v39 = vld [vmem:[%s10388_s2] ss:$0 sm:$0xff] }
  0xd9   : > { %v1723_v23 = vadd.f32 %v1685_v4, %v1604_v5  ;;  %v1887_v15 = vor.u32 %v1885_v38, %v1883_v19  ;;  %v7538_v40 = vunpack.c.h.bf16 %v6088_v11  ;;  %v7540_v57 = vunpack.c.l.bf16 %v6089_v47 }
  0xda   : > { %10683 = vst [vmem:[#allocation3_spill] sm:$0xff] %v7536_v33  ;;  %v7542_v60 = vunpack.c.h.bf16 %v6089_v47  ;;  %v1724_v41 = vadd.f32 %v1687_v31, %v1605_v24  ;;  %v890_v42 = vadd.f32 %v851_v2, %v752_v43  ;;  %v7547_v12 = vunpack.c.l.bf16 %v6090_v55 }
  0xdb   : > { %10684 = vst [vmem:[#allocation14_spill] sm:$0xff] %v7538_v40  ;;  %10685 = vst [vmem:[#allocation15_spill] sm:$0xff] %v7540_v57  ;;  %v1749_v45 = vadd.f32 %v7310_v59, %v1723_v23  ;;  %v1892_v32 = vsel %vm1856_vm7, %v1887_v15, %v10688_v58  ;;  %v7556_v56 = vunpack.c.h.bf16 %v6090_v55  ;;  %v7558_v19 = vunpack.c.l.bf16 %v6091_v62 }
  0xdc   : > { %10686 = vst [vmem:[#allocation16_spill] sm:$0xff] %v7542_v60  ;;  %10687 = vst [vmem:[#allocation17_spill] sm:$0xff] %v7547_v12  ;;  %v7560_v18 = vunpack.c.h.bf16 %v6091_v62  ;;  %v1750_v2 = vadd.f32 %v7310_v59, %v1724_v41  ;;  %v1009_v11 = vadd.f32 %v970_v16, %v890_v42  ;;  %v7571_v50 = vunpack.c.l.bf16 %v7534_v8 }
  0xdd   : > { %v1768_v37 = vmax.f32 %v1749_v45, 0.0  ;;  %v3803_v35 = vmul.f32 %v7552_v39, %v7536_v33  ;;  %v3804_v46 = vmul.f32 %v7552_v39, %v7538_v40  ;;  %v3805_v26 = vmul.f32 %v7552_v39, %v7540_v57 }
  0xde   : > { %10689 = vst [vmem:[#allocation4_spill] sm:$0xff] %v7571_v50  ;;  %v3806_v47 = vmul.f32 %v7552_v39, %v7542_v60  ;;  %v1769_v20 = vmax.f32 %v1750_v2, 0.0  ;;  %v1129_v28 = vadd.f32 %v1090_v30, %v1009_v11  ;;  %v3846_v16 = vmul.f32 %v7565_v34, %v7536_v33  ;;  %5880 = vmatmul.mubr.bf16.gmra.mxu0 %v1892_v32 }
  0xdf   : > { %v1794_v1 = vmul.f32 %v7341_v49, %v1768_v37  ;;  %v3847_v22 = vmul.f32 %v7565_v34, %v7538_v40  ;;  %v3848_v5 = vmul.f32 %v7565_v34, %v7540_v57  ;;  %v3849_v55 = vmul.f32 %v7565_v34, %v7542_v60  ;;  %5971 = vmatprep.mubr.msk.bf16.mxu0 %vm6169_vm0, %v10615_v13 }
  0xe0   : > { %v7594_v27 = vmul.f32 %v7565_v34, %v7547_v12  ;;  %v1795_v30 = vmul.f32 %v7341_v49, %v1769_v20  ;;  %v1248_v4 = vadd.f32 %v1209_v48, %v1129_v28  ;;  %v3884_v31 = vrot.slane %v3846_v16, 1  ;;  %v7630_v28 = vld [vmem:[%s10388_s2 + $0x3] ss:$0 sm:$0xff] }
  0xe1   : > { %v1820_v10 = vadd.f32 %v7353_v36, %v1794_v1  ;;  %v3885_v38 = vrot.slane %v3847_v22, 1  ;;  %v3887_v62 = vrot.slane %v3848_v5, 1  ;;  %v3889_v24 = vrot.slane %v3849_v55, 1 }
  0xe2   : > { %v10472_v23 = vrot.slane %v7594_v27, 1  ;;  %v1821_v43 = vadd.f32 %v7353_v36, %v1795_v30  ;;  %v1367_v15 = vadd.f32 %v1328_v44, %v1248_v4  ;;  %v3964_v41 = vmul.f32 %v7599_v29, %v7536_v33 }
  0xe3   : > { %v3965_v7 = vmul.f32 %v7599_v29, %v7538_v40  ;;  %v3886_v48 = vsel %vm815_vm1, %v3884_v31, %v3885_v38  ;;  %v3888_v45 = vsel %vm815_vm1, %v3885_v38, %v3887_v62  ;;  %v3890_v42 = vsel %vm815_vm1, %v3887_v62, %v3889_v24 }
  0xe4   : > { %v3892_v58 = vsel %vm815_vm1, %v3889_v24, %v10472_v23  ;;  %v1831_v32 = vpack.c.bf16 %v1821_v43, %v1820_v10  ;;  %v1487_v25 = vadd.f32 %v1448_v54, %v1367_v15  ;;  %v3940_v44 = vadd.f32 %v3886_v48, %v3803_v35  ;;  %v7657_v24 = vld [vmem:[%s10388_s2 + $0x4] ss:$0 sm:$0xff] }
  0xe5   : > { %v3941_v2 = vadd.f32 %v3888_v45, %v3804_v46  ;;  %v3942_v37 = vadd.f32 %v3890_v42, %v3805_v26  ;;  %v3943_v11 = vadd.f32 %v3892_v58, %v3806_v47  ;;  %v3966_v20 = vmul.f32 %v7599_v29, %v7540_v57 }
  0xe6   : > { %v3967_v1 = vmul.f32 %v7599_v29, %v7542_v60  ;;  %v1921_v16 = vshll.u32 %v1831_v32, 16  ;;  %v1606_v3 = vadd.f32 %v1567_v61, %v1487_v25  ;;  %v1925_v54 = vshrl.u32 %v1831_v32, 16 }
  0xe7   : > { %v7636_v35 = vmul.f32 %v7599_v29, %v7547_v12  ;;  %v4002_v46 = vrot.slane %v3964_v41, 2  ;;  %v4003_v26 = vrot.slane %v3965_v7, 2  ;;  %v4005_v47 = vrot.slane %v3966_v20, 2 }
  0xe8   : > { %v4007_v22 = vrot.slane %v3967_v1, 2  ;;  %v1923_v5 = vrot.slane %v1921_v16, 1  ;;  %v1725_v55 = vadd.f32 %v1686_v0, %v1606_v3  ;;  %v4084_v10 = vmul.f32 %v7630_v28, %v7540_v57 }
  0xe9   : > { %v10471_v30 = vrot.slane %v7636_v35, 2  ;;  %v4004_v21 = vsel %vm934_vm2, %v4002_v46, %v4003_v26  ;;  %v4006_v61 = vsel %vm934_vm2, %v4003_v26, %v4005_v47  ;;  %v4085_v31 = vmul.f32 %v7630_v28, %v7542_v60 }
  0xea   : > { %v4008_v4 = vsel %vm934_vm2, %v4005_v47, %v4007_v22  ;;  %v1924_v38 = vsel %vm1856_vm7, %v7526_v51, %v1923_v5  ;;  %v1751_v14 = vadd.f32 %v7310_v59, %v1725_v55  ;;  %v1927_v0 = vor.u32 %v1925_v54, %v1923_v5  ;;  %v7693_v47 = vld [vmem:[%s10388_s2 + $0x5] ss:$0 sm:$0xff] }
  0xeb   : > { %v4010_v62 = vsel %vm934_vm2, %v4007_v22, %v10471_v30  ;;  %5896 = vmatmul.mubr.bf16.gmra.mxu1 %v1924_v38  ;;  %v4058_v43 = vadd.f32 %v4004_v21, %v3940_v44  ;;  %v4059_v15 = vadd.f32 %v4006_v61, %v3941_v2  ;;  %v4060_v41 = vadd.f32 %v4008_v4, %v3942_v37 }
  0xec   : > { %v4061_v7 = vadd.f32 %v4010_v62, %v3943_v11  ;;  %5899 = vmatprep.mubr.msk.bf16.mxu1 %vm6169_vm0, %v10615_v13  ;;  %v1770_v51 = vmax.f32 %v1751_v14, 0.0  ;;  %v4086_v59 = vmul.f32 %v7630_v28, %v7547_v12  ;;  %v4087_v48 = vmul.f32 %v7630_v28, %v7556_v56 }
  0xed   : > { %v7667_v45 = vmul.f32 %v7630_v28, %v7558_v19  ;;  %v4122_v42 = vrot.slane %v4084_v10, 2  ;;  %v4123_v58 = vrot.slane %v4085_v31, 2  ;;  %v4202_v32 = vmul.f32 %v7657_v24, %v7540_v57 }
  0xee   : > { %v4203_v25 = vmul.f32 %v7657_v24, %v7542_v60  ;;  %v1796_v44 = vmul.f32 %v7341_v49, %v1770_v51  ;;  %v4125_v2 = vrot.slane %v4086_v59, 2  ;;  %v4127_v37 = vrot.slane %v4087_v48, 2 }
  0xef   : > { %v10470_v11 = vrot.slane %v7667_v45, 2  ;;  %v4124_v20 = vsel %vm934_vm2, %v4122_v42, %v4123_v58  ;;  %v4204_v1 = vmul.f32 %v7657_v24, %v7547_v12  ;;  %v4205_v16 = vmul.f32 %v7657_v24, %v7556_v56 }
  0xf0   : > { %v7682_v3 = vmul.f32 %v7657_v24, %v7558_v19  ;;  %v1822_v54 = vadd.f32 %v7353_v36, %v1796_v44  ;;  %v4126_v49 = vsel %vm934_vm2, %v4123_v58, %v4125_v2  ;;  %v4128_v46 = vsel %vm934_vm2, %v4125_v2, %v4127_v37  ;;  %v7711_v58 = vld [vmem:[%s10388_s2 + $0x6] ss:$0 sm:$0xff] }
  0xf1   : > { %v4130_v26 = vsel %vm934_vm2, %v4127_v37, %v10470_v11  ;;  %v4178_v22 = vadd.f32 %v4124_v20, %v4058_v43  ;;  %v4179_v5 = vadd.f32 %v4126_v49, %v4059_v15  ;;  %v4180_v55 = vadd.f32 %v4128_v46, %v4060_v41 }
  0xf2   : > { %v4181_v10 = vadd.f32 %v4130_v26, %v4061_v7  ;;  %v1832_v21 = vpack.c.bf16 %v1822_v54, %v1822_v54  ;;  %v4240_v61 = vrot.slane %v4202_v32, 3  ;;  %v4241_v36 = vrot.slane %v4203_v25, 3 }
  0xf3   : > { %v4243_v4 = vrot.slane %v4204_v1, 3  ;;  %v4245_v31 = vrot.slane %v4205_v16, 3  ;;  %v10467_v38 = vrot.slane %v7682_v3, 3  ;;  %v4320_v14 = vmul.f32 %v7693_v47, %v7540_v57 }
  0xf4   : > { %v4321_v62 = vmul.f32 %v7693_v47, %v7542_v60  ;;  %v1929_v51 = vshll.u32 %v1832_v21, 16  ;;  %v4242_v59 = vsel %vm1173_vm3, %v4240_v61, %v4241_v36  ;;  %v4322_v15 = vmul.f32 %v7693_v47, %v7547_v12 }
  0xf5   : > { %v4244_v43 = vsel %vm1173_vm3, %v4241_v36, %v4243_v4  ;;  %v4246_v41 = vsel %vm1173_vm3, %v4243_v4, %v4245_v31  ;;  %v4248_v7 = vsel %vm1173_vm3, %v4245_v31, %v10467_v38  ;;  %v4296_v48 = vadd.f32 %v4242_v59, %v4178_v22  ;;  %v7735_v4 = vld [vmem:[%s10388_s2 + $0x7] ss:$0 sm:$0xff] }
  0xf6   : > { %v4297_v42 = vadd.f32 %v4244_v43, %v4179_v5  ;;  %v1931_v32 = vrot.slane %v1929_v51, 1  ;;  %v4298_v25 = vadd.f32 %v4246_v41, %v4180_v55  ;;  %v4299_v44 = vadd.f32 %v4248_v7, %v4181_v10 }
  0xf7   : > { %v4323_v2 = vmul.f32 %v7693_v47, %v7556_v56  ;;  %v7717_v37 = vmul.f32 %v7693_v47, %v7558_v19  ;;  %v4358_v20 = vrot.slane %v4320_v14, 4  ;;  %v4359_v1 = vrot.slane %v4321_v62, 4 }
  0xf8   : > { %v4361_v16 = vrot.slane %v4322_v15, 4  ;;  %v1932_v54 = vsel %vm1856_vm7, %v1927_v0, %v1931_v32  ;;  %v4440_v46 = vmul.f32 %v7711_v58, %v7547_v12  ;;  %v4441_v26 = vmul.f32 %v7711_v58, %v7556_v56 }
  0xf9   : > { %v4363_v49 = vrot.slane %v4323_v2, 4  ;;  %5900 = vmatmul.mubr.bf16.gmra.mxu1 %v1932_v54  ;;  %v4360_v22 = vsel %vm1292_vm4, %v4358_v20, %v4359_v1  ;;  %v10466_v55 = vrot.slane %v7717_v37, 4  ;;  %v4442_v10 = vmul.f32 %v7711_v58, %v7558_v19 }
  0xfa   : > { %v4362_v5 = vsel %vm1292_vm4, %v4359_v1, %v4361_v16  ;;  %v4414_v0 = vadd.f32 %v4360_v22, %v4296_v48  ;;  %v4443_v36 = vmul.f32 %v7711_v58, %v7560_v18  ;;  %5919 = vmatprep.mubr.msk.bf16.mxu1 %vm6169_vm0, %v10615_v13  ;;  %v7744_v62 = vmul.f32 %v7711_v58, %v7571_v50  ;;  %v7761_v1 = vld [vmem:[%s10388_s2 + $0x8] ss:$0 sm:$0xff] }
  0xfb   : > { %v4364_v21 = vsel %vm1292_vm4, %v4361_v16, %v4363_v49  ;;  %v4415_v61 = vadd.f32 %v4362_v5, %v4297_v42  ;;  %v4366_v31 = vsel %vm1292_vm4, %v4363_v49, %v10466_v55  ;;  %v4478_v51 = vrot.slane %v4440_v46, 4 }
  0xfc   : > { %v4416_v14 = vadd.f32 %v4364_v21, %v4298_v25  ;;  %v4417_v59 = vadd.f32 %v4366_v31, %v4299_v44  ;;  %v4479_v43 = vrot.slane %v4441_v26, 4  ;;  %v4481_v15 = vrot.slane %v4442_v10, 4 }
  0xfd   : > { %v4483_v41 = vrot.slane %v4443_v36, 4  ;;  %v10465_v7 = vrot.slane %v7744_v62, 4  ;;  %v4558_v48 = vmul.f32 %v7735_v4, %v7547_v12  ;;  %v4559_v42 = vmul.f32 %v7735_v4, %v7556_v56 }
  0xfe   : > { %v4560_v32 = vmul.f32 %v7735_v4, %v7558_v19  ;;  %v4480_v25 = vsel %vm1292_vm4, %v4478_v51, %v4479_v43  ;;  %v4482_v2 = vsel %vm1292_vm4, %v4479_v43, %v4481_v15  ;;  %v4561_v20 = vmul.f32 %v7735_v4, %v7560_v18  ;;  %v6094_v43 = vld [vmem:[%s6273_s28 + $0x68] sm:$0xff]  }
  0xff   : > { %v4484_v44 = vsel %vm1292_vm4, %v4481_v15, %v4483_v41  ;;  %v4486_v16 = vsel %vm1292_vm4, %v4483_v41, %v10465_v7  ;;  %v4534_v54 = vadd.f32 %v4480_v25, %v4414_v0  ;;  %v4535_v49 = vadd.f32 %v4482_v2, %v4415_v61 }
 0x100   : > { %v4536_v46 = vadd.f32 %v4484_v44, %v4416_v14  ;;  %v4537_v26 = vadd.f32 %v4486_v16, %v4417_v59  ;;  %v7768_v22 = vmul.f32 %v7735_v4, %v7571_v50  ;;  %v4596_v5 = vrot.slane %v4558_v48, 5 }
 0x101   : > { %v4597_v10 = vrot.slane %v4559_v42, 5  ;;  %v4599_v21 = vrot.slane %v4560_v32, 5  ;;  %v4601_v36 = vrot.slane %v4561_v20, 5  ;;  %v4676_v31 = vmul.f32 %v7761_v1, %v7547_v12  ;;  %v7788_v32 = vld [vmem:[%s6273_s28 + $0x70] sm:$0xff]  }
 0x102   : > { %v4677_v51 = vmul.f32 %v7761_v1, %v7556_v56  ;;  %v10469_v61 = vrot.slane %v7768_v22, 5  ;;  %v4678_v14 = vmul.f32 %v7761_v1, %v7558_v19  ;;  %v4679_v59 = vmul.f32 %v7761_v1, %v7560_v18 }
 0x103   : > { %v4598_v0 = vsel %vm1531_vm5, %v4596_v5, %v4597_v10  ;;  %v4600_v15 = vsel %vm1531_vm5, %v4597_v10, %v4599_v21  ;;  %v4602_v41 = vsel %vm1531_vm5, %v4599_v21, %v4601_v36  ;;  %v7785_v42 = vmul.f32 %v7761_v1, %v7571_v50 }
 0x104   : > { %v4652_v48 = vadd.f32 %v4598_v0, %v4534_v54  ;;  %v4604_v25 = vsel %vm1531_vm5, %v4601_v36, %v10469_v61  ;;  %v4653_v2 = vadd.f32 %v4600_v15, %v4535_v49  ;;  %v4654_v44 = vadd.f32 %v4602_v41, %v4536_v46  ;;  %v7807_v46 = vld [vmem:[%s10389_s3] ss:$0 sm:$0xff] }
 0x105   : > { %v4714_v20 = vrot.slane %v4676_v31, 6  ;;  %v4655_v16 = vadd.f32 %v4604_v25, %v4537_v26  ;;  %v4715_v5 = vrot.slane %v4677_v51, 6  ;;  %v4717_v7 = vrot.slane %v4678_v14, 6 }
 0x106   : > { %v4719_v10 = vrot.slane %v4679_v59, 6  ;;  %v10468_v21 = vrot.slane %v7785_v42, 6  ;;  %v7795_v54 = vunpack.c.h.bf16 %v7444_v9  ;;  %v7797_v0 = vunpack.c.l.bf16 %v6094_v43 }
 0x107   : > { %v7799_v55 = vunpack.c.h.bf16 %v6094_v43  ;;  %v4716_v38 = vsel %vm1650_vm6, %v4714_v20, %v4715_v5  ;;  %v4718_v36 = vsel %vm1650_vm6, %v4715_v5, %v4717_v7  ;;  %v7810_v26 = vunpack.c.l.bf16 %v7788_v32 }
 0x108   : > { %v4720_v49 = vsel %vm1650_vm6, %v4717_v7, %v4719_v10  ;;  %v4722_v9 = vsel %vm1650_vm6, %v4719_v10, %v10468_v21  ;;  %v4770_v31 = vadd.f32 %v4716_v38, %v4652_v48  ;;  %v4771_v51 = vadd.f32 %v4718_v36, %v4653_v2  ;;  %v7830_v2 = vld [vmem:[%s10390_s4] ss:$0 sm:$0xff] }
 0x109   : > { %v4772_v14 = vadd.f32 %v4720_v49, %v4654_v44  ;;  %v4773_v59 = vadd.f32 %v4722_v9, %v4655_v16  ;;  %v2272_v43 = vmul.f32 %v7552_v39, %v6806_v63  ;;  %v2273_v7 = vmul.f32 %v7552_v39, %v7161_v52 }
 0x10a   : > { %v2274_v15 = vmul.f32 %v7552_v39, %v7164_v17  ;;  %v4796_v41 = vadd.f32 %v7807_v46, %v4770_v31  ;;  %v4797_v25 = vadd.f32 %v7807_v46, %v4771_v51  ;;  %v2275_v38 = vmul.f32 %v7552_v39, %v7466_v6  ;;  %v7843_v51 = vld [vmem:[%s10391_s5] ss:$0 sm:$0xff] }
 0x10b   : > { %v4798_v20 = vadd.f32 %v7807_v46, %v4772_v14  ;;  %v4799_v48 = vadd.f32 %v7807_v46, %v4773_v59  ;;  %v2315_v44 = vmul.f32 %v7565_v34, %v6806_v63  ;;  %v2316_v16 = vmul.f32 %v7565_v34, %v7161_v52 }
 0x10c   : > { %v2317_v5 = vmul.f32 %v7565_v34, %v7164_v17  ;;  %v4815_v10 = vmax.f32 %v4796_v41, 0.0  ;;  %v4816_v36 = vmax.f32 %v4797_v25, 0.0  ;;  %v2318_v9 = vmul.f32 %v7565_v34, %v7466_v6 }
 0x10d   : > { %v4817_v49 = vmax.f32 %v4798_v20, 0.0  ;;  %v4818_v31 = vmax.f32 %v4799_v48, 0.0  ;;  %v7847_v14 = vmul.f32 %v7565_v34, %v7472_v53  ;;  %v2353_v59 = vrot.slane %v2315_v44, 1 }
 0x10e   : > { %v2354_v21 = vrot.slane %v2316_v16, 1  ;;  %v4841_v61 = vmul.f32 %v7830_v2, %v4815_v10  ;;  %v4842_v41 = vmul.f32 %v7830_v2, %v4816_v36  ;;  %v2356_v20 = vrot.slane %v2317_v5, 1 }
 0x10f   : > { %10690 = vst [vmem:[#allocation5_spill] sm:$0xff] %v7847_v14  ;;  %v4843_v25 = vmul.f32 %v7830_v2, %v4817_v49  ;;  %v4844_v48 = vmul.f32 %v7830_v2, %v4818_v31  ;;  %v2358_v30 = vrot.slane %v2318_v9, 1  ;;  %v10480_v23 = vrot.slane %v7847_v14, 1 }
 0x110   : > { %v2355_v11 = vsel %vm815_vm1, %v2353_v59, %v2354_v21  ;;  %v4867_v60 = vadd.f32 %v7843_v51, %v4841_v61  ;;  %v4868_v57 = vadd.f32 %v7843_v51, %v4842_v41  ;;  %v2357_v16 = vsel %vm815_vm1, %v2354_v21, %v2356_v20 }
 0x111   : > { %v4869_v44 = vadd.f32 %v7843_v51, %v4843_v25  ;;  %v4870_v10 = vadd.f32 %v7843_v51, %v4844_v48  ;;  %v2359_v36 = vsel %vm815_vm1, %v2356_v20, %v2358_v30  ;;  %v2361_v5 = vsel %vm815_vm1, %v2358_v30, %v10480_v23 }
 0x112   : > { %v2409_v49 = vadd.f32 %v2355_v11, %v2272_v43  ;;  %v4886_v9 = vpack.c.bf16 %v4868_v57, %v4867_v60  ;;  %v2410_v31 = vadd.f32 %v2357_v16, %v2273_v7  ;;  %v2411_v59 = vadd.f32 %v2359_v36, %v2274_v15 }
 0x113   : > { %v2412_v40 = vadd.f32 %v2361_v5, %v2275_v38  ;;  %v7864_v61 = vpack.c.bf16 %v4870_v10, %v4869_v44  ;;  %v2433_v41 = vmul.f32 %v7599_v29, %v6806_v63  ;;  %v2434_v21 = vmul.f32 %v7599_v29, %v7161_v52 }
 0x114   : > { %v2435_v25 = vmul.f32 %v7599_v29, %v7164_v17  ;;  %v4920_v20 = vshrl.u32 %v4886_v9, 16  ;;  %v4922_v48 = vshll.u32 %v4886_v9, 16  ;;  %v2436_v30 = vmul.f32 %v7599_v29, %v7466_v6 }
 0x115   : > { %v7876_v57 = vmul.f32 %v7599_v29, %v7472_v53  ;;  %v4927_v60 = vshll.u32 %v7864_v61, 16  ;;  %v2471_v11 = vrot.slane %v2433_v41, 2  ;;  %v2472_v43 = vrot.slane %v2434_v21, 2 }
 0x116   : > { %v2474_v63 = vrot.slane %v2435_v25, 2  ;;  %v4924_v7 = vrot.slane %v4922_v48, 1  ;;  %v2476_v15 = vrot.slane %v2436_v30, 2  ;;  %v2553_v38 = vmul.f32 %v7630_v28, %v7164_v17 }
 0x117   : > { %10691 = vst [vmem:[#allocation6_spill] sm:$0xff] %v7876_v57  ;;  %v10479_v52 = vrot.slane %v7876_v57, 2  ;;  %v7882_v44 = vrot.slane %v4927_v60, 1  ;;  %v2473_v16 = vsel %vm934_vm2, %v2471_v11, %v2472_v43  ;;  %v2554_v36 = vmul.f32 %v7630_v28, %v7466_v6 }
 0x118   : > { %v2475_v10 = vsel %vm934_vm2, %v2472_v43, %v2474_v63  ;;  %v4925_v5 = vor.u32 %v4924_v7, %v4920_v20  ;;  %v2477_v9 = vsel %vm934_vm2, %v2474_v63, %v2476_v15  ;;  %v2527_v21 = vadd.f32 %v2473_v16, %v2409_v49 }
 0x119   : > { %v2479_v41 = vsel %vm934_vm2, %v2476_v15, %v10479_v52  ;;  %v2528_v25 = vadd.f32 %v2475_v10, %v2410_v31  ;;  %v2529_v48 = vadd.f32 %v2477_v9, %v2411_v59  ;;  %v2555_v60 = vmul.f32 %v7630_v28, %v7472_v53 }
 0x11a   : > { %v2530_v30 = vadd.f32 %v2479_v41, %v2412_v40  ;;  %v4930_v11 = vsel %vm1856_vm7, %v4925_v5, %v7882_v44  ;;  %v2556_v43 = vmul.f32 %v7630_v28, %v7795_v54  ;;  %v7900_v20 = vmul.f32 %v7630_v28, %v7797_v0 }
 0x11b   : > { %v2591_v63 = vrot.slane %v2553_v38, 2  ;;  %5972 = vmatmul.mubr.bf16.vlgmr.msra.gmra.mxu0 %v4930_v11  ;;  %v2592_v7 = vrot.slane %v2554_v36, 2  ;;  %v2594_v49 = vrot.slane %v2555_v60, 2  ;;  %v2671_v40 = vmul.f32 %v7657_v24, %v7164_v17 }
 0x11c   : > { %10692 = vst [vmem:[#allocation7_spill] sm:$0xff] %v7900_v20  ;;  %v2672_v31 = vmul.f32 %v7657_v24, %v7466_v6  ;;  %v2596_v59 = vrot.slane %v2556_v43, 2  ;;  %v10489_v15 = vrot.slane %v7900_v20, 2  ;;  %v2673_v16 = vmul.f32 %v7657_v24, %v7472_v53  ;;  %5975 = vmatprep.mubr.msk.bf16.mxu0 %vm6169_vm0, %v10615_v13 }
 0x11d   : > { %v2674_v10 = vmul.f32 %v7657_v24, %v7795_v54  ;;  %v2593_v38 = vsel %vm934_vm2, %v2591_v63, %v2592_v7  ;;  %v2595_v36 = vsel %vm934_vm2, %v2592_v7, %v2594_v49  ;;  %v7917_v5 = vmul.f32 %v7657_v24, %v7797_v0 }
 0x11e   : > { %v2709_v9 = vrot.slane %v2671_v40, 3  ;;  %v2597_v41 = vsel %vm934_vm2, %v2594_v49, %v2596_v59  ;;  %v2599_v60 = vsel %vm934_vm2, %v2596_v59, %v10489_v15  ;;  %v2647_v11 = vadd.f32 %v2593_v38, %v2527_v21 }
 0x11f   : > { %v2648_v43 = vadd.f32 %v2595_v36, %v2528_v25  ;;  %v2649_v52 = vadd.f32 %v2597_v41, %v2529_v48  ;;  %v2650_v23 = vadd.f32 %v2599_v60, %v2530_v30  ;;  %v2710_v33 = vrot.slane %v2672_v31, 3 }
 0x120   : > { %v2712_v57 = vrot.slane %v2673_v16, 3  ;;  %v2714_v63 = vrot.slane %v2674_v10, 3  ;;  %v10487_v7 = vrot.slane %v7917_v5, 3  ;;  %v2789_v14 = vmul.f32 %v7693_v47, %v7164_v17 }
 0x121   : > { %v2790_v40 = vmul.f32 %v7693_v47, %v7466_v6  ;;  %v2711_v49 = vsel %vm1173_vm3, %v2709_v9, %v2710_v33  ;;  %v2791_v21 = vmul.f32 %v7693_v47, %v7472_v53  ;;  %v2792_v25 = vmul.f32 %v7693_v47, %v7795_v54 }
 0x122   : > { %v2713_v20 = vsel %vm1173_vm3, %v2710_v33, %v2712_v57  ;;  %v2715_v48 = vsel %vm1173_vm3, %v2712_v57, %v2714_v63  ;;  %v2717_v30 = vsel %vm1173_vm3, %v2714_v63, %v10487_v7  ;;  %v2765_v17 = vadd.f32 %v2711_v49, %v2647_v11 }
 0x123   : > { %v2766_v31 = vadd.f32 %v2713_v20, %v2648_v43  ;;  %v2767_v59 = vadd.f32 %v2715_v48, %v2649_v52  ;;  %v2768_v6 = vadd.f32 %v2717_v30, %v2650_v23  ;;  %v7940_v16 = vmul.f32 %v7693_v47, %v7797_v0 }
 0x124   : > { %v2827_v33 = vrot.slane %v2789_v14, 4  ;;  %v2828_v10 = vrot.slane %v2790_v40, 4  ;;  %v2830_v38 = vrot.slane %v2791_v21, 4  ;;  %v2832_v36 = vrot.slane %v2792_v25, 4 }
 0x125   : > { %10693 = vst [vmem:[#allocation8_spill] sm:$0xff] %v7940_v16  ;;  %v2909_v57 = vmul.f32 %v7711_v58, %v7472_v53  ;;  %v10486_v9 = vrot.slane %v7940_v16, 4  ;;  %v2910_v41 = vmul.f32 %v7711_v58, %v7795_v54  ;;  %v2911_v23 = vmul.f32 %v7711_v58, %v7797_v0 }
 0x126   : > { %v2912_v52 = vmul.f32 %v7711_v58, %v7799_v55  ;;  %v2829_v14 = vsel %vm1292_vm4, %v2827_v33, %v2828_v10  ;;  %v2831_v20 = vsel %vm1292_vm4, %v2828_v10, %v2830_v38  ;;  %v2833_v60 = vsel %vm1292_vm4, %v2830_v38, %v2832_v36 }
 0x127   : > { %v7956_v11 = vmul.f32 %v7711_v58, %v7810_v26  ;;  %v2835_v43 = vsel %vm1292_vm4, %v2832_v36, %v10486_v9  ;;  %v2883_v63 = vadd.f32 %v2829_v14, %v2765_v17  ;;  %v2884_v40 = vadd.f32 %v2831_v20, %v2766_v31 }
 0x128   : > { %v2885_v49 = vadd.f32 %v2833_v60, %v2767_v59  ;;  %v2886_v21 = vadd.f32 %v2835_v43, %v2768_v6  ;;  %v2947_v25 = vrot.slane %v2909_v57, 4  ;;  %v2948_v48 = vrot.slane %v2910_v41, 4 }
 0x129   : > { %10694 = vst [vmem:[#allocation9_spill] sm:$0xff] %v7956_v11  ;;  %v2950_v30 = vrot.slane %v2911_v23, 4  ;;  %v2952_v33 = vrot.slane %v2912_v52, 4  ;;  %v10488_v10 = vrot.slane %v7956_v11, 4  ;;  %v3027_v38 = vmul.f32 %v7735_v4, %v7472_v53 }
 0x12a   : > { %v3028_v17 = vmul.f32 %v7735_v4, %v7795_v54  ;;  %v2949_v31 = vsel %vm1292_vm4, %v2947_v25, %v2948_v48  ;;  %v3029_v6 = vmul.f32 %v7735_v4, %v7797_v0  ;;  %v3030_v36 = vmul.f32 %v7735_v4, %v7799_v55 }
 0x12b   : > { %v2951_v59 = vsel %vm1292_vm4, %v2948_v48, %v2950_v30  ;;  %v2953_v57 = vsel %vm1292_vm4, %v2950_v30, %v2952_v33  ;;  %v2955_v41 = vsel %vm1292_vm4, %v2952_v33, %v10488_v10  ;;  %v3003_v23 = vadd.f32 %v2949_v31, %v2883_v63 }
 0x12c   : > { %v3004_v52 = vadd.f32 %v2951_v59, %v2884_v40  ;;  %v3005_v14 = vadd.f32 %v2953_v57, %v2885_v49  ;;  %v3006_v20 = vadd.f32 %v2955_v41, %v2886_v21  ;;  %v7985_v60 = vmul.f32 %v7735_v4, %v7810_v26  ;;  %v7997_v49 = vld [vmem:[%s6273_s28 + $0xc0] sm:$0xff]  }
 0x12d   : > { %v3065_v43 = vrot.slane %v3027_v38, 5  ;;  %v3066_v25 = vrot.slane %v3028_v17, 5  ;;  %v3068_v48 = vrot.slane %v3029_v6, 5  ;;  %v3070_v9 = vrot.slane %v3030_v36, 5 }
 0x12e   : > { %10695 = vst [vmem:[#allocation10_spill] sm:$0xff] %v7985_v60  ;;  %v3145_v30 = vmul.f32 %v7761_v1, %v7472_v53  ;;  %v3072_v7 = vrot.slane %v7985_v60, 5  ;;  %v3146_v33 = vmul.f32 %v7761_v1, %v7795_v54  ;;  %v3147_v63 = vmul.f32 %v7761_v1, %v7797_v0 }
 0x12f   : > { %v3148_v40 = vmul.f32 %v7761_v1, %v7799_v55  ;;  %v3067_v21 = vsel %vm1531_vm5, %v3065_v43, %v3066_v25  ;;  %v3069_v38 = vsel %vm1531_vm5, %v3066_v25, %v3068_v48  ;;  %v3071_v17 = vsel %vm1531_vm5, %v3068_v48, %v3070_v9 }
 0x130   : > { %v8004_v31 = vmul.f32 %v7761_v1, %v7810_v26  ;;  %v3073_v59 = vsel %vm1531_vm5, %v3070_v9, %v3072_v7  ;;  %v3121_v6 = vadd.f32 %v3067_v21, %v3003_v23  ;;  %v3122_v36 = vadd.f32 %v3069_v38, %v3004_v52 }
 0x131   : > { %v3123_v57 = vadd.f32 %v3071_v17, %v3005_v14  ;;  %v3124_v41 = vadd.f32 %v3073_v59, %v3006_v20  ;;  %v3183_v10 = vrot.slane %v3145_v30, 6  ;;  %v3184_v15 = vrot.slane %v3146_v33, 6 }
 0x132   : > { %v3186_v11 = vrot.slane %v3147_v63, 6  ;;  %v3188_v43 = vrot.slane %v3148_v40, 6  ;;  %v10495_v25 = vrot.slane %v8004_v31, 6  ;;  %v8011_v48 = vunpack.c.h.bf16 %v7534_v8 }
 0x133   : > { %v8014_v16 = vunpack.c.l.bf16 %v7997_v49  ;;  %v3185_v60 = vsel %vm1650_vm6, %v3183_v10, %v3184_v15  ;;  %v3807_v23 = vmul.f32 %v7552_v39, %v7547_v12  ;;  %v3808_v52 = vmul.f32 %v7552_v39, %v7556_v56 }
 0x134   : > { %v3187_v9 = vsel %vm1650_vm6, %v3184_v15, %v3186_v11  ;;  %v3189_v14 = vsel %vm1650_vm6, %v3186_v11, %v3188_v43  ;;  %v3191_v8 = vsel %vm1650_vm6, %v3188_v43, %v10495_v25  ;;  %v3239_v20 = vadd.f32 %v3185_v60, %v3121_v6 }
 0x135   : > { %10696 = vst [vmem:[#allocation11_spill] sm:$0xff] %v8014_v16  ;;  %v3240_v30 = vadd.f32 %v3187_v9, %v3122_v36  ;;  %v3241_v33 = vadd.f32 %v3189_v14, %v3123_v57  ;;  %v3242_v63 = vadd.f32 %v3191_v8, %v3124_v41  ;;  %v3851_v10 = vmul.f32 %v7565_v34, %v7556_v56 }
 0x136   : > { %v8030_v15 = vmul.f32 %v7565_v34, %v7558_v19  ;;  %v3265_v40 = vadd.f32 %v7807_v46, %v3239_v20  ;;  %v3969_v11 = vmul.f32 %v7599_v29, %v7556_v56  ;;  %v8038_v60 = vmul.f32 %v7599_v29, %v7558_v19 }
 0x137   : > { %v3266_v21 = vadd.f32 %v7807_v46, %v3240_v30  ;;  %v3267_v38 = vadd.f32 %v7807_v46, %v3241_v33  ;;  %v3268_v17 = vadd.f32 %v7807_v46, %v3242_v63  ;;  %v3893_v59 = vrot.slane %v3851_v10, 1 }
 0x138   : > { %v10494_v6 = vrot.slane %v8030_v15, 1  ;;  %v3284_v36 = vmax.f32 %v3265_v40, 0.0  ;;  %v4011_v41 = vrot.slane %v3969_v11, 2  ;;  %v10493_v43 = vrot.slane %v8038_v60, 2 }
 0x139   : > { %v3285_v57 = vmax.f32 %v3266_v21, 0.0  ;;  %v3286_v9 = vmax.f32 %v3267_v38, 0.0  ;;  %v3287_v14 = vmax.f32 %v3268_v17, 0.0  ;;  %v10697_v56 = vrot.slane %v7594_v27, 1 }
 0x13a   : > { %v3896_v20 = vsel %vm815_vm1, %v3893_v59, %v10494_v6  ;;  %v3310_v30 = vmul.f32 %v7830_v2, %v3284_v36  ;;  %v10698_v11 = vrot.slane %v7636_v35, 2  ;;  %v4014_v38 = vsel %vm934_vm2, %v4011_v41, %v10493_v43 }
 0x13b   : > { %v3894_v8 = vsel %vm815_vm1, %v10697_v56, %v3893_v59  ;;  %v3311_v33 = vmul.f32 %v7830_v2, %v3285_v57  ;;  %v3945_v10 = vadd.f32 %v3896_v20, %v3808_v52  ;;  %v3312_v40 = vmul.f32 %v7830_v2, %v3286_v9 }
 0x13c   : > { %v3944_v63 = vadd.f32 %v3894_v8, %v3807_v23  ;;  %v3313_v21 = vmul.f32 %v7830_v2, %v3287_v14  ;;  %v4012_v27 = vsel %vm934_vm2, %v10698_v11, %v4011_v41  ;;  %v3336_v17 = vadd.f32 %v7843_v51, %v3310_v30 }
 0x13d   : > { %v3337_v59 = vadd.f32 %v7843_v51, %v3311_v33  ;;  %v4063_v57 = vadd.f32 %v4014_v38, %v3945_v10  ;;  %v3338_v23 = vadd.f32 %v7843_v51, %v3312_v40  ;;  %v4089_v9 = vmul.f32 %v7630_v28, %v7560_v18 }
 0x13e   : > { %v4062_v36 = vadd.f32 %v4012_v27, %v3944_v63  ;;  %v3339_v52 = vadd.f32 %v7843_v51, %v3313_v21  ;;  %v8068_v35 = vmul.f32 %v7630_v28, %v7571_v50  ;;  %v4207_v41 = vmul.f32 %v7657_v24, %v7560_v18 }
 0x13f   : > { %v3355_v14 = vpack.c.bf16 %v3337_v59, %v3336_v17  ;;  %v8074_v56 = vmul.f32 %v7657_v24, %v7571_v50  ;;  %v4325_v8 = vmul.f32 %v7693_v47, %v7560_v18  ;;  %v4131_v30 = vrot.slane %v4089_v9, 2 }
 0x140   : > { %v8078_v20 = vpack.c.bf16 %v3339_v52, %v3338_v23  ;;  %v10509_v33 = vrot.slane %v8068_v35, 2  ;;  %v8083_v63 = vmul.f32 %v7693_v47, %v7571_v50  ;;  %v4249_v21 = vrot.slane %v4207_v41, 3 }
 0x141   : > { %v3389_v10 = vshrl.u32 %v3355_v14, 16  ;;  %v3391_v40 = vshll.u32 %v3355_v14, 16  ;;  %v10497_v11 = vrot.slane %v8074_v56, 3  ;;  %v10699_v38 = vrot.slane %v7667_v45, 2 }
 0x142   : > { %v3396_v27 = vshll.u32 %v8078_v20, 16  ;;  %v4134_v59 = vsel %vm934_vm2, %v4131_v30, %v10509_v33  ;;  %v4367_v23 = vrot.slane %v4325_v8, 4  ;;  %v10700_v6 = vrot.slane %v7682_v3, 3 }
 0x143   : > { %v4132_v17 = vsel %vm934_vm2, %v10699_v38, %v4131_v30  ;;  %v3393_v52 = vrot.slane %v3391_v40, 1  ;;  %v4183_v43 = vadd.f32 %v4134_v59, %v4063_v57  ;;  %v4252_v45 = vsel %vm1173_vm3, %v4249_v21, %v10497_v11 }
 0x144   : > { %v4182_v9 = vadd.f32 %v4132_v17, %v4062_v36  ;;  %v4250_v14 = vsel %vm1173_vm3, %v10700_v6, %v4249_v21  ;;  %v8096_v41 = vrot.slane %v3396_v27, 1  ;;  %v10701_v38 = vrot.slane %v7717_v37, 4 }
 0x145   : > { %v10496_v30 = vrot.slane %v8083_v63, 4  ;;  %v3394_v8 = vor.u32 %v3393_v52, %v3389_v10  ;;  %v4301_v36 = vadd.f32 %v4252_v45, %v4183_v43  ;;  %v4445_v3 = vmul.f32 %v7711_v58, %v8011_v48 }
 0x146   : > { %v4368_v25 = vsel %vm1292_vm4, %v10701_v38, %v4367_v23  ;;  %v4300_v40 = vadd.f32 %v4250_v14, %v4182_v9  ;;  %v8112_v57 = vmul.f32 %v7711_v58, %v8014_v16  ;;  %v4563_v37 = vmul.f32 %v7735_v4, %v8011_v48  ;;  %v8127_v14 = vld [vmem:[%s6273_s28 + $0x78] sm:$0xff]  }
 0x147   : > { %v4370_v6 = vsel %vm1292_vm4, %v4367_v23, %v10496_v30  ;;  %v8118_v10 = vmul.f32 %v7735_v4, %v8014_v16  ;;  %v3399_v43 = vsel %vm1856_vm7, %v3394_v8, %v8096_v41  ;;  %v4487_v17 = vrot.slane %v4445_v3, 4 }
 0x148   : > { %v4418_v21 = vadd.f32 %v4368_v25, %v4300_v40  ;;  %v4419_v27 = vadd.f32 %v4370_v6, %v4301_v36  ;;  %5920 = vmatmul.mubr.bf16.vlgmr.msra.gmra.mxu1 %v3399_v43  ;;  %v10500_v59 = vrot.slane %v8112_v57, 4  ;;  %v4605_v23 = vrot.slane %v4563_v37, 5 }
 0x149   : > { %v10499_v52 = vrot.slane %v8118_v10, 5  ;;  %v4681_v9 = vmul.f32 %v7761_v1, %v8011_v48  ;;  %v10702_v45 = vrot.slane %v7744_v62, 4  ;;  %v8134_v25 = vmul.f32 %v7761_v1, %v8014_v16  ;;  %5923 = vmatprep.mubr.msk.bf16.mxu1 %vm6169_vm0, %v10615_v13 }
 0x14a   : > { %v4931_v8 = vshrl.u32 %v7864_v61, 16  ;;  %v8140_v40 = vunpack.c.h.bf16 %v7788_v32  ;;  %v4490_v36 = vsel %vm1292_vm4, %v4487_v17, %v10500_v59  ;;  %v10703_v62 = vrot.slane %v7768_v22, 5 }
 0x14b   : > { %v4488_v38 = vsel %vm1292_vm4, %v10702_v45, %v4487_v17  ;;  %v4608_v37 = vsel %vm1531_vm5, %v4605_v23, %v10499_v52  ;;  %v4539_v61 = vadd.f32 %v4490_v36, %v4419_v27  ;;  %v4723_v43 = vrot.slane %v4681_v9, 6 }
 0x14c   : > { %v4538_v3 = vadd.f32 %v4488_v38, %v4418_v21  ;;  %v4606_v6 = vsel %vm1531_vm5, %v10703_v62, %v4605_v23  ;;  %v10498_v45 = vrot.slane %v8134_v25, 6  ;;  %v8153_v32 = vor.u32 %v4931_v8, %v7882_v44 }
 0x14d   : > { %v8156_v11 = vunpack.c.l.bf16 %v8127_v14  ;;  %v2276_v22 = vmul.f32 %v7552_v39, %v7472_v53  ;;  %v2277_v21 = vmul.f32 %v7552_v39, %v7795_v54  ;;  %v4657_v17 = vadd.f32 %v4608_v37, %v4539_v61 }
 0x14e   : > { %v4656_v30 = vadd.f32 %v4606_v6, %v4538_v3  ;;  %v10704_v23 = vrot.slane %v7785_v42, 6  ;;  %v4726_v44 = vsel %vm1650_vm6, %v4723_v43, %v10498_v45  ;;  %v2320_v9 = vmul.f32 %v7565_v34, %v7795_v54 }
 0x14f   : > { %v8172_v8 = vmul.f32 %v7565_v34, %v7797_v0  ;;  %v2438_v53 = vmul.f32 %v7599_v29, %v7795_v54  ;;  %v8178_v39 = vmul.f32 %v7599_v29, %v7797_v0  ;;  %v4775_v42 = vadd.f32 %v4726_v44, %v4657_v17  ;;  %v10705_v29 = vld [vmem:[#allocation5_spill] sm:$0xff] }
 0x150   : > { %v4724_v27 = vsel %vm1650_vm6, %v10704_v23, %v4723_v43  ;;  %v2362_v36 = vrot.slane %v2320_v9, 1  ;;  %v2558_v3 = vmul.f32 %v7630_v28, %v7799_v55  ;;  %v8184_v62 = vmul.f32 %v7630_v28, %v7810_v26  ;;  %v10707_v9 = vld [vmem:[#allocation6_spill] sm:$0xff] }
 0x151   : > { %v4774_v38 = vadd.f32 %v4724_v27, %v4656_v30  ;;  %v10508_v34 = vrot.slane %v8172_v8, 1  ;;  %v2480_v6 = vrot.slane %v2438_v53, 2  ;;  %v10507_v54 = vrot.slane %v8178_v39, 2 }
 0x152   : > { %v4801_v37 = vadd.f32 %v7807_v46, %v4775_v42  ;;  %v10706_v61 = vrot.slane %v10705_v29, 1  ;;  %v2600_v17 = vrot.slane %v2558_v3, 2  ;;  %v10506_v23 = vrot.slane %v8184_v62, 2  ;;  %v10709_v29 = vld [vmem:[#allocation7_spill] sm:$0xff] }
 0x153   : > { %v4800_v30 = vadd.f32 %v7807_v46, %v4774_v38  ;;  %v2365_v28 = vsel %vm815_vm1, %v2362_v36, %v10508_v34  ;;  %v10708_v38 = vrot.slane %v10707_v9, 2  ;;  %v2483_v42 = vsel %vm934_vm2, %v2480_v6, %v10507_v54 }
 0x154   : > { %v2363_v43 = vsel %vm815_vm1, %v10706_v61, %v2362_v36  ;;  %v4820_v45 = vmax.f32 %v4801_v37, 0.0  ;;  %v2414_v52 = vadd.f32 %v2365_v28, %v2277_v21  ;;  %v10710_v3 = vrot.slane %v10709_v29, 2 }
 0x155   : > { %v4819_v27 = vmax.f32 %v4800_v30, 0.0  ;;  %v2413_v44 = vadd.f32 %v2363_v43, %v2276_v22  ;;  %v2481_v53 = vsel %vm934_vm2, %v10708_v38, %v2480_v6  ;;  %v2603_v22 = vsel %vm934_vm2, %v2600_v17, %v10506_v23 }
 0x156   : > { %v2601_v61 = vsel %vm934_vm2, %v10710_v3, %v2600_v17  ;;  %v2676_v36 = vmul.f32 %v7657_v24, %v7799_v55  ;;  %v4846_v21 = vmul.f32 %v7830_v2, %v4820_v45  ;;  %v2532_v37 = vadd.f32 %v2483_v42, %v2414_v52 }
 0x157   : > { %v4845_v30 = vmul.f32 %v7830_v2, %v4819_v27  ;;  %v2531_v59 = vadd.f32 %v2481_v53, %v2413_v44  ;;  %v8215_v6 = vmul.f32 %v7657_v24, %v7810_v26  ;;  %v2794_v43 = vmul.f32 %v7693_v47, %v7799_v55 }
 0x158   : > { %v2718_v44 = vrot.slane %v2676_v36, 3  ;;  %v8222_v17 = vmul.f32 %v7693_v47, %v7810_v26  ;;  %v4872_v9 = vadd.f32 %v7843_v51, %v4846_v21  ;;  %v2652_v38 = vadd.f32 %v2603_v22, %v2532_v37 }
 0x159   : > { %v4871_v27 = vadd.f32 %v7843_v51, %v4845_v30  ;;  %v2651_v28 = vadd.f32 %v2601_v61, %v2531_v59  ;;  %v10505_v52 = vrot.slane %v8215_v6, 3  ;;  %v2836_v45 = vrot.slane %v2794_v43, 4  ;;  %v10712_v30 = vld [vmem:[#allocation8_spill] sm:$0xff] }
 0x15a   : > { %v10711_v24 = vrot.slane %v7917_v5, 3  ;;  %v10501_v42 = vrot.slane %v8222_v17, 4  ;;  %v2914_v59 = vmul.f32 %v7711_v58, %v8140_v40  ;;  %v8234_v29 = vmul.f32 %v7711_v58, %v8156_v11 }
 0x15b   : > { %v8236_v47 = vpack.c.bf16 %v4872_v9, %v4871_v27  ;;  %v2721_v3 = vsel %vm1173_vm3, %v2718_v44, %v10505_v52  ;;  %v10713_v5 = vrot.slane %v10712_v30, 4  ;;  %v10719_v54 = vrot.slane %v8030_v15, 1 }
 0x15c   : > { %v2719_v53 = vsel %vm1173_vm3, %v10711_v24, %v2718_v44  ;;  %v2770_v36 = vadd.f32 %v2721_v3, %v2652_v38  ;;  %v2839_v21 = vsel %vm1292_vm4, %v2836_v45, %v10501_v42  ;;  %v2956_v37 = vrot.slane %v2914_v59, 4  ;;  %v10714_v38 = vld [vmem:[#allocation9_spill] sm:$0xff]  ;;  %v8267_v42 = vld [vmem:[%s6273_s28 + $0xc8] sm:$0xff]  }
 0x15d   : > { %v2769_v61 = vadd.f32 %v2719_v53, %v2651_v28  ;;  %v2837_v22 = vsel %vm1292_vm4, %v10713_v5, %v2836_v45  ;;  %v10504_v43 = vrot.slane %v8234_v29, 4  ;;  %v4935_v27 = vshll.u32 %v8236_v47, 16 }
 0x15e   : > { %v3032_v44 = vmul.f32 %v7735_v4, %v8140_v40  ;;  %v8253_v28 = vmul.f32 %v7735_v4, %v8156_v11  ;;  %v2888_v24 = vadd.f32 %v2839_v21, %v2770_v36  ;;  %v10715_v53 = vrot.slane %v10714_v38, 4 }
 0x15f   : > { %v2887_v9 = vadd.f32 %v2837_v22, %v2769_v61  ;;  %v2959_v45 = vsel %vm1292_vm4, %v2956_v37, %v10504_v43  ;;  %v3150_v59 = vmul.f32 %v7761_v1, %v8140_v40  ;;  %v8263_v61 = vrot.slane %v4935_v27, 1 }
 0x160   : > { %v2957_v3 = vsel %vm1292_vm4, %v10715_v53, %v2956_v37  ;;  %v3074_v5 = vrot.slane %v3032_v44, 5  ;;  %v10503_v22 = vrot.slane %v8253_v28, 5  ;;  %v3008_v36 = vadd.f32 %v2959_v45, %v2888_v24 }
 0x161   : > { %v3007_v30 = vadd.f32 %v2957_v3, %v2887_v9  ;;  %v8271_v21 = vmul.f32 %v7761_v1, %v8156_v11  ;;  %v3192_v38 = vrot.slane %v3150_v59, 6  ;;  %v3400_v53 = vshrl.u32 %v8078_v20, 16 }
 0x162   : > { %v4938_v37 = vsel %vm1856_vm7, %v8153_v32, %v8263_v61  ;;  %v3075_v9 = vsel %vm1531_vm5, %v3072_v7, %v3074_v5  ;;  %v3077_v44 = vsel %vm1531_vm5, %v3074_v5, %v10503_v22  ;;  %v8284_v24 = vunpack.c.h.bf16 %v7997_v49  ;;  %v8301_v49 = vld [vmem:[%s10388_s2] ss:$0 sm:$0xff] }
 0x163   : > { %5976 = vmatmul.mubr.bf16.gmra.mxu0 %v4938_v37  ;;  %v3125_v3 = vadd.f32 %v3075_v9, %v3007_v30  ;;  %v3126_v45 = vadd.f32 %v3077_v44, %v3008_v36  ;;  %v10717_v20 = vrot.slane %v8004_v31, 6  ;;  %v10502_v32 = vrot.slane %v8271_v21, 6  ;;  %v8313_v36 = vld [vmem:[%s10388_s2 + $0x1] ss:$0 sm:$0xff]  ;;  %v8324_v9 = vld [vmem:[%s10388_s2 + $0x2] ss:$0 sm:$0xff] }
 0x164   : > { %v8291_v27 = vor.u32 %v3400_v53, %v8096_v41  ;;  %5979 = vmatprep.mubr.msk.bf16.mxu0 %vm6169_vm0, %v10615_v13  ;;  %v8296_v7 = vunpack.c.l.bf16 %v8267_v42  ;;  %v3809_v31 = vmul.f32 %v8301_v49, %v7558_v19  ;;  %v3810_v30 = vmul.f32 %v8301_v49, %v7560_v18 }
 0x165   : > { %v3193_v59 = vsel %vm1650_vm6, %v10717_v20, %v3192_v38  ;;  %v3195_v41 = vsel %vm1650_vm6, %v3192_v38, %v10502_v32  ;;  %v3853_v53 = vmul.f32 %v8313_v36, %v7560_v18  ;;  %v8319_v37 = vmul.f32 %v8313_v36, %v7571_v50 }
 0x166   : > { %10718 = vst [vmem:[#allocation12_spill] sm:$0xff] %v8296_v7  ;;  %v3243_v5 = vadd.f32 %v3193_v59, %v3125_v3  ;;  %v3244_v19 = vadd.f32 %v3195_v41, %v3126_v45  ;;  %v3971_v38 = vmul.f32 %v8324_v9, %v7560_v18  ;;  %v8330_v44 = vmul.f32 %v8324_v9, %v7571_v50  ;;  %v8335_v3 = vld [vmem:[%s10388_s2 + $0x3] ss:$0 sm:$0xff] }
 0x167   : > { %v4091_v45 = vmul.f32 %v8335_v3, %v8011_v48  ;;  %v3897_v59 = vrot.slane %v3853_v53, 1  ;;  %v10515_v41 = vrot.slane %v8319_v37, 1  ;;  %v8343_v18 = vmul.f32 %v8335_v3, %v8014_v16 }
 0x168   : > { %v3269_v20 = vadd.f32 %v7807_v46, %v3243_v5  ;;  %v3270_v32 = vadd.f32 %v7807_v46, %v3244_v19  ;;  %v4015_v22 = vrot.slane %v3971_v38, 2  ;;  %v10514_v43 = vrot.slane %v8330_v44, 2 }
 0x169   : > { %v4135_v52 = vrot.slane %v4091_v45, 2  ;;  %v3898_v34 = vsel %vm815_vm1, %v10719_v54, %v3897_v59  ;;  %v3900_v5 = vsel %vm815_vm1, %v3897_v59, %v10515_v41  ;;  %v10513_v53 = vrot.slane %v8343_v18, 2 }
 0x16a   : > { %v3288_v23 = vmax.f32 %v3269_v20, 0.0  ;;  %v3289_v33 = vmax.f32 %v3270_v32, 0.0  ;;  %v3946_v12 = vadd.f32 %v3898_v34, %v3809_v31  ;;  %v3947_v50 = vadd.f32 %v3900_v5, %v3810_v30 }
 0x16b   : > { %v10720_v19 = vrot.slane %v8038_v60, 2  ;;  %v4018_v15 = vsel %vm934_vm2, %v4015_v22, %v10514_v43  ;;  %v10721_v54 = vrot.slane %v8068_v35, 2  ;;  %v4138_v32 = vsel %vm934_vm2, %v4135_v52, %v10513_v53 }
 0x16c   : > { %v3314_v45 = vmul.f32 %v7830_v2, %v3288_v23  ;;  %v3315_v34 = vmul.f32 %v7830_v2, %v3289_v33  ;;  %v4065_v60 = vadd.f32 %v4018_v15, %v3947_v50  ;;  %v8371_v23 = vld [vmem:[%s10388_s2 + $0x4] ss:$0 sm:$0xff]  ;;  %v8383_v33 = vld [vmem:[%s10388_s2 + $0x5] ss:$0 sm:$0xff]  ;;  %v10722_v43 = vrot.slane %v8074_v56, 3 }
 0x16d   : > { %v4016_v38 = vsel %vm934_vm2, %v10720_v19, %v4015_v22  ;;  %v4136_v20 = vsel %vm934_vm2, %v10721_v54, %v4135_v52  ;;  %v4209_v22 = vmul.f32 %v8371_v23, %v8011_v48  ;;  %v8378_v30 = vmul.f32 %v8371_v23, %v8014_v16 }
 0x16e   : > { %v4064_v31 = vadd.f32 %v4016_v38, %v3946_v12  ;;  %v3340_v35 = vadd.f32 %v7843_v51, %v3314_v45  ;;  %v4327_v12 = vmul.f32 %v8383_v33, %v8011_v48  ;;  %v8389_v50 = vmul.f32 %v8383_v33, %v8014_v16 }
 0x16f   : > { %v3341_v52 = vadd.f32 %v7843_v51, %v3315_v34  ;;  %v4185_v5 = vadd.f32 %v4138_v32, %v4065_v60  ;;  %v4253_v19 = vrot.slane %v4209_v22, 3  ;;  %v10528_v38 = vrot.slane %v8378_v30, 3 }
 0x170   : > { %v4184_v59 = vadd.f32 %v4136_v20, %v4064_v31  ;;  %v4371_v45 = vrot.slane %v4327_v12, 4  ;;  %v10516_v15 = vrot.slane %v8389_v50, 4  ;;  %v4447_v54 = vmul.f32 %v7711_v58, %v8284_v24 }
 0x171   : > { %v8396_v53 = vpack.c.bf16 %v3341_v52, %v3340_v35  ;;  %v4254_v41 = vsel %vm1173_vm3, %v10722_v43, %v4253_v19  ;;  %v8403_v34 = vmul.f32 %v7711_v58, %v8296_v7  ;;  %v4565_v20 = vmul.f32 %v7735_v4, %v8284_v24 }
 0x172   : > { %v4256_v32 = vsel %vm1173_vm3, %v4253_v19, %v10528_v38  ;;  %v4302_v31 = vadd.f32 %v4254_v41, %v4184_v59  ;;  %v10723_v60 = vrot.slane %v8083_v63, 4  ;;  %v4374_v56 = vsel %vm1292_vm4, %v4371_v45, %v10516_v15 }
 0x173   : > { %v3404_v58 = vshll.u32 %v8396_v53, 16  ;;  %v4303_v43 = vadd.f32 %v4256_v32, %v4185_v5  ;;  %v4491_v35 = vrot.slane %v4447_v54, 4  ;;  %v10527_v12 = vrot.slane %v8403_v34, 4  ;;  %v8433_v54 = vld [vmem:[%s6273_s28 + $0x80] sm:$0xff]  }
 0x174   : > { %v4372_v22 = vsel %vm1292_vm4, %v10723_v60, %v4371_v45  ;;  %v8420_v19 = vmul.f32 %v7735_v4, %v8296_v7  ;;  %v4609_v41 = vrot.slane %v4565_v20, 5  ;;  %v4683_v63 = vmul.f32 %v7761_v1, %v8284_v24 }
 0x175   : > { %v4420_v52 = vadd.f32 %v4372_v22, %v4302_v31  ;;  %v8424_v59 = vrot.slane %v3404_v58, 1  ;;  %v4421_v60 = vadd.f32 %v4374_v56, %v4303_v43  ;;  %v10724_v45 = vrot.slane %v8112_v57, 4 }
 0x176   : > { %v4494_v5 = vsel %vm1292_vm4, %v4491_v35, %v10527_v12  ;;  %v10725_v4 = vrot.slane %v8118_v10, 5  ;;  %v10518_v31 = vrot.slane %v8420_v19, 5  ;;  %v8441_v22 = vmul.f32 %v7761_v1, %v8296_v7 }
 0x177   : > { %v4492_v15 = vsel %vm1292_vm4, %v10724_v45, %v4491_v35  ;;  %v3407_v57 = vsel %vm1856_vm7, %v8291_v27, %v8424_v59  ;;  %v4541_v56 = vadd.f32 %v4494_v5, %v4421_v60  ;;  %v4727_v58 = vrot.slane %v4683_v63, 6 }
 0x178   : > { %v4540_v32 = vadd.f32 %v4492_v15, %v4420_v52  ;;  %v4610_v20 = vsel %vm1531_vm5, %v10725_v4, %v4609_v41  ;;  %v4939_v43 = vshrl.u32 %v8236_v47, 16  ;;  %5924 = vmatmul.mubr.bf16.gmra.mxu1 %v3407_v57  ;;  %v4612_v10 = vsel %vm1531_vm5, %v4609_v41, %v10518_v31 }
 0x179   : > { %v10517_v35 = vrot.slane %v8441_v22, 6  ;;  %v8452_v52 = vunpack.c.h.bf16 %v8127_v14  ;;  %v4659_v1 = vadd.f32 %v4612_v10, %v4541_v56  ;;  %v10726_v45 = vrot.slane %v8134_v25, 6  ;;  %5927 = vmatprep.mubr.msk.bf16.mxu1 %vm6169_vm0, %v10615_v13 }
 0x17a   : > { %v4658_v15 = vadd.f32 %v4610_v20, %v4540_v32  ;;  %v8458_v63 = vor.u32 %v4939_v43, %v8263_v61  ;;  %v8463_v47 = vunpack.c.l.bf16 %v8433_v54  ;;  %v2278_v60 = vmul.f32 %v8301_v49, %v7797_v0 }
 0x17b   : > { %v4728_v27 = vsel %vm1650_vm6, %v10726_v45, %v4727_v58  ;;  %v4730_v41 = vsel %vm1650_vm6, %v4727_v58, %v10517_v35  ;;  %v2279_v25 = vmul.f32 %v8301_v49, %v7799_v55  ;;  %v2322_v61 = vmul.f32 %v8313_v36, %v7799_v55 }
 0x17c   : > { %v4776_v14 = vadd.f32 %v4728_v27, %v4658_v15  ;;  %v4777_v5 = vadd.f32 %v4730_v41, %v4659_v1  ;;  %v8476_v32 = vmul.f32 %v8313_v36, %v7810_v26  ;;  %v2440_v4 = vmul.f32 %v8324_v9, %v7799_v55 }
 0x17d   : > { %v8483_v57 = vmul.f32 %v8324_v9, %v7810_v26  ;;  %v2560_v0 = vmul.f32 %v8335_v3, %v8140_v40  ;;  %v8489_v56 = vmul.f32 %v8335_v3, %v8156_v11  ;;  %v2366_v43 = vrot.slane %v2322_v61, 1 }
 0x17e   : > { %v4802_v20 = vadd.f32 %v7807_v46, %v4776_v14  ;;  %v4803_v58 = vadd.f32 %v7807_v46, %v4777_v5  ;;  %v10526_v10 = vrot.slane %v8476_v32, 1  ;;  %v2484_v15 = vrot.slane %v2440_v4, 2 }
 0x17f   : > { %v10522_v1 = vrot.slane %v8483_v57, 2  ;;  %v2604_v45 = vrot.slane %v2560_v0, 2  ;;  %v10521_v27 = vrot.slane %v8489_v56, 2  ;;  %v10727_v14 = vrot.slane %v8172_v8, 1 }
 0x180   : > { %v4821_v55 = vmax.f32 %v4802_v20, 0.0  ;;  %v4822_v41 = vmax.f32 %v4803_v58, 0.0  ;;  %v2369_v31 = vsel %vm815_vm1, %v2366_v43, %v10526_v10  ;;  %v10728_v46 = vrot.slane %v8178_v39, 2 }
 0x181   : > { %v2367_v35 = vsel %vm815_vm1, %v10727_v14, %v2366_v43  ;;  %v2416_v20 = vadd.f32 %v2369_v31, %v2279_v25  ;;  %v2487_v0 = vsel %vm934_vm2, %v2484_v15, %v10522_v1  ;;  %v10729_v58 = vrot.slane %v8184_v62, 2 }
 0x182   : > { %v2485_v5 = vsel %vm934_vm2, %v10728_v46, %v2484_v15  ;;  %v4847_v61 = vmul.f32 %v7830_v2, %v4821_v55  ;;  %v2415_v4 = vadd.f32 %v2367_v35, %v2278_v60  ;;  %v4848_v8 = vmul.f32 %v7830_v2, %v4822_v41 }
 0x183   : > { %v2605_v14 = vsel %vm934_vm2, %v10729_v58, %v2604_v45  ;;  %v2607_v39 = vsel %vm934_vm2, %v2604_v45, %v10521_v27  ;;  %v2678_v43 = vmul.f32 %v8371_v23, %v8140_v40  ;;  %v2534_v60 = vadd.f32 %v2487_v0, %v2416_v20 }
 0x184   : > { %v4873_v35 = vadd.f32 %v7843_v51, %v4847_v61  ;;  %v2533_v31 = vadd.f32 %v2485_v5, %v2415_v4  ;;  %v8520_v25 = vmul.f32 %v8371_v23, %v8156_v11  ;;  %v4874_v2 = vadd.f32 %v7843_v51, %v4848_v8  ;;  %v8533_v5 = vld [vmem:[%s10388_s2 + $0x6] ss:$0 sm:$0xff] }
 0x185   : > { %v2722_v62 = vrot.slane %v2678_v43, 3  ;;  %v2796_v15 = vmul.f32 %v8383_v33, %v8140_v40  ;;  %v8527_v55 = vmul.f32 %v8383_v33, %v8156_v11  ;;  %v2654_v41 = vadd.f32 %v2607_v39, %v2534_v60 }
 0x186   : > { %v2653_v45 = vadd.f32 %v2605_v14, %v2533_v31  ;;  %v10520_v46 = vrot.slane %v8520_v25, 3  ;;  %v2916_v51 = vmul.f32 %v8533_v5, %v8452_v52  ;;  %v8537_v61 = vpack.c.bf16 %v4874_v2, %v4873_v35 }
 0x187   : > { %v10730_v4 = vrot.slane %v8215_v6, 3  ;;  %v2840_v0 = vrot.slane %v2796_v15, 4  ;;  %v10519_v8 = vrot.slane %v8527_v55, 4  ;;  %v8548_v39 = vmul.f32 %v8533_v5, %v8463_v47 }
 0x188   : > { %v2725_v58 = vsel %vm1173_vm3, %v2722_v62, %v10520_v46  ;;  %v2960_v43 = vrot.slane %v2916_v51, 4  ;;  %v4943_v35 = vshll.u32 %v8537_v61, 16  ;;  %v10731_v6 = vrot.slane %v8222_v17, 4  ;;  %v8564_v51 = vld [vmem:[%s10388_s2 + $0x7] ss:$0 sm:$0xff] }
 0x189   : > { %v2723_v20 = vsel %vm1173_vm3, %v10730_v4, %v2722_v62  ;;  %v2772_v31 = vadd.f32 %v2725_v58, %v2654_v41  ;;  %v2843_v2 = vsel %vm1292_vm4, %v2840_v0, %v10519_v8  ;;  %v10732_v62 = vrot.slane %v8234_v29, 4  ;;  %v8577_v29 = vld [vmem:[%s10388_s2 + $0x8] ss:$0 sm:$0xff] }
 0x18a   : > { %v2771_v14 = vadd.f32 %v2723_v20, %v2653_v45  ;;  %v2841_v60 = vsel %vm1292_vm4, %v10731_v6, %v2840_v0  ;;  %v10525_v4 = vrot.slane %v8548_v39, 4  ;;  %v3034_v17 = vmul.f32 %v8564_v51, %v8452_v52 }
 0x18b   : > { %v2961_v45 = vsel %vm1292_vm4, %v10732_v62, %v2960_v43  ;;  %v8568_v41 = vrot.slane %v4943_v35, 1  ;;  %v2890_v20 = vadd.f32 %v2843_v2, %v2772_v31  ;;  %v8572_v0 = vmul.f32 %v8564_v51, %v8463_v47 }
 0x18c   : > { %v2889_v15 = vadd.f32 %v2841_v60, %v2771_v14  ;;  %v3152_v58 = vmul.f32 %v8577_v29, %v8452_v52  ;;  %v8582_v14 = vld [vmem:[%s6273_s28 + $0xd0] sm:$0xff]   ;;  %v2963_v35 = vsel %vm1292_vm4, %v2960_v43, %v10525_v4  ;;  %v3078_v31 = vrot.slane %v3034_v17, 5 }
 0x18d   : > { %v8589_v60 = vmul.f32 %v8577_v29, %v8463_v47  ;;  %v4946_v2 = vsel %vm1856_vm7, %v8458_v63, %v8568_v41  ;;  %v3010_v62 = vadd.f32 %v2963_v35, %v2890_v20  ;;  %v10524_v8 = vrot.slane %v8572_v0, 5  ;;  %v10735_v35 = vld [vmem:[#allocation4_spill] sm:$0xff] }
 0x18e   : > { %v3009_v6 = vadd.f32 %v2961_v45, %v2889_v15  ;;  %v3196_v46 = vrot.slane %v3152_v58, 6  ;;  %5980 = vmatmul.mubr.bf16.gmra.mxu0 %v4946_v2  ;;  %v10733_v27 = vrot.slane %v8253_v28, 5  ;;  %v3408_v15 = vshrl.u32 %v8396_v53, 16 }
 0x18f   : > { %v10523_v43 = vrot.slane %v8589_v60, 6  ;;  %v8601_v45 = vunpack.c.h.bf16 %v8267_v42  ;;  %v3081_v63 = vsel %vm1531_vm5, %v3078_v31, %v10524_v8  ;;  %v10734_v20 = vrot.slane %v8271_v21, 6  ;;  %5983 = vmatprep.mubr.msk.bf16.mxu0 %vm6169_vm0, %v10615_v13 }
 0x190   : > { %v3079_v1 = vsel %vm1531_vm5, %v10733_v27, %v3078_v31  ;;  %v8612_v28 = vunpack.c.l.bf16 %v8582_v14  ;;  %v3128_v27 = vadd.f32 %v3081_v63, %v3010_v62  ;;  %v8618_v53 = vor.u32 %v3408_v15, %v8424_v59  ;;  %v8641_v63 = vld [vmem:[%s10389_s3] ss:$0 sm:$0xff] }
 0x191   : > { %v3127_v17 = vadd.f32 %v3079_v1, %v3009_v6  ;;  %v3197_v58 = vsel %vm1650_vm6, %v10734_v20, %v3196_v46  ;;  %v3199_v42 = vsel %vm1650_vm6, %v3196_v46, %v10523_v43  ;;  %v3811_v1 = vmul.f32 %v8301_v49, %v10735_v35 }
 0x192   : > { %v3812_v6 = vmul.f32 %v8301_v49, %v8011_v48  ;;  %v3855_v31 = vmul.f32 %v8313_v36, %v8011_v48  ;;  %v8628_v2 = vmul.f32 %v8313_v36, %v8014_v16  ;;  %v3246_v62 = vadd.f32 %v3199_v42, %v3128_v27 }
 0x193   : > { %v3245_v21 = vadd.f32 %v3197_v58, %v3127_v17  ;;  %v3973_v46 = vmul.f32 %v8324_v9, %v8011_v48  ;;  %v8634_v59 = vmul.f32 %v8324_v9, %v8014_v16  ;;  %v4093_v15 = vmul.f32 %v8335_v3, %v8284_v24 }
 0x194   : > { %v3901_v20 = vrot.slane %v3855_v31, 1  ;;  %v10532_v58 = vrot.slane %v8628_v2, 1  ;;  %v8647_v48 = vmul.f32 %v8335_v3, %v8296_v7  ;;  %v3272_v27 = vadd.f32 %v8641_v63, %v3246_v62 }
 0x195   : > { %v3271_v17 = vadd.f32 %v8641_v63, %v3245_v21  ;;  %v4019_v42 = vrot.slane %v3973_v46, 2  ;;  %v10531_v35 = vrot.slane %v8634_v59, 2  ;;  %v4139_v43 = vrot.slane %v4093_v15, 2  ;;  %v8664_v15 = vld [vmem:[%s10390_s4] ss:$0 sm:$0xff] }
 0x196   : > { %10736 = vst [vmem:[#allocation2_spill] sm:$0xff] %v8647_v48  ;;  %v10737_v4 = vrot.slane %v8319_v37, 1  ;;  %v3904_v21 = vsel %vm815_vm1, %v3901_v20, %v10532_v58  ;;  %v10530_v31 = vrot.slane %v8647_v48, 2  ;;  %v3291_v12 = vmax.f32 %v3272_v27, 0.0 }
 0x197   : > { %v3290_v8 = vmax.f32 %v3271_v17, 0.0  ;;  %v3949_v16 = vadd.f32 %v3904_v21, %v3812_v6  ;;  %v10738_v62 = vrot.slane %v8330_v44, 2  ;;  %v10739_v17 = vrot.slane %v8343_v18, 2 }
 0x198   : > { %v3902_v10 = vsel %vm815_vm1, %v10737_v4, %v3901_v20  ;;  %v4022_v4 = vsel %vm934_vm2, %v4019_v42, %v10531_v35  ;;  %v4142_v44 = vsel %vm934_vm2, %v4139_v43, %v10530_v31  ;;  %v4211_v27 = vmul.f32 %v8371_v23, %v8284_v24 }
 0x199   : > { %v3948_v38 = vadd.f32 %v3902_v10, %v3811_v1  ;;  %v4020_v46 = vsel %vm934_vm2, %v10738_v62, %v4019_v42  ;;  %v3316_v37 = vmul.f32 %v8664_v15, %v3290_v8  ;;  %v4140_v10 = vsel %vm934_vm2, %v10739_v17, %v4139_v43  ;;  %v8682_v8 = vld [vmem:[%s10391_s5] ss:$0 sm:$0xff] }
 0x19a   : > { %v3317_v1 = vmul.f32 %v8664_v15, %v3291_v12  ;;  %v4067_v20 = vadd.f32 %v4022_v4, %v3949_v16  ;;  %v8687_v42 = vmul.f32 %v8371_v23, %v8296_v7  ;;  %v4329_v43 = vmul.f32 %v8383_v33, %v8284_v24 }
 0x19b   : > { %v4066_v6 = vadd.f32 %v4020_v46, %v3948_v38  ;;  %v3342_v18 = vadd.f32 %v8682_v8, %v3316_v37  ;;  %v8693_v16 = vmul.f32 %v8383_v33, %v8296_v7  ;;  %v4257_v62 = vrot.slane %v4211_v27, 3 }
 0x19c   : > { %v3343_v38 = vadd.f32 %v8682_v8, %v3317_v1  ;;  %v4187_v21 = vadd.f32 %v4142_v44, %v4067_v20  ;;  %v10538_v46 = vrot.slane %v8687_v42, 3  ;;  %v4375_v4 = vrot.slane %v4329_v43, 4 }
 0x19d   : > { %v4186_v12 = vadd.f32 %v4140_v10, %v4066_v6  ;;  %v10534_v37 = vrot.slane %v8693_v16, 4  ;;  %v4449_v17 = vmul.f32 %v8533_v5, %v8601_v45  ;;  %v10740_v35 = vrot.slane %v8378_v30, 3 }
 0x19e   : > { %v8700_v31 = vpack.c.bf16 %v3343_v38, %v3342_v18  ;;  %v8707_v1 = vmul.f32 %v8533_v5, %v8612_v28  ;;  %v4567_v10 = vmul.f32 %v8564_v51, %v8601_v45  ;;  %v4260_v44 = vsel %vm1173_vm3, %v4257_v62, %v10538_v46 }
 0x19f   : > { %v4258_v58 = vsel %vm1173_vm3, %v10740_v35, %v4257_v62  ;;  %v10741_v20 = vrot.slane %v8389_v50, 4  ;;  %v4378_v30 = vsel %vm1292_vm4, %v4375_v4, %v10534_v37  ;;  %v4305_v18 = vadd.f32 %v4260_v44, %v4187_v21 }
 0x1a0   : > { %v4304_v6 = vadd.f32 %v4258_v58, %v4186_v12  ;;  %v3412_v35 = vshll.u32 %v8700_v31, 16  ;;  %v4495_v43 = vrot.slane %v4449_v17, 4  ;;  %v10535_v38 = vrot.slane %v8707_v1, 4  ;;  %v8737_v17 = vld [vmem:[%s6273_s28 + $0x88] sm:$0xff]  }
 0x1a1   : > { %v4376_v27 = vsel %vm1292_vm4, %v10741_v20, %v4375_v4  ;;  %v8724_v62 = vmul.f32 %v8564_v51, %v8612_v28  ;;  %v4613_v58 = vrot.slane %v4567_v10, 5  ;;  %v4685_v50 = vmul.f32 %v8577_v29, %v8601_v45 }
 0x1a2   : > { %v4422_v48 = vadd.f32 %v4376_v27, %v4304_v6  ;;  %v8728_v12 = vrot.slane %v3412_v35, 1  ;;  %v4423_v20 = vadd.f32 %v4378_v30, %v4305_v18  ;;  %v10742_v4 = vrot.slane %v8403_v34, 4 }
 0x1a3   : > { %v4498_v21 = vsel %vm1292_vm4, %v4495_v43, %v10535_v38  ;;  %v10743_v6 = vrot.slane %v8420_v19, 5  ;;  %v10537_v27 = vrot.slane %v8724_v62, 5  ;;  %v8745_v30 = vmul.f32 %v8577_v29, %v8612_v28 }
 0x1a4   : > { %v4496_v37 = vsel %vm1292_vm4, %v10742_v4, %v4495_v43  ;;  %v3415_v34 = vsel %vm1856_vm7, %v8618_v53, %v8728_v12  ;;  %v4543_v35 = vadd.f32 %v4498_v21, %v4423_v20  ;;  %v4731_v18 = vrot.slane %v4685_v50, 6 }
 0x1a5   : > { %v4542_v44 = vadd.f32 %v4496_v37, %v4422_v48  ;;  %v4614_v10 = vsel %vm1531_vm5, %v10743_v6, %v4613_v58  ;;  %v4947_v43 = vshrl.u32 %v8537_v61, 16  ;;  %5928 = vmatmul.mubr.bf16.gmra.mxu1 %v3415_v34  ;;  %v4616_v19 = vsel %vm1531_vm5, %v4613_v58, %v10537_v27 }
 0x1a6   : > { %v10536_v37 = vrot.slane %v8745_v30, 6  ;;  %v8756_v4 = vunpack.c.h.bf16 %v8433_v54  ;;  %v4661_v6 = vadd.f32 %v4616_v19, %v4543_v35  ;;  %v10744_v38 = vrot.slane %v8441_v22, 6  ;;  %5931 = vmatprep.mubr.msk.bf16.mxu1 %vm6169_vm0, %v10615_v13 }
 0x1a7   : > { %v4660_v48 = vadd.f32 %v4614_v10, %v4542_v44  ;;  %v8762_v50 = vor.u32 %v4947_v43, %v8568_v41  ;;  %v8767_v61 = vunpack.c.l.bf16 %v8737_v17  ;;  %v2280_v20 = vmul.f32 %v8301_v49, %v7810_v26 }
 0x1a8   : > { %v4732_v53 = vsel %vm1650_vm6, %v10744_v38, %v4731_v18  ;;  %v4734_v58 = vsel %vm1650_vm6, %v4731_v18, %v10536_v37  ;;  %v2281_v22 = vmul.f32 %v8301_v49, %v8140_v40  ;;  %v2324_v41 = vmul.f32 %v8313_v36, %v8140_v40 }
 0x1a9   : > { %v4778_v54 = vadd.f32 %v4732_v53, %v4660_v48  ;;  %v4779_v38 = vadd.f32 %v4734_v58, %v4661_v6  ;;  %v8780_v21 = vmul.f32 %v8313_v36, %v8156_v11  ;;  %v2442_v44 = vmul.f32 %v8324_v9, %v8140_v40 }
 0x1aa   : > { %v8787_v34 = vmul.f32 %v8324_v9, %v8156_v11  ;;  %v2562_v26 = vmul.f32 %v8335_v3, %v8452_v52  ;;  %v8793_v35 = vmul.f32 %v8335_v3, %v8463_v47  ;;  %v2370_v43 = vrot.slane %v2324_v41, 1 }
 0x1ab   : > { %v4804_v10 = vadd.f32 %v8641_v63, %v4778_v54  ;;  %v4805_v18 = vadd.f32 %v8641_v63, %v4779_v38  ;;  %v10544_v19 = vrot.slane %v8780_v21, 1  ;;  %v2488_v48 = vrot.slane %v2442_v44, 2 }
 0x1ac   : > { %v2608_v53 = vrot.slane %v2562_v26, 2  ;;  %v10745_v37 = vrot.slane %v8476_v32, 1  ;;  %v10746_v38 = vrot.slane %v8483_v57, 2  ;;  %v10747_v26 = vrot.slane %v8787_v34, 2 }
 0x1ad   : > { %v4823_v40 = vmax.f32 %v4804_v10, 0.0  ;;  %v4824_v54 = vmax.f32 %v4805_v18, 0.0  ;;  %v2373_v46 = vsel %vm815_vm1, %v2370_v43, %v10544_v19 }
 0x1ae   : > { %v2371_v27 = vsel %vm815_vm1, %v10745_v37, %v2370_v43  ;;  %v2489_v41 = vsel %vm934_vm2, %v10746_v38, %v2488_v48  ;;  %v2418_v6 = vadd.f32 %v2373_v46, %v2281_v22  ;;  %v2491_v18 = vsel %vm934_vm2, %v2488_v48, %v10747_v26 }
 0x1af   : > { %v4849_v44 = vmul.f32 %v8664_v15, %v4823_v40  ;;  %v2417_v10 = vadd.f32 %v2371_v27, %v2280_v20  ;;  %v4850_v32 = vmul.f32 %v8664_v15, %v4824_v54  ;;  %v10748_v37 = vrot.slane %v8489_v56, 2 }
 0x1b0   : > { %v10749_v43 = vrot.slane %v8793_v35, 2  ;;  %v2680_v38 = vmul.f32 %v8371_v23, %v8452_v52  ;;  %v2536_v20 = vadd.f32 %v2491_v18, %v2418_v6  ;;  %v8824_v22 = vmul.f32 %v8371_v23, %v8463_v47 }
 0x1b1   : > { %v2609_v58 = vsel %vm934_vm2, %v10748_v37, %v2608_v53  ;;  %v4875_v27 = vadd.f32 %v8682_v8, %v4849_v44  ;;  %v2535_v46 = vadd.f32 %v2489_v41, %v2417_v10  ;;  %v4876_v48 = vadd.f32 %v8682_v8, %v4850_v32 }
 0x1b2   : > { %v2611_v57 = vsel %vm934_vm2, %v2608_v53, %v10749_v43  ;;  %v2726_v56 = vrot.slane %v2680_v38, 3  ;;  %v2798_v40 = vmul.f32 %v8383_v33, %v8452_v52  ;;  %v8831_v53 = vmul.f32 %v8383_v33, %v8463_v47 }
 0x1b3   : > { %v2655_v54 = vadd.f32 %v2609_v58, %v2535_v46  ;;  %v2656_v26 = vadd.f32 %v2611_v57, %v2536_v20  ;;  %v10540_v44 = vrot.slane %v8824_v22, 3  ;;  %v2918_v6 = vmul.f32 %v8533_v5, %v8756_v4 }
 0x1b4   : > { %v8836_v41 = vpack.c.bf16 %v4876_v48, %v4875_v27  ;;  %v10750_v10 = vrot.slane %v8520_v25, 3  ;;  %v2844_v32 = vrot.slane %v2798_v40, 4  ;;  %v10539_v37 = vrot.slane %v8831_v53, 4 }
 0x1b5   : > { %v2729_v43 = vsel %vm1173_vm3, %v2726_v56, %v10540_v44  ;;  %v8847_v57 = vmul.f32 %v8533_v5, %v8767_v61  ;;  %v2964_v38 = vrot.slane %v2918_v6, 4  ;;  %v10751_v25 = vrot.slane %v8527_v55, 4 }
 0x1b6   : > { %v2727_v18 = vsel %vm1173_vm3, %v10750_v10, %v2726_v56  ;;  %v4951_v27 = vshll.u32 %v8836_v41, 16  ;;  %v2774_v46 = vadd.f32 %v2729_v43, %v2656_v26  ;;  %v2847_v48 = vsel %vm1292_vm4, %v2844_v32, %v10539_v37  ;;  %v8871_v43 = vld [vmem:[%s7966_s12] sm:$0xff]  }
 0x1b7   : > { %v2773_v58 = vadd.f32 %v2727_v18, %v2655_v54  ;;  %v2845_v20 = vsel %vm1292_vm4, %v10751_v25, %v2844_v32  ;;  %v10752_v56 = vrot.slane %v8548_v39, 4  ;;  %v10543_v10 = vrot.slane %v8847_v57, 4 }
 0x1b8   : > { %v3036_v6 = vmul.f32 %v8564_v51, %v8756_v4  ;;  %v8862_v18 = vrot.slane %v4951_v27, 1  ;;  %v2892_v26 = vadd.f32 %v2847_v48, %v2774_v46  ;;  %v8866_v55 = vmul.f32 %v8564_v51, %v8767_v61 }
 0x1b9   : > { %v2891_v40 = vadd.f32 %v2845_v20, %v2773_v58  ;;  %v2965_v54 = vsel %vm1292_vm4, %v10752_v56, %v2964_v38  ;;  %v3154_v32 = vmul.f32 %v8577_v29, %v8756_v4  ;;  %v2967_v39 = vsel %vm1292_vm4, %v2964_v38, %v10543_v10 }
 0x1ba   : > { %v3082_v25 = vrot.slane %v3036_v6, 5  ;;  %v8878_v27 = vmul.f32 %v8577_v29, %v8767_v61  ;;  %v4954_v46 = vsel %vm1856_vm7, %v8762_v50, %v8862_v18  ;;  %v3012_v20 = vadd.f32 %v2967_v39, %v2892_v26  ;;  %v10756_v39 = vld [vmem:[#allocation11_spill] sm:$0xff] }
 0x1bb   : > { %v3011_v58 = vadd.f32 %v2965_v54, %v2891_v40  ;;  %v10542_v48 = vrot.slane %v8866_v55, 5  ;;  %v3200_v56 = vrot.slane %v3154_v32, 6  ;;  %5984 = vmatmul.mubr.bf16.gmra.mxu0 %v4954_v46  ;;  %v10754_v37 = vrot.slane %v8572_v0, 5 }
 0x1bc   : > { %10753 = vst [vmem:[#allocation13_spill] sm:$0xff] %v8878_v27  ;;  %v10541_v38 = vrot.slane %v8878_v27, 6  ;;  %v3416_v40 = vshrl.u32 %v8700_v31, 16  ;;  %v8890_v54 = vunpack.c.h.bf16 %v8582_v14  ;;  %v10755_v26 = vrot.slane %v8589_v60, 6  ;;  %5987 = vmatprep.mubr.msk.bf16.mxu0 %vm6169_vm0, %v10615_v13 }
 0x1bd   : > { %v3083_v44 = vsel %vm1531_vm5, %v10754_v37, %v3082_v25  ;;  %v3085_v50 = vsel %vm1531_vm5, %v3082_v25, %v10542_v48  ;;  %v8901_v0 = vunpack.c.l.bf16 %v8871_v43  ;;  %v3857_v25 = vmul.f32 %v8313_v36, %v8284_v24 }
 0x1be   : > { %v3129_v6 = vadd.f32 %v3083_v44, %v3011_v58  ;;  %v3201_v32 = vsel %vm1650_vm6, %v10755_v26, %v3200_v56  ;;  %v3130_v37 = vadd.f32 %v3085_v50, %v3012_v20  ;;  %v3203_v14 = vsel %vm1650_vm6, %v3200_v56, %v10541_v38 }
 0x1bf   : > { %v8907_v31 = vor.u32 %v3416_v40, %v8728_v12  ;;  %v3813_v44 = vmul.f32 %v8301_v49, %v10756_v39  ;;  %v3814_v58 = vmul.f32 %v8301_v49, %v8284_v24  ;;  %v8917_v46 = vmul.f32 %v8313_v36, %v8296_v7 }
 0x1c0   : > { %v3247_v60 = vadd.f32 %v3201_v32, %v3129_v6  ;;  %v3248_v20 = vadd.f32 %v3203_v14, %v3130_v37  ;;  %v3975_v56 = vmul.f32 %v8324_v9, %v8284_v24  ;;  %v8923_v12 = vmul.f32 %v8324_v9, %v8296_v7 }
 0x1c1   : > { %10757 = vst [vmem:[#allocation5_spill] sm:$0xff] %v8917_v46  ;;  %v4095_v40 = vmul.f32 %v8335_v3, %v8601_v45  ;;  %v3905_v6 = vrot.slane %v3857_v25, 1  ;;  %v10555_v26 = vrot.slane %v8917_v46, 1  ;;  %v8931_v32 = vmul.f32 %v8335_v3, %v8612_v28 }
 0x1c2   : > { %v3273_v50 = vadd.f32 %v8641_v63, %v3247_v60  ;;  %v3274_v37 = vadd.f32 %v8641_v63, %v3248_v20  ;;  %v4023_v14 = vrot.slane %v3975_v56, 2  ;;  %v10549_v24 = vrot.slane %v8923_v12, 2 }
 0x1c3   : > { %v4143_v39 = vrot.slane %v4095_v40, 2  ;;  %v10758_v48 = vrot.slane %v8628_v2, 1  ;;  %v3908_v60 = vsel %vm815_vm1, %v3905_v6, %v10555_v26  ;;  %v10548_v25 = vrot.slane %v8931_v32, 2 }
 0x1c4   : > { %v3292_v38 = vmax.f32 %v3273_v50, 0.0  ;;  %v3293_v19 = vmax.f32 %v3274_v37, 0.0  ;;  %v3951_v27 = vadd.f32 %v3908_v60, %v3814_v58  ;;  %v10759_v20 = vrot.slane %v8634_v59, 2 }
 0x1c5   : > { %v3906_v10 = vsel %vm815_vm1, %v10758_v48, %v3905_v6  ;;  %v4026_v2 = vsel %vm934_vm2, %v4023_v14, %v10549_v24  ;;  %v10760_v48 = vld [vmem:[#allocation2_spill] sm:$0xff]  ;;  %v4146_v6 = vsel %vm934_vm2, %v4143_v39, %v10548_v25  ;;  %v4213_v58 = vmul.f32 %v8371_v23, %v8601_v45 }
 0x1c6   : > { %v3950_v7 = vadd.f32 %v3906_v10, %v3813_v44  ;;  %v4024_v56 = vsel %vm934_vm2, %v10759_v20, %v4023_v14  ;;  %v3318_v40 = vmul.f32 %v8664_v15, %v3292_v38  ;;  %v10761_v50 = vrot.slane %v10760_v48, 2 }
 0x1c7   : > { %v3319_v10 = vmul.f32 %v8664_v15, %v3293_v19  ;;  %v4069_v59 = vadd.f32 %v4026_v2, %v3951_v27  ;;  %v8961_v37 = vmul.f32 %v8371_v23, %v8612_v28  ;;  %v4331_v14 = vmul.f32 %v8383_v33, %v8601_v45 }
 0x1c8   : > { %v4144_v46 = vsel %vm934_vm2, %v10761_v50, %v4143_v39  ;;  %v4068_v44 = vadd.f32 %v4024_v56, %v3950_v7  ;;  %v3344_v38 = vadd.f32 %v8682_v8, %v3318_v40  ;;  %v8967_v60 = vmul.f32 %v8383_v33, %v8612_v28 }
 0x1c9   : > { %v3345_v19 = vadd.f32 %v8682_v8, %v3319_v10  ;;  %v4189_v27 = vadd.f32 %v4146_v6, %v4069_v59  ;;  %v4261_v39 = vrot.slane %v4213_v58, 3  ;;  %v10554_v20 = vrot.slane %v8961_v37, 3 }
 0x1ca   : > { %v4188_v7 = vadd.f32 %v4144_v46, %v4068_v44  ;;  %v4379_v56 = vrot.slane %v4331_v14, 4  ;;  %v10550_v40 = vrot.slane %v8967_v60, 4  ;;  %v4451_v2 = vmul.f32 %v8533_v5, %v8890_v54 }
 0x1cb   : > { %v8974_v48 = vpack.c.bf16 %v3345_v19, %v3344_v38  ;;  %v10762_v50 = vrot.slane %v8687_v42, 3  ;;  %v8981_v10 = vmul.f32 %v8533_v5, %v8901_v0  ;;  %v4569_v46 = vmul.f32 %v8564_v51, %v8890_v54 }
 0x1cc   : > { %v4264_v6 = vsel %vm1173_vm3, %v4261_v39, %v10554_v20  ;;  %v10763_v59 = vrot.slane %v8693_v16, 4  ;;  %v4382_v42 = vsel %vm1292_vm4, %v4379_v56, %v10550_v40  ;;  %v4499_v19 = vrot.slane %v4451_v2, 4  ;;  %v9011_v2 = vld [vmem:[%s6273_s28 + $0x90] sm:$0xff]  }
 0x1cd   : > { %v4262_v25 = vsel %vm1173_vm3, %v10762_v50, %v4261_v39  ;;  %v3420_v38 = vshll.u32 %v8974_v48, 16  ;;  %v4307_v14 = vadd.f32 %v4264_v6, %v4189_v27  ;;  %v10551_v50 = vrot.slane %v8981_v10, 4 }
 0x1ce   : > { %v4306_v44 = vadd.f32 %v4262_v25, %v4188_v7  ;;  %v4380_v58 = vsel %vm1292_vm4, %v10763_v59, %v4379_v56  ;;  %v8998_v39 = vmul.f32 %v8564_v51, %v8901_v0  ;;  %v4617_v25 = vrot.slane %v4569_v46, 5 }
 0x1cf   : > { %v4687_v16 = vmul.f32 %v8577_v29, %v8890_v54  ;;  %v9002_v7 = vrot.slane %v3420_v38, 1  ;;  %v4425_v59 = vadd.f32 %v4382_v42, %v4307_v14  ;;  %v10764_v56 = vrot.slane %v8707_v1, 4 }
 0x1d0   : > { %v4424_v24 = vadd.f32 %v4380_v58, %v4306_v44  ;;  %v4502_v27 = vsel %vm1292_vm4, %v4499_v19, %v10551_v50  ;;  %v10765_v44 = vrot.slane %v8724_v62, 5  ;;  %v10553_v58 = vrot.slane %v8998_v39, 5 }
 0x1d1   : > { %v4500_v40 = vsel %vm1292_vm4, %v10764_v56, %v4499_v19  ;;  %v9019_v42 = vmul.f32 %v8577_v29, %v8901_v0  ;;  %v3423_v1 = vsel %vm1856_vm7, %v8907_v31, %v9002_v7  ;;  %v4545_v38 = vadd.f32 %v4502_v27, %v4425_v59 }
 0x1d2   : > { %v4544_v6 = vadd.f32 %v4500_v40, %v4424_v24  ;;  %v4618_v46 = vsel %vm1531_vm5, %v10765_v44, %v4617_v25  ;;  %v4735_v14 = vrot.slane %v4687_v16, 6  ;;  %v4955_v19 = vshrl.u32 %v8836_v41, 16  ;;  %5932 = vmatmul.mubr.bf16.gmra.mxu1 %v3423_v1 }
 0x1d3   : > { %v4620_v62 = vsel %vm1531_vm5, %v4617_v25, %v10553_v58  ;;  %v10552_v40 = vrot.slane %v9019_v42, 6  ;;  %v9030_v56 = vunpack.c.h.bf16 %v8737_v17  ;;  %v10766_v50 = vrot.slane %v8745_v30, 6  ;;  %5935 = vmatprep.mubr.msk.bf16.mxu1 %vm6169_vm0, %v10615_v13 }
 0x1d4   : > { %v4662_v24 = vadd.f32 %v4618_v46, %v4544_v6  ;;  %v4663_v44 = vadd.f32 %v4620_v62, %v4545_v38  ;;  %v9036_v16 = vor.u32 %v4955_v19, %v8862_v18  ;;  %v9041_v41 = vunpack.c.l.bf16 %v9011_v2 }
 0x1d5   : > { %v4736_v31 = vsel %vm1650_vm6, %v10766_v50, %v4735_v14  ;;  %v4738_v25 = vsel %vm1650_vm6, %v4735_v14, %v10552_v40  ;;  %v2282_v59 = vmul.f32 %v8301_v49, %v8156_v11  ;;  %v2283_v30 = vmul.f32 %v8301_v49, %v8452_v52 }
 0x1d6   : > { %v4780_v17 = vadd.f32 %v4736_v31, %v4662_v24  ;;  %v4781_v50 = vadd.f32 %v4738_v25, %v4663_v44  ;;  %v2326_v18 = vmul.f32 %v8313_v36, %v8452_v52  ;;  %v9054_v27 = vmul.f32 %v8313_v36, %v8463_v47 }
 0x1d7   : > { %v2444_v6 = vmul.f32 %v8324_v9, %v8452_v52  ;;  %v9061_v1 = vmul.f32 %v8324_v9, %v8463_v47  ;;  %v2564_v11 = vmul.f32 %v8335_v3, %v8756_v4  ;;  %v9067_v38 = vmul.f32 %v8335_v3, %v8767_v61 }
 0x1d8   : > { %v4806_v46 = vadd.f32 %v8641_v63, %v4780_v17  ;;  %v4807_v14 = vadd.f32 %v8641_v63, %v4781_v50  ;;  %v2374_v19 = vrot.slane %v2326_v18, 1  ;;  %v10563_v62 = vrot.slane %v9054_v27, 1 }
 0x1d9   : > { %v2492_v24 = vrot.slane %v2444_v6, 2  ;;  %v10562_v44 = vrot.slane %v9061_v1, 2  ;;  %v2612_v31 = vrot.slane %v2564_v11, 2  ;;  %v10558_v25 = vrot.slane %v9067_v38, 2 }
 0x1da   : > { %v4825_v52 = vmax.f32 %v4806_v46, 0.0  ;;  %v4826_v17 = vmax.f32 %v4807_v14, 0.0  ;;  %v10767_v40 = vrot.slane %v8780_v21, 1  ;;  %v2377_v20 = vsel %vm815_vm1, %v2374_v19, %v10563_v62 }
 0x1db   : > { %v10768_v50 = vrot.slane %v8787_v34, 2  ;;  %v2420_v26 = vadd.f32 %v2377_v20, %v2283_v30  ;;  %v2495_v11 = vsel %vm934_vm2, %v2492_v24, %v10562_v44  ;;  %v2615_v34 = vsel %vm934_vm2, %v2612_v31, %v10558_v25 }
 0x1dc   : > { %v2375_v58 = vsel %vm815_vm1, %v10767_v40, %v2374_v19  ;;  %v4851_v6 = vmul.f32 %v8664_v15, %v4825_v52  ;;  %v4852_v21 = vmul.f32 %v8664_v15, %v4826_v17  ;;  %v10769_v40 = vrot.slane %v8793_v35, 2 }
 0x1dd   : > { %v2493_v18 = vsel %vm934_vm2, %v10768_v50, %v2492_v24  ;;  %v2419_v46 = vadd.f32 %v2375_v58, %v2282_v59  ;;  %v2682_v19 = vmul.f32 %v8371_v23, %v8756_v4  ;;  %v2538_v59 = vadd.f32 %v2495_v11, %v2420_v26 }
 0x1de   : > { %v2613_v14 = vsel %vm934_vm2, %v10769_v40, %v2612_v31  ;;  %v4877_v58 = vadd.f32 %v8682_v8, %v4851_v6  ;;  %v9098_v30 = vmul.f32 %v8371_v23, %v8767_v61  ;;  %v4878_v24 = vadd.f32 %v8682_v8, %v4852_v21 }
 0x1df   : > { %v2537_v20 = vadd.f32 %v2493_v18, %v2419_v46  ;;  %v2730_v35 = vrot.slane %v2682_v19, 3  ;;  %v2800_v52 = vmul.f32 %v8383_v33, %v8756_v4  ;;  %v9105_v31 = vmul.f32 %v8383_v33, %v8767_v61 }
 0x1e0   : > { %v2658_v50 = vadd.f32 %v2615_v34, %v2538_v59  ;;  %v10556_v6 = vrot.slane %v9098_v30, 3  ;;  %v2920_v26 = vmul.f32 %v8533_v5, %v9030_v56  ;;  %v9110_v18 = vpack.c.bf16 %v4878_v24, %v4877_v58 }
 0x1e1   : > { %v2657_v17 = vadd.f32 %v2613_v14, %v2537_v20  ;;  %v10770_v46 = vrot.slane %v8824_v22, 3  ;;  %v2848_v21 = vrot.slane %v2800_v52, 4  ;;  %v10557_v40 = vrot.slane %v9105_v31, 4 }
 0x1e2   : > { %v2733_v19 = vsel %vm1173_vm3, %v2730_v35, %v10556_v6  ;;  %v9121_v34 = vmul.f32 %v8533_v5, %v9041_v41  ;;  %v2968_v20 = vrot.slane %v2920_v26, 4  ;;  %v4959_v58 = vshll.u32 %v9110_v18, 16 }
 0x1e3   : > { %v2731_v11 = vsel %vm1173_vm3, %v10770_v46, %v2730_v35  ;;  %v2776_v59 = vadd.f32 %v2733_v19, %v2658_v50  ;;  %v10771_v22 = vrot.slane %v8831_v53, 4  ;;  %v2851_v52 = vsel %vm1292_vm4, %v2848_v21, %v10557_v40  ;;  %v9145_v19 = vld [vmem:[%s7966_s12 + $0x8] sm:$0xff]  }
 0x1e4   : > { %v2775_v14 = vadd.f32 %v2731_v11, %v2657_v17  ;;  %v10772_v35 = vrot.slane %v8847_v57, 4  ;;  %v10561_v11 = vrot.slane %v9121_v34, 4  ;;  %v3038_v26 = vmul.f32 %v8564_v51, %v9030_v56  ;;  %10773 = vst [vmem:[#allocation6_spill] sm:$0xff] %v9145_v19 }
 0x1e5   : > { %v2849_v24 = vsel %vm1292_vm4, %v10771_v22, %v2848_v21  ;;  %v9136_v6 = vrot.slane %v4959_v58, 1  ;;  %v2894_v50 = vadd.f32 %v2851_v52, %v2776_v59  ;;  %v9140_v53 = vmul.f32 %v8564_v51, %v9041_v41 }
 0x1e6   : > { %v2893_v46 = vadd.f32 %v2849_v24, %v2775_v14  ;;  %v2969_v17 = vsel %vm1292_vm4, %v10772_v35, %v2968_v20  ;;  %v3156_v21 = vmul.f32 %v8577_v29, %v9030_v56  ;;  %v2971_v57 = vsel %vm1292_vm4, %v2968_v20, %v10561_v11 }
 0x1e7   : > { %v3086_v22 = vrot.slane %v3038_v26, 5  ;;  %v9152_v58 = vmul.f32 %v8577_v29, %v9041_v41  ;;  %v4962_v59 = vsel %vm1856_vm7, %v9036_v16, %v9136_v6  ;;  %v3014_v24 = vadd.f32 %v2971_v57, %v2894_v50  ;;  %v10775_v50 = vld [vmem:[#allocation13_spill] sm:$0xff] }
 0x1e8   : > { %v3013_v14 = vadd.f32 %v2969_v17, %v2893_v46  ;;  %v10560_v52 = vrot.slane %v9140_v53, 5  ;;  %v3204_v35 = vrot.slane %v3156_v21, 6  ;;  %5988 = vmatmul.mubr.bf16.gmra.mxu0 %v4962_v59  ;;  %v10774_v40 = vrot.slane %v8866_v55, 5  ;;  %v9188_v59 = vld [vmem:[%s10388_s2] ss:$0 sm:$0xff] }
 0x1e9   : > { %v10559_v20 = vrot.slane %v9152_v58, 6  ;;  %v3424_v46 = vshrl.u32 %v8974_v48, 16  ;;  %v9164_v17 = vunpack.c.h.bf16 %v8871_v43  ;;  %v10776_v57 = vrot.slane %v10775_v50, 6  ;;  %5991 = vmatprep.mubr.msk.bf16.mxu0 %vm6169_vm0, %v10615_v13 }
 0x1ea   : > { %v3087_v25 = vsel %vm1531_vm5, %v10774_v40, %v3086_v22  ;;  %v3089_v16 = vsel %vm1531_vm5, %v3086_v22, %v10560_v52  ;;  %v9175_v55 = vunpack.c.l.bf16 %v9145_v19  ;;  %v10777_v22 = vld [vmem:[#allocation12_spill] sm:$0xff]  ;;  %v3816_v50 = vmul.f32 %v9188_v59, %v8601_v45 }
 0x1eb   : > { %v3131_v26 = vadd.f32 %v3087_v25, %v3013_v14  ;;  %v3205_v21 = vsel %vm1650_vm6, %v10776_v57, %v3204_v35  ;;  %v3132_v40 = vadd.f32 %v3089_v16, %v3014_v24  ;;  %v3207_v43 = vsel %vm1650_vm6, %v3204_v35, %v10559_v20 }
 0x1ec   : > { %v9181_v48 = vor.u32 %v3424_v46, %v9002_v7  ;;  %v3815_v25 = vmul.f32 %v8301_v49, %v10777_v22  ;;  %v3859_v24 = vmul.f32 %v8313_v36, %v8601_v45  ;;  %v9196_v35 = vmul.f32 %v8313_v36, %v8612_v28  ;;  %v9211_v36 = vld [vmem:[%s10388_s2 + $0x3] ss:$0 sm:$0xff] }
 0x1ed   : > { %v3249_v14 = vadd.f32 %v3205_v21, %v3131_v26  ;;  %v3250_v7 = vadd.f32 %v3207_v43, %v3132_v40  ;;  %v3977_v49 = vmul.f32 %v8324_v9, %v8601_v45  ;;  %v9202_v46 = vmul.f32 %v8324_v9, %v8612_v28 }
 0x1ee   : > { %v4097_v16 = vmul.f32 %v8335_v3, %v8890_v54  ;;  %v3909_v57 = vrot.slane %v3859_v24, 1  ;;  %v10575_v21 = vrot.slane %v9196_v35, 1  ;;  %v9215_v45 = vmul.f32 %v9211_v36, %v8901_v0 }
 0x1ef   : > { %v3275_v26 = vadd.f32 %v8641_v63, %v3249_v14  ;;  %v3276_v9 = vadd.f32 %v8641_v63, %v3250_v7  ;;  %v4027_v40 = vrot.slane %v3977_v49, 2  ;;  %v10574_v43 = vrot.slane %v9202_v46, 2  ;;  %v10778_v14 = vld [vmem:[#allocation5_spill] sm:$0xff] }
 0x1f0   : > { %v4147_v3 = vrot.slane %v4097_v16, 2  ;;  %v10779_v24 = vrot.slane %v10778_v14, 1  ;;  %v3912_v52 = vsel %vm815_vm1, %v3909_v57, %v10575_v21  ;;  %v10565_v11 = vrot.slane %v9215_v45, 2 }
 0x1f1   : > { %v3294_v22 = vmax.f32 %v3275_v26, 0.0  ;;  %v3295_v44 = vmax.f32 %v3276_v9, 0.0  ;;  %v3953_v19 = vadd.f32 %v3912_v52, %v3816_v50  ;;  %v10780_v7 = vrot.slane %v8923_v12, 2  ;;  %v9246_v9 = vld [vmem:[%s10388_s2 + $0x4] ss:$0 sm:$0xff] }
 0x1f2   : > { %v3910_v20 = vsel %vm815_vm1, %v10779_v24, %v3909_v57  ;;  %v4030_v26 = vsel %vm934_vm2, %v4027_v40, %v10574_v43  ;;  %v10781_v14 = vrot.slane %v8931_v32, 2  ;;  %v4150_v57 = vsel %vm934_vm2, %v4147_v3, %v10565_v11 }
 0x1f3   : > { %v3952_v62 = vadd.f32 %v3910_v20, %v3815_v25  ;;  %v4028_v49 = vsel %vm934_vm2, %v10780_v7, %v4027_v40  ;;  %v3320_v16 = vmul.f32 %v8664_v15, %v3294_v22  ;;  %v3321_v52 = vmul.f32 %v8664_v15, %v3295_v44 }
 0x1f4   : > { %v4148_v24 = vsel %vm934_vm2, %v10781_v14, %v4147_v3  ;;  %v4071_v12 = vadd.f32 %v4030_v26, %v3953_v19  ;;  %v4215_v25 = vmul.f32 %v8371_v23, %v8890_v54  ;;  %v9250_v32 = vmul.f32 %v9246_v9, %v8901_v0 }
 0x1f5   : > { %v4070_v20 = vadd.f32 %v4028_v49, %v3952_v62  ;;  %v3346_v50 = vadd.f32 %v8682_v8, %v3320_v16  ;;  %v4333_v40 = vmul.f32 %v8383_v33, %v8890_v54  ;;  %v9256_v62 = vmul.f32 %v8383_v33, %v8901_v0 }
 0x1f6   : > { %v3347_v23 = vadd.f32 %v8682_v8, %v3321_v52  ;;  %v4191_v19 = vadd.f32 %v4150_v57, %v4071_v12  ;;  %v4265_v3 = vrot.slane %v4215_v25, 3  ;;  %v10573_v22 = vrot.slane %v9250_v32, 3 }
 0x1f7   : > { %v4190_v44 = vadd.f32 %v4148_v24, %v4070_v20  ;;  %v4383_v7 = vrot.slane %v4333_v40, 4  ;;  %v10572_v49 = vrot.slane %v9256_v62, 4  ;;  %v4453_v16 = vmul.f32 %v8533_v5, %v9164_v17 }
 0x1f8   : > { %v9263_v26 = vpack.c.bf16 %v3347_v23, %v3346_v50  ;;  %v10782_v14 = vrot.slane %v8961_v37, 3  ;;  %v9270_v52 = vmul.f32 %v8533_v5, %v9175_v55  ;;  %v4571_v24 = vmul.f32 %v8564_v51, %v9164_v17 }
 0x1f9   : > { %v4268_v57 = vsel %vm1173_vm3, %v4265_v3, %v10573_v22  ;;  %v10783_v12 = vrot.slane %v8967_v60, 4  ;;  %v4386_v37 = vsel %vm1292_vm4, %v4383_v7, %v10572_v49  ;;  %v4503_v40 = vrot.slane %v4453_v16, 4 }
 0x1fa   : > { %v4266_v33 = vsel %vm1173_vm3, %v10782_v14, %v4265_v3  ;;  %v3428_v50 = vshll.u32 %v9263_v26, 16  ;;  %v4309_v5 = vadd.f32 %v4268_v57, %v4191_v19  ;;  %v10568_v23 = vrot.slane %v9270_v52, 4 }
 0x1fb   : > { %v4308_v20 = vadd.f32 %v4266_v33, %v4190_v44  ;;  %v4384_v25 = vsel %vm1292_vm4, %v10783_v12, %v4383_v7  ;;  %v9287_v11 = vmul.f32 %v8564_v51, %v9175_v55  ;;  %v4621_v44 = vrot.slane %v4571_v24, 5 }
 0x1fc   : > { %v4689_v60 = vmul.f32 %v8577_v29, %v9164_v17  ;;  %v9291_v3 = vrot.slane %v3428_v50, 1  ;;  %v4427_v33 = vadd.f32 %v4386_v37, %v4309_v5  ;;  %v10784_v7 = vrot.slane %v8981_v10, 4 }
 0x1fd   : > { %v4426_v14 = vadd.f32 %v4384_v25, %v4308_v20  ;;  %v4506_v19 = vsel %vm1292_vm4, %v4503_v40, %v10568_v23  ;;  %v10785_v57 = vrot.slane %v8998_v39, 5  ;;  %v10567_v24 = vrot.slane %v9287_v11, 5  ;;  %v9384_v23 = vpop.f32.mrf.mxu0 }
 0x1fe   : > { %v4504_v12 = vsel %vm1292_vm4, %v10784_v7, %v4503_v40  ;;  %v9305_v20 = vmul.f32 %v8577_v29, %v9175_v55  ;;  %v3431_v10 = vsel %vm1856_vm7, %v9181_v48, %v9291_v3  ;;  %v4547_v25 = vadd.f32 %v4506_v19, %v4427_v33  ;;  %v9347_v19 = vld [vmem:[%s10388_s2 + $0x2] ss:$0 sm:$0xff]  ;;  %10791 = vst [vmem:[#allocation8_spill] sm:$0xff] %v9384_v23 }
 0x1ff   : > { %v4546_v16 = vadd.f32 %v4504_v12, %v4426_v14  ;;  %v4622_v51 = vsel %vm1531_vm5, %v10785_v57, %v4621_v44  ;;  %v4739_v37 = vrot.slane %v4689_v60, 6  ;;  %v4963_v50 = vshrl.u32 %v9110_v18, 16  ;;  %5936 = vmatmul.mubr.bf16.gmra.mxu1 %v3431_v10 }
 0x200   : > { %v4624_v39 = vsel %vm1531_vm5, %v4621_v44, %v10567_v24  ;;  %v10566_v40 = vrot.slane %v9305_v20, 6  ;;  %v9316_v14 = vunpack.c.h.bf16 %v9011_v2  ;;  %v10786_v7 = vrot.slane %v9019_v42, 6  ;;  %5939 = vmatprep.mubr.msk.bf16.mxu1 %vm6169_vm0, %v10615_v13  ;;  %v9336_v42 = vld [vmem:[%s10388_s2 + $0x1] ss:$0 sm:$0xff] }
 0x201   : > { %v4664_v5 = vadd.f32 %v4622_v51, %v4546_v16  ;;  %v4665_v29 = vadd.f32 %v4624_v39, %v4547_v25  ;;  %v9322_v60 = vor.u32 %v4963_v50, %v9136_v6  ;;  %v2284_v18 = vmul.f32 %v9188_v59, %v8463_v47 }
 0x202   : > { %v4740_v48 = vsel %vm1650_vm6, %v10786_v7, %v4739_v37  ;;  %v4742_v44 = vsel %vm1650_vm6, %v4739_v37, %v10566_v40  ;;  %v2285_v33 = vmul.f32 %v9188_v59, %v8756_v4  ;;  %v2328_v6 = vmul.f32 %v9336_v42, %v8756_v4 }
 0x203   : > { %v4782_v2 = vadd.f32 %v4740_v48, %v4664_v5  ;;  %v4783_v12 = vadd.f32 %v4742_v44, %v4665_v29  ;;  %v9342_v47 = vmul.f32 %v9336_v42, %v8767_v61  ;;  %v2446_v16 = vmul.f32 %v9347_v19, %v8756_v4 }
 0x204   : > { %v9353_v57 = vmul.f32 %v9347_v19, %v8767_v61  ;;  %v2378_v10 = vrot.slane %v2328_v6, 1  ;;  %v2566_v25 = vmul.f32 %v9211_v36, %v9030_v56  ;;  %v9360_v37 = vmul.f32 %v9211_v36, %v9041_v41 }
 0x205   : > { %v4808_v51 = vadd.f32 %v8641_v63, %v4782_v2  ;;  %v4809_v50 = vadd.f32 %v8641_v63, %v4783_v12  ;;  %v10571_v39 = vrot.slane %v9342_v47, 1  ;;  %v2496_v5 = vrot.slane %v2446_v16, 2 }
 0x206   : > { %v10570_v4 = vrot.slane %v9353_v57, 2  ;;  %v10787_v7 = vrot.slane %v9054_v27, 1  ;;  %v2616_v44 = vrot.slane %v2566_v25, 2  ;;  %v10569_v2 = vrot.slane %v9360_v37, 2 }
 0x207   : > { %v4827_v29 = vmax.f32 %v4808_v51, 0.0  ;;  %v4828_v6 = vmax.f32 %v4809_v50, 0.0  ;;  %v2381_v40 = vsel %vm815_vm1, %v2378_v10, %v10571_v39  ;;  %v10788_v63 = vrot.slane %v9061_v1, 2 }
 0x208   : > { %v2379_v48 = vsel %vm815_vm1, %v10787_v7, %v2378_v10  ;;  %v2422_v51 = vadd.f32 %v2381_v40, %v2285_v33  ;;  %v2499_v27 = vsel %vm934_vm2, %v2496_v5, %v10570_v4  ;;  %v10789_v25 = vrot.slane %v9067_v38, 2  ;;  %v9382_v7 = vpop.f32.mrf.mxu1 }
 0x209   : > { %v2421_v24 = vadd.f32 %v2379_v48, %v2284_v18  ;;  %v2497_v12 = vsel %vm934_vm2, %v10788_v63, %v2496_v5  ;;  %v4853_v16 = vmul.f32 %v8664_v15, %v4827_v29  ;;  %10790 = vst [vmem:[#allocation7_spill] sm:$0xff] %v9382_v7  ;;  %v4854_v18 = vmul.f32 %v8664_v15, %v4828_v6  ;;  %v9400_v29 = vld [vmem:[%s10388_s2 + $0x5] ss:$0 sm:$0xff]  ;;  %v5869_v48 = vpop.f32.mrf.mxu0 }
 0x20a   : > { %v2617_v50 = vsel %vm934_vm2, %v10789_v25, %v2616_v44  ;;  %v2619_v10 = vsel %vm934_vm2, %v2616_v44, %v10569_v2  ;;  %v2684_v40 = vmul.f32 %v9246_v9, %v9030_v56  ;;  %v2540_v5 = vadd.f32 %v2499_v27, %v2422_v51  ;;  %v9413_v25 = vld [vmem:[%s10388_s2 + $0x6] ss:$0 sm:$0xff] }
 0x20b   : > { %v2539_v1 = vadd.f32 %v2497_v12, %v2421_v24  ;;  %v4879_v33 = vadd.f32 %v8682_v8, %v4853_v16  ;;  %v9395_v38 = vmul.f32 %v9246_v9, %v9041_v41  ;;  %v2802_v15 = vmul.f32 %v9400_v29, %v9030_v56  ;;  %v5885_v24 = vpop.f32.mrf.mxu1 }
 0x20c   : > { %v4880_v44 = vadd.f32 %v8682_v8, %v4854_v18  ;;  %v2734_v63 = vrot.slane %v2684_v40, 3  ;;  %v9407_v12 = vmul.f32 %v9400_v29, %v9041_v41  ;;  %v2660_v16 = vadd.f32 %v2619_v10, %v2540_v5  ;;  %v9419_v8 = vpop.f32.mrf.mxu0  ;;  %v10795_v40 = vld [vmem:[#allocation3_spill] sm:$0xff] }
 0x20d   : > { %v2659_v6 = vadd.f32 %v2617_v50, %v2539_v1  ;;  %v10578_v51 = vrot.slane %v9395_v38, 3  ;;  %v2852_v27 = vrot.slane %v2802_v15, 4  ;;  %v2922_v24 = vmul.f32 %v9413_v25, %v9316_v14  ;;  %v9417_v48 = vpop.f32.mrf.mxu1  ;;  %10793 = vst [vmem:[#allocation10_spill] sm:$0xff] %v9419_v8 }
 0x20e   : > { %10792 = vst [vmem:[#allocation9_spill] sm:$0xff] %v9417_v48  ;;  %v9421_v50 = vpack.c.bf16 %v4880_v44, %v4879_v33  ;;  %v10794_v18 = vrot.slane %v9098_v30, 3  ;;  %v10577_v10 = vrot.slane %v9407_v12, 4  ;;  %v9429_v5 = vmul.f32 %v9413_v25, %v10795_v40  ;;  %v5870_v30 = vpop.f32.mrf.mxu0 }
 0x20f   : > { %v2737_v15 = vsel %vm1173_vm3, %v2734_v63, %v10578_v51  ;;  %v10796_v4 = vrot.slane %v9105_v31, 4  ;;  %v2972_v44 = vrot.slane %v2922_v24, 4  ;;  %v5886_v39 = vpop.f32.mrf.mxu1  ;;  %v9448_v31 = vld [vmem:[%s10388_s2 + $0x7] ss:$0 sm:$0xff]  ;;  %v3432_v51 = vshrl.u32 %v9263_v26, 16 }
 0x210   : > { %v2735_v1 = vsel %vm1173_vm3, %v10794_v18, %v2734_v63  ;;  %v4967_v18 = vshll.u32 %v9421_v50, 16  ;;  %v2778_v49 = vadd.f32 %v2737_v15, %v2660_v16  ;;  %v2855_v22 = vsel %vm1292_vm4, %v2852_v27, %v10577_v10 }
 0x211   : > { %v2777_v2 = vadd.f32 %v2735_v1, %v2659_v6  ;;  %v2853_v33 = vsel %vm1292_vm4, %v10796_v4, %v2852_v27  ;;  %v10576_v43 = vrot.slane %v9429_v5, 4  ;;  %v10797_v63 = vrot.slane %v9121_v34, 4  ;;  %v9456_v16 = vpop.f32.mrf.mxu1  ;;  %v9458_v27 = vpop.f32.mrf.mxu0  ;;  %v9468_v1 = vld [vmem:[%s10388_s2 + $0x8] ss:$0 sm:$0xff] }
 0x212   : > { %v3040_v39 = vmul.f32 %v9448_v31, %v9316_v14  ;;  %v9454_v4 = vmul.f32 %v9448_v31, %v10795_v40  ;;  %10798 = vst [vmem:[#allocation4_spill] sm:$0xff] %v9456_v16  ;;  %10799 = vst [vmem:[#allocation11_spill] sm:$0xff] %v9458_v27  ;;  %v2896_v34 = vadd.f32 %v2855_v22, %v2778_v49 }
 0x213   : > { %v2895_v21 = vadd.f32 %v2853_v33, %v2777_v2  ;;  %v2973_v6 = vsel %vm1292_vm4, %v10797_v63, %v2972_v44  ;;  %v9460_v2 = vrot.slane %v4967_v18, 1  ;;  %v2975_v24 = vsel %vm1292_vm4, %v2972_v44, %v10576_v43  ;;  %v5889_v49 = vpop.f32.mrf.mxu1  ;;  %v5873_v18 = vpop.f32.mrf.mxu0 }
 0x214   : > { %v3158_v15 = vmul.f32 %v9468_v1, %v9316_v14  ;;  %v3090_v30 = vrot.slane %v3040_v39, 5  ;;  %v10580_v63 = vrot.slane %v9454_v4, 5  ;;  %v9475_v22 = vmul.f32 %v9468_v1, %v10795_v40  ;;  %v9489_v18 = vld [vmem:[%s7966_s12 + $0x10] sm:$0xff]  }
 0x215   : > { %v3015_v33 = vadd.f32 %v2973_v6, %v2895_v21  ;;  %v4970_v44 = vsel %vm1856_vm7, %v9322_v60, %v9460_v2  ;;  %v3016_v43 = vadd.f32 %v2975_v24, %v2896_v34  ;;  %v10800_v21 = vrot.slane %v9140_v53, 5  ;;  %10801 = vst [vmem:[#allocation2_spill] sm:$0xff] %v9489_v18  ;;  %v9493_v34 = vpop.f32.mrf.mxu1  ;;  %v9495_v24 = vpop.f32.mrf.mxu0 }
 0x216   : > { %v3208_v10 = vrot.slane %v3158_v15, 6  ;;  %5992 = vmatmul.mubr.bf16.gmra.mxu0 %v4970_v44  ;;  %v3093_v39 = vsel %vm1531_vm5, %v3090_v30, %v10580_v63  ;;  %v10579_v49 = vrot.slane %v9475_v22, 6  ;;  %v3817_v60 = vmul.f32 %v9188_v59, %v8612_v28  ;;  %10802 = vst [vmem:[#allocation13_spill] sm:$0xff] %v9493_v34  ;;  %10803 = vst [vmem:[#allocation12_spill] sm:$0xff] %v9495_v24  ;;  %v10805_v63 = vld [vmem:[#allocation6_spill] sm:$0xff] }
 0x217   : > { %v3091_v6 = vsel %vm1531_vm5, %v10800_v21, %v3090_v30  ;;  %v3134_v15 = vadd.f32 %v3093_v39, %v3016_v43  ;;  %v10804_v53 = vrot.slane %v9152_v58, 6  ;;  %v9501_v21 = vor.u32 %v3432_v51, %v9291_v3  ;;  %5995 = vmatprep.mubr.msk.bf16.mxu0 %vm6169_vm0, %v10615_v13  ;;  %v5874_v3 = vpop.f32.mrf.mxu0 }
 0x218   : > { %v3133_v26 = vadd.f32 %v3091_v6, %v3015_v33  ;;  %v3211_v28 = vsel %vm1650_vm6, %v3208_v10, %v10579_v49  ;;  %v3818_v30 = vmul.f32 %v9188_v59, %v8890_v54  ;;  %v3861_v43 = vmul.f32 %v9336_v42, %v8890_v54  ;;  %v5890_v33 = vpop.f32.mrf.mxu1 }
 0x219   : > { %v3209_v44 = vsel %vm1650_vm6, %v10804_v53, %v3208_v10  ;;  %v9514_v58 = vmul.f32 %v9336_v42, %v8901_v0  ;;  %v3252_v6 = vadd.f32 %v3211_v28, %v3134_v15  ;;  %v3979_v39 = vmul.f32 %v9347_v19, %v8890_v54  ;;  %v9536_v54 = vld [vmem:[%s10389_s3] ss:$0 sm:$0xff] }
 0x21a   : > { %v3251_v51 = vadd.f32 %v3209_v44, %v3133_v26  ;;  %v9520_v10 = vmul.f32 %v9347_v19, %v8901_v0  ;;  %v3913_v53 = vrot.slane %v3861_v43, 1  ;;  %v9524_v24 = vunpack.c.h.bf16 %v10805_v63  ;;  %v9529_v33 = vpop.f32.mrf.mxu1  ;;  %v9531_v26 = vpop.f32.mrf.mxu0 }
 0x21b   : > { %v10581_v49 = vrot.slane %v9514_v58, 1  ;;  %v9527_v34 = vunpack.c.l.bf16 %v9489_v18  ;;  %10806 = vst [vmem:[#allocation5_spill] sm:$0xff] %v9529_v33  ;;  %10807 = vst [vmem:[#allocation3_spill] sm:$0xff] %v9531_v26  ;;  %v3278_v44 = vadd.f32 %v9536_v54, %v3252_v6  ;;  %v4031_v28 = vrot.slane %v3979_v39, 2 }
 0x21c   : > { %v3277_v15 = vadd.f32 %v9536_v54, %v3251_v51  ;;  %v10808_v43 = vrot.slane %v9196_v35, 1  ;;  %v4099_v33 = vmul.f32 %v9211_v36, %v9164_v17  ;;  %v9551_v27 = vmul.f32 %v9211_v36, %v9175_v55  ;;  %v5893_v51 = vpop.f32.mrf.mxu1  ;;  %v5877_v6 = vpop.f32.mrf.mxu0 }
 0x21d   : > { %v3916_v26 = vsel %vm815_vm1, %v3913_v53, %v10581_v49  ;;  %v3297_v16 = vmax.f32 %v3278_v44, 0.0  ;;  %v10810_v35 = vrot.slane %v9202_v46, 2  ;;  %v10811_v48 = vrot.slane %v9520_v10, 2 }
 0x21e   : > { %v3914_v3 = vsel %vm815_vm1, %v10808_v43, %v3913_v53  ;;  %10809 = vst [vmem:[#allocation6_spill] sm:$0xff] %v9551_v27  ;;  %v3296_v39 = vmax.f32 %v3277_v15, 0.0  ;;  %v3955_v8 = vadd.f32 %v3916_v26, %v3818_v30  ;;  %v4151_v49 = vrot.slane %v4099_v33, 2  ;;  %v9560_v7 = vpop.f32.mrf.mxu1  ;;  %v9562_v18 = vpop.f32.mrf.mxu0 }
 0x21f   : > { %v3954_v63 = vadd.f32 %v3914_v3, %v3817_v60  ;;  %v4032_v43 = vsel %vm934_vm2, %v10810_v35, %v4031_v28  ;;  %v4034_v53 = vsel %vm934_vm2, %v4031_v28, %v10811_v48  ;;  %v10583_v23 = vrot.slane %v9551_v27, 2  ;;  %10812 = vst [vmem:[#allocation18_spill] sm:$0xff] %v9560_v7  ;;  %10813 = vst [vmem:[#allocation19_spill] sm:$0xff] %v9562_v18  ;;  %v9567_v60 = vld [vmem:[%s10390_s4] ss:$0 sm:$0xff] }
 0x220   : > { %v3322_v46 = vmul.f32 %v9567_v60, %v3296_v39  ;;  %v3323_v30 = vmul.f32 %v9567_v60, %v3297_v16  ;;  %v4073_v15 = vadd.f32 %v4034_v53, %v3955_v8  ;;  %v10814_v48 = vrot.slane %v9215_v45, 2  ;;  %v5894_v51 = vpop.f32.mrf.mxu1  ;;  %v5878_v6 = vpop.f32.mrf.mxu0  ;;  %v9586_v8 = vld [vmem:[%s10391_s5] ss:$0 sm:$0xff] }
 0x221   : > { %v4072_v26 = vadd.f32 %v4032_v43, %v3954_v63  ;;  %v4154_v44 = vsel %vm934_vm2, %v4151_v49, %v10583_v23  ;;  %v4217_v28 = vmul.f32 %v9246_v9, %v9164_v17  ;;  %v9581_v3 = vmul.f32 %v9246_v9, %v9175_v55 }
 0x222   : > { %v4152_v33 = vsel %vm934_vm2, %v10814_v48, %v4151_v49  ;;  %v3348_v45 = vadd.f32 %v9586_v8, %v3322_v46  ;;  %v3349_v16 = vadd.f32 %v9586_v8, %v3323_v30  ;;  %v4193_v49 = vadd.f32 %v4154_v44, %v4073_v15  ;;  %v9597_v48 = vpop.f32.mrf.mxu1  ;;  %v9599_v51 = vpop.f32.mrf.mxu0 }
 0x223   : > { %v4192_v63 = vadd.f32 %v4152_v33, %v4072_v26  ;;  %v4269_v39 = vrot.slane %v4217_v28, 3  ;;  %v10586_v35 = vrot.slane %v9581_v3, 3  ;;  %v4335_v43 = vmul.f32 %v9400_v29, %v9164_v17  ;;  %10815 = vst [vmem:[#allocation20_spill] sm:$0xff] %v9597_v48  ;;  %10816 = vst [vmem:[#allocation21_spill] sm:$0xff] %v9599_v51 }
 0x224   : > { %v9595_v53 = vmul.f32 %v9400_v29, %v9175_v55  ;;  %v9601_v6 = vpack.c.bf16 %v3349_v16, %v3348_v45  ;;  %v4455_v46 = vmul.f32 %v9413_v25, %v9524_v24  ;;  %v9607_v30 = vmul.f32 %v9413_v25, %v9527_v34  ;;  %v5897_v16 = vpop.f32.mrf.mxu1  ;;  %v5881_v23 = vpop.f32.mrf.mxu0 }
 0x225   : > { %v4573_v26 = vmul.f32 %v9448_v31, %v9524_v24  ;;  %v10817_v15 = vrot.slane %v9250_v32, 3  ;;  %v4272_v44 = vsel %vm1173_vm3, %v4269_v39, %v10586_v35  ;;  %v4387_v28 = vrot.slane %v4335_v43, 4 }
 0x226   : > { %v10585_v45 = vrot.slane %v9595_v53, 4  ;;  %v3436_v51 = vshll.u32 %v9601_v6, 16  ;;  %v4311_v18 = vadd.f32 %v4272_v44, %v4193_v49  ;;  %v4507_v7 = vrot.slane %v4455_v46, 4  ;;  %v9630_v23 = vpop.f32.mrf.mxu1  ;;  %v9632_v16 = vpop.f32.mrf.mxu0 }
 0x227   : > { %v4270_v33 = vsel %vm1173_vm3, %v10817_v15, %v4269_v39  ;;  %v10818_v27 = vrot.slane %v9256_v62, 4  ;;  %v10589_v39 = vrot.slane %v9607_v30, 4  ;;  %v9628_v43 = vmul.f32 %v9448_v31, %v9527_v34  ;;  %10819 = vst [vmem:[#allocation22_spill] sm:$0xff] %v9630_v23  ;;  %10820 = vst [vmem:[#allocation23_spill] sm:$0xff] %v9632_v16 }
 0x228   : > { %v4310_v48 = vadd.f32 %v4270_v33, %v4192_v63  ;;  %v4390_v15 = vsel %vm1292_vm4, %v4387_v28, %v10585_v45  ;;  %v9634_v63 = vrot.slane %v3436_v51, 1  ;;  %v4625_v44 = vrot.slane %v4573_v26, 5  ;;  %v5898_v35 = vpop.f32.mrf.mxu1  ;;  %v5882_v16 = vpop.f32.mrf.mxu0 }
 0x229   : > { %v4388_v32 = vsel %vm1292_vm4, %v10818_v27, %v4387_v28  ;;  %v4429_v62 = vadd.f32 %v4390_v15, %v4311_v18  ;;  %v10821_v27 = vrot.slane %v9270_v52, 4  ;;  %v4510_v33 = vsel %vm1292_vm4, %v4507_v7, %v10589_v39 }
 0x22a   : > { %v4428_v49 = vadd.f32 %v4388_v32, %v4310_v48  ;;  %v10588_v28 = vrot.slane %v9628_v43, 5  ;;  %v4691_v45 = vmul.f32 %v9468_v1, %v9524_v24  ;;  %v3439_v18 = vsel %vm1856_vm7, %v9501_v21, %v9634_v63  ;;  %v9659_v16 = vpop.f32.mrf.mxu1  ;;  %v9661_v21 = vpop.f32.mrf.mxu0 }
 0x22b   : > { %v4508_v46 = vsel %vm1292_vm4, %v10821_v27, %v4507_v7  ;;  %v4549_v52 = vadd.f32 %v4510_v33, %v4429_v62  ;;  %v9650_v51 = vmul.f32 %v9468_v1, %v9527_v34  ;;  %5940 = vmatmul.mubr.bf16.gmra.mxu1 %v3439_v18  ;;  %v10822_v7 = vrot.slane %v9287_v11, 5  ;;  %10823 = vst [vmem:[#allocation24_spill] sm:$0xff] %v9659_v16 }
 0x22c   : > { %v4548_v48 = vadd.f32 %v4508_v46, %v4428_v49  ;;  %v4628_v35 = vsel %vm1531_vm5, %v4625_v44, %v10588_v28  ;;  %v4743_v32 = vrot.slane %v4691_v45, 6  ;;  %v4971_v15 = vshrl.u32 %v9421_v50, 16  ;;  %10824 = vst [vmem:[#allocation25_spill] sm:$0xff] %v9661_v21  ;;  %5943 = vmatprep.mubr.msk.bf16.mxu1 %vm6169_vm0, %v10615_v13  ;;  %v5901_v18 = vpop.f32.mrf.mxu1 }
 0x22d   : > { %v4626_v26 = vsel %vm1531_vm5, %v10822_v7, %v4625_v44  ;;  %v4667_v62 = vadd.f32 %v4628_v35, %v4549_v52  ;;  %v10587_v27 = vrot.slane %v9650_v51, 6  ;;  %v2286_v11 = vmul.f32 %v9188_v59, %v8767_v61 }
 0x22e   : > { %v4666_v49 = vadd.f32 %v4626_v26, %v4548_v48  ;;  %v10825_v46 = vrot.slane %v9305_v20, 6  ;;  %v9672_v50 = vor.u32 %v4971_v15, %v9460_v2  ;;  %v2287_v33 = vmul.f32 %v9188_v59, %v9030_v56  ;;  %v5973_v48 = vpop.f32.mrf.mxu0 }
 0x22f   : > { %v2330_v44 = vmul.f32 %v9336_v42, %v9030_v56  ;;  %v4746_v52 = vsel %vm1650_vm6, %v4743_v32, %v10587_v27  ;;  %v9683_v20 = vmul.f32 %v9336_v42, %v9041_v41  ;;  %v2448_v2 = vmul.f32 %v9347_v19, %v9030_v56 }
 0x230   : > { %v4744_v45 = vsel %vm1650_vm6, %v10825_v46, %v4743_v32  ;;  %v4785_v7 = vadd.f32 %v4746_v52, %v4667_v62  ;;  %v9689_v35 = vmul.f32 %v9347_v19, %v9041_v41  ;;  %v2568_v15 = vmul.f32 %v9211_v36, %v9316_v14  ;;  %v9693_v46 = vpop.f32.mrf.mxu1  ;;  %v9695_v32 = vpop.f32.mrf.mxu0 }
 0x231   : > { %v4784_v61 = vadd.f32 %v4744_v45, %v4666_v49  ;;  %v2382_v26 = vrot.slane %v2330_v44, 1  ;;  %10826 = vst [vmem:[#allocation26_spill] sm:$0xff] %v9693_v46  ;;  %10827 = vst [vmem:[#allocation27_spill] sm:$0xff] %v9695_v32  ;;  %v10591_v45 = vrot.slane %v9683_v20, 1  ;;  %v2500_v18 = vrot.slane %v2448_v2, 2 }
 0x232   : > { %v9701_v56 = vmul.f32 %v9211_v36, %v10795_v40  ;;  %v4811_v62 = vadd.f32 %v9536_v54, %v4785_v7  ;;  %v10828_v44 = vrot.slane %v9342_v47, 1  ;;  %v10590_v52 = vrot.slane %v9689_v35, 2  ;;  %v5902_v28 = vpop.f32.mrf.mxu1  ;;  %v5974_v39 = vpop.f32.mrf.mxu0 }
 0x233   : > { %v4810_v49 = vadd.f32 %v9536_v54, %v4784_v61  ;;  %v2620_v27 = vrot.slane %v2568_v15, 2  ;;  %v2385_v61 = vsel %vm815_vm1, %v2382_v26, %v10591_v45  ;;  %v10829_v46 = vrot.slane %v9353_v57, 2 }
 0x234   : > { %v2383_v48 = vsel %vm815_vm1, %v10828_v44, %v2382_v26  ;;  %v4830_v7 = vmax.f32 %v4811_v62, 0.0  ;;  %v2424_v16 = vadd.f32 %v2385_v61, %v2287_v33  ;;  %v2503_v47 = vsel %vm934_vm2, %v2500_v18, %v10590_v52  ;;  %v9720_v28 = vpop.f32.mrf.mxu1 }
 0x235   : > { %v4829_v32 = vmax.f32 %v4810_v49, 0.0  ;;  %v2423_v2 = vadd.f32 %v2383_v48, %v2286_v11  ;;  %v2501_v21 = vsel %vm934_vm2, %v10829_v46, %v2500_v18  ;;  %v10830_v15 = vrot.slane %v9360_v37, 2  ;;  %10831 = vst [vmem:[#allocation28_spill] sm:$0xff] %v9720_v28  ;;  %v9726_v46 = vpop.f32.mrf.mxu0 }
 0x236   : > { %v10592_v11 = vrot.slane %v9701_v56, 2  ;;  %v2686_v57 = vmul.f32 %v9246_v9, %v9316_v14  ;;  %10832 = vst [vmem:[#allocation29_spill] sm:$0xff] %v9726_v46  ;;  %v4856_v33 = vmul.f32 %v9567_v60, %v4830_v7  ;;  %v2542_v62 = vadd.f32 %v2503_v47, %v2424_v16  ;;  %v5921_v44 = vpop.f32.mrf.mxu1 }
 0x237   : > { %v2621_v39 = vsel %vm934_vm2, %v10830_v15, %v2620_v27  ;;  %v4855_v49 = vmul.f32 %v9567_v60, %v4829_v32  ;;  %v2541_v26 = vadd.f32 %v2501_v21, %v2423_v2  ;;  %v9731_v37 = vmul.f32 %v9246_v9, %v10795_v40  ;;  %v5977_v2 = vpop.f32.mrf.mxu0 }
 0x238   : > { %v2804_v18 = vmul.f32 %v9400_v29, %v9316_v14  ;;  %v2623_v32 = vsel %vm934_vm2, %v2620_v27, %v10592_v11  ;;  %v2738_v61 = vrot.slane %v2686_v57, 3  ;;  %v4882_v7 = vadd.f32 %v9586_v8, %v4856_v33  ;;  %v9745_v52 = vpop.f32.mrf.mxu1  ;;  %v10835_v27 = vld [vmem:[#allocation14_spill] sm:$0xff] }
 0x239   : > { %v4881_v21 = vadd.f32 %v9586_v8, %v4855_v49  ;;  %v2661_v48 = vadd.f32 %v2621_v39, %v2541_v26  ;;  %v2662_v16 = vadd.f32 %v2623_v32, %v2542_v62  ;;  %v10597_v47 = vrot.slane %v9731_v37, 3  ;;  %10833 = vst [vmem:[#allocation30_spill] sm:$0xff] %v9745_v52  ;;  %v10836_v26 = vld [vmem:[#allocation15_spill] sm:$0xff]  ;;  %v9756_v33 = vpop.f32.mrf.mxu0 }
 0x23a   : > { %v9743_v15 = vmul.f32 %v9400_v29, %v10795_v40  ;;  %v10834_v49 = vrot.slane %v9395_v38, 3  ;;  %v2856_v45 = vrot.slane %v2804_v18, 4  ;;  %v2924_v39 = vmul.f32 %v9413_v25, %v10835_v27  ;;  %10837 = vst [vmem:[#allocation14_spill] sm:$0xff] %v9756_v33 }
 0x23b   : > { %v9754_v57 = vmul.f32 %v9413_v25, %v10836_v26  ;;  %v9758_v62 = vpack.c.bf16 %v4882_v7, %v4881_v21  ;;  %v2741_v32 = vsel %vm1173_vm3, %v2738_v61, %v10597_v47  ;;  %v10838_v11 = vrot.slane %v9407_v12, 4  ;;  %v5978_v23 = vpop.f32.mrf.mxu0  ;;  %v6106_v47 = vld [vmem:[%s7966_s12 + $0x18] sm:$0xf]  }
 0x23c   : > { %v2739_v44 = vsel %vm1173_vm3, %v10834_v49, %v2738_v61  ;;  %v10596_v38 = vrot.slane %v9743_v15, 4  ;;  %v5922_v49 = vpop.f32.mrf.mxu1  ;;  %v2780_v18 = vadd.f32 %v2741_v32, %v2662_v16  ;;  %v2976_v46 = vrot.slane %v2924_v39, 4 }
 0x23d   : > { %v2779_v2 = vadd.f32 %v2739_v44, %v2661_v48  ;;  %v2857_v52 = vsel %vm1292_vm4, %v10838_v11, %v2856_v45  ;;  %v10595_v28 = vrot.slane %v9754_v57, 4  ;;  %v4975_v21 = vshll.u32 %v9758_v62, 16 }
 0x23e   : > { %v2859_v7 = vsel %vm1292_vm4, %v2856_v45, %v10596_v38  ;;  %v3042_v48 = vmul.f32 %v9448_v31, %v10835_v27  ;;  %v10839_v16 = vrot.slane %v9429_v5, 4  ;;  %v9782_v23 = vmul.f32 %v9448_v31, %v10836_v26 }
 0x23f   : > { %v2897_v61 = vadd.f32 %v2857_v52, %v2779_v2  ;;  %v2898_v44 = vadd.f32 %v2859_v7, %v2780_v18  ;;  %v2979_v11 = vsel %vm1292_vm4, %v2976_v46, %v10595_v28  ;;  %v9784_v39 = vrot.slane %v4975_v21, 1 }
 0x240   : > { %v2977_v12 = vsel %vm1292_vm4, %v10839_v16, %v2976_v46  ;;  %v3094_v52 = vrot.slane %v3042_v48, 5  ;;  %v3160_v32 = vmul.f32 %v9468_v1, %v10835_v27  ;;  %v10594_v5 = vrot.slane %v9782_v23, 5 }
 0x241   : > { %v3017_v45 = vadd.f32 %v2977_v12, %v2897_v61  ;;  %v3018_v2 = vadd.f32 %v2979_v11, %v2898_v44  ;;  %v9791_v49 = vmul.f32 %v9468_v1, %v10836_v26  ;;  %v3440_v46 = vshrl.u32 %v9601_v6, 16 }
 0x242   : > { %v4978_v18 = vsel %vm1856_vm7, %v9672_v50, %v9784_v39  ;;  %v10840_v21 = vrot.slane %v9454_v4, 5  ;;  %v3212_v61 = vrot.slane %v3160_v32, 6  ;;  %v3819_v48 = vmul.f32 %v9188_v59, %v8901_v0 }
 0x243   : > { %5996 = vmatmul.mubr.bf16.gmra.mxu0 %v4978_v18  ;;  %v3097_v44 = vsel %vm1531_vm5, %v3094_v52, %v10594_v5  ;;  %v10593_v6 = vrot.slane %v9791_v49, 6  ;;  %v9807_v12 = vor.u32 %v3440_v46, %v9634_v63  ;;  %v10841_v4 = vrot.slane %v9475_v22, 6 }
 0x244   : > { %v3095_v7 = vsel %vm1531_vm5, %v10840_v21, %v3094_v52  ;;  %v3136_v50 = vadd.f32 %v3097_v44, %v3018_v2  ;;  %5999 = vmatprep.mubr.msk.bf16.mxu0 %vm6169_vm0, %v10615_v13  ;;  %v3820_v0 = vmul.f32 %v9188_v59, %v9164_v17  ;;  %v3863_v52 = vmul.f32 %v9336_v42, %v9164_v17 }
 0x245   : > { %v3135_v16 = vadd.f32 %v3095_v7, %v3017_v45  ;;  %v3213_v11 = vsel %vm1650_vm6, %v10841_v4, %v3212_v61  ;;  %v3215_v45 = vsel %vm1650_vm6, %v3212_v61, %v10593_v6  ;;  %v9823_v32 = vmul.f32 %v9336_v42, %v9175_v55 }
 0x246   : > { %v3981_v22 = vmul.f32 %v9347_v19, %v9164_v17  ;;  %v3254_v2 = vadd.f32 %v3215_v45, %v3136_v50  ;;  %v3917_v46 = vrot.slane %v3863_v52, 1  ;;  %v9829_v18 = vmul.f32 %v9347_v19, %v9175_v55 }
 0x247   : > { %v3253_v63 = vadd.f32 %v3213_v11, %v3135_v16  ;;  %v4101_v21 = vmul.f32 %v9211_v36, %v9524_v24  ;;  %v10599_v61 = vrot.slane %v9823_v32, 1  ;;  %v9837_v16 = vmul.f32 %v9211_v36, %v9527_v34 }
 0x248   : > { %v4035_v44 = vrot.slane %v3981_v22, 2  ;;  %v3280_v17 = vadd.f32 %v9536_v54, %v3254_v2  ;;  %v10842_v50 = vrot.slane %v9514_v58, 1  ;;  %v10598_v11 = vrot.slane %v9829_v18, 2  ;;  %v10844_v2 = vld [vmem:[#allocation6_spill] sm:$0xff] }
 0x249   : > { %v3279_v7 = vadd.f32 %v9536_v54, %v3253_v63  ;;  %v4155_v52 = vrot.slane %v4101_v21, 2  ;;  %v3920_v63 = vsel %vm815_vm1, %v3917_v46, %v10599_v61  ;;  %v10843_v22 = vrot.slane %v9520_v10, 2 }
 0x24a   : > { %v3918_v4 = vsel %vm815_vm1, %v10842_v50, %v3917_v46  ;;  %v3299_v28 = vmax.f32 %v3280_v17, 0.0  ;;  %v3957_v38 = vadd.f32 %v3920_v63, %v3820_v0  ;;  %v4038_v58 = vsel %vm934_vm2, %v4035_v44, %v10598_v11  ;;  %v9861_v46 = vpop.f32.mrf.mxu1  ;;  %v10847_v11 = vld [vmem:[#allocation2_spill] sm:$0xff] }
 0x24b   : > { %v3298_v45 = vmax.f32 %v3279_v7, 0.0  ;;  %v3956_v6 = vadd.f32 %v3918_v4, %v3819_v48  ;;  %v4036_v5 = vsel %vm934_vm2, %v10843_v22, %v4035_v44  ;;  %v10845_v50 = vrot.slane %v10844_v2, 2 }
 0x24c   : > { %v4157_v48 = vrot.slane %v9837_v16, 2  ;;  %v4219_v10 = vmul.f32 %v9246_v9, %v9524_v24  ;;  %v3325_v0 = vmul.f32 %v9567_v60, %v3299_v28  ;;  %v4075_v17 = vadd.f32 %v4038_v58, %v3957_v38  ;;  %v5925_v22 = vpop.f32.mrf.mxu1 }
 0x24d   : > { %v4156_v21 = vsel %vm934_vm2, %v10845_v50, %v4155_v52  ;;  %v3324_v7 = vmul.f32 %v9567_v60, %v3298_v45  ;;  %v4074_v33 = vadd.f32 %v4036_v5, %v3956_v6  ;;  %v9866_v44 = vmul.f32 %v9246_v9, %v9527_v34 }
 0x24e   : > { %v4337_v4 = vmul.f32 %v9400_v29, %v9524_v24  ;;  %v4158_v5 = vsel %vm934_vm2, %v4155_v52, %v4157_v48  ;;  %v4273_v63 = vrot.slane %v4219_v10, 3  ;;  %v3351_v2 = vadd.f32 %v9586_v8, %v3325_v0 }
 0x24f   : > { %v3350_v45 = vadd.f32 %v9586_v8, %v3324_v7  ;;  %v4194_v6 = vadd.f32 %v4156_v21, %v4074_v33  ;;  %v4195_v28 = vadd.f32 %v4158_v5, %v4075_v17  ;;  %v4275_v38 = vrot.slane %v9866_v44, 3  ;;  %v9884_v33 = vpop.f32.mrf.mxu1 }
 0x250   : > { %v9878_v58 = vmul.f32 %v9400_v29, %v9527_v34  ;;  %v10846_v24 = vrot.slane %v9581_v3, 3  ;;  %v4391_v7 = vrot.slane %v4337_v4, 4  ;;  %v4433_v61 = vunpack.c.h.bf16 %v10847_v11 }
 0x251   : > { %v4434_v52 = vunpack.c.l.bf16 %v6106_v47  ;;  %v9886_v21 = vpack.c.bf16 %v3351_v2, %v3350_v45  ;;  %v4276_v10 = vsel %vm1173_vm3, %v4273_v63, %v4275_v38  ;;  %v10848_v3 = vrot.slane %v9595_v53, 4  ;;  %v5926_v11 = vpop.f32.mrf.mxu1 }
 0x252   : > { %v4274_v50 = vsel %vm1173_vm3, %v10846_v24, %v4273_v63  ;;  %v10601_v34 = vrot.slane %v9878_v58, 4  ;;  %v4313_v17 = vadd.f32 %v4276_v10, %v4195_v28  ;;  %v4457_v4 = vmul.f32 %v9413_v25, %v4433_v61 }
 0x253   : > { %v4312_v0 = vadd.f32 %v4274_v50, %v4194_v6  ;;  %v4392_v5 = vsel %vm1292_vm4, %v10848_v3, %v4391_v7  ;;  %v9897_v47 = vmul.f32 %v9413_v25, %v4434_v52  ;;  %v3444_v45 = vshll.u32 %v9886_v21, 16 }
 0x254   : > { %v4394_v63 = vsel %vm1292_vm4, %v4391_v7, %v10601_v34  ;;  %v4575_v22 = vmul.f32 %v9448_v31, %v4433_v61  ;;  %v4511_v28 = vrot.slane %v4457_v4, 4  ;;  %v9906_v24 = vmul.f32 %v9448_v31, %v4434_v52 }
 0x255   : > { %v4430_v6 = vadd.f32 %v4392_v5, %v4312_v0  ;;  %v4431_v2 = vadd.f32 %v4394_v63, %v4313_v17  ;;  %v10600_v53 = vrot.slane %v9897_v47, 4  ;;  %v9908_v50 = vrot.slane %v3444_v45, 1 }
 0x256   : > { %v4629_v10 = vrot.slane %v4575_v22, 5  ;;  %v4693_v3 = vmul.f32 %v9468_v1, %v4433_v61  ;;  %v9912_v11 = vmul.f32 %v9468_v1, %v4434_v52  ;;  %v10849_v7 = vrot.slane %v9607_v30, 4 }
 0x257   : > { %v4514_v17 = vsel %vm1292_vm4, %v4511_v28, %v10600_v53  ;;  %v4631_v5 = vrot.slane %v9906_v24, 5  ;;  %v4979_v4 = vshrl.u32 %v9758_v62, 16  ;;  %v3447_v45 = vsel %vm1856_vm7, %v9807_v12, %v9908_v50 }
 0x258   : > { %v4512_v0 = vsel %vm1292_vm4, %v10849_v7, %v4511_v28  ;;  %v4551_v63 = vadd.f32 %v4514_v17, %v4431_v2  ;;  %v10850_v52 = vrot.slane %v9628_v43, 5  ;;  %5944 = vmatmul.mubr.bf16.gmra.mxu1 %v3447_v45  ;;  %v4747_v28 = vrot.slane %v4693_v3, 6 }
 0x259   : > { %v4550_v61 = vadd.f32 %v4512_v0, %v4430_v6  ;;  %v4632_v22 = vsel %vm1531_vm5, %v4629_v10, %v4631_v5  ;;  %v10602_v7 = vrot.slane %v9912_v11, 6  ;;  %v9933_v62 = vor.u32 %v4979_v4, %v9784_v39  ;;  %5947 = vmatprep.mubr.msk.bf16.mxu1 %vm6169_vm0, %v10615_v13 }
 0x25a   : > { %v4630_v30 = vsel %vm1531_vm5, %v10850_v52, %v4629_v10  ;;  %v4669_v34 = vadd.f32 %v4632_v22, %v4551_v63  ;;  %v2288_v43 = vmul.f32 %v9188_v59, %v9041_v41  ;;  %v2289_v12 = vmul.f32 %v9188_v59, %v9316_v14 }
 0x25b   : > { %v4668_v53 = vadd.f32 %v4630_v30, %v4550_v61  ;;  %v10851_v6 = vrot.slane %v9650_v51, 6  ;;  %v4750_v39 = vsel %vm1650_vm6, %v4747_v28, %v10602_v7  ;;  %v2332_v10 = vmul.f32 %v9336_v42, %v9316_v14 }
 0x25c   : > { %v9951_v3 = vmul.f32 %v9336_v42, %v10795_v40  ;;  %v4787_v41 = vadd.f32 %v4750_v39, %v4669_v34  ;;  %v2450_v59 = vmul.f32 %v9347_v19, %v9316_v14  ;;  %v9957_v51 = vmul.f32 %v9347_v19, %v10795_v40 }
 0x25d   : > { %v4748_v2 = vsel %vm1650_vm6, %v10851_v6, %v4747_v28  ;;  %v2386_v17 = vrot.slane %v2332_v10, 1  ;;  %v2570_v45 = vmul.f32 %v9211_v36, %v10835_v27  ;;  %v9964_v61 = vmul.f32 %v9211_v36, %v10836_v26 }
 0x25e   : > { %v4786_v0 = vadd.f32 %v4748_v2, %v4668_v53  ;;  %v2388_v4 = vrot.slane %v9951_v3, 1  ;;  %v4813_v34 = vadd.f32 %v9536_v54, %v4787_v41  ;;  %v2504_v53 = vrot.slane %v2450_v59, 2 }
 0x25f   : > { %v2506_v14 = vrot.slane %v9957_v51, 2  ;;  %v10852_v19 = vrot.slane %v9683_v20, 1  ;;  %v2624_v30 = vrot.slane %v2570_v45, 2  ;;  %v2626_v22 = vrot.slane %v9964_v61, 2 }
 0x260   : > { %v4812_v42 = vadd.f32 %v9536_v54, %v4786_v0  ;;  %v2389_v52 = vsel %vm815_vm1, %v2386_v17, %v2388_v4  ;;  %v4832_v28 = vmax.f32 %v4813_v34, 0.0  ;;  %v10853_v39 = vrot.slane %v9689_v35, 2 }
 0x261   : > { %v2387_v63 = vsel %vm815_vm1, %v10852_v19, %v2386_v17  ;;  %v2426_v2 = vadd.f32 %v2389_v52, %v2289_v12  ;;  %v2507_v20 = vsel %vm934_vm2, %v2504_v53, %v2506_v14  ;;  %v10854_v0 = vrot.slane %v9701_v56, 2  ;;  %v9988_v17 = vpop.f32.mrf.mxu0 }
 0x262   : > { %v4831_v36 = vmax.f32 %v4812_v42, 0.0  ;;  %v2425_v6 = vadd.f32 %v2387_v63, %v2288_v43  ;;  %v2505_v10 = vsel %vm934_vm2, %v10853_v39, %v2504_v53  ;;  %v2627_v59 = vsel %vm934_vm2, %v2624_v30, %v2626_v22 }
 0x263   : > { %v2625_v41 = vsel %vm934_vm2, %v10854_v0, %v2624_v30  ;;  %v4858_v35 = vmul.f32 %v9567_v60, %v4832_v28  ;;  %v2544_v45 = vadd.f32 %v2507_v20, %v2426_v2  ;;  %v2688_v42 = vmul.f32 %v9246_v9, %v10835_v27  ;;  %v5981_v19 = vpop.f32.mrf.mxu0 }
 0x264   : > { %v4857_v43 = vmul.f32 %v9567_v60, %v4831_v36  ;;  %v2543_v12 = vadd.f32 %v2505_v10, %v2425_v6  ;;  %v9996_v56 = vmul.f32 %v9246_v9, %v10836_v26  ;;  %v2806_v34 = vmul.f32 %v9400_v29, %v10835_v27  ;;  %v10855_v10 = vld [vmem:[#allocation16_spill] sm:$0xff] }
 0x265   : > { %v10002_v53 = vmul.f32 %v9400_v29, %v10836_v26  ;;  %v4884_v52 = vadd.f32 %v9586_v8, %v4858_v35  ;;  %v2664_v36 = vadd.f32 %v2627_v59, %v2544_v45  ;;  %v2742_v28 = vrot.slane %v2688_v42, 3  ;;  %v10008_v39 = vpop.f32.mrf.mxu0  ;;  %v10856_v26 = vld [vmem:[#allocation17_spill] sm:$0xff] }
 0x266   : > { %v4883_v63 = vadd.f32 %v9586_v8, %v4857_v43  ;;  %v2663_v30 = vadd.f32 %v2625_v41, %v2543_v12  ;;  %v2744_v6 = vrot.slane %v9996_v56, 3  ;;  %v2860_v2 = vrot.slane %v2806_v34, 4 }
 0x267   : > { %v2862_v9 = vrot.slane %v10002_v53, 4  ;;  %v2926_v29 = vmul.f32 %v9413_v25, %v10855_v10  ;;  %v10014_v20 = vmul.f32 %v9413_v25, %v10856_v26  ;;  %v3044_v0 = vmul.f32 %v9448_v31, %v10855_v10  ;;  %v5982_v45 = vpop.f32.mrf.mxu0 }
 0x268   : > { %v4894_v27 = vpack.c.bf16 %v4884_v52, %v4883_v63  ;;  %v10857_v41 = vrot.slane %v9731_v37, 3  ;;  %v2745_v43 = vsel %vm1173_vm3, %v2742_v28, %v2744_v6  ;;  %v10858_v35 = vrot.slane %v9743_v15, 4 }
 0x269   : > { %v2863_v25 = vsel %vm1292_vm4, %v2860_v2, %v2862_v9  ;;  %v2782_v19 = vadd.f32 %v2745_v43, %v2664_v36  ;;  %v2980_v63 = vrot.slane %v2926_v29, 4  ;;  %v2982_v37 = vrot.slane %v10014_v20, 4 }
 0x26a   : > { %v2743_v59 = vsel %vm1173_vm3, %v10857_v41, %v2742_v28  ;;  %v2861_v12 = vsel %vm1292_vm4, %v10858_v35, %v2860_v2  ;;  %v4983_v42 = vshll.u32 %v4894_v27, 16  ;;  %v10033_v52 = vmul.f32 %v9448_v31, %v10856_v26 }
 0x26b   : > { %v2781_v34 = vadd.f32 %v2743_v59, %v2663_v30  ;;  %v3098_v28 = vrot.slane %v3044_v0, 5  ;;  %v3162_v15 = vmul.f32 %v9468_v1, %v10855_v10  ;;  %v2900_v7 = vadd.f32 %v2863_v25, %v2782_v19 }
 0x26c   : > { %v4985_v41 = vrot.slane %v4983_v42, 1  ;;  %v10859_v2 = vrot.slane %v9754_v57, 4  ;;  %v2983_v30 = vsel %vm1292_vm4, %v2980_v63, %v2982_v37  ;;  %v10860_v36 = vrot.slane %v9782_v23, 5 }
 0x26d   : > { %v2899_v35 = vadd.f32 %v2861_v12, %v2781_v34  ;;  %v3100_v29 = vrot.slane %v10033_v52, 5  ;;  %v10049_v10 = vmul.f32 %v9468_v1, %v10856_v26  ;;  %v3020_v59 = vadd.f32 %v2983_v30, %v2900_v7  ;;  %v6143_v1 = vld [vmem:[%s10388_s2] ss:$0 sm:$0xff]  ;;  %v10863_v30 = vld [vmem:[#allocation7_spill] sm:$0xff] }
 0x26e   : > { %v2981_v45 = vsel %vm1292_vm4, %v10859_v2, %v2980_v63  ;;  %v3099_v31 = vsel %vm1531_vm5, %v10860_v36, %v3098_v28  ;;  %v4986_v0 = vsel %vm1856_vm7, %v9933_v62, %v4985_v41  ;;  %v3216_v43 = vrot.slane %v3162_v15, 6  ;;  %v10065_v7 = vld [vmem:[%s10393_s7] ss:$0 sm:$0xff] }
 0x26f   : > { %v3019_v57 = vadd.f32 %v2981_v45, %v2899_v35  ;;  %6000 = vmatmul.mubr.bf16.gmra.mxu0 %v4986_v0  ;;  %v3101_v12 = vsel %vm1531_vm5, %v3098_v28, %v3100_v29  ;;  %v3218_v23 = vrot.slane %v10049_v10, 6  ;;  %v3448_v25 = vshrl.u32 %v9886_v21, 16 }
 0x270   : > { %v3821_v26 = vmul.f32 %v6143_v1, %v9175_v55  ;;  %v3138_v42 = vadd.f32 %v3101_v12, %v3020_v59  ;;  %v10861_v34 = vrot.slane %v9791_v49, 6  ;;  %6003 = vmatprep.mubr.msk.bf16.mxu0 %vm6169_vm0, %v10615_v13  ;;  %v4987_v21 = vshrl.u32 %v4894_v27, 16  ;;  %v10867_v12 = vld [vmem:[#allocation10_spill] sm:$0xff] }
 0x271   : > { %v3137_v62 = vadd.f32 %v3099_v31, %v3019_v57  ;;  %v3219_v63 = vsel %vm1650_vm6, %v3216_v43, %v3218_v23  ;;  %v10076_v55 = vor.u32 %v3448_v25, %v9908_v50  ;;  %v10862_v28 = vrot.slane %v9823_v32, 1  ;;  %v10092_v32 = vld [vmem:[%s10394_s8] ss:$0 sm:$0xff] }
 0x272   : > { %v3217_v19 = vsel %vm1650_vm6, %v10861_v34, %v3216_v43  ;;  %v2290_v35 = vmul.f32 %v6143_v1, %v10795_v40  ;;  %v3256_v49 = vadd.f32 %v3219_v63, %v3138_v42  ;;  %v10081_v45 = vor.u32 %v4987_v21, %v4985_v41  ;;  %v10865_v40 = vld [vmem:[#allocation8_spill] sm:$0xff]  ;;  %v10866_v41 = vld [vmem:[#allocation9_spill] sm:$0xff]  ;;  %v10109_v1 = vld [vmem:[%s10395_s9] ss:$0 sm:$0xff] }
 0x273   : > { %v3958_v15 = vadd.f32 %v10862_v28, %v3821_v26  ;;  %v3255_v2 = vadd.f32 %v3217_v19, %v3137_v62  ;;  %v2057_v36 = vadd.f32 %v10065_v7, %v10863_v30  ;;  %v10864_v27 = vrot.slane %v9829_v18, 2 }
 0x274   : > { %v2427_v0 = vadd.f32 %v2388_v4, %v2290_v35  ;;  %v2025_v50 = vadd.f32 %v10065_v7, %v10865_v40  ;;  %v2060_v57 = vadd.f32 %v10065_v7, %v10866_v41  ;;  %v3282_v18 = vadd.f32 %v9536_v54, %v3256_v49  ;;  %v10871_v41 = vld [vmem:[#allocation11_spill] sm:$0xff] }
 0x275   : > { %v4076_v31 = vadd.f32 %v10864_v27, %v3958_v15  ;;  %v3281_v59 = vadd.f32 %v9536_v54, %v3255_v2  ;;  %v2103_v43 = vmax.f32 %v2057_v36, 0.0  ;;  %v2028_v3 = vadd.f32 %v10065_v7, %v10867_v12  ;;  %v10123_v2 = vpop.f32.mrf.mxu1  ;;  %v10869_v27 = vld [vmem:[#allocation4_spill] sm:$0xff]  ;;  %v10872_v12 = vld [vmem:[#allocation13_spill] sm:$0xff] }
 0x276   : > { %v2545_v25 = vadd.f32 %v2506_v14, %v2427_v0  ;;  %v2095_v26 = vmax.f32 %v2025_v50, 0.0  ;;  %v2104_v62 = vmax.f32 %v2060_v57, 0.0  ;;  %v3301_v34 = vmax.f32 %v3282_v18, 0.0 }
 0x277   : > { %v4196_v4 = vadd.f32 %v4157_v48, %v4076_v31  ;;  %v3300_v42 = vmax.f32 %v3281_v59, 0.0  ;;  %v2128_v19 = vmul.f32 %v10092_v32, %v2103_v43  ;;  %v2096_v21 = vmax.f32 %v2028_v3, 0.0 }
 0x278   : > { %v2665_v48 = vadd.f32 %v2626_v22, %v2545_v25  ;;  %v2120_v51 = vmul.f32 %v10092_v32, %v2095_v26  ;;  %v2129_v14 = vmul.f32 %v10092_v32, %v2104_v62  ;;  %v3327_v28 = vmul.f32 %v9567_v60, %v3301_v34  ;;  %v10873_v25 = vld [vmem:[#allocation12_spill] sm:$0xff] }
 0x279   : > { %v4314_v16 = vadd.f32 %v4275_v38, %v4196_v4  ;;  %v3326_v63 = vmul.f32 %v9567_v60, %v3300_v42  ;;  %v2153_v15 = vadd.f32 %v10109_v1, %v2128_v19  ;;  %v2121_v35 = vmul.f32 %v10092_v32, %v2096_v21 }
 0x27a   : > { %v10868_v44 = vrot.slane %v9878_v58, 4  ;;  %v2783_v61 = vadd.f32 %v2744_v6, %v2665_v48  ;;  %v2145_v22 = vadd.f32 %v10109_v1, %v2120_v51  ;;  %v2154_v49 = vadd.f32 %v10109_v1, %v2129_v14  ;;  %v5929_v6 = vpop.f32.mrf.mxu1 }
 0x27b   : > { %v3352_v30 = vadd.f32 %v9586_v8, %v3326_v63  ;;  %v3353_v36 = vadd.f32 %v9586_v8, %v3327_v28  ;;  %v2146_v58 = vadd.f32 %v10109_v1, %v2121_v35  ;;  %v2065_v56 = vadd.f32 %v10065_v7, %v10869_v27  ;;  %v10875_v63 = vld [vmem:[#allocation5_spill] sm:$0xff] }
 0x27c   : > { %v4432_v38 = vadd.f32 %v10868_v44, %v4314_v16  ;;  %v10870_v31 = vrot.slane %v9897_v47, 4  ;;  %v2901_v40 = vadd.f32 %v2862_v9, %v2783_v61  ;;  %v5662_v50 = vpack.c.bf16 %v2154_v49, %v2153_v15  ;;  %v10149_v4 = vpop.f32.mrf.mxu1 }
 0x27d   : > { %v2033_v57 = vadd.f32 %v10065_v7, %v10871_v41  ;;  %v3363_v59 = vpack.c.bf16 %v3353_v36, %v3352_v30  ;;  %v5642_v18 = vpack.c.bf16 %v2146_v58, %v2145_v22  ;;  %v2105_v43 = vmax.f32 %v2065_v56, 0.0  ;;  %v10877_v58 = vld [vmem:[#allocation18_spill] sm:$0xff]  ;;  %v10878_v56 = vld [vmem:[#allocation19_spill] sm:$0xff] }
 0x27e   : > { %v4552_v0 = vadd.f32 %v10870_v31, %v4432_v38  ;;  %v2068_v3 = vadd.f32 %v10065_v7, %v10872_v12  ;;  %v3021_v53 = vadd.f32 %v2982_v37, %v2901_v40  ;;  %5777 = vst [vmem:[%s10136_s30 + $0x20] sm:$0xff] %v5662_v50   ;;  %v2036_v26 = vadd.f32 %v10065_v7, %v10873_v25  ;;  %v5930_v21 = vpop.f32.mrf.mxu1 }
 0x27f   : > { %v2097_v9 = vmax.f32 %v2033_v57, 0.0  ;;  %v3452_v62 = vshll.u32 %v3363_v59, 16  ;;  %v3456_v42 = vshrl.u32 %v3363_v59, 16  ;;  %5643 = vst [vmem:[%s10136_s30] sm:$0xff] %v5642_v18   ;;  %v2130_v34 = vmul.f32 %v10092_v32, %v2105_v43  ;;  %v10879_v57 = vld [vmem:[#allocation20_spill] sm:$0xff] }
 0x280   : > { %v4670_v47 = vadd.f32 %v4631_v5, %v4552_v0  ;;  %v2106_v19 = vmax.f32 %v2068_v3, 0.0  ;;  %v10874_v16 = vrot.slane %v9912_v11, 6  ;;  %v3139_v24 = vadd.f32 %v3100_v29, %v3021_v53  ;;  %v10880_v3 = vld [vmem:[#allocation21_spill] sm:$0xff] }
 0x281   : > { %v2122_v5 = vmul.f32 %v10092_v32, %v2097_v9  ;;  %v2098_v20 = vmax.f32 %v2036_v26, 0.0  ;;  %v3454_v37 = vrot.slane %v3452_v62, 1  ;;  %v2155_v51 = vadd.f32 %v10109_v1, %v2130_v34  ;;  %v10881_v26 = vld [vmem:[#allocation22_spill] sm:$0xff] }
 0x282   : > { %v4788_v48 = vadd.f32 %v10874_v16, %v4670_v47  ;;  %v2131_v14 = vmul.f32 %v10092_v32, %v2106_v19  ;;  %v2073_v28 = vadd.f32 %v10065_v7, %v10875_v63  ;;  %v3257_v11 = vadd.f32 %v3218_v23, %v3139_v24  ;;  %v10876_v23 = vld [vmem:[#allocation3_spill] sm:$0xff] }
 0x283   : > { %v2147_v35 = vadd.f32 %v10109_v1, %v2122_v5  ;;  %v2123_v52 = vmul.f32 %v10092_v32, %v2098_v20  ;;  %v3455_v29 = vsel %vm1856_vm7, %v10076_v55, %v3454_v37  ;;  %v10176_v44 = vor.u32 %v3456_v42, %v3454_v37 }
 0x284   : > { %v4814_v15 = vadd.f32 %v9536_v54, %v4788_v48  ;;  %v2156_v38 = vadd.f32 %v10109_v1, %v2131_v14  ;;  %v2107_v61 = vmax.f32 %v2073_v28, 0.0  ;;  %5948 = vmatmul.mubr.bf16.gmra.mxu1 %v3455_v29  ;;  %v3283_v49 = vadd.f32 %v9536_v54, %v3257_v11  ;;  %v10215_v11 = vpop.f32.mrf.mxu0 }
 0x285   : > { %v2148_v10 = vadd.f32 %v10109_v1, %v2123_v52  ;;  %v2041_v30 = vadd.f32 %v10065_v7, %v10876_v23  ;;  %5951 = vmatprep.mubr.msk.bf16.mxu1 %vm6169_vm0, %v10615_v13  ;;  %v2076_v27 = vadd.f32 %v10065_v7, %v10877_v58  ;;  %v2044_v6 = vadd.f32 %v10065_v7, %v10878_v56 }
 0x286   : > { %v4833_v22 = vmax.f32 %v4814_v15, 0.0  ;;  %v5667_v55 = vpack.c.bf16 %v2156_v38, %v2155_v51  ;;  %v2132_v36 = vmul.f32 %v10092_v32, %v2107_v61  ;;  %v3302_v31 = vmax.f32 %v3283_v49, 0.0  ;;  %v10882_v51 = vld [vmem:[#allocation23_spill] sm:$0xff] }
 0x287   : > { %v5647_v0 = vpack.c.bf16 %v2148_v10, %v2147_v35  ;;  %v2099_v40 = vmax.f32 %v2041_v30, 0.0  ;;  %v2108_v41 = vmax.f32 %v2076_v27, 0.0  ;;  %v2100_v13 = vmax.f32 %v2044_v6, 0.0  ;;  %v10884_v10 = vld [vmem:[#allocation25_spill] sm:$0xff]  ;;  %v10885_v30 = vld [vmem:[#allocation26_spill] sm:$0xff]  ;;  %v10886_v6 = vld [vmem:[#allocation27_spill] sm:$0xff] }
 0x288   : > { %v4859_v54 = vmul.f32 %v9567_v60, %v4833_v22  ;;  %5778 = vst [vmem:[%s10136_s30 + $0x28] sm:$0xff] %v5667_v55   ;;  %v2157_v50 = vadd.f32 %v10109_v1, %v2132_v36  ;;  %v2081_v59 = vadd.f32 %v10065_v7, %v10879_v57  ;;  %v3328_v43 = vmul.f32 %v9567_v60, %v3302_v31  ;;  %v10883_v22 = vld [vmem:[#allocation24_spill] sm:$0xff]  ;;  %v5985_v36 = vpop.f32.mrf.mxu0 }
 0x289   : > { %5774 = vst [vmem:[%s10136_s30 + $0x8] sm:$0xff] %v5647_v0   ;;  %v2124_v12 = vmul.f32 %v10092_v32, %v2099_v40  ;;  %v2049_v47 = vadd.f32 %v10065_v7, %v10880_v3  ;;  %v2133_v53 = vmul.f32 %v10092_v32, %v2108_v41  ;;  %v2125_v9 = vmul.f32 %v10092_v32, %v2100_v13 }
 0x28a   : > { %v4885_v18 = vadd.f32 %v9586_v8, %v4859_v54  ;;  %v2109_v25 = vmax.f32 %v2081_v59, 0.0  ;;  %v2084_v62 = vadd.f32 %v10065_v7, %v10881_v26  ;;  %v3354_v34 = vadd.f32 %v9586_v8, %v3328_v43  ;;  %v5113_v41 = vpop.f32.mrf.mxu0 }
 0x28b   : > { %v2149_v19 = vadd.f32 %v10109_v1, %v2124_v12  ;;  %v2101_v60 = vmax.f32 %v2049_v47, 0.0  ;;  %v2158_v21 = vadd.f32 %v10109_v1, %v2133_v53  ;;  %v2150_v16 = vadd.f32 %v10109_v1, %v2125_v9  ;;  %v10888_v47 = vld [vmem:[#allocation29_spill] sm:$0xff] }
 0x28c   : > { %v4895_v42 = vpack.c.bf16 %v4885_v18, %v4885_v18  ;;  %v2134_v48 = vmul.f32 %v10092_v32, %v2109_v25  ;;  %v2110_v24 = vmax.f32 %v2084_v62, 0.0  ;;  %v3364_v20 = vpack.c.bf16 %v3354_v34, %v3354_v34  ;;  %v10887_v18 = vld [vmem:[#allocation28_spill] sm:$0xff]  ;;  %v5986_v9 = vpop.f32.mrf.mxu0  ;;  %v10889_v62 = vld [vmem:[#allocation30_spill] sm:$0xff] }
 0x28d   : > { %v2126_v37 = vmul.f32 %v10092_v32, %v2101_v60  ;;  %v2052_v14 = vadd.f32 %v10065_v7, %v10882_v51  ;;  %v5672_v8 = vpack.c.bf16 %v2158_v21, %v2157_v50  ;;  %v5652_v63 = vpack.c.bf16 %v2150_v16, %v2149_v19 }
 0x28e   : > { %v4991_v5 = vshll.u32 %v4895_v42, 16  ;;  %v2159_v28 = vadd.f32 %v10109_v1, %v2134_v48  ;;  %v2135_v15 = vmul.f32 %v10092_v32, %v2110_v24  ;;  %v3460_v52 = vshll.u32 %v3364_v20, 16 }
 0x28f   : > { %v2151_v29 = vadd.f32 %v10109_v1, %v2126_v37  ;;  %v2102_v38 = vmax.f32 %v2052_v14, 0.0  ;;  %5779 = vst [vmem:[%s10136_s30 + $0x30] sm:$0xff] %v5672_v8   ;;  %5775 = vst [vmem:[%s10136_s30 + $0x10] sm:$0xff] %v5652_v63   ;;  %v2089_v49 = vadd.f32 %v10065_v7, %v10883_v22  ;;  %v5087_v23 = vadd.f32 %v10065_v7, %v10884_v10 }
 0x290   : > { %v4993_v35 = vrot.slane %v4991_v5, 1  ;;  %v2160_v61 = vadd.f32 %v10109_v1, %v2135_v15  ;;  %v2092_v55 = vadd.f32 %v10065_v7, %v10885_v30  ;;  %v3462_v27 = vrot.slane %v3460_v52, 1  ;;  %v10890_v5 = vld [vmem:[#allocation14_spill] sm:$0xff] }
 0x291   : > { %v2127_v56 = vmul.f32 %v10092_v32, %v2102_v38  ;;  %v5090_v54 = vadd.f32 %v10065_v7, %v10886_v6  ;;  %v2111_v0 = vmax.f32 %v2089_v49, 0.0  ;;  %v5157_v40 = vmax.f32 %v5087_v23, 0.0 }
 0x292   : > { %v4994_v58 = vsel %vm1856_vm7, %v10081_v45, %v4993_v35  ;;  %v5677_v31 = vpack.c.bf16 %v2160_v61, %v2159_v28  ;;  %v2112_v50 = vmax.f32 %v2092_v55, 0.0  ;;  %v3463_v13 = vsel %vm1856_vm7, %v10176_v44, %v3462_v27 }
 0x293   : > { %6004 = vmatmul.mubr.bf16.gmra.mxu0 %v4994_v58  ;;  %v2152_v57 = vadd.f32 %v10109_v1, %v2127_v56  ;;  %v5158_v59 = vmax.f32 %v5090_v54, 0.0  ;;  %v3556_v45 = vadd.f32 %v10065_v7, %v10887_v18  ;;  %5952 = vmatmul.mubr.bf16.gmra.mxu1 %v3463_v13  ;;  %v2136_v43 = vmul.f32 %v10092_v32, %v2111_v0 }
 0x294   : > { %5780 = vst [vmem:[%s10136_s30 + $0x38] sm:$0xff] %v5677_v31   ;;  %v5182_v12 = vmul.f32 %v10092_v32, %v5157_v40  ;;  %v2137_v3 = vmul.f32 %v10092_v32, %v2112_v50  ;;  %v5095_v53 = vadd.f32 %v10065_v7, %v10888_v47  ;;  %v3559_v42 = vadd.f32 %v10065_v7, %v10889_v62 }
 0x295   : > { %v5657_v44 = vpack.c.bf16 %v2152_v57, %v2151_v29  ;;  %v5183_v25 = vmul.f32 %v10092_v32, %v5158_v59  ;;  %v3626_v26 = vmax.f32 %v3556_v45, 0.0  ;;  %v2161_v34 = vadd.f32 %v10109_v1, %v2136_v43 }
 0x296   : > { %v5207_v19 = vadd.f32 %v10109_v1, %v5182_v12  ;;  %v2162_v60 = vadd.f32 %v10109_v1, %v2137_v3  ;;  %v5159_v21 = vmax.f32 %v5095_v53, 0.0  ;;  %v3627_v24 = vmax.f32 %v3559_v42, 0.0  ;;  %v3579_v12 = vpop.f32.mrf.mxu1 }
 0x297   : > { %5776 = vst [vmem:[%s10136_s30 + $0x18] sm:$0xff] %v5657_v44   ;;  %v5208_v16 = vadd.f32 %v10109_v1, %v5183_v25  ;;  %v3651_v48 = vmul.f32 %v10092_v32, %v3626_v26  ;;  %v5098_v20 = vadd.f32 %v10065_v7, %v10890_v5  ;;  %v3564_v14 = vadd.f32 %v10065_v7, %v9861_v46 }
 0x298   : > { %v5682_v37 = vpack.c.bf16 %v2162_v60, %v2161_v34  ;;  %v5184_v51 = vmul.f32 %v10092_v32, %v5159_v21  ;;  %v5103_v8 = vadd.f32 %v10065_v7, %v9988_v17  ;;  %v3652_v15 = vmul.f32 %v10092_v32, %v3627_v24  ;;  %v5933_v44 = vpop.f32.mrf.mxu1 }
 0x299   : > { %v5732_v63 = vpack.c.bf16 %v5208_v16, %v5207_v19  ;;  %v3676_v28 = vadd.f32 %v10109_v1, %v3651_v48  ;;  %v5160_v35 = vmax.f32 %v5098_v20, 0.0  ;;  %v3628_v29 = vmax.f32 %v3564_v14, 0.0 }
 0x29a   : > { %5781 = vst [vmem:[%s10136_s30 + $0x40] sm:$0xff] %v5682_v37   ;;  %v5209_v52 = vadd.f32 %v10109_v1, %v5184_v51  ;;  %v5161_v38 = vmax.f32 %v5103_v8, 0.0  ;;  %v3567_v61 = vadd.f32 %v10065_v7, %v9884_v33  ;;  %v3677_v46 = vadd.f32 %v10109_v1, %v3652_v15  ;;  %v3582_v42 = vpop.f32.mrf.mxu1 }
 0x29b   : > { %5791 = vst [vmem:[%s10136_s30 + $0x90] sm:$0xff] %v5732_v63   ;;  %v5185_v17 = vmul.f32 %v10092_v32, %v5160_v35  ;;  %v5106_v22 = vadd.f32 %v10065_v7, %v10008_v39  ;;  %v3572_v49 = vadd.f32 %v10065_v7, %v10123_v2  ;;  %v3653_v10 = vmul.f32 %v10092_v32, %v3628_v29 }
 0x29c   : > { %v5186_v23 = vmul.f32 %v10092_v32, %v5161_v38  ;;  %v3629_v30 = vmax.f32 %v3567_v61, 0.0  ;;  %v5111_v33 = vadd.f32 %v10065_v7, %v10215_v11  ;;  %v5687_v55 = vpack.c.bf16 %v3677_v46, %v3676_v28  ;;  %v5934_v60 = vpop.f32.mrf.mxu1 }
 0x29d   : > { %v5210_v36 = vadd.f32 %v10109_v1, %v5185_v17  ;;  %v5162_v58 = vmax.f32 %v5106_v22, 0.0  ;;  %v3630_v27 = vmax.f32 %v3572_v49, 0.0  ;;  %v3575_v31 = vadd.f32 %v10065_v7, %v10149_v4 }
 0x29e   : > { %v3654_v56 = vmul.f32 %v10092_v32, %v3629_v30  ;;  %v5163_v39 = vmax.f32 %v5111_v33, 0.0  ;;  %5782 = vst [vmem:[%s10136_s30 + $0x48] sm:$0xff] %v5687_v55   ;;  %v5211_v2 = vadd.f32 %v10109_v1, %v5186_v23  ;;  %v3678_v11 = vadd.f32 %v10109_v1, %v3653_v10 }
 0x29f   : > { %v5737_v6 = vpack.c.bf16 %v5210_v36, %v5209_v52  ;;  %v5187_v54 = vmul.f32 %v10092_v32, %v5162_v58  ;;  %v5114_v50 = vadd.f32 %v10065_v7, %v5113_v41  ;;  %v3655_v57 = vmul.f32 %v10092_v32, %v3630_v27 }
 0x2a0   : > { %v3679_v0 = vadd.f32 %v10109_v1, %v3654_v56  ;;  %v5188_v40 = vmul.f32 %v10092_v32, %v5163_v39  ;;  %v3631_v59 = vmax.f32 %v3575_v31, 0.0  ;;  %v3580_v41 = vadd.f32 %v10065_v7, %v3579_v12 }
 0x2a1   : > { %5792 = vst [vmem:[%s10136_s30 + $0x98] sm:$0xff] %v5737_v6   ;;  %v5212_v13 = vadd.f32 %v10109_v1, %v5187_v54  ;;  %v5164_v45 = vmax.f32 %v5114_v50, 0.0  ;;  %v3680_v53 = vadd.f32 %v10109_v1, %v3655_v57  ;;  %v3583_v19 = vadd.f32 %v10065_v7, %v3582_v42 }
 0x2a2   : > { %v5692_v18 = vpack.c.bf16 %v3679_v0, %v3678_v11  ;;  %v3656_v4 = vmul.f32 %v10092_v32, %v3631_v59  ;;  %v5213_v3 = vadd.f32 %v10109_v1, %v5188_v40  ;;  %v3632_v26 = vmax.f32 %v3580_v41, 0.0 }
 0x2a3   : > { %v5742_v43 = vpack.c.bf16 %v5212_v13, %v5211_v2  ;;  %v5189_v47 = vmul.f32 %v10092_v32, %v5164_v45  ;;  %v3633_v16 = vmax.f32 %v3583_v19, 0.0 }
 0x2a4   : > { %5783 = vst [vmem:[%s10136_s30 + $0x50] sm:$0xff] %v5692_v18   ;;  %v3681_v9 = vadd.f32 %v10109_v1, %v3656_v4  ;;  %v3657_v21 = vmul.f32 %v10092_v32, %v3632_v26 }
 0x2a5   : > { %5793 = vst [vmem:[%s10136_s30 + $0xa0] sm:$0xff] %v5742_v43   ;;  %v5214_v25 = vadd.f32 %v10109_v1, %v5189_v47  ;;  %v3658_v48 = vmul.f32 %v10092_v32, %v3633_v16 }
 0x2a6   : > { %v5697_v62 = vpack.c.bf16 %v3681_v9, %v3680_v53  ;;  %v3682_v24 = vadd.f32 %v10109_v1, %v3657_v21 }
 0x2a7   : > { %v5747_v34 = vpack.c.bf16 %v5214_v25, %v5213_v3  ;;  %v3683_v5 = vadd.f32 %v10109_v1, %v3658_v48 }
 0x2a8   : > { %5784 = vst [vmem:[%s10136_s30 + $0x58] sm:$0xff] %v5697_v62   ;;  %v5118_v37 = vpop.f32.mrf.mxu0 }
 0x2a9   : > { %5794 = vst [vmem:[%s10136_s30 + $0xa8] sm:$0xff] %v5747_v34   ;;  %v5702_v20 = vpack.c.bf16 %v3683_v5, %v3682_v24  ;;  %v5119_v51 = vadd.f32 %v10065_v7, %v5118_v37 }
 0x2aa   : > { %v5989_v14 = vpop.f32.mrf.mxu0 }
 0x2ab   : > { %5785 = vst [vmem:[%s10136_s30 + $0x60] sm:$0xff] %v5702_v20   ;;  %v5165_v8 = vmax.f32 %v5119_v51, 0.0 }
 0x2ac   : > { %v5121_v63 = vpop.f32.mrf.mxu0 }
 0x2ad   : > { %v5190_v28 = vmul.f32 %v10092_v32, %v5165_v8  ;;  %v5122_v15 = vadd.f32 %v10065_v7, %v5121_v63 }
 0x2ae   : > { %v5990_v35 = vpop.f32.mrf.mxu0 }
 0x2af   : > { %v5166_v52 = vmax.f32 %v5122_v15, 0.0  ;;  %v5215_v29 = vadd.f32 %v10109_v1, %v5190_v28 }
 0x2b1   : > { %v5191_v38 = vmul.f32 %v10092_v32, %v5166_v52 }
 0x2b3   : > { %v5216_v61 = vadd.f32 %v10109_v1, %v5191_v38 }
 0x2b5   : > { %v5752_v46 = vpack.c.bf16 %v5216_v61, %v5215_v29 }
 0x2b7   : > { %5795 = vst [vmem:[%s10136_s30 + $0xb0] sm:$0xff] %v5752_v46  }
 0x2bf   : > { %v3587_v17 = vpop.f32.mrf.mxu1 }
 0x2c0   : > { %v3588_v22 = vadd.f32 %v10065_v7, %v3587_v17 }
 0x2c1   : > { %v5937_v49 = vpop.f32.mrf.mxu1 }
 0x2c2   : > { %v3634_v10 = vmax.f32 %v3588_v22, 0.0 }
 0x2c3   : > { %v3590_v23 = vpop.f32.mrf.mxu1 }
 0x2c4   : > { %v3591_v30 = vadd.f32 %v10065_v7, %v3590_v23  ;;  %v3659_v55 = vmul.f32 %v10092_v32, %v3634_v10 }
 0x2c5   : > { %v5938_v33 = vpop.f32.mrf.mxu1 }
 0x2c6   : > { %v3635_v36 = vmax.f32 %v3591_v30, 0.0  ;;  %v3684_v27 = vadd.f32 %v10109_v1, %v3659_v55 }
 0x2c8   : > { %v3660_v58 = vmul.f32 %v10092_v32, %v3635_v36 }
 0x2ca   : > { %v3685_v56 = vadd.f32 %v10109_v1, %v3660_v58 }
 0x2cc   : > { %v5707_v39 = vpack.c.bf16 %v3685_v56, %v3684_v27 }
 0x2ce   : > { %5786 = vst [vmem:[%s10136_s30 + $0x68] sm:$0xff] %v5707_v39  }
 0x2d6   : > { %v5126_v6 = vpop.f32.mrf.mxu0 }
 0x2d7   : > { %v5127_v2 = vadd.f32 %v10065_v7, %v5126_v6 }
 0x2d8   : > { %v5993_v54 = vpop.f32.mrf.mxu0 }
 0x2d9   : > { %v5167_v31 = vmax.f32 %v5127_v2, 0.0 }
 0x2da   : > { %v5129_v11 = vpop.f32.mrf.mxu0 }
 0x2db   : > { %v5192_v0 = vmul.f32 %v10092_v32, %v5167_v31  ;;  %v5130_v40 = vadd.f32 %v10065_v7, %v5129_v11 }
 0x2dc   : > { %v5994_v50 = vpop.f32.mrf.mxu0 }
 0x2dd   : > { %v5168_v13 = vmax.f32 %v5130_v40, 0.0  ;;  %v5217_v57 = vadd.f32 %v10109_v1, %v5192_v0 }
 0x2df   : > { %v5193_v59 = vmul.f32 %v10092_v32, %v5168_v13 }
 0x2e1   : > { %v5218_v18 = vadd.f32 %v10109_v1, %v5193_v59 }
 0x2e3   : > { %v5757_v45 = vpack.c.bf16 %v5218_v18, %v5217_v57 }
 0x2e5   : > { %5796 = vst [vmem:[%s10136_s30 + $0xb8] sm:$0xff] %v5757_v45  }
 0x2eb   : > { %v3595_v43 = vpop.f32.mrf.mxu1 }
 0x2ec   : > { %v3596_v4 = vadd.f32 %v10065_v7, %v3595_v43 }
 0x2ed   : > { %v5941_v12 = vpop.f32.mrf.mxu1 }
 0x2ee   : > { %v3636_v3 = vmax.f32 %v3596_v4, 0.0 }
 0x2ef   : > { %v3598_v47 = vpop.f32.mrf.mxu1 }
 0x2f0   : > { %v3599_v41 = vadd.f32 %v10065_v7, %v3598_v47  ;;  %v3661_v9 = vmul.f32 %v10092_v32, %v3636_v3 }
 0x2f1   : > { %v5942_v53 = vpop.f32.mrf.mxu1 }
 0x2f2   : > { %v3637_v44 = vmax.f32 %v3599_v41, 0.0  ;;  %v3686_v26 = vadd.f32 %v10109_v1, %v3661_v9 }
 0x2f4   : > { %v3662_v25 = vmul.f32 %v10092_v32, %v3637_v44 }
 0x2f6   : > { %v3687_v62 = vadd.f32 %v10109_v1, %v3662_v25 }
 0x2f8   : > { %v5712_v42 = vpack.c.bf16 %v3687_v62, %v3686_v26 }
 0x2fa   : > { %5787 = vst [vmem:[%s10136_s30 + $0x70] sm:$0xff] %v5712_v42  }
 0x303   : > { %v5134_v34 = vpop.f32.mrf.mxu0 }
 0x304   : > { %v5135_v19 = vadd.f32 %v10065_v7, %v5134_v34 }
 0x305   : > { %v5997_v60 = vpop.f32.mrf.mxu0 }
 0x306   : > { %v5169_v21 = vmax.f32 %v5135_v19, 0.0 }
 0x307   : > { %v5137_v16 = vpop.f32.mrf.mxu0 }
 0x308   : > { %v5194_v48 = vmul.f32 %v10092_v32, %v5169_v21  ;;  %v5138_v24 = vadd.f32 %v10065_v7, %v5137_v16 }
 0x309   : > { %v5998_v5 = vpop.f32.mrf.mxu0 }
 0x30a   : > { %v5170_v20 = vmax.f32 %v5138_v24, 0.0  ;;  %v5219_v37 = vadd.f32 %v10109_v1, %v5194_v48 }
 0x30c   : > { %v5195_v51 = vmul.f32 %v10092_v32, %v5170_v20 }
 0x30e   : > { %v5220_v14 = vadd.f32 %v10109_v1, %v5195_v51 }
 0x310   : > { %v5762_v8 = vpack.c.bf16 %v5220_v14, %v5219_v37 }
 0x312   : > { %5797 = vst [vmem:[%s10136_s30 + $0xc0] sm:$0xff] %v5762_v8  }
 0x318   : > { %v3603_v63 = vpop.f32.mrf.mxu1 }
 0x319   : > { %v3604_v28 = vadd.f32 %v10065_v7, %v3603_v63 }
 0x31a   : > { %v5945_v15 = vpop.f32.mrf.mxu1 }
 0x31b   : > { %v3638_v35 = vmax.f32 %v3604_v28, 0.0 }
 0x31c   : > { %v3606_v52 = vpop.f32.mrf.mxu1 }
 0x31d   : > { %v3607_v29 = vadd.f32 %v10065_v7, %v3606_v52  ;;  %v3663_v61 = vmul.f32 %v10092_v32, %v3638_v35 }
 0x31e   : > { %v5946_v38 = vpop.f32.mrf.mxu1 }
 0x31f   : > { %v3639_v46 = vmax.f32 %v3607_v29, 0.0  ;;  %v3688_v22 = vadd.f32 %v10109_v1, %v3663_v61 }
 0x321   : > { %v3664_v17 = vmul.f32 %v10092_v32, %v3639_v46 }
 0x323   : > { %v3689_v49 = vadd.f32 %v10109_v1, %v3664_v17 }
 0x325   : > { %v5717_v10 = vpack.c.bf16 %v3689_v49, %v3688_v22 }
 0x327   : > { %5788 = vst [vmem:[%s10136_s30 + $0x78] sm:$0xff] %v5717_v10  }
 0x32f   : > { %v5142_v23 = vpop.f32.mrf.mxu0 }
 0x330   : > { %v5143_v30 = vadd.f32 %v10065_v7, %v5142_v23 }
 0x331   : > { %v6001_v33 = vpop.f32.mrf.mxu0 }
 0x332   : > { %v5171_v55 = vmax.f32 %v5143_v30, 0.0 }
 0x333   : > { %v5145_v36 = vpop.f32.mrf.mxu0 }
 0x334   : > { %v5196_v58 = vmul.f32 %v10092_v32, %v5171_v55  ;;  %v5146_v27 = vadd.f32 %v10065_v7, %v5145_v36 }
 0x335   : > { %v6002_v56 = vpop.f32.mrf.mxu0 }
 0x336   : > { %v5172_v39 = vmax.f32 %v5146_v27, 0.0  ;;  %v5221_v6 = vadd.f32 %v10109_v1, %v5196_v58 }
 0x338   : > { %v5197_v2 = vmul.f32 %v10092_v32, %v5172_v39 }
 0x33a   : > { %v5222_v54 = vadd.f32 %v10109_v1, %v5197_v2 }
 0x33c   : > { %v5767_v31 = vpack.c.bf16 %v5222_v54, %v5221_v6 }
 0x33e   : > { %5798 = vst [vmem:[%s10136_s30 + $0xc8] sm:$0xff] %v5767_v31  }
 0x344   : > { %v3611_v11 = vpop.f32.mrf.mxu1 }
 0x345   : > { %v3612_v0 = vadd.f32 %v10065_v7, %v3611_v11 }
 0x346   : > { %v5949_v40 = vpop.f32.mrf.mxu1 }
 0x347   : > { %v3640_v50 = vmax.f32 %v3612_v0, 0.0 }
 0x348   : > { %v3614_v13 = vpop.f32.mrf.mxu1 }
 0x349   : > { %v3615_v57 = vadd.f32 %v10065_v7, %v3614_v13  ;;  %v3665_v18 = vmul.f32 %v10092_v32, %v3640_v50 }
 0x34a   : > { %v5950_v59 = vpop.f32.mrf.mxu1 }
 0x34b   : > { %v3641_v45 = vmax.f32 %v3615_v57, 0.0  ;;  %v3690_v4 = vadd.f32 %v10109_v1, %v3665_v18 }
 0x34d   : > { %v3666_v43 = vmul.f32 %v10092_v32, %v3641_v45 }
 0x34f   : > { %v3691_v12 = vadd.f32 %v10109_v1, %v3666_v43 }
 0x351   : > { %v5722_v47 = vpack.c.bf16 %v3691_v12, %v3690_v4 }
 0x353   : > { %v5150_v3 = vpop.f32.mrf.mxu0  ;;  %5789 = vst [vmem:[%s10136_s30 + $0x80] sm:$0xff] %v5722_v47   ;;  %v3619_v9 = vpop.f32.mrf.mxu1 }
 0x354   : > { %v5151_v41 = vadd.f32 %v10065_v7, %v5150_v3  ;;  %v3620_v25 = vadd.f32 %v10065_v7, %v3619_v9 }
 0x355   : > { %v6005_v53 = vpop.f32.mrf.mxu0  ;;  %v5953_v62 = vpop.f32.mrf.mxu1 }
 0x356   : > { %v5173_v44 = vmax.f32 %v5151_v41, 0.0  ;;  %v3642_v19 = vmax.f32 %v3620_v25, 0.0 }
 0x357   : > { %v5153_v26 = vpop.f32.mrf.mxu0  ;;  %v3622_v21 = vpop.f32.mrf.mxu1 }
 0x358   : > { %v5198_v42 = vmul.f32 %v10092_v32, %v5173_v44  ;;  %v5154_v34 = vadd.f32 %v10065_v7, %v5153_v26  ;;  %v3623_v48 = vadd.f32 %v10065_v7, %v3622_v21  ;;  %v3667_v37 = vmul.f32 %v10092_v32, %v3642_v19 }
 0x359   : > { %v6006_v60 = vpop.f32.mrf.mxu0  ;;  %v5954_v24 = vpop.f32.mrf.mxu1 }
 0x35a   : > { %v5174_v16 = vmax.f32 %v5154_v34, 0.0  ;;  %v5223_v5 = vadd.f32 %v10109_v1, %v5198_v42  ;;  %v3643_v51 = vmax.f32 %v3623_v48, 0.0  ;;  %v3692_v28 = vadd.f32 %v10109_v1, %v3667_v37 }
 0x35c   : > { %v5199_v20 = vmul.f32 %v10092_v32, %v5174_v16  ;;  %v3668_v8 = vmul.f32 %v10092_v32, %v3643_v51 }
 0x35e   : > { %v5224_v14 = vadd.f32 %v10109_v1, %v5199_v20  ;;  %v3693_v15 = vadd.f32 %v10109_v1, %v3668_v8 }
 0x360   : > { %v5772_v63 = vpack.c.bf16 %v5224_v14, %v5223_v5  ;;  %v5727_v35 = vpack.c.bf16 %v3693_v15, %v3692_v28 }
 0x362   : > { %5799 = vst [vmem:[%s10136_s30 + $0xd0] sm:$0xff] %v5772_v63   ;;  %5790 = vst [vmem:[%s10136_s30 + $0x88] sm:$0xff] %v5727_v35  }
 0x363 PF: > { %s20_s15 = sadd.s32 1, %s6166_s15   ;;  %s10891_s13 = smov %s6162_s14 }
 0x364   : > { %p17_p5 = scmp.ge.s32.totalorder %s20_s15, 4   ;;  %s10892_s14 = smov %s10894_s16 }
 0x366   :  { %19 = sbr.rel (!%p17_p5) target bundleno = 2 (0x2), region = 93 }

// kernel: parallel_conv_forward.3
= control target key start
LH: loop header
LB: loop body
LE: loop exit
PB: predicated region body
PF: predicated region fallthrough
CT: control target
= control target key end

     0   :  { %s4417_s13 = smov 0   ;;  %s4419_s14 = smov 0   ;;  %s5603_s0 = inlined_call_operand.vmem [shape: bf16[2,240,128], index: 0, kind: input, shape index: {}, may-alias: {0,1}]   ;;  %s5604_s1 = inlined_call_operand.vmem [shape: bf16[2,240,128], index: 1, kind: input, shape index: {}, may-alias: {0,1}]   ;;  %s5605_s2 = inlined_call_operand.vmem [shape: bf16[9,128,128], index: 2, kind: input, shape index: {}]   ;;  %s5606_s3 = inlined_call_operand.vmem [shape: f32[1,128], index: 3, kind: input, shape index: {}]   ;;  %s5607_s4 = inlined_call_operand.vmem [shape: f32[1,128], index: 4, kind: input, shape index: {}]   ;;  %s5608_s5 = inlined_call_operand.vmem [shape: f32[1,128], index: 5, kind: input, shape index: {}]   ;;  %s5609_s6 = inlined_call_operand.vmem [shape: bf16[128,128], index: 6, kind: input, shape index: {}]   ;;  %s5610_s7 = inlined_call_operand.vmem [shape: f32[1,128], index: 7, kind: input, shape index: {}]   ;;  %s5611_s8 = inlined_call_operand.vmem [shape: f32[1,128], index: 8, kind: input, shape index: {}]   ;;  %s5612_s9 = inlined_call_operand.vmem [shape: f32[1,128], index: 9, kind: input, shape index: {}]   ;;  %s5613_s10 = inlined_call_operand.vmem [shape: bf16[2,160,128], index: 10, kind: output, shape index: {}]  }
   0x1   :  { %s4421_s15 = smov 0  }
   0x2 LB: > { %s32_s16 = sadd.s32 1, %s4356_s14  ;;  %p3341_p0 = scmp.ge.s32.totalorder %s4360_s15, 1  ;;  %s4360_s15 = sphi %s4421_s15, %s20_s15   ;;  %s4356_s14 = sphi %s4419_s14, %s5653_s14   ;;  %s4352_s13 = sphi %s4417_s13, %s5652_s13  }
   0x3   : > { %p34_p1 = scmp.ge.s32.totalorder %s32_s16, 2  ;;  %p366_p2 = scmp.lt.s32.totalorder %s4360_s15, 3 }
   0x5   : > { %s5655_s16 = smov (%p34_p1, %s32_s16), 0  ;;  %p367_p3 = pnand %p3341_p0, %p366_p2 }
   0x7   : > { %370 = sbr.rel (%p367_p3) target bundleno = 660 (0x294), region = 60 }
   0xc   : > { %v4242_v0 = vld [vmem:[%s5605_s2 + $0x78] sm:$0xff]   ;;  %p432_p4 = scmp.lt.s32.totalorder %s4352_s13, 1  ;;  %v4244_v2 = vld [vmem:[%s5605_s2 + $0x70] sm:$0xff]   ;;  %v4246_v4 = vld [vmem:[%s5605_s2 + $0x68] sm:$0xff]   ;;  %vm587_vm0 = vcmask 1042432   ;;  %vm1576_vm4 = vcmask 1045504  }
   0xd   : > { %v4243_v1 = vld [vmem:[%s5605_s2 + $0x38] sm:$0xff]   ;;  %3854 = vmatprep.subr.bf16.mxu0 %v4242_v0  ;;  %v4245_v3 = vld [vmem:[%s5605_s2 + $0x30] sm:$0xff]   ;;  %v4247_v5 = vld [vmem:[%s5605_s2 + $0x28] sm:$0xff]   ;;  %vm780_vm1 = vsmask.f32 3328  ;;  %vm2310_vm6 = vcmask 1040384  }
   0xe   : > { %3890 = vmatprep.subr.bf16.mxu1 %v4243_v1  ;;  %3855 = vmatpush3.bf16.msra.mxu0 %v4242_v0  ;;  %s5657_s13 = smov (!%p432_p4, %s4352_s13), 1  ;;  %v4248_v6 = vld [vmem:[%s5605_s2 + $0x60] sm:$0xff]   ;;  %v4250_v8 = vld [vmem:[%s5605_s2 + $0x58] sm:$0xff]   ;;  %v4252_v10 = vld [vmem:[%s5605_s2 + $0x50] sm:$0xff]   ;;  %vm1067_vm2 = vsmask.f32 2304 }
   0xf   : > { %3891 = vmatpush3.bf16.msra.mxu1 %v4243_v1  ;;  %3856 = vmatprep.subr.bf16.mxu0 %v4244_v2  ;;  %v4249_v7 = vld [vmem:[%s5605_s2 + $0x20] sm:$0xff]   ;;  %s4214_s17 = smul.u32 120, %s5657_s13  ;;  %v4251_v9 = vld [vmem:[%s5605_s2 + $0x18] sm:$0xff]   ;;  %v4253_v11 = vld [vmem:[%s5605_s2 + $0x10] sm:$0xff]   ;;  %vm1319_vm3 = vsmask.f32 6400 }
  0x10   : > { %3892 = vmatprep.subr.bf16.mxu1 %v4245_v3  ;;  %v4254_v19 = vld [vmem:[%s5605_s2 + $0x48] sm:$0xff]   ;;  %v4256_v28 = vld [vmem:[%s5605_s2 + $0x40] sm:$0xff]   ;;  %v4261_v46 = vld [vmem:[%s5605_s2 + $0xb8] sm:$0xff]   ;;  %vm1806_vm5 = vsmask.f32 5376  ;;  %s4216_s11 = smul.u32 80, %s5657_s13 }
  0x11   : > { %s4476_s26 = scalar_lea.vmem %s5603_s0, %s4214_s17  ;;  %v4255_v23 = vld [vmem:[%s5605_s2 + $0x8] sm:$0xff]   ;;  %v4257_v37 = vld [vmem:[%s5605_s2] sm:$0xff]   ;;  %v4266_v49 = vld [vmem:[%s5605_s2 + $0xf8] sm:$0xff]   ;;  %s3594_s22 = sadd.s32 80, %s4214_s17  ;;  %vm2058_vm7 = vsmask.f32 1280 }
  0x12   : > { %3857 = vmatpush3.bf16.msra.mxu0 %v4244_v2  ;;  %v4482_v12 = vld [vmem:[%s4476_s26] sm:$0xff]   ;;  %v4485_v13 = vld [vmem:[%s4476_s26 + $0x8] sm:$0xff]   ;;  %v4488_v14 = vld [vmem:[%s4476_s26 + $0x10] sm:$0xff]   ;;  %s4634_s29 = scalar_lea.vmem %s5604_s1, %s3594_s22  ;;  %vm2540_vm8 = vsmask.f32 256  ;;  %s5534_s13 = scalar_lea.vmem %s5613_s10, %s4216_s11 }
  0x13   : > { %3893 = vmatpush3.bf16.msra.mxu1 %v4245_v3  ;;  %3858 = vmatprep.subr.bf16.mxu0 %v4246_v4  ;;  %v588_v15 = vrot.slane %v4482_v12, 5  ;;  %v589_v16 = vrot.slane %v4485_v13, 5  ;;  %v782_v17 = vshrl.u32 %v4482_v12, 16  ;;  %v785_v18 = vshll.u32 %v4482_v12, 16  ;;  %v4524_v33 = vld [vmem:[%s4476_s26 + $0x18] sm:$0xff]   ;;  %v4528_v36 = vld [vmem:[%s4476_s26 + $0x20] sm:$0xff]  }
  0x14   : > { %3894 = vmatprep.subr.bf16.mxu1 %v4247_v5  ;;  %v4498_v20 = vshrl.u32 %v4485_v13, 16  ;;  %v4501_v21 = vshll.u32 %v4485_v13, 16  ;;  %v4504_v22 = vshrl.u32 %v4488_v14, 16  ;;  %v4515_v27 = vshll.u32 %v4488_v14, 16  ;;  %v4557_v51 = vld [vmem:[%s4476_s26 + $0x28] sm:$0xff]   ;;  %v4262_v53 = vld [vmem:[%s5605_s2 + $0xb0] sm:$0xff]  }
  0x15   : > { %v590_v24 = vsel %vm587_vm0, %v588_v15, %v589_v16  ;;  %v784_v25 = vrot.slane %v782_v17, 4  ;;  %v787_v26 = vrot.slane %v785_v18, 5  ;;  %v4534_v38 = vshrl.u32 %v4524_v33, 16  ;;  %v4573_v59 = vld [vmem:[%s4476_s26 + $0x30] sm:$0xff]   ;;  %v4265_v2 = vld [vmem:[%s5605_s2 + $0xa8] sm:$0xff]  }
  0x16   : > { %3859 = vmatpush3.bf16.msra.mxu0 %v4246_v4  ;;  %3870 = vmatprep.mubr.bf16.mxu0 %v590_v24  ;;  %v792_v29 = vrot.slane %v4498_v20, 4  ;;  %v795_v30 = vrot.slane %v4501_v21, 5  ;;  %v801_v32 = vrot.slane %v4504_v22, 4  ;;  %v804_v35 = vrot.slane %v4515_v27, 5  ;;  %v4267_v62 = vld [vmem:[%s5605_s2 + $0xf0] sm:$0xff]  }
  0x17   : > { %3895 = vmatpush3.bf16.msra.mxu1 %v4247_v5  ;;  %3860 = vmatprep.subr.bf16.mxu0 %v4248_v6  ;;  %v788_v31 = vor.u32 %v787_v26, %v784_v25  ;;  %v4537_v39 = vshll.u32 %v4524_v33, 16  ;;  %v591_v41 = vrot.slane %v4488_v14, 5  ;;  %v4542_v42 = vshrl.u32 %v4528_v36, 16 }
  0x18   : > { %3896 = vmatprep.subr.bf16.mxu1 %v4249_v7  ;;  %v796_v34 = vor.u32 %v795_v30, %v792_v29  ;;  %v810_v43 = vrot.slane %v4534_v38, 4  ;;  %v805_v45 = vor.u32 %v804_v35, %v801_v32  ;;  %v4550_v47 = vshll.u32 %v4528_v36, 16  ;;  %v4272_v32 = vld [vmem:[%s5605_s2 + $0x98] sm:$0xff]  }
  0x19   : > { %v813_v44 = vrot.slane %v4537_v39, 5  ;;  %v593_v48 = vrot.slane %v4524_v33, 5  ;;  %v592_v52 = vsel %vm587_vm0, %v589_v16, %v591_v41  ;;  %v819_v54 = vrot.slane %v4542_v42, 4  ;;  %v4273_v33 = vld [vmem:[%s5605_s2 + $0xe0] sm:$0xff]  }
  0x1a   : > { %3861 = vmatpush3.bf16.msra.mxu0 %v4248_v6  ;;  %v797_v40 = vsel %vm780_vm1, %v788_v31, %v796_v34  ;;  %v806_v55 = vsel %vm780_vm1, %v796_v34, %v805_v45  ;;  %v822_v56 = vrot.slane %v4550_v47, 5  ;;  %v4567_v57 = vshrl.u32 %v4557_v51, 16  ;;  %v4271_v6 = vld [vmem:[%s5605_s2 + $0xe8] sm:$0xff]  }
  0x1b   : > { %3897 = vmatpush3.bf16.msra.mxu1 %v4249_v7  ;;  %3862 = vmatprep.subr.bf16.mxu0 %v4250_v8  ;;  %v814_v50 = vor.u32 %v813_v44, %v810_v43  ;;  %v4570_v58 = vshll.u32 %v4557_v51, 16  ;;  %v594_v60 = vsel %vm587_vm0, %v591_v41, %v593_v48  ;;  %v595_v1 = vrot.slane %v4528_v36, 5  ;;  %v4277_v43 = vld [vmem:[%s5605_s2 + $0xd8] sm:$0xff]  }
  0x1c   : > { %3898 = vmatprep.subr.bf16.mxu1 %v4251_v9  ;;  %3906 = vmatprep.mubr.bf16.mxu1 %v797_v40  ;;  %v828_v63 = vrot.slane %v4567_v57, 4  ;;  %v823_v3 = vor.u32 %v822_v56, %v819_v54  ;;  %v4587_v4 = vshrl.u32 %v4573_v59, 16  ;;  %v4590_v5 = vshll.u32 %v4573_v59, 16 }
  0x1d   : > { %v815_v61 = vsel %vm780_vm1, %v805_v45, %v814_v50  ;;  %v831_v0 = vrot.slane %v4570_v58, 5  ;;  %v597_v7 = vrot.slane %v4557_v51, 5  ;;  %v599_v31 = vrot.slane %v4573_v59, 5 }
  0x1e   : > { %3863 = vmatpush3.bf16.msra.mxu0 %v4250_v8  ;;  %v837_v24 = vrot.slane %v4587_v4, 4  ;;  %v840_v25 = vrot.slane %v4590_v5, 5  ;;  %v1321_v12 = vrot.slane %v4501_v21, 2 }
  0x1f   : > { %3899 = vmatpush3.bf16.msra.mxu1 %v4251_v9  ;;  %3864 = vmatprep.subr.bf16.mxu0 %v4252_v10  ;;  %v832_v8 = vor.u32 %v831_v0, %v828_v63  ;;  %v4597_v9 = vld [vmem:[%s4476_s26 + $0x38] sm:$0xff]   ;;  %v598_v26 = vsel %vm587_vm0, %v595_v1, %v597_v7  ;;  %v4278_v0 = vld [vmem:[%s5605_s2 + $0x88] sm:$0xff]  }
  0x20   : > { %3900 = vmatprep.subr.bf16.mxu1 %v4253_v11  ;;  %v4604_v15 = vshrl.u32 %v4597_v9, 16  ;;  %v4607_v16 = vshll.u32 %v4597_v9, 16  ;;  %v841_v35 = vor.u32 %v840_v25, %v837_v24  ;;  %v601_v40 = vrot.slane %v4597_v9, 5  ;;  %v4283_v24 = vld [vmem:[%s5605_s2 + $0x80] sm:$0xff]  }
  0x21   : > { %v1072_v25 = vrot.slane %v4501_v21, 6 }
  0x22   : > { %3865 = vmatpush3.bf16.msra.mxu0 %v4252_v10  ;;  %v4600_v10 = vld [vmem:[%s4476_s26 + $0x40] sm:$0xff]   ;;  %v846_v29 = vrot.slane %v4604_v15, 4  ;;  %v849_v30 = vrot.slane %v4607_v16, 5 }
  0x23   : > { %3901 = vmatpush3.bf16.msra.mxu1 %v4253_v11  ;;  %3866 = vmatprep.subr.bf16.mxu0 %v4254_v19  ;;  %v596_v11 = vsel %vm587_vm0, %v593_v48, %v595_v1  ;;  %v4629_v34 = vshrl.u32 %v4600_v10, 16  ;;  %v4637_v36 = vshll.u32 %v4600_v10, 16 }
  0x24   : > { %3902 = vmatprep.subr.bf16.mxu1 %v4255_v23  ;;  %v850_v41 = vor.u32 %v849_v30, %v846_v29 }
  0x25   : > { %v855_v48 = vrot.slane %v4629_v34, 4 }
  0x26   : > { %3867 = vmatpush3.bf16.msra.mxu0 %v4254_v19  ;;  %v824_v19 = vsel %vm780_vm1, %v814_v50, %v823_v3  ;;  %v858_v50 = vrot.slane %v4637_v36, 5  ;;  %v851_v54 = vsel %vm780_vm1, %v841_v35, %v850_v41 }
  0x27   : > { %3903 = vmatpush3.bf16.msra.mxu1 %v4255_v23  ;;  %3868 = vmatprep.subr.bf16.mxu0 %v4256_v28  ;;  %v4269_v23 = vld [vmem:[%s5605_s2 + $0xa0] sm:$0xff]  }
  0x28   : > { %3904 = vmatprep.subr.bf16.mxu1 %v4257_v37  ;;  %v859_v63 = vor.u32 %v858_v50, %v855_v48  ;;  %v4288_v50 = vld [vmem:[%s5605_s2 + $0x178] sm:$0xff]  }
  0x2a   : > { %3869 = vmatpush3.bf16.msra.mxu0 %v4256_v28  ;;  %v833_v28 = vsel %vm780_vm1, %v823_v3, %v832_v8 }
  0x2b   : > { %3905 = vmatpush3.bf16.msra.mxu1 %v4257_v37  ;;  %3926 = vmatprep.subr.bf16.mxu0 %v4261_v46  ;;  %v4640_v37 = vld [vmem:[%s4476_s26 + $0x48] sm:$0xff]  }
  0x2c   : > { %3962 = vmatprep.subr.bf16.mxu1 %v4266_v49  ;;  %v4647_v44 = vshrl.u32 %v4640_v37, 16  ;;  %v4650_v45 = vshll.u32 %v4640_v37, 16  ;;  %v605_v1 = vrot.slane %v4640_v37, 5 }
  0x2d   : > { %3871 = vmatmul.mubr.bf16.vlgmr.msra.gmra.mxu0 %v592_v52  ;;  %v4657_v52 = vld [vmem:[%s4634_s29] sm:$0xff]  }
  0x2e   : > { %3907 = vmatmul.mubr.bf16.vlgmr.msra.gmra.mxu1 %v806_v55  ;;  %3927 = vmatpush3.bf16.msra.mxu0 %v4261_v46  ;;  %v600_v46 = vsel %vm587_vm0, %v597_v7, %v599_v31  ;;  %v4276_v55 = vld [vmem:[%s5605_s2 + $0x90] sm:$0xff]   ;;  %v864_v56 = vrot.slane %v4647_v44, 4  ;;  %v4678_v3 = vshll.u32 %v4657_v52, 16  ;;  %v1068_v7 = vrot.slane %v782_v17, 5 }
  0x2f   : > { %3928 = vmatprep.subr.bf16.mxu0 %v4262_v53  ;;  %3874 = vmatprep.mubr.bf16.mxu0 %v594_v60  ;;  %v867_v60 = vrot.slane %v4650_v45, 5  ;;  %v1320_v17 = vrot.slane %v4498_v20, 1 }
  0x30   : > { %3910 = vmatprep.mubr.bf16.mxu1 %v815_v61  ;;  %3963 = vmatpush3.bf16.msra.mxu1 %v4266_v49  ;;  %v842_v49 = vsel %vm780_vm1, %v832_v8, %v841_v35  ;;  %v4279_v61 = vld [vmem:[%s5605_s2 + $0xd0] sm:$0xff]   ;;  %v1069_v8 = vrot.slane %v785_v18, 6  ;;  %v860_v18 = vsel %vm780_vm1, %v850_v41, %v859_v63  ;;  %v876_v29 = vrot.slane %v4678_v3, 5 }
  0x31   : > { %3964 = vmatprep.subr.bf16.mxu1 %v4267_v62  ;;  %v607_v35 = vrot.slane %v4657_v52, 5  ;;  %v1322_v48 = vor.u32 %v1321_v12, %v1320_v17  ;;  %v1084_v17 = vrot.slane %v4550_v47, 6 }
  0x32   : > { %3929 = vmatpush3.bf16.msra.mxu0 %v4262_v53  ;;  %v602_v53 = vsel %vm587_vm0, %v599_v31, %v601_v40  ;;  %v1323_v31 = vrot.slane %v4504_v22, 1  ;;  %v1070_v41 = vor.u32 %v1069_v8, %v1068_v7  ;;  %v1331_v7 = vrot.slane %v4542_v42, 1 }
  0x33   : > { %3930 = vmatprep.subr.bf16.mxu0 %v4265_v2 }
  0x34   : > { %3965 = vmatpush3.bf16.msra.mxu1 %v4267_v62  ;;  %v603_v62 = vrot.slane %v4600_v10, 5 }
  0x35   : > { %3875 = vmatmul.mubr.bf16.gmra.mxu0 %v596_v11  ;;  %3966 = vmatprep.subr.bf16.mxu1 %v4271_v6  ;;  %v4282_v11 = vld [vmem:[%s5605_s2 + $0xc8] sm:$0xff]  }
  0x36   : > { %3911 = vmatmul.mubr.bf16.gmra.mxu1 %v824_v19  ;;  %3931 = vmatpush3.bf16.msra.mxu0 %v4265_v2  ;;  %v4675_v2 = vshrl.u32 %v4657_v52, 16  ;;  %v1071_v19 = vrot.slane %v4498_v20, 5 }
  0x37   : > { %3878 = vmatprep.mubr.bf16.mxu0 %v598_v26  ;;  %3914 = vmatprep.mubr.bf16.mxu1 %v833_v28  ;;  %v606_v26 = vsel %vm587_vm0, %v603_v62, %v605_v1 }
  0x38   : > { %3932 = vmatprep.subr.bf16.mxu0 %v4269_v23  ;;  %3967 = vmatpush3.bf16.msra.mxu1 %v4271_v6  ;;  %v868_v6 = vor.u32 %v867_v60, %v864_v56  ;;  %v873_v28 = vrot.slane %v4675_v2, 4 }
  0x39   : > { %3968 = vmatprep.subr.bf16.mxu1 %v4273_v33 }
  0x3a   : > { %3933 = vmatpush3.bf16.msra.mxu0 %v4269_v23  ;;  %v604_v23 = vsel %vm587_vm0, %v601_v40, %v603_v62  ;;  %v869_v30 = vsel %vm780_vm1, %v859_v63, %v868_v6  ;;  %v877_v40 = vor.u32 %v876_v29, %v873_v28  ;;  %v1328_v62 = vrot.slane %v4537_v39, 2 }
  0x3b   : > { %3934 = vmatprep.subr.bf16.mxu0 %v4272_v32  ;;  %v1336_v28 = vrot.slane %v4570_v58, 2 }
  0x3c   : > { %3969 = vmatpush3.bf16.msra.mxu1 %v4273_v33  ;;  %v4284_v33 = vld [vmem:[%s5605_s2 + $0xc0] sm:$0xff]   ;;  %v878_v56 = vsel %vm780_vm1, %v868_v6, %v877_v40  ;;  %v1332_v6 = vrot.slane %v4550_v47, 2  ;;  %v1340_v40 = vrot.slane %v4590_v5, 2 }
  0x3d   : > { %3879 = vmatmul.mubr.bf16.gmra.mxu0 %v600_v46  ;;  %3970 = vmatprep.subr.bf16.mxu1 %v4277_v43  ;;  %v4285_v46 = vld [vmem:[%s5605_s2 + $0x138] sm:$0xff]  }
  0x3e   : > { %3915 = vmatmul.mubr.bf16.gmra.mxu1 %v842_v49  ;;  %3935 = vmatpush3.bf16.msra.mxu0 %v4272_v32  ;;  %v1324_v32 = vrot.slane %v4515_v27, 2 }
  0x3f   : > { %3882 = vmatprep.mubr.bf16.mxu0 %v602_v53  ;;  %3918 = vmatprep.mubr.bf16.mxu1 %v851_v54  ;;  %v608_v53 = vsel %vm587_vm0, %v605_v1, %v607_v35  ;;  %v1075_v54 = vrot.slane %v4504_v22, 5  ;;  %v1080_v1 = vrot.slane %v4537_v39, 6  ;;  %v1339_v35 = vrot.slane %v4587_v4, 1 }
  0x40   : > { %3936 = vmatprep.subr.bf16.mxu0 %v4276_v55  ;;  %3971 = vmatpush3.bf16.msra.mxu1 %v4277_v43  ;;  %v1073_v43 = vor.u32 %v1072_v25, %v1071_v19  ;;  %v1325_v49 = vor.u32 %v1324_v32, %v1323_v31  ;;  %v1083_v25 = vrot.slane %v4542_v42, 5  ;;  %v1088_v31 = vrot.slane %v4570_v58, 6 }
  0x41   : > { %3972 = vmatprep.subr.bf16.mxu1 %v4279_v61 }
  0x42   : > { %3937 = vmatpush3.bf16.msra.mxu0 %v4276_v55  ;;  %v1076_v55 = vrot.slane %v4515_v27, 6  ;;  %v1074_v60 = vsel %vm1067_vm2, %v1070_v41, %v1073_v43  ;;  %v1326_v63 = vsel %vm1319_vm3, %v1322_v48, %v1325_v49  ;;  %v1085_v41 = vor.u32 %v1084_v17, %v1083_v25  ;;  %v4287_v48 = vld [vmem:[%s5605_s2 + $0x128] sm:$0xff]  }
  0x43   : > { %3938 = vmatprep.subr.bf16.mxu0 %v4278_v0  ;;  %v1348_v17 = vrot.slane %v4637_v36, 2 }
  0x44   : > { %3973 = vmatpush3.bf16.msra.mxu1 %v4279_v61  ;;  %v1327_v61 = vrot.slane %v4534_v38, 1  ;;  %v1077_v8 = vor.u32 %v1076_v55, %v1075_v54  ;;  %v1092_v54 = vrot.slane %v4590_v5, 6  ;;  %v5615_v55 = vrot.slane %v4557_v51, 2 }
  0x45   : > { %3883 = vmatmul.mubr.bf16.gmra.mxu0 %v604_v23  ;;  %3974 = vmatprep.subr.bf16.mxu1 %v4282_v11  ;;  %v1333_v23 = vor.u32 %v1332_v6, %v1331_v7 }
  0x46   : > { %3919 = vmatmul.mubr.bf16.gmra.mxu1 %v860_v18  ;;  %3886 = vmatprep.mubr.bf16.mxu0 %v606_v26  ;;  %v4286_v18 = vld [vmem:[%s5605_s2 + $0x130] sm:$0xff]   ;;  %v1335_v26 = vrot.slane %v4567_v57, 1 }
  0x47   : > { %3922 = vmatprep.mubr.bf16.mxu1 %v869_v30  ;;  %3939 = vmatpush3.bf16.msra.mxu0 %v4278_v0  ;;  %v1079_v0 = vrot.slane %v4534_v38, 5  ;;  %v1087_v30 = vrot.slane %v4567_v57, 5 }
  0x48   : > { %3940 = vmatprep.subr.bf16.mxu0 %v4283_v24  ;;  %3975 = vmatpush3.bf16.msra.mxu1 %v4282_v11  ;;  %v1329_v11 = vor.u32 %v1328_v62, %v1327_v61  ;;  %v1341_v61 = vor.u32 %v1340_v40, %v1339_v35  ;;  %v1343_v62 = vrot.slane %v4604_v15, 1  ;;  %v1839_v35 = vrot.slane %v4650_v45, 3 }
  0x49   : > { %3976 = vmatprep.subr.bf16.mxu1 %v4284_v33  ;;  %v1081_v19 = vor.u32 %v1080_v1, %v1079_v0  ;;  %v1344_v0 = vrot.slane %v4607_v16, 2  ;;  %v1095_v1 = vrot.slane %v4604_v15, 5 }
  0x4a   : > { %v1330_v12 = vsel %vm1319_vm3, %v1325_v49, %v1329_v11  ;;  %v1334_v32 = vsel %vm1319_vm3, %v1329_v11, %v1333_v23  ;;  %v1091_v49 = vrot.slane %v4587_v4, 5  ;;  %v1347_v11 = vrot.slane %v4629_v34, 1 }
  0x4b   : > { %3941 = vmatpush3.bf16.msra.mxu0 %v4283_v24  ;;  %v1078_v24 = vsel %vm1067_vm2, %v1073_v43, %v1077_v8  ;;  %v1082_v29 = vsel %vm1067_vm2, %v1077_v8, %v1081_v19  ;;  %v1337_v43 = vor.u32 %v1336_v28, %v1335_v26  ;;  %v1096_v8 = vrot.slane %v4607_v16, 6 }
  0x4c   : > { %3977 = vmatpush3.bf16.msra.mxu1 %v4284_v33  ;;  %3998 = vmatprep.subr.bf16.mxu0 %v4285_v46  ;;  %v4289_v33 = vld [vmem:[%s5605_s2 + $0x170] sm:$0xff]   ;;  %v1093_v25 = vor.u32 %v1092_v54, %v1091_v49  ;;  %v1099_v26 = vrot.slane %v4629_v34, 5  ;;  %v1100_v28 = vrot.slane %v4637_v36, 6  ;;  %v1345_v40 = vor.u32 %v1344_v0, %v1343_v62  ;;  %v4295_v49 = vld [vmem:[%s5605_s2 + $0x158] sm:$0xff]  }
  0x4d   : > { %3887 = vmatmul.mubr.bf16.gmra.mxu0 %v608_v53  ;;  %4034 = vmatprep.subr.bf16.mxu1 %v4288_v50  ;;  %v1089_v53 = vor.u32 %v1088_v31, %v1087_v30  ;;  %v1338_v6 = vsel %vm1319_vm3, %v1333_v23, %v1337_v43  ;;  %v4293_v23 = vld [vmem:[%s5605_s2 + $0x160] sm:$0xff]   ;;  %v4292_v30 = vld [vmem:[%s5605_s2 + $0x118] sm:$0xff]   ;;  %v1351_v31 = vrot.slane %v4647_v44, 1  ;;  %v1103_v62 = vrot.slane %v4647_v44, 5 }
  0x4e   : > { %3923 = vmatmul.mubr.bf16.gmra.mxu1 %v878_v56  ;;  %3942 = vmatprep.mubr.bf16.mxu0 %v1074_v60  ;;  %v1586_v56 = vrot.slane %v4573_v59, 2  ;;  %v4290_v60 = vld [vmem:[%s5605_s2 + $0x120] sm:$0xff]  }
  0x4f   : > { %3978 = vmatprep.mubr.bf16.mxu1 %v1326_v63  ;;  %v1086_v63 = vsel %vm1067_vm2, %v1081_v19, %v1085_v41  ;;  %v1090_v19 = vsel %vm1067_vm2, %v1085_v41, %v1089_v53  ;;  %v1094_v0 = vsel %vm1067_vm2, %v1089_v53, %v1093_v25  ;;  %v4817_v53 = vld [vmem:[%s4634_s29 + $0x8] sm:$0xff]  }
  0x50   : > { %v4763_v7 = vsel %vm1576_vm4, %v5615_v55, %v1586_v56 }
  0x55   : > { %3943 = vmatmul.mubr.bf16.vlgmr.msra.gmra.mxu0 %v1078_v24 }
  0x56   : > { %3999 = vmatpush3.bf16.msra.mxu0 %v4285_v46  ;;  %3979 = vmatmul.mubr.bf16.vlgmr.msra.gmra.mxu1 %v1330_v12  ;;  %v4291_v46 = vld [vmem:[%s5605_s2 + $0x168] sm:$0xff]   ;;  %v1590_v12 = vrot.slane %v4600_v10, 2 }
  0x57   : > { %4000 = vmatprep.subr.bf16.mxu0 %v4286_v18  ;;  %3946 = vmatprep.mubr.bf16.mxu0 %v1082_v29  ;;  %v1592_v29 = vrot.slane %v4640_v37, 2 }
  0x58   : > { %3982 = vmatprep.mubr.bf16.mxu1 %v1334_v32  ;;  %4035 = vmatpush3.bf16.msra.mxu1 %v4288_v50  ;;  %v1588_v50 = vrot.slane %v4597_v9, 2 }
  0x59   : > { %4036 = vmatprep.subr.bf16.mxu1 %v4289_v33  ;;  %v4791_v41 = vsel %vm1576_vm4, %v1590_v12, %v1592_v29 }
  0x5a   : > { %4001 = vmatpush3.bf16.msra.mxu0 %v4286_v18  ;;  %v4769_v24 = vsel %vm1576_vm4, %v1586_v56, %v1588_v50  ;;  %v1342_v18 = vsel %vm1319_vm3, %v1337_v43, %v1341_v61  ;;  %v4786_v32 = vsel %vm1576_vm4, %v1588_v50, %v1590_v12  ;;  %v1097_v43 = vor.u32 %v1096_v8, %v1095_v1  ;;  %v4294_v1 = vld [vmem:[%s5605_s2 + $0x110] sm:$0xff]  }
  0x5b   : > { %4002 = vmatprep.subr.bf16.mxu0 %v4287_v48  ;;  %v5614_v56 = vrot.slane %v4657_v52, 2  ;;  %v1352_v50 = vrot.slane %v4650_v45, 2  ;;  %v1355_v8 = vrot.slane %v4675_v2, 1 }
  0x5c   : > { %4037 = vmatpush3.bf16.msra.mxu1 %v4289_v33  ;;  %v1838_v33 = vrot.slane %v4647_v44, 2  ;;  %v1098_v12 = vsel %vm1067_vm2, %v1093_v25, %v1097_v43 }
  0x5d   : > { %3947 = vmatmul.mubr.bf16.gmra.mxu0 %v1086_v63  ;;  %4038 = vmatprep.subr.bf16.mxu1 %v4291_v46  ;;  %v1842_v63 = vrot.slane %v4675_v2, 2  ;;  %v1353_v25 = vor.u32 %v1352_v50, %v1351_v31  ;;  %v4299_v31 = vld [vmem:[%s5605_s2 + $0x148] sm:$0xff]  }
  0x5e   : > { %3983 = vmatmul.mubr.bf16.gmra.mxu1 %v1338_v6  ;;  %4003 = vmatpush3.bf16.msra.mxu0 %v4287_v48  ;;  %v1349_v48 = vor.u32 %v1348_v17, %v1347_v11  ;;  %v4796_v54 = vor.u32 %v1839_v35, %v1838_v33  ;;  %v1104_v6 = vrot.slane %v4650_v45, 6  ;;  %v4812_v11 = vsel %vm1576_vm4, %v1592_v29, %v5614_v56 }
  0x5f   : > { %3950 = vmatprep.mubr.bf16.mxu0 %v1090_v19  ;;  %4004 = vmatprep.subr.bf16.mxu0 %v4290_v60  ;;  %v1346_v19 = vsel %vm1319_vm3, %v1341_v61, %v1345_v40  ;;  %v1356_v17 = vrot.slane %v4678_v3, 2  ;;  %v1101_v33 = vor.u32 %v1100_v28, %v1099_v26  ;;  %v4297_v61 = vld [vmem:[%s5605_s2 + $0x150] sm:$0xff]   ;;  %v1107_v29 = vrot.slane %v4675_v2, 5  ;;  %v4296_v26 = vld [vmem:[%s5605_s2 + $0x108] sm:$0xff]  }
  0x60   : > { %3986 = vmatprep.mubr.bf16.mxu1 %v1342_v18  ;;  %4039 = vmatpush3.bf16.msra.mxu1 %v4291_v46  ;;  %v1843_v46 = vrot.slane %v4678_v3, 3  ;;  %v1350_v18 = vsel %vm1319_vm3, %v1345_v40, %v1349_v48  ;;  %v1108_v35 = vrot.slane %v4678_v3, 6  ;;  %v4837_v28 = vshrl.u32 %v4817_v53, 16 }
  0x61   : > { %4040 = vmatprep.subr.bf16.mxu1 %v4293_v23  ;;  %v4840_v40 = vshll.u32 %v4817_v53, 16  ;;  %v1354_v50 = vsel %vm1319_vm3, %v1349_v48, %v1353_v25  ;;  %v4301_v48 = vld [vmem:[%s5605_s2 + $0x140] sm:$0xff]   ;;  %v1814_v56 = vrot.slane %v4534_v38, 2 }
  0x62   : > { %4005 = vmatpush3.bf16.msra.mxu0 %v4290_v60  ;;  %v4819_v60 = vor.u32 %v1843_v46, %v1842_v63  ;;  %v1357_v46 = vor.u32 %v1356_v17, %v1355_v8  ;;  %v1578_v8 = vrot.slane %v4488_v14, 2  ;;  %v1808_v17 = vrot.slane %v4501_v21, 3 }
  0x63   : > { %4006 = vmatprep.subr.bf16.mxu0 %v4292_v30 }
  0x64   : > { %4041 = vmatpush3.bf16.msra.mxu1 %v4293_v23  ;;  %v4831_v63 = vsel %vm1806_vm5, %v4796_v54, %v4819_v60  ;;  %v1105_v23 = vor.u32 %v1104_v6, %v1103_v62  ;;  %v4300_v6 = vld [vmem:[%s5605_s2 + $0x100] sm:$0xff]  }
  0x65   : > { %3951 = vmatmul.mubr.bf16.gmra.mxu0 %v1094_v0  ;;  %4042 = vmatprep.subr.bf16.mxu1 %v4295_v49  ;;  %v1102_v0 = vsel %vm1067_vm2, %v1097_v43, %v1101_v33  ;;  %v1362_v43 = vrot.slane %v4837_v28, 1 }
  0x66   : > { %3987 = vmatmul.mubr.bf16.gmra.mxu1 %v1346_v19  ;;  %4007 = vmatpush3.bf16.msra.mxu0 %v4292_v30  ;;  %v1109_v30 = vor.u32 %v1108_v35, %v1107_v29  ;;  %v1106_v62 = vsel %vm1067_vm2, %v1101_v33, %v1105_v23  ;;  %v1365_v19 = vrot.slane %v4840_v40, 2  ;;  %v5616_v29 = vrot.slane %v4557_v51, 7 }
  0x67   : > { %3954 = vmatprep.mubr.bf16.mxu0 %v1098_v12  ;;  %3990 = vmatprep.mubr.bf16.mxu1 %v1350_v18  ;;  %v1358_v12 = vsel %vm1319_vm3, %v1353_v25, %v1357_v46  ;;  %v1811_v18 = vrot.slane %v4515_v27, 3  ;;  %v2320_v35 = vrot.slane %v4573_v59, 7  ;;  %v2322_v25 = vrot.slane %v4597_v9, 7 }
  0x68   : > { %4008 = vmatprep.subr.bf16.mxu0 %v4294_v1  ;;  %4043 = vmatpush3.bf16.msra.mxu1 %v4295_v49  ;;  %v1577_v49 = vrot.slane %v4485_v13, 2  ;;  %v1810_v13 = vrot.slane %v4504_v22, 2  ;;  %v1110_v33 = vsel %vm1067_vm2, %v1105_v23, %v1109_v30  ;;  %v1366_v55 = vor.u32 %v1365_v19, %v1362_v43  ;;  %v4302_v30 = vld [vmem:[%s5605_s2 + $0x1b8] sm:$0xff]  }
  0x69   : > { %4044 = vmatprep.subr.bf16.mxu1 %v4297_v61  ;;  %v4872_v23 = vsel %vm2310_vm6, %v5616_v29, %v2320_v35  ;;  %v2091_v59 = vrot.slane %v4650_v45, 7  ;;  %v4886_v43 = vld [vmem:[%s5605_s2 + $0x1f8] sm:$0xff]   ;;  %v2330_v29 = vrot.slane %v4817_v53, 7 }
  0x6a   : > { %4009 = vmatpush3.bf16.msra.mxu0 %v4294_v1  ;;  %v1807_v1 = vrot.slane %v4498_v20, 2  ;;  %v1812_v9 = vor.u32 %v1811_v18, %v1810_v13  ;;  %v2098_v13 = vrot.slane %v4837_v28, 6  ;;  %v2099_v18 = vrot.slane %v4840_v40, 7 }
  0x6b   : > { %4010 = vmatprep.subr.bf16.mxu0 %v4296_v26 }
  0x6c   : > { %4045 = vmatpush3.bf16.msra.mxu1 %v4297_v61  ;;  %v1815_v61 = vrot.slane %v4537_v39, 3 }
  0x6d   : > { %3955 = vmatmul.mubr.bf16.gmra.mxu0 %v1102_v0  ;;  %4046 = vmatprep.subr.bf16.mxu1 %v4299_v31  ;;  %v2090_v0 = vrot.slane %v4647_v44, 6 }
  0x6e   : > { %3991 = vmatmul.mubr.bf16.gmra.mxu1 %v1354_v50  ;;  %3958 = vmatprep.mubr.bf16.mxu0 %v1106_v62  ;;  %v1809_v50 = vor.u32 %v1808_v17, %v1807_v1  ;;  %v2324_v62 = vrot.slane %v4600_v10, 7  ;;  %v2095_v1 = vrot.slane %v4678_v3, 7  ;;  %v1579_v17 = vsel %vm1576_vm4, %v1577_v49, %v1578_v8 }
  0x6f   : > { %4011 = vmatpush3.bf16.msra.mxu0 %v4296_v26  ;;  %3994 = vmatprep.mubr.bf16.mxu1 %v1358_v12  ;;  %v4880_v26 = vsel %vm2310_vm6, %v2320_v35, %v2322_v25  ;;  %v4888_v19 = vor.u32 %v2091_v59, %v2090_v0  ;;  %v2094_v12 = vrot.slane %v4675_v2, 6  ;;  %v1367_v35 = vsel %vm1319_vm3, %v1357_v46, %v1366_v55 }
  0x70   : > { %4012 = vmatprep.subr.bf16.mxu0 %v4300_v6  ;;  %4047 = vmatpush3.bf16.msra.mxu1 %v4299_v31  ;;  %v2326_v31 = vrot.slane %v4640_v37, 7  ;;  %v4897_v10 = vsel %vm2310_vm6, %v2322_v25, %v2324_v62  ;;  %v2328_v59 = vrot.slane %v4657_v52, 7  ;;  %v1813_v49 = vsel %vm1806_vm5, %v1809_v50, %v1812_v9  ;;  %v4919_v50 = vld [vmem:[%s4476_s26 + $0x18] sm:$0xff]  }
  0x71   : > { %4048 = vmatprep.subr.bf16.mxu1 %v4301_v48  ;;  %v2096_v0 = vor.u32 %v2095_v1, %v2094_v12  ;;  %v2100_v25 = vor.u32 %v2099_v18, %v2098_v13  ;;  %v1818_v55 = vrot.slane %v4542_v42, 2  ;;  %v1819_v46 = vrot.slane %v4550_v47, 3  ;;  %v4929_v13 = vld [vmem:[%s4476_s26 + $0x20] sm:$0xff]  }
  0x72   : > { %v4903_v37 = vsel %vm2310_vm6, %v2324_v62, %v2326_v31  ;;  %v1580_v62 = vrot.slane %v4919_v50, 2  ;;  %v4926_v12 = vsel %vm2310_vm6, %v2328_v59, %v2330_v29  ;;  %v1816_v1 = vor.u32 %v1815_v61, %v1814_v56  ;;  %v4303_v56 = vld [vmem:[%s5605_s2 + $0x1b0] sm:$0xff]  }
  0x73   : > { %4013 = vmatpush3.bf16.msra.mxu0 %v4300_v6  ;;  %v4913_v6 = vsel %vm2058_vm7, %v4888_v19, %v2096_v0  ;;  %v1582_v18 = vrot.slane %v4929_v13, 2  ;;  %v1823_v61 = vrot.slane %v4570_v58, 3 }
  0x74   : > { %4049 = vmatpush3.bf16.msra.mxu1 %v4301_v48  ;;  %4070 = vmatprep.subr.bf16.mxu0 %v4302_v30  ;;  %v4916_v48 = vsel %vm2310_vm6, %v2326_v31, %v2328_v59  ;;  %v2563_v31 = vrot.slane %v4647_v44, 7  ;;  %v1817_v29 = vsel %vm1806_vm5, %v1812_v9, %v1816_v1  ;;  %v2566_v44 = vrot.slane %v4675_v2, 7  ;;  %v4306_v9 = vld [vmem:[%s5605_s2 + $0x1f0] sm:$0xff]  }
  0x75   : > { %3959 = vmatmul.mubr.bf16.gmra.mxu0 %v1110_v33  ;;  %4106 = vmatprep.subr.bf16.mxu1 %v4886_v43  ;;  %5617 = vst [vmem:[#allocation2_spill] sm:$0xff] %v4916_v48  ;;  %v4923_v33 = vsel %vm2058_vm7, %v2096_v0, %v2100_v25  ;;  %v1822_v48 = vrot.slane %v4567_v57, 2  ;;  %v2569_v59 = vrot.slane %v4837_v28, 7  ;;  %v1583_v14 = vsel %vm1576_vm4, %v1580_v62, %v1582_v18 }
  0x76   : > { %3995 = vmatmul.mubr.bf16.gmra.mxu1 %v1367_v35  ;;  %4014 = vmatprep.mubr.bf16.mxu0 %v1579_v17  ;;  %v1820_v35 = vor.u32 %v1819_v46, %v1818_v55  ;;  %v1581_v17 = vsel %vm1576_vm4, %v1578_v8, %v1580_v62  ;;  %v4938_v0 = vor.u32 %v2563_v31, %v4650_v45  ;;  %v1826_v8 = vrot.slane %v4587_v4, 2  ;;  %v4304_v46 = vld [vmem:[%s5605_s2 + $0x1a8] sm:$0xff]  }
  0x77   : > { %4050 = vmatprep.mubr.bf16.mxu1 %v1813_v49  ;;  %v1827_v49 = vrot.slane %v4590_v5, 3  ;;  %v2567_v25 = vor.u32 %v2566_v44, %v4678_v3  ;;  %v2570_v55 = vor.u32 %v2569_v59, %v4840_v40  ;;  %v1824_v2 = vor.u32 %v1823_v61, %v1822_v48 }
  0x78   : > { %v1821_v45 = vsel %vm1806_vm5, %v1816_v1, %v1820_v35  ;;  %v5618_v48 = vrot.slane %v4557_v51, 2  ;;  %v1831_v61 = vrot.slane %v4607_v16, 3 }
  0x79   : > { %v4960_v62 = vsel %vm2540_vm8, %v2563_v31, %v2567_v25  ;;  %v4963_v1 = vsel %vm2540_vm8, %v2566_v44, %v2570_v55  ;;  %v1828_v3 = vor.u32 %v1827_v49, %v1826_v8  ;;  %v1825_v31 = vsel %vm1806_vm5, %v1820_v35, %v1824_v2  ;;  %v4311_v49 = vld [vmem:[%s5605_s2 + $0x190] sm:$0xff]   ;;  %v4313_v55 = vld [vmem:[%s5605_s2 + $0x188] sm:$0xff]  }
  0x7a   : > { %v1834_v44 = vrot.slane %v4629_v34, 2  ;;  %v4314_v25 = vld [vmem:[%s5605_s2 + $0x1d0] sm:$0xff]  }
  0x7b   : > { %v1829_v59 = vsel %vm1806_vm5, %v1824_v2, %v1828_v3 }
  0x7d   : > { %4015 = vmatmul.mubr.bf16.vlgmr.msra.gmra.mxu0 %v1581_v17  ;;  %v1585_v17 = vsel %vm1576_vm4, %v1582_v18, %v5618_v48  ;;  %v4310_v18 = vld [vmem:[%s5605_s2 + $0x1e0] sm:$0xff]   ;;  %v2062_v48 = vrot.slane %v4504_v22, 6 }
  0x7e   : > { %4071 = vmatpush3.bf16.msra.mxu0 %v4302_v30  ;;  %4051 = vmatmul.mubr.bf16.vlgmr.msra.gmra.mxu1 %v1817_v29  ;;  %v4308_v30 = vld [vmem:[%s5605_s2 + $0x1e8] sm:$0xff]   ;;  %v4307_v29 = vld [vmem:[%s5605_s2 + $0x1a0] sm:$0xff]  }
  0x7f   : > { %4072 = vmatprep.subr.bf16.mxu0 %v4303_v56  ;;  %4018 = vmatprep.mubr.bf16.mxu0 %v1583_v14  ;;  %v4309_v14 = vld [vmem:[%s5605_s2 + $0x198] sm:$0xff]  }
  0x80   : > { %4054 = vmatprep.mubr.bf16.mxu1 %v1821_v45  ;;  %4107 = vmatpush3.bf16.msra.mxu1 %v4886_v43  ;;  %v1830_v43 = vrot.slane %v4604_v15, 2  ;;  %v4312_v45 = vld [vmem:[%s5605_s2 + $0x1d8] sm:$0xff]  }
  0x81   : > { %4108 = vmatprep.subr.bf16.mxu1 %v4306_v9 }
  0x82   : > { %4073 = vmatpush3.bf16.msra.mxu0 %v4303_v56  ;;  %v1835_v56 = vrot.slane %v4637_v36, 3  ;;  %v1832_v35 = vor.u32 %v1831_v61, %v1830_v43  ;;  %v4336_v43 = vld [vmem:[%s4476_s26 + $0x8] sm:$0xff]  }
  0x83   : > { %4074 = vmatprep.subr.bf16.mxu0 %v4304_v46  ;;  %v2311_v61 = vrot.slane %v4336_v43, 7  ;;  %v2087_v43 = vrot.slane %v4637_v36, 7 }
  0x84   : > { %4109 = vmatpush3.bf16.msra.mxu1 %v4306_v9  ;;  %v1836_v8 = vor.u32 %v1835_v56, %v1834_v44  ;;  %v1833_v9 = vsel %vm1806_vm5, %v1828_v3, %v1832_v35  ;;  %v2059_v3 = vrot.slane %v4498_v20, 6  ;;  %v4337_v44 = vld [vmem:[%s4476_s26 + $0x10] sm:$0xff]  }
  0x85   : > { %4019 = vmatmul.mubr.bf16.gmra.mxu0 %v1585_v17  ;;  %4110 = vmatprep.subr.bf16.mxu1 %v4308_v30  ;;  %v2063_v17 = vrot.slane %v4515_v27, 7  ;;  %v2312_v56 = vrot.slane %v4337_v44, 7 }
  0x86   : > { %4055 = vmatmul.mubr.bf16.gmra.mxu1 %v1825_v31  ;;  %4075 = vmatpush3.bf16.msra.mxu0 %v4304_v46  ;;  %v1841_v2 = vsel %vm1806_vm5, %v1836_v8, %v4796_v54  ;;  %v1846_v46 = vrot.slane %v4837_v28, 2  ;;  %v4316_v54 = vld [vmem:[%s5605_s2 + $0x180] sm:$0xff]  }
  0x87   : > { %4022 = vmatprep.mubr.bf16.mxu0 %v4763_v7  ;;  %4076 = vmatprep.subr.bf16.mxu0 %v4307_v29  ;;  %v1837_v7 = vsel %vm1806_vm5, %v1832_v35, %v1836_v8  ;;  %v4317_v28 = vld [vmem:[%s5605_s2 + $0x1c0] sm:$0xff]   ;;  %v2070_v8 = vrot.slane %v4542_v42, 6 }
  0x88   : > { %4058 = vmatprep.mubr.bf16.mxu1 %v1829_v59  ;;  %4111 = vmatpush3.bf16.msra.mxu1 %v4308_v30  ;;  %v2060_v30 = vrot.slane %v4501_v21, 7  ;;  %v1596_v21 = vrot.slane %v4817_v53, 2  ;;  %v2067_v59 = vrot.slane %v4537_v39, 7 }
  0x89   : > { %4112 = vmatprep.subr.bf16.mxu1 %v4310_v18 }
  0x8a   : > { %4077 = vmatpush3.bf16.msra.mxu0 %v4307_v29  ;;  %v2061_v31 = vor.u32 %v2060_v30, %v2059_v3  ;;  %v2064_v29 = vor.u32 %v2063_v17, %v2062_v48  ;;  %v4320_v30 = vld [vmem:[%s5605_s2 + $0x228] sm:$0xff]  }
  0x8b   : > { %4078 = vmatprep.subr.bf16.mxu0 %v4309_v14 }
  0x8c   : > { %4113 = vmatpush3.bf16.msra.mxu1 %v4310_v18  ;;  %v2065_v35 = vsel %vm2058_vm7, %v2061_v31, %v2064_v29  ;;  %v4321_v31 = vld [vmem:[%s5605_s2 + $0x220] sm:$0xff]  }
  0x8d   : > { %4023 = vmatmul.mubr.bf16.gmra.mxu0 %v4769_v24  ;;  %4114 = vmatprep.subr.bf16.mxu1 %v4312_v45  ;;  %v4315_v24 = vld [vmem:[%s5605_s2 + $0x1c8] sm:$0xff]  }
  0x8e   : > { %4059 = vmatmul.mubr.bf16.gmra.mxu1 %v1833_v9  ;;  %4079 = vmatpush3.bf16.msra.mxu0 %v4309_v14  ;;  %v2313_v14 = vsel %vm2310_vm6, %v2311_v61, %v2312_v56  ;;  %v2314_v9 = vrot.slane %v4919_v50, 7  ;;  %v2079_v50 = vrot.slane %v4590_v5, 7 }
  0x8f   : > { %4026 = vmatprep.mubr.bf16.mxu0 %v4786_v32  ;;  %4062 = vmatprep.mubr.bf16.mxu1 %v1837_v7  ;;  %v1847_v32 = vrot.slane %v4840_v40, 3 }
  0x90   : > { %4080 = vmatprep.subr.bf16.mxu0 %v4311_v49  ;;  %4115 = vmatpush3.bf16.msra.mxu1 %v4312_v45 }
  0x91   : > { %4116 = vmatprep.subr.bf16.mxu1 %v4314_v25  ;;  %v1848_v40 = vor.u32 %v1847_v32, %v1846_v46  ;;  %v2078_v32 = vrot.slane %v4587_v4, 6 }
  0x92   : > { %4081 = vmatpush3.bf16.msra.mxu0 %v4311_v49 }
  0x93   : > { %4082 = vmatprep.subr.bf16.mxu0 %v4313_v55  ;;  %v1849_v18 = vsel %vm1806_vm5, %v4819_v60, %v1848_v40  ;;  %v2316_v60 = vrot.slane %v4929_v13, 7  ;;  %v2080_v48 = vor.u32 %v2079_v50, %v2078_v32 }
  0x94   : > { %4117 = vmatpush3.bf16.msra.mxu1 %v4314_v25  ;;  %v2074_v25 = vrot.slane %v4567_v57, 6 }
  0x95   : > { %4027 = vmatmul.mubr.bf16.gmra.mxu0 %v4791_v41  ;;  %4118 = vmatprep.subr.bf16.mxu1 %v4315_v24  ;;  %v4318_v41 = vld [vmem:[%s5605_s2 + $0x238] sm:$0xff]   ;;  %v2317_v13 = vsel %vm2310_vm6, %v2314_v9, %v2316_v60 }
  0x96   : > { %4063 = vmatmul.mubr.bf16.gmra.mxu1 %v1841_v2  ;;  %4030 = vmatprep.mubr.bf16.mxu0 %v4812_v11  ;;  %v5619_v11 = vrot.slane %v4657_v52, 2  ;;  %v2071_v52 = vrot.slane %v4550_v47, 7  ;;  %v4319_v2 = vld [vmem:[%s5605_s2 + $0x230] sm:$0xff]  }
  0x97   : > { %4083 = vmatpush3.bf16.msra.mxu0 %v4313_v55  ;;  %4066 = vmatprep.mubr.bf16.mxu1 %v4831_v63  ;;  %v2066_v63 = vrot.slane %v4534_v38, 6  ;;  %v2075_v55 = vrot.slane %v4570_v58, 7 }
  0x98   : > { %4084 = vmatprep.subr.bf16.mxu0 %v4316_v54  ;;  %4119 = vmatpush3.bf16.msra.mxu1 %v4315_v24  ;;  %v1597_v53 = vsel %vm1576_vm4, %v5619_v11, %v1596_v21  ;;  %v2072_v7 = vor.u32 %v2071_v52, %v2070_v8  ;;  %v2315_v24 = vsel %vm2310_vm6, %v2312_v56, %v2314_v9  ;;  %v5620_v21 = vrot.slane %v4557_v51, 7  ;;  %v4322_v51 = vld [vmem:[%s5605_s2 + $0x218] sm:$0xff]  }
  0x99   : > { %4120 = vmatprep.subr.bf16.mxu1 %v4317_v28  ;;  %v2068_v45 = vor.u32 %v2067_v59, %v2066_v63  ;;  %v2076_v3 = vor.u32 %v2075_v55, %v2074_v25  ;;  %v2542_v59 = vrot.slane %v4504_v22, 7  ;;  %v2554_v8 = vrot.slane %v4587_v4, 7 }
  0x9a   : > { %v2319_v40 = vsel %vm2310_vm6, %v2316_v60, %v5620_v21  ;;  %v2560_v52 = vrot.slane %v4629_v34, 7 }
  0x9b   : > { %4085 = vmatpush3.bf16.msra.mxu0 %v4316_v54  ;;  %v2069_v49 = vsel %vm2058_vm7, %v2064_v29, %v2068_v45  ;;  %v2073_v46 = vsel %vm2058_vm7, %v2068_v45, %v2072_v7  ;;  %v2077_v17 = vsel %vm2058_vm7, %v2072_v7, %v2076_v3  ;;  %v2082_v54 = vrot.slane %v4604_v15, 6 }
  0x9c   : > { %4121 = vmatpush3.bf16.msra.mxu1 %v4317_v28  ;;  %4142 = vmatprep.subr.bf16.mxu0 %v4318_v41  ;;  %v2083_v28 = vrot.slane %v4607_v16, 7  ;;  %v2081_v29 = vsel %vm2058_vm7, %v2076_v3, %v2080_v48  ;;  %v2561_v4 = vor.u32 %v2560_v52, %v4637_v36 }
  0x9d   : > { %4031 = vmatmul.mubr.bf16.gmra.mxu0 %v1597_v53  ;;  %v4323_v53 = vld [vmem:[%s5605_s2 + $0x210] sm:$0xff]  }
  0x9e   : > { %4067 = vmatmul.mubr.bf16.gmra.mxu1 %v1849_v18  ;;  %4086 = vmatprep.mubr.bf16.mxu0 %v2065_v35  ;;  %v2084_v61 = vor.u32 %v2083_v28, %v2082_v54  ;;  %v2541_v18 = vrot.slane %v4498_v20, 7  ;;  %v2545_v35 = vrot.slane %v4534_v38, 7 }
  0x9f   : > { %4122 = vmatprep.mubr.bf16.mxu1 %v2313_v14  ;;  %v2548_v14 = vrot.slane %v4542_v42, 7 }
  0xa0   : > { %v2085_v56 = vsel %vm2058_vm7, %v2080_v48, %v2084_v61 }
  0xa5   : > { %4087 = vmatmul.mubr.bf16.vlgmr.msra.gmra.mxu0 %v2069_v49 }
  0xa6   : > { %4143 = vmatpush3.bf16.msra.mxu0 %v4318_v41  ;;  %4123 = vmatmul.mubr.bf16.vlgmr.msra.gmra.mxu1 %v2315_v24  ;;  %v2086_v41 = vrot.slane %v4629_v34, 6 }
  0xa7   : > { %4144 = vmatprep.subr.bf16.mxu0 %v4319_v2  ;;  %4090 = vmatprep.mubr.bf16.mxu0 %v2073_v46 }
  0xa8   : > { %4126 = vmatprep.mubr.bf16.mxu1 %v2317_v13  ;;  %v2088_v44 = vor.u32 %v2087_v43, %v2086_v41 }
  0xaa   : > { %4145 = vmatpush3.bf16.msra.mxu0 %v4319_v2  ;;  %v2089_v11 = vsel %vm2058_vm7, %v2084_v61, %v2088_v44  ;;  %v2093_v63 = vsel %vm2058_vm7, %v2088_v44, %v4888_v19  ;;  %v2543_v19 = vor.u32 %v2542_v59, %v4515_v27  ;;  %v2551_v27 = vrot.slane %v4567_v57, 7 }
  0xab   : > { %4146 = vmatprep.subr.bf16.mxu0 %v4320_v30 }
  0xac   : > { %v2544_v22 = vsel %vm2540_vm8, %v2541_v18, %v2543_v19  ;;  %v2552_v42 = vor.u32 %v2551_v27, %v4570_v58 }
  0xad   : > { %4091 = vmatmul.mubr.bf16.gmra.mxu0 %v2077_v17 }
  0xae   : > { %4127 = vmatmul.mubr.bf16.gmra.mxu1 %v2319_v40  ;;  %4147 = vmatpush3.bf16.msra.mxu0 %v4320_v30  ;;  %v4326_v30 = vld [vmem:[%s5609_s6 + $0x38] sm:$0xff]  }
  0xaf   : > { %4094 = vmatprep.mubr.bf16.mxu0 %v2081_v29  ;;  %4148 = vmatprep.subr.bf16.mxu0 %v4321_v31 }
  0xb0   : > { %4130 = vmatprep.mubr.bf16.mxu1 %v4872_v23  ;;  %v4324_v23 = vld [vmem:[%s5605_s2 + $0x208] sm:$0xff]   ;;  %4178 = vmatprep.subr.bf16.mxu1 %v4326_v30 }
  0xb1   : > { %4179 = vmatpush3.bf16.msra.mxu1 %v4326_v30 }
  0xb2   : > { %4149 = vmatpush3.bf16.msra.mxu0 %v4321_v31  ;;  %v4327_v31 = vld [vmem:[%s5609_s6 + $0x30] sm:$0xff]  }
  0xb3   : > { %4150 = vmatprep.subr.bf16.mxu0 %v4322_v51  ;;  %4180 = vmatprep.subr.bf16.mxu1 %v4327_v31 }
  0xb5   : > { %4095 = vmatmul.mubr.bf16.gmra.mxu0 %v2085_v56  ;;  %4181 = vmatpush3.bf16.msra.mxu1 %v4327_v31 }
  0xb6   : > { %4131 = vmatmul.mubr.bf16.gmra.mxu1 %v4880_v26  ;;  %4151 = vmatpush3.bf16.msra.mxu0 %v4322_v51  ;;  %v4325_v26 = vld [vmem:[%s5605_s2 + $0x200] sm:$0xff]  }
  0xb7   : > { %4098 = vmatprep.mubr.bf16.mxu0 %v2089_v11  ;;  %4134 = vmatprep.mubr.bf16.mxu1 %v4897_v10  ;;  %v5621_v10 = vld [vmem:[#allocation2_spill] sm:$0xff] }
  0xb8   : > { %4152 = vmatprep.subr.bf16.mxu0 %v4323_v53 }
  0xba   : > { %4153 = vmatpush3.bf16.msra.mxu0 %v4323_v53 }
  0xbb   : > { %4154 = vmatprep.subr.bf16.mxu0 %v4324_v23 }
  0xbd   : > { %4099 = vmatmul.mubr.bf16.gmra.mxu0 %v2093_v63 }
  0xbe   : > { %4135 = vmatmul.mubr.bf16.gmra.mxu1 %v4903_v37  ;;  %4102 = vmatprep.mubr.bf16.mxu0 %v4913_v6  ;;  %v2546_v37 = vor.u32 %v2545_v35, %v4537_v39  ;;  %v2549_v6 = vor.u32 %v2548_v14, %v4550_v47  ;;  %v2557_v39 = vrot.slane %v4604_v15, 7 }
  0xbf   : > { %4155 = vmatpush3.bf16.msra.mxu0 %v4324_v23  ;;  %4138 = vmatprep.mubr.bf16.mxu1 %v5621_v10  ;;  %v4328_v23 = vld [vmem:[%s5609_s6 + $0x28] sm:$0xff]  }
  0xc0   : > { %4156 = vmatprep.subr.bf16.mxu0 %v4325_v26  ;;  %v2547_v20 = vsel %vm2540_vm8, %v2542_v59, %v2546_v37  ;;  %v2550_v38 = vsel %vm2540_vm8, %v2545_v35, %v2549_v6  ;;  %v2558_v57 = vor.u32 %v2557_v39, %v4607_v16  ;;  %v2562_v58 = vsel %vm2540_vm8, %v2557_v39, %v2561_v4  ;;  %v4329_v35 = vld [vmem:[%s5609_s6 + $0x20] sm:$0xff]  }
  0xc1   : > { %4182 = vmatprep.subr.bf16.mxu1 %v4328_v23 }
  0xc2   : > { %v2559_v45 = vsel %vm2540_vm8, %v2554_v8, %v2558_v57  ;;  %4183 = vmatpush3.bf16.msra.mxu1 %v4328_v23 }
  0xc3   : > { %4157 = vmatpush3.bf16.msra.mxu0 %v4325_v26  ;;  %4184 = vmatprep.subr.bf16.mxu1 %v4329_v35 }
  0xc5   : > { %4103 = vmatmul.mubr.bf16.gmra.mxu0 %v4923_v33  ;;  %v2555_v33 = vor.u32 %v2554_v8, %v4590_v5  ;;  %v2565_v5 = vsel %vm2540_vm8, %v2560_v52, %v4938_v0 }
  0xc6   : > { %4139 = vmatmul.mubr.bf16.gmra.mxu1 %v4926_v12  ;;  %4158 = vmatprep.mubr.bf16.mxu0 %v2544_v22  ;;  %v2553_v12 = vsel %vm2540_vm8, %v2548_v14, %v2552_v42 }
  0xc7   : > { %v2556_v47 = vsel %vm2540_vm8, %v2551_v27, %v2555_v33  ;;  %4185 = vmatpush3.bf16.msra.mxu1 %v4329_v35 }
  0xcd   : > { %4159 = vmatmul.mubr.bf16.vlgmr.msra.gmra.mxu0 %v2547_v20 }
  0xce   : > { %4162 = vmatprep.mubr.bf16.mxu0 %v2550_v38 }
  0xd5   : > { %4163 = vmatmul.mubr.bf16.gmra.mxu0 %v2553_v12 }
  0xd6   : > { %4166 = vmatprep.mubr.bf16.mxu0 %v2556_v47  ;;  %v4330_v47 = vld [vmem:[%s5609_s6 + $0x18] sm:$0xff]  }
  0xd7   : > { %4186 = vmatprep.subr.bf16.mxu1 %v4330_v47 }
  0xd8   : > { %4187 = vmatpush3.bf16.msra.mxu1 %v4330_v47 }
  0xdd   : > { %4167 = vmatmul.mubr.bf16.gmra.mxu0 %v2559_v45 }
  0xde   : > { %4170 = vmatprep.mubr.bf16.mxu0 %v2562_v58 }
  0xe5   : > { %4171 = vmatmul.mubr.bf16.gmra.mxu0 %v2565_v5 }
  0xe6   : > { %4174 = vmatprep.mubr.bf16.mxu0 %v4960_v62 }
  0xed   : > { %v3872_v15 = vpop.f32.mrf.mxu0  ;;  %4175 = vmatmul.mubr.bf16.gmra.mxu0 %v4963_v1 }
  0xee   : > { %v3908_v34 = vpop.f32.mrf.mxu1 }
  0xef   : > { %v5119_v9 = vadd.f32 %v3908_v34, %v3872_v15  ;;  %v701_v16 = vpop.f32.mrf.mxu0  ;;  %v4331_v15 = vld [vmem:[%s5609_s6 + $0x10] sm:$0xff]  }
  0xf0   : > { %v971_v36 = vpop.f32.mrf.mxu1  ;;  %4188 = vmatprep.subr.bf16.mxu1 %v4331_v15 }
  0xf1   : > { %v5121_v7 = vadd.f32 %v971_v36, %v701_v16  ;;  %v3873_v60 = vpop.f32.mrf.mxu0  ;;  %4189 = vmatpush3.bf16.msra.mxu1 %v4331_v15 }
  0xf2   : > { %v3909_v49 = vpop.f32.mrf.mxu1 }
  0xf3   : > { %v5123_v25 = vadd.f32 %v3909_v49, %v3873_v60  ;;  %v704_v55 = vpop.f32.mrf.mxu0 }
  0xf4   : > { %v974_v24 = vpop.f32.mrf.mxu1 }
  0xf5   : > { %v5125_v0 = vadd.f32 %v974_v24, %v704_v55  ;;  %v3876_v2 = vpop.f32.mrf.mxu0 }
  0xf6   : > { %v3912_v62 = vpop.f32.mrf.mxu1 }
  0xf7   : > { %v5127_v46 = vadd.f32 %v3912_v62, %v3876_v2  ;;  %v717_v1 = vpop.f32.mrf.mxu0  ;;  %v4332_v62 = vld [vmem:[%s5609_s6 + $0x8] sm:$0xff]  }
  0xf8   : > { %v987_v32 = vpop.f32.mrf.mxu1  ;;  %4190 = vmatprep.subr.bf16.mxu1 %v4332_v62 }
  0xf9   : > { %v5129_v50 = vadd.f32 %v987_v32, %v717_v1  ;;  %v3877_v13 = vpop.f32.mrf.mxu0  ;;  %4191 = vmatpush3.bf16.msra.mxu1 %v4332_v62 }
  0xfa   : > { %v3913_v3 = vpop.f32.mrf.mxu1 }
  0xfb   : > { %v5134_v48 = vadd.f32 %v3913_v3, %v3877_v13  ;;  %v720_v17 = vpop.f32.mrf.mxu0 }
  0xfc   : > { %v990_v54 = vpop.f32.mrf.mxu1 }
  0xfd   : > { %v5136_v28 = vadd.f32 %v990_v54, %v720_v17  ;;  %v3880_v21 = vpop.f32.mrf.mxu0  ;;  %v4333_v54 = vld [vmem:[%s5609_s6] sm:$0xff]  }
  0xfe   : > { %v3916_v40 = vpop.f32.mrf.mxu1  ;;  %4192 = vmatprep.subr.bf16.mxu1 %v4333_v54 }
  0xff   : > { %v5141_v29 = vadd.f32 %v3916_v40, %v3880_v21  ;;  %v733_v41 = vpop.f32.mrf.mxu0  ;;  %4193 = vmatpush3.bf16.msra.mxu1 %v4333_v54 }
 0x100   : > { %v1003_v43 = vpop.f32.mrf.mxu1 }
 0x101   : > { %v5143_v61 = vadd.f32 %v1003_v43, %v733_v41  ;;  %v3881_v51 = vpop.f32.mrf.mxu0 }
 0x102   : > { %v3917_v44 = vpop.f32.mrf.mxu1 }
 0x103   : > { %v5145_v56 = vadd.f32 %v3917_v44, %v3881_v51  ;;  %v736_v11 = vpop.f32.mrf.mxu0 }
 0x104   : > { %v1006_v53 = vpop.f32.mrf.mxu1 }
 0x105   : > { %v5150_v63 = vadd.f32 %v1006_v53, %v736_v11  ;;  %v3884_v59 = vpop.f32.mrf.mxu0 }
 0x106   : > { %v3920_v26 = vpop.f32.mrf.mxu1 }
 0x107   : > { %v5152_v10 = vadd.f32 %v3920_v26, %v3884_v59  ;;  %v749_v18 = vpop.f32.mrf.mxu0 }
 0x108   : > { %v1019_v19 = vpop.f32.mrf.mxu1 }
 0x109   : > { %v5157_v22 = vadd.f32 %v1019_v19, %v749_v18  ;;  %v3885_v14 = vpop.f32.mrf.mxu0 }
 0x10a   : > { %v3921_v37 = vpop.f32.mrf.mxu1 }
 0x10b   : > { %v5159_v6 = vadd.f32 %v3921_v37, %v3885_v14  ;;  %v752_v20 = vpop.f32.mrf.mxu0 }
 0x10c   : > { %v1022_v27 = vpop.f32.mrf.mxu1 }
 0x10d   : > { %v5161_v38 = vadd.f32 %v1022_v27, %v752_v20  ;;  %v3888_v8 = vpop.f32.mrf.mxu0 }
 0x10e   : > { %v3924_v42 = vpop.f32.mrf.mxu1 }
 0x10f   : > { %v5163_v33 = vadd.f32 %v3924_v42, %v3888_v8  ;;  %v765_v12 = vpop.f32.mrf.mxu0 }
 0x110   : > { %v1035_v39 = vpop.f32.mrf.mxu1 }
 0x111   : > { %v5168_v52 = vadd.f32 %v1035_v39, %v765_v12  ;;  %v3889_v57 = vpop.f32.mrf.mxu0 }
 0x112   : > { %v3925_v4 = vpop.f32.mrf.mxu1 }
 0x113   : > { %v5170_v45 = vadd.f32 %v3925_v4, %v3889_v57  ;;  %v768_v58 = vpop.f32.mrf.mxu0 }
 0x114   : > { %v1038_v5 = vpop.f32.mrf.mxu1 }
 0x115   : > { %v5175_v34 = vadd.f32 %v1038_v5, %v768_v58  ;;  %v3944_v16 = vpop.f32.mrf.mxu0 }
 0x116   : > { %v1284_v36 = vadd.f32 %v3944_v16, %v5119_v9  ;;  %v3980_v60 = vpop.f32.mrf.mxu1 }
 0x117   : > { %v1203_v49 = vpop.f32.mrf.mxu0 }
 0x118   : > { %v1282_v55 = vadd.f32 %v1203_v49, %v5121_v7  ;;  %v5179_v24 = vadd.f32 %v3980_v60, %v1284_v36  ;;  %v1460_v2 = vpop.f32.mrf.mxu1 }
 0x119   : > { %v3945_v1 = vpop.f32.mrf.mxu0 }
 0x11a   : > { %v1285_v32 = vadd.f32 %v3945_v1, %v5123_v25  ;;  %v5185_v13 = vadd.f32 %v1460_v2, %v1282_v55  ;;  %v3981_v3 = vpop.f32.mrf.mxu1 }
 0x11b   : > { %v1206_v9 = vpop.f32.mrf.mxu0 }
 0x11c   : > { %v1283_v30 = vadd.f32 %v1206_v9, %v5125_v0  ;;  %v5188_v17 = vadd.f32 %v3981_v3, %v1285_v32  ;;  %v1463_v7 = vpop.f32.mrf.mxu1 }
 0x11d   : > { %v3948_v21 = vpop.f32.mrf.mxu0 }
 0x11e   : > { %v1288_v40 = vadd.f32 %v3948_v21, %v5127_v46  ;;  %v5194_v31 = vadd.f32 %v1463_v7, %v1283_v30  ;;  %v3984_v25 = vpop.f32.mrf.mxu1 }
 0x11f   : > { %v1219_v41 = vpop.f32.mrf.mxu0 }
 0x120   : > { %v1286_v43 = vadd.f32 %v1219_v41, %v5129_v50  ;;  %v5197_v51 = vadd.f32 %v3984_v25, %v1288_v40  ;;  %v1476_v0 = vpop.f32.mrf.mxu1 }
 0x121   : > { %v3949_v44 = vpop.f32.mrf.mxu0 }
 0x122   : > { %v1289_v11 = vadd.f32 %v3949_v44, %v5134_v48  ;;  %v5200_v53 = vadd.f32 %v1476_v0, %v1286_v43  ;;  %v3985_v23 = vpop.f32.mrf.mxu1 }
 0x123   : > { %v1222_v59 = vpop.f32.mrf.mxu0 }
 0x124   : > { %v1287_v46 = vadd.f32 %v1222_v59, %v5136_v28  ;;  %v5203_v26 = vadd.f32 %v3985_v23, %v1289_v11  ;;  %v1479_v18 = vpop.f32.mrf.mxu1 }
 0x125   : > { %v3952_v19 = vpop.f32.mrf.mxu0 }
 0x126   : > { %v1292_v35 = vadd.f32 %v3952_v19, %v5141_v29  ;;  %v5206_v14 = vadd.f32 %v1479_v18, %v1287_v46  ;;  %v3988_v50 = vpop.f32.mrf.mxu1 }
 0x127   : > { %v1235_v37 = vpop.f32.mrf.mxu0 }
 0x128   : > { %v1290_v20 = vadd.f32 %v1235_v37, %v5143_v61  ;;  %v5209_v27 = vadd.f32 %v3988_v50, %v1292_v35  ;;  %v1492_v48 = vpop.f32.mrf.mxu1 }
 0x129   : > { %v3953_v8 = vpop.f32.mrf.mxu0 }
 0x12a   : > { %v1293_v42 = vadd.f32 %v3953_v8, %v5145_v56  ;;  %v5212_v12 = vadd.f32 %v1492_v48, %v1290_v20  ;;  %v3989_v28 = vpop.f32.mrf.mxu1 }
 0x12b   : > { %v1238_v39 = vpop.f32.mrf.mxu0 }
 0x12c   : > { %v1291_v47 = vadd.f32 %v1238_v39, %v5150_v63  ;;  %v5215_v57 = vadd.f32 %v3989_v28, %v1293_v42  ;;  %v1495_v29 = vpop.f32.mrf.mxu1 }
 0x12d   : > { %v3956_v4 = vpop.f32.mrf.mxu0 }
 0x12e   : > { %v1296_v58 = vadd.f32 %v3956_v4, %v5152_v10  ;;  %v5218_v5 = vadd.f32 %v1495_v29, %v1291_v47  ;;  %v3992_v61 = vpop.f32.mrf.mxu1 }
 0x12f   : > { %v1251_v15 = vpop.f32.mrf.mxu0 }
 0x130   : > { %v1294_v16 = vadd.f32 %v1251_v15, %v5157_v22  ;;  %v5221_v36 = vadd.f32 %v3992_v61, %v1296_v58  ;;  %v1508_v56 = vpop.f32.mrf.mxu1 }
 0x131   : > { %v3957_v60 = vpop.f32.mrf.mxu0 }
 0x132   : > { %v1297_v49 = vadd.f32 %v3957_v60, %v5159_v6  ;;  %v5224_v55 = vadd.f32 %v1508_v56, %v1294_v16  ;;  %v3993_v63 = vpop.f32.mrf.mxu1 }
 0x133   : > { %v1254_v2 = vpop.f32.mrf.mxu0 }
 0x134   : > { %v1295_v62 = vadd.f32 %v1254_v2, %v5161_v38  ;;  %v1554_v1 = vadd.f32 %v3993_v63, %v1297_v49  ;;  %v1511_v10 = vpop.f32.mrf.mxu1 }
 0x135   : > { %v3960_v32 = vpop.f32.mrf.mxu0 }
 0x136   : > { %v1300_v3 = vadd.f32 %v3960_v32, %v5163_v33  ;;  %v1552_v9 = vadd.f32 %v1511_v10, %v1295_v62  ;;  %v3996_v30 = vpop.f32.mrf.mxu1 }
 0x137   : > { %v1267_v22 = vpop.f32.mrf.mxu0 }
 0x138   : > { %v1298_v7 = vadd.f32 %v1267_v22, %v5168_v52  ;;  %v1557_v54 = vadd.f32 %v3996_v30, %v1300_v3  ;;  %v1524_v21 = vpop.f32.mrf.mxu1 }
 0x139   : > { %v3961_v40 = vpop.f32.mrf.mxu0 }
 0x13a   : > { %v1301_v6 = vadd.f32 %v3961_v40, %v5170_v45  ;;  %v1555_v25 = vadd.f32 %v1524_v21, %v1298_v7  ;;  %v3997_v41 = vpop.f32.mrf.mxu1 }
 0x13b   : > { %v1270_v43 = vpop.f32.mrf.mxu0 }
 0x13c   : > { %v1299_v38 = vadd.f32 %v1270_v43, %v5175_v34  ;;  %v1558_v0 = vadd.f32 %v3997_v41, %v1301_v6  ;;  %v1527_v44 = vpop.f32.mrf.mxu1 }
 0x13d   : > { %v4016_v11 = vpop.f32.mrf.mxu0 }
 0x13e   : > { %v1556_v23 = vadd.f32 %v1527_v44, %v1299_v38  ;;  %v5232_v33 = vadd.f32 %v4016_v11, %v5179_v24  ;;  %v5234_v59 = vpop.f32.mrf.mxu1 }
 0x13f   : > { %v1690_v52 = vpop.f32.mrf.mxu0 }
 0x140   : > { %v5237_v46 = vadd.f32 %v1690_v52, %v5185_v13  ;;  %v5239_v18 = vpop.f32.mrf.mxu1 }
 0x141   : > { %v4017_v45 = vpop.f32.mrf.mxu0 }
 0x142   : > { %v5242_v19 = vadd.f32 %v4017_v45, %v5188_v17  ;;  %v5244_v34 = vpop.f32.mrf.mxu1 }
 0x143   : > { %v1693_v35 = vpop.f32.mrf.mxu0 }
 0x144   : > { %v5247_v50 = vadd.f32 %v1693_v35, %v5194_v31  ;;  %v5249_v24 = vpop.f32.mrf.mxu1 }
 0x145   : > { %v4020_v37 = vpop.f32.mrf.mxu0 }
 0x146   : > { %v5252_v20 = vadd.f32 %v4020_v37, %v5197_v51  ;;  %v5254_v13 = vpop.f32.mrf.mxu1 }
 0x147   : > { %v1706_v48 = vpop.f32.mrf.mxu0 }
 0x148   : > { %v5257_v8 = vadd.f32 %v1706_v48, %v5200_v53  ;;  %v5259_v17 = vpop.f32.mrf.mxu1 }
 0x149   : > { %v4021_v42 = vpop.f32.mrf.mxu0 }
 0x14a   : > { %v5262_v28 = vadd.f32 %v4021_v42, %v5203_v26  ;;  %v5264_v31 = vpop.f32.mrf.mxu1 }
 0x14b   : > { %v1709_v39 = vpop.f32.mrf.mxu0 }
 0x14c   : > { %v5267_v47 = vadd.f32 %v1709_v39, %v5206_v14  ;;  %v5269_v51 = vpop.f32.mrf.mxu1 }
 0x14d   : > { %v4024_v29 = vpop.f32.mrf.mxu0 }
 0x14e   : > { %v5272_v4 = vadd.f32 %v4024_v29, %v5209_v27  ;;  %v5274_v53 = vpop.f32.mrf.mxu1 }
 0x14f   : > { %v1722_v58 = vpop.f32.mrf.mxu0 }
 0x150   : > { %v5277_v61 = vadd.f32 %v1722_v58, %v5212_v12  ;;  %v5279_v26 = vpop.f32.mrf.mxu1 }
 0x151   : > { %v4025_v15 = vpop.f32.mrf.mxu0 }
 0x152   : > { %v5282_v16 = vadd.f32 %v4025_v15, %v5215_v57  ;;  %v5284_v14 = vpop.f32.mrf.mxu1 }
 0x153   : > { %v1725_v56 = vpop.f32.mrf.mxu0 }
 0x154   : > { %v5287_v60 = vadd.f32 %v1725_v56, %v5218_v5  ;;  %v5289_v27 = vpop.f32.mrf.mxu1 }
 0x155   : > { %v4028_v49 = vpop.f32.mrf.mxu0 }
 0x156   : > { %v5292_v63 = vadd.f32 %v4028_v49, %v5221_v36  ;;  %v5294_v12 = vpop.f32.mrf.mxu1 }
 0x157   : > { %v1738_v2 = vpop.f32.mrf.mxu0 }
 0x158   : > { %v5297_v62 = vadd.f32 %v1738_v2, %v5224_v55  ;;  %v5299_v57 = vpop.f32.mrf.mxu1 }
 0x159   : > { %v4029_v10 = vpop.f32.mrf.mxu0 }
 0x15a   : > { %v5301_v32 = vadd.f32 %v4029_v10, %v1554_v1  ;;  %v5303_v3 = vpop.f32.mrf.mxu1 }
 0x15b   : > { %v1741_v5 = vpop.f32.mrf.mxu0 }
 0x15c   : > { %v5305_v30 = vadd.f32 %v1741_v5, %v1552_v9  ;;  %v5307_v22 = vpop.f32.mrf.mxu1 }
 0x15d   : > { %v4032_v36 = vpop.f32.mrf.mxu0 }
 0x15e   : > { %v5309_v7 = vadd.f32 %v4032_v36, %v1557_v54  ;;  %v5311_v21 = vpop.f32.mrf.mxu1 }
 0x15f   : > { %5623 = vst [vmem:[#allocation3_spill] sm:$0xff] %v5311_v21  ;;  %v1754_v40 = vpop.f32.mrf.mxu0 }
 0x160   : > { %5622 = vst [vmem:[#allocation2_spill] sm:$0xff] %v5309_v7  ;;  %v5313_v55 = vadd.f32 %v1754_v40, %v1555_v25  ;;  %v5315_v6 = vpop.f32.mrf.mxu1 }
 0x161   : > { %5625 = vst [vmem:[#allocation5_spill] sm:$0xff] %v5315_v6  ;;  %v4033_v41 = vpop.f32.mrf.mxu0 }
 0x162   : > { %5624 = vst [vmem:[#allocation4_spill] sm:$0xff] %v5313_v55  ;;  %v5317_v1 = vadd.f32 %v4033_v41, %v1558_v0  ;;  %v5319_v43 = vpop.f32.mrf.mxu1  ;;  %v2021_v55 = vadd.f32 %v5239_v18, %v5237_v46  ;;  %v5370_v46 = vld [vmem:[%s5606_s3] ss:$0 sm:$0xff] }
 0x163   : > { %5627 = vst [vmem:[#allocation7_spill] sm:$0xff] %v5319_v43  ;;  %v1757_v38 = vpop.f32.mrf.mxu0  ;;  %v2023_v43 = vadd.f32 %v5234_v59, %v5232_v33 }
 0x164   : > { %5626 = vst [vmem:[#allocation6_spill] sm:$0xff] %v5317_v1  ;;  %v5321_v9 = vadd.f32 %v1757_v38, %v1556_v23  ;;  %v5323_v44 = vpop.f32.mrf.mxu1 }
 0x165   : > { %5629 = vst [vmem:[#allocation9_spill] sm:$0xff] %v5323_v44  ;;  %v4088_v11 = vpop.f32.mrf.mxu0 }
 0x166   : > { %5628 = vst [vmem:[#allocation8_spill] sm:$0xff] %v5321_v9  ;;  %v4124_v54 = vpop.f32.mrf.mxu1  ;;  %v2275_v21 = vadd.f32 %v4088_v11, %v2023_v43  ;;  %v2028_v11 = vadd.f32 %v5264_v31, %v5262_v28  ;;  %v2031_v28 = vadd.f32 %v5274_v53, %v5272_v4  ;;  %v2029_v31 = vadd.f32 %v5279_v26, %v5277_v61 }
 0x167   : > { %v2194_v52 = vpop.f32.mrf.mxu0  ;;  %v2035_v53 = vadd.f32 %v5294_v12, %v5292_v63 }
 0x168   : > { %v2424_v45 = vpop.f32.mrf.mxu1  ;;  %v2273_v7 = vadd.f32 %v2194_v52, %v2021_v55  ;;  %v2505_v59 = vadd.f32 %v4124_v54, %v2275_v21 }
 0x169   : > { %v4089_v35 = vpop.f32.mrf.mxu0 }
 0x16a   : > { %v4125_v37 = vpop.f32.mrf.mxu1  ;;  %v2503_v18 = vadd.f32 %v2424_v45, %v2273_v7  ;;  %v2026_v7 = vadd.f32 %v5269_v51, %v5267_v47 }
 0x16b   : > { %v2197_v25 = vpop.f32.mrf.mxu0 }
 0x16c   : > { %v2427_v42 = vpop.f32.mrf.mxu1 }
 0x16d   : > { %v4092_v48 = vpop.f32.mrf.mxu0 }
 0x16e   : > { %v4128_v0 = vpop.f32.mrf.mxu1 }
 0x16f   : > { %v2210_v39 = vpop.f32.mrf.mxu0 }
 0x170   : > { %v2440_v56 = vpop.f32.mrf.mxu1 }
 0x171   : > { %v4093_v29 = vpop.f32.mrf.mxu0 }
 0x172   : > { %v5331_v2 = vpop.f32.mrf.mxu1  ;;  %v2280_v47 = vadd.f32 %v4093_v29, %v2028_v11 }
 0x173   : > { %v2213_v58 = vpop.f32.mrf.mxu0 }
 0x174   : > { %v5337_v36 = vpop.f32.mrf.mxu1 }
 0x175   : > { %v5325_v15 = vpop.f32.mrf.mxu0 }
 0x176   : > { %v5343_v38 = vpop.f32.mrf.mxu1 }
 0x177   : > { %v5327_v23 = vpop.f32.mrf.mxu0 }
 0x178   : > { %v5351_v1 = vpop.f32.mrf.mxu1 }
 0x179   : > { %v5329_v49 = vpop.f32.mrf.mxu0  ;;  %5635 = vst [vmem:[#allocation15_spill] sm:$0xff] %v5351_v1 }
 0x17b   : > { %v5333_v10 = vpop.f32.mrf.mxu0 }
 0x17d   : > { %v5335_v5 = vpop.f32.mrf.mxu0 }
 0x17e   : > { %5630 = vst [vmem:[#allocation10_spill] sm:$0xff] %v5335_v5 }
 0x17f   : > { %v5339_v40 = vpop.f32.mrf.mxu0 }
 0x180   : > { %5631 = vst [vmem:[#allocation11_spill] sm:$0xff] %v5339_v40 }
 0x181   : > { %v5341_v41 = vpop.f32.mrf.mxu0 }
 0x182   : > { %5632 = vst [vmem:[#allocation12_spill] sm:$0xff] %v5341_v41  ;;  %v2024_v41 = vadd.f32 %v5244_v34, %v5242_v19  ;;  %v2027_v34 = vadd.f32 %v5254_v13, %v5252_v20  ;;  %v5388_v13 = vld [vmem:[%s5607_s4] ss:$0 sm:$0xff] }
 0x183   : > { %v5345_v44 = vpop.f32.mrf.mxu0 }
 0x184   : > { %5633 = vst [vmem:[#allocation13_spill] sm:$0xff] %v5345_v44  ;;  %v5361_v44 = vpop.f32.mrf.mxu1  ;;  %v2276_v5 = vadd.f32 %v4089_v35, %v2024_v41  ;;  %v2279_v54 = vadd.f32 %v4092_v48, %v2027_v34 }
 0x185   : > { %v5347_v9 = vpop.f32.mrf.mxu0 }
 0x186   : > { %5634 = vst [vmem:[#allocation14_spill] sm:$0xff] %v5347_v9  ;;  %v2022_v9 = vadd.f32 %v5249_v24, %v5247_v50  ;;  %v5372_v43 = vpop.f32.mrf.mxu1  ;;  %v2025_v50 = vadd.f32 %v5259_v17, %v5257_v8  ;;  %v2506_v24 = vadd.f32 %v4125_v37, %v2276_v5  ;;  %v2278_v37 = vadd.f32 %v2213_v58, %v2026_v7 }
 0x187   : > { %v5353_v6 = vpop.f32.mrf.mxu0 }
 0x188   : > { %5636 = vst [vmem:[#allocation16_spill] sm:$0xff] %v5353_v6  ;;  %v2274_v6 = vadd.f32 %v2197_v25, %v2022_v9  ;;  %v2277_v45 = vadd.f32 %v2210_v39, %v2025_v50  ;;  %v5383_v35 = vpop.f32.mrf.mxu1  ;;  %v2509_v39 = vadd.f32 %v4128_v0, %v2279_v54  ;;  %v2283_v0 = vadd.f32 %v5325_v15, %v2031_v28 }
 0x189   : > { %v5357_v40 = vpop.f32.mrf.mxu0  ;;  %v2508_v12 = vadd.f32 %v5337_v36, %v2278_v37 }
 0x18a   : > { %v2504_v52 = vadd.f32 %v2427_v42, %v2274_v6  ;;  %v2032_v6 = vadd.f32 %v5284_v14, %v5282_v16  ;;  %v2030_v42 = vadd.f32 %v5289_v27, %v5287_v60  ;;  %v2507_v61 = vadd.f32 %v2440_v56, %v2277_v45  ;;  %v5403_v26 = vpop.f32.mrf.mxu1  ;;  %v5408_v16 = vld [vmem:[%s5608_s5] ss:$0 sm:$0xff] }
 0x18b   : > { %v5365_v33 = vpop.f32.mrf.mxu0  ;;  %v2033_v60 = vadd.f32 %v5299_v57, %v5297_v62  ;;  %v2510_v27 = vadd.f32 %v5331_v2, %v2280_v47  ;;  %v2513_v54 = vadd.f32 %v5343_v38, %v2283_v0 }
 0x18c   : > { %v5421_v2 = vpop.f32.mrf.mxu1 }
 0x18d   : > { %v4160_v1 = vpop.f32.mrf.mxu0 }
 0x18e   : > { %v2745_v19 = vadd.f32 %v4160_v1, %v2505_v59 }
 0x18f   : > { %v2664_v55 = vpop.f32.mrf.mxu0 }
 0x190   : > { %v2772_v21 = vadd.f32 %v5370_v46, %v2745_v19  ;;  %v2743_v9 = vadd.f32 %v2664_v55, %v2503_v18  ;;  %v2281_v19 = vadd.f32 %v5327_v23, %v2029_v31  ;;  %v2034_v23 = vadd.f32 %v5307_v22, %v5305_v30  ;;  %v2475_v22 = vpop.f32.mrf.mxu1 }
 0x191   : > { %v4161_v1 = vpop.f32.mrf.mxu0 }
 0x192   : > { %v2792_v20 = vmax.f32 %v2772_v21, 0.0  ;;  %v2770_v8 = vadd.f32 %v5370_v46, %v2743_v9  ;;  %v2746_v17 = vadd.f32 %v4161_v1, %v2506_v24  ;;  %v2036_v21 = vadd.f32 %v5303_v3, %v5301_v32  ;;  %v5637_v3 = vld [vmem:[#allocation15_spill] sm:$0xff] }
 0x193   : > { %v2667_v51 = vpop.f32.mrf.mxu0  ;;  %v2284_v9 = vadd.f32 %v5329_v49, %v2032_v6  ;;  %v2511_v30 = vadd.f32 %v5637_v3, %v2281_v19  ;;  %v5644_v19 = vld [vmem:[#allocation12_spill] sm:$0xff] }
 0x194   : > { %v2773_v25 = vadd.f32 %v5370_v46, %v2746_v17  ;;  %v2744_v48 = vadd.f32 %v2667_v51, %v2504_v52  ;;  %v2819_v5 = vmul.f32 %v5388_v13, %v2792_v20  ;;  %v2790_v41 = vmax.f32 %v2770_v8, 0.0  ;;  %v5638_v51 = vld [vmem:[#allocation10_spill] sm:$0xff] }
 0x195   : > { %v4164_v4 = vpop.f32.mrf.mxu0  ;;  %v2282_v20 = vadd.f32 %v5333_v10, %v2030_v42  ;;  %v2514_v38 = vadd.f32 %v5361_v44, %v2284_v9  ;;  %v2287_v6 = vadd.f32 %v5638_v51, %v2035_v53 }
 0x196   : > { %v2793_v14 = vmax.f32 %v2773_v25, 0.0  ;;  %v2771_v29 = vadd.f32 %v5370_v46, %v2744_v48  ;;  %v2749_v58 = vadd.f32 %v4164_v4, %v2509_v39  ;;  %v2846_v34 = vadd.f32 %v5408_v16, %v2819_v5  ;;  %v5640_v4 = vld [vmem:[#allocation3_spill] sm:$0xff] }
 0x197   : > { %v2680_v63 = vpop.f32.mrf.mxu0  ;;  %v2817_v55 = vmul.f32 %v5388_v13, %v2790_v41  ;;  %v5639_v41 = vld [vmem:[#allocation2_spill] sm:$0xff]  ;;  %v2512_v44 = vadd.f32 %v5372_v43, %v2282_v20 }
 0x198   : > { %v2820_v56 = vmul.f32 %v5388_v13, %v2793_v14  ;;  %v2791_v59 = vmax.f32 %v2771_v29, 0.0  ;;  %v2747_v18 = vadd.f32 %v2680_v63, %v2507_v61  ;;  %v2776_v62 = vadd.f32 %v5370_v46, %v2749_v58  ;;  %v5641_v14 = vld [vmem:[#allocation4_spill] sm:$0xff]  ;;  %v5642_v29 = vld [vmem:[#allocation5_spill] sm:$0xff]  ;;  %v5643_v58 = vld [vmem:[#allocation11_spill] sm:$0xff] }
 0x199   : > { %v4165_v57 = vpop.f32.mrf.mxu0  ;;  %v2844_v28 = vadd.f32 %v5408_v16, %v2817_v55  ;;  %v2039_v61 = vadd.f32 %v5640_v4, %v5639_v41  ;;  %v2285_v63 = vadd.f32 %v5643_v58, %v2033_v60 }
 0x19a   : > { %v2847_v15 = vadd.f32 %v5408_v16, %v2820_v56  ;;  %v2818_v50 = vmul.f32 %v5388_v13, %v2791_v59  ;;  %v2774_v36 = vadd.f32 %v5370_v46, %v2747_v18  ;;  %v2750_v24 = vadd.f32 %v4165_v57, %v2510_v27 }
 0x19b   : > { %v2796_v11 = vmax.f32 %v2776_v62, 0.0  ;;  %v2683_v7 = vpop.f32.mrf.mxu0  ;;  %v2037_v27 = vadd.f32 %v5642_v29, %v5641_v14 }
 0x19c   : > { %v2865_v52 = vpack.c.bf16 %v2847_v15, %v2846_v34  ;;  %v2777_v1 = vadd.f32 %v5370_v46, %v2750_v24  ;;  %v2748_v45 = vadd.f32 %v2683_v7, %v2508_v12  ;;  %v2794_v8 = vmax.f32 %v2774_v36, 0.0  ;;  %v4140_v12 = vpop.f32.mrf.mxu1 }
 0x19d   : > { %v4168_v17 = vpop.f32.mrf.mxu0  ;;  %v2845_v32 = vadd.f32 %v5408_v16, %v2818_v50  ;;  %v2823_v37 = vmul.f32 %v5388_v13, %v2796_v11  ;;  %v2288_v34 = vadd.f32 %v5644_v19, %v2036_v21  ;;  %v2517_v15 = vadd.f32 %v5383_v35, %v2287_v6  ;;  %v5645_v50 = vld [vmem:[#allocation13_spill] sm:$0xff]  ;;  %v5649_v6 = vld [vmem:[#allocation8_spill] sm:$0xff] }
 0x19e   : > { %v2797_v49 = vmax.f32 %v2777_v1, 0.0  ;;  %v2775_v31 = vadd.f32 %v5370_v46, %v2748_v45  ;;  %v2753_v47 = vadd.f32 %v4168_v17, %v2513_v54  ;;  %v2821_v53 = vmul.f32 %v5388_v13, %v2794_v8  ;;  %v2488_v1 = vpop.f32.mrf.mxu1 }
 0x19f   : > { %v2696_v10 = vpop.f32.mrf.mxu0  ;;  %v2864_v25 = vpack.c.bf16 %v2845_v32, %v2844_v28  ;;  %v2850_v57 = vadd.f32 %v5408_v16, %v2823_v37  ;;  %v2286_v36 = vadd.f32 %v5645_v50, %v2034_v23  ;;  %v2518_v35 = vadd.f32 %v5421_v2, %v2288_v34  ;;  %v5646_v23 = vld [vmem:[#allocation14_spill] sm:$0xff]  ;;  %v5650_v37 = vld [vmem:[#allocation9_spill] sm:$0xff] }
 0x1a0   : > { %v2824_v48 = vmul.f32 %v5388_v13, %v2797_v49  ;;  %v2795_v42 = vmax.f32 %v2775_v31, 0.0  ;;  %v2780_v39 = vadd.f32 %v5370_v46, %v2753_v47  ;;  %v2751_v5 = vadd.f32 %v2696_v10, %v2511_v30 }
 0x1a1   : > { %4194 = vmatprep.mubr.bf16.mxu1 %v2864_v25  ;;  %v4169_v0 = vpop.f32.mrf.mxu0  ;;  %v2848_v7 = vadd.f32 %v5408_v16, %v2821_v53  ;;  %v2291_v17 = vadd.f32 %v5646_v23, %v2039_v61  ;;  %v2038_v10 = vadd.f32 %v5650_v37, %v5649_v6  ;;  %v2516_v25 = vadd.f32 %v2475_v22, %v2286_v36 }
 0x1a2   : > { %v2822_v56 = vmul.f32 %v5388_v13, %v2795_v42  ;;  %v2778_v59 = vadd.f32 %v5370_v46, %v2751_v5  ;;  %v2754_v18 = vadd.f32 %v4169_v0, %v2514_v38  ;;  %4195 = vmatmul.mubr.bf16.vlgmr.msra.gmra.mxu1 %v2865_v52  ;;  %v2800_v55 = vmax.f32 %v2780_v39, 0.0  ;;  %v5648_v38 = vld [vmem:[#allocation7_spill] sm:$0xff]  ;;  %v5651_v42 = vld [vmem:[#allocation16_spill] sm:$0xff]  ;;  %v4141_v5 = vpop.f32.mrf.mxu1 }
 0x1a3   : > { %v2699_v62 = vpop.f32.mrf.mxu0  ;;  %v2851_v43 = vadd.f32 %v5408_v16, %v2824_v48  ;;  %v2515_v52 = vadd.f32 %v5403_v26, %v2285_v63  ;;  %v5647_v26 = vld [vmem:[#allocation6_spill] sm:$0xff]  ;;  %v2289_v39 = vadd.f32 %v5651_v42, %v2037_v27  ;;  %v2521_v0 = vadd.f32 %v4140_v12, %v2291_v17 }
 0x1a4   : > { %v2781_v60 = vadd.f32 %v5370_v46, %v2754_v18  ;;  %v2752_v24 = vadd.f32 %v2699_v62, %v2512_v44  ;;  %v2798_v9 = vmax.f32 %v2778_v59, 0.0  ;;  %v2849_v54 = vadd.f32 %v5408_v16, %v2822_v56 }
 0x1a5   : > { %v4172_v11 = vpop.f32.mrf.mxu0  ;;  %v2867_v21 = vpack.c.bf16 %v2851_v43, %v2850_v57  ;;  %v2827_v28 = vmul.f32 %v5388_v13, %v2800_v55  ;;  %v2040_v51 = vadd.f32 %v5648_v38, %v5647_v26  ;;  %v2290_v58 = vadd.f32 %v5365_v33, %v2038_v10  ;;  %v2491_v55 = vpop.f32.mrf.mxu1 }
 0x1a6   : > { %v2801_v45 = vmax.f32 %v2781_v60, 0.0  ;;  %v2779_v20 = vadd.f32 %v5370_v46, %v2752_v24  ;;  %v2757_v8 = vadd.f32 %v4172_v11, %v2517_v15  ;;  %v2866_v3 = vpack.c.bf16 %v2849_v54, %v2848_v7 }
 0x1a7   : > { %v2712_v32 = vpop.f32.mrf.mxu0  ;;  %v2825_v2 = vmul.f32 %v5388_v13, %v2798_v9  ;;  %v2292_v14 = vadd.f32 %v5357_v40, %v2040_v51  ;;  %v2854_v53 = vadd.f32 %v5408_v16, %v2827_v28  ;;  %v2519_v40 = vadd.f32 %v2488_v1, %v2289_v39  ;;  %v5506_v39 = vld [vmem:[%s5610_s7] ss:$0 sm:$0xff] }
 0x1a8   : > { %v2828_v30 = vmul.f32 %v5388_v13, %v2801_v45  ;;  %v2799_v49 = vmax.f32 %v2779_v20, 0.0  ;;  %v2784_v31 = vadd.f32 %v5370_v46, %v2757_v8  ;;  %v2755_v47 = vadd.f32 %v2712_v32, %v2515_v52  ;;  %4198 = vmatprep.mubr.bf16.mxu1 %v2866_v3 }
 0x1a9   : > { %v4173_v48 = vpop.f32.mrf.mxu0  ;;  %v2852_v18 = vadd.f32 %v5408_v16, %v2825_v2  ;;  %v2522_v15 = vadd.f32 %v4141_v5, %v2292_v14  ;;  %v2520_v11 = vadd.f32 %v2491_v55, %v2290_v58 }
 0x1aa   : > { %v2826_v41 = vmul.f32 %v5388_v13, %v2799_v49  ;;  %v2782_v4 = vadd.f32 %v5370_v46, %v2755_v47  ;;  %v2758_v61 = vadd.f32 %v4173_v48, %v2518_v35  ;;  %4199 = vmatmul.mubr.bf16.gmra.mxu1 %v2867_v21  ;;  %v2804_v29 = vmax.f32 %v2784_v31, 0.0 }
 0x1ab   : > { %v2715_v44 = vpop.f32.mrf.mxu0  ;;  %v2855_v22 = vadd.f32 %v5408_v16, %v2828_v30 }
 0x1ac   : > { %v2785_v27 = vadd.f32 %v5370_v46, %v2758_v61  ;;  %v2756_v63 = vadd.f32 %v2715_v44, %v2516_v25  ;;  %v2802_v56 = vmax.f32 %v2782_v4, 0.0  ;;  %v2853_v19 = vadd.f32 %v5408_v16, %v2826_v41 }
 0x1ad   : > { %v4176_v59 = vpop.f32.mrf.mxu0  ;;  %v2869_v34 = vpack.c.bf16 %v2855_v22, %v2854_v53  ;;  %v2831_v12 = vmul.f32 %v5388_v13, %v2804_v29 }
 0x1ae   : > { %v2805_v62 = vmax.f32 %v2785_v27, 0.0  ;;  %v2783_v57 = vadd.f32 %v5370_v46, %v2756_v63  ;;  %v2761_v43 = vadd.f32 %v4176_v59, %v2521_v0  ;;  %v2868_v50 = vpack.c.bf16 %v2853_v19, %v2852_v18  ;;  %v5521_v27 = vld [vmem:[%s5612_s9] ss:$0 sm:$0xff] }
 0x1af   : > { %v2728_v33 = vpop.f32.mrf.mxu0  ;;  %v2829_v7 = vmul.f32 %v5388_v13, %v2802_v56  ;;  %v2858_v8 = vadd.f32 %v5408_v16, %v2831_v12 }
 0x1b0   : > { %v2832_v36 = vmul.f32 %v5388_v13, %v2805_v62  ;;  %v2803_v60 = vmax.f32 %v2783_v57, 0.0  ;;  %v2788_v24 = vadd.f32 %v5370_v46, %v2761_v43  ;;  %v2759_v9 = vadd.f32 %v2728_v33, %v2519_v40  ;;  %4202 = vmatprep.mubr.bf16.mxu1 %v2868_v50 }
 0x1b1   : > { %v4177_v54 = vpop.f32.mrf.mxu0  ;;  %v2856_v32 = vadd.f32 %v5408_v16, %v2829_v7 }
 0x1b2   : > { %v2830_v21 = vmul.f32 %v5388_v13, %v2803_v60  ;;  %v2808_v52 = vmax.f32 %v2788_v24, 0.0  ;;  %v2786_v1 = vadd.f32 %v5370_v46, %v2759_v9  ;;  %v2762_v45 = vadd.f32 %v4177_v54, %v2522_v15  ;;  %4203 = vmatmul.mubr.bf16.gmra.mxu1 %v2869_v34 }
 0x1b3   : > { %v2731_v20 = vpop.f32.mrf.mxu0  ;;  %v2859_v35 = vadd.f32 %v5408_v16, %v2832_v36 }
 0x1b4   : > { %v2806_v23 = vmax.f32 %v2786_v1, 0.0  ;;  %v2789_v17 = vadd.f32 %v5370_v46, %v2762_v45  ;;  %v2760_v28 = vadd.f32 %v2731_v20, %v2520_v11  ;;  %v2857_v3 = vadd.f32 %v5408_v16, %v2830_v21 }
 0x1b5   : > { %v2871_v30 = vpack.c.bf16 %v2859_v35, %v2858_v8  ;;  %v2835_v49 = vmul.f32 %v5388_v13, %v2808_v52 }
 0x1b6   : > { %v2809_v31 = vmax.f32 %v2789_v17, 0.0  ;;  %v2787_v47 = vadd.f32 %v5370_v46, %v2760_v28  ;;  %v2870_v26 = vpack.c.bf16 %v2857_v3, %v2856_v32  ;;  %v2833_v38 = vmul.f32 %v5388_v13, %v2806_v23 }
 0x1b7   : > { %v2862_v10 = vadd.f32 %v5408_v16, %v2835_v49 }
 0x1b8   : > { %v2836_v51 = vmul.f32 %v5388_v13, %v2809_v31  ;;  %v2807_v6 = vmax.f32 %v2787_v47, 0.0  ;;  %4206 = vmatprep.mubr.bf16.mxu1 %v2870_v26  ;;  %v2860_v2 = vadd.f32 %v5408_v16, %v2833_v38 }
 0x1ba   : > { %v2834_v37 = vmul.f32 %v5388_v13, %v2807_v6  ;;  %4207 = vmatmul.mubr.bf16.gmra.mxu1 %v2871_v30  ;;  %v2863_v25 = vadd.f32 %v5408_v16, %v2836_v51 }
 0x1bc   : > { %v2861_v48 = vadd.f32 %v5408_v16, %v2834_v37  ;;  %v2873_v42 = vpack.c.bf16 %v2863_v25, %v2862_v10  ;;  %v5513_v16 = vld [vmem:[%s5611_s8] ss:$0 sm:$0xff] }
 0x1be   : > { %v2872_v46 = vpack.c.bf16 %v2861_v48, %v2860_v2 }
 0x1c0   : > { %4210 = vmatprep.mubr.bf16.mxu1 %v2872_v46 }
 0x1c2   : > { %4211 = vmatmul.mubr.bf16.gmra.mxu1 %v2873_v42 }
 0x262   : > { %v4196_v13 = vpop.f32.mrf.mxu1 }
 0x263   : > { %v2988_v5 = vadd.f32 %v4196_v13, %v5506_v39 }
 0x264   : > { %v2979_v41 = vpop.f32.mrf.mxu1 }
 0x265   : > { %v3060_v4 = vmax.f32 %v2988_v5, 0.0  ;;  %v2980_v61 = vadd.f32 %v5506_v39, %v2979_v41 }
 0x266   : > { %v4197_v14 = vpop.f32.mrf.mxu1 }
 0x267   : > { %v3058_v29 = vmax.f32 %v2980_v61, 0.0  ;;  %v2991_v44 = vadd.f32 %v4197_v14, %v5506_v39  ;;  %v3087_v22 = vmul.f32 %v5513_v16, %v3060_v4 }
 0x268   : > { %v2982_v53 = vpop.f32.mrf.mxu1 }
 0x269   : > { %v3061_v0 = vmax.f32 %v2991_v44, 0.0  ;;  %v2983_v58 = vadd.f32 %v5506_v39, %v2982_v53  ;;  %v3085_v56 = vmul.f32 %v5513_v16, %v3058_v29  ;;  %v3114_v40 = vadd.f32 %v5521_v27, %v3087_v22 }
 0x26a   : > { %v4200_v63 = vpop.f32.mrf.mxu1 }
 0x26b   : > { %v3088_v59 = vmul.f32 %v5513_v16, %v3061_v0  ;;  %v3059_v18 = vmax.f32 %v2983_v58, 0.0  ;;  %v3004_v19 = vadd.f32 %v4200_v63, %v5506_v39  ;;  %v3112_v12 = vadd.f32 %v5521_v27, %v3085_v56 }
 0x26c   : > { %v2995_v34 = vpop.f32.mrf.mxu1 }
 0x26d   : > { %v3115_v55 = vadd.f32 %v5521_v27, %v3088_v59  ;;  %v3086_v62 = vmul.f32 %v5513_v16, %v3059_v18  ;;  %v2996_v57 = vadd.f32 %v5506_v39, %v2995_v34  ;;  %v3064_v43 = vmax.f32 %v3004_v19, 0.0 }
 0x26e   : > { %v4201_v15 = vpop.f32.mrf.mxu1 }
 0x26f   : > { %v3623_v33 = vpack.c.bf16 %v3115_v55, %v3114_v40  ;;  %v3113_v50 = vadd.f32 %v5521_v27, %v3086_v62  ;;  %v3062_v36 = vmax.f32 %v2996_v57, 0.0  ;;  %v3007_v60 = vadd.f32 %v4201_v15, %v5506_v39 }
 0x270   : > { %v2998_v24 = vpop.f32.mrf.mxu1  ;;  %v3091_v7 = vmul.f32 %v5513_v16, %v3064_v43 }
 0x271   : > { %3665 = vst [vmem:[%s5534_s13 + $0x8] sm:$0xff] %v3623_v33   ;;  %v3618_v9 = vpack.c.bf16 %v3113_v50, %v3112_v12  ;;  %v2999_v11 = vadd.f32 %v5506_v39, %v2998_v24  ;;  %v3065_v54 = vmax.f32 %v3007_v60, 0.0  ;;  %v3089_v52 = vmul.f32 %v5513_v16, %v3062_v36 }
 0x272   : > { %v4204_v21 = vpop.f32.mrf.mxu1  ;;  %v3118_v28 = vadd.f32 %v5521_v27, %v3091_v7 }
 0x273   : > { %3619 = vst [vmem:[%s5534_s13] sm:$0xff] %v3618_v9   ;;  %v3063_v1 = vmax.f32 %v2999_v11, 0.0  ;;  %v3020_v45 = vadd.f32 %v4204_v21, %v5506_v39  ;;  %v3092_v20 = vmul.f32 %v5513_v16, %v3065_v54  ;;  %v3116_v30 = vadd.f32 %v5521_v27, %v3089_v52 }
 0x274   : > { %v3011_v8 = vpop.f32.mrf.mxu1 }
 0x275   : > { %v3090_v35 = vmul.f32 %v5513_v16, %v3063_v1  ;;  %v3068_v23 = vmax.f32 %v3020_v45, 0.0  ;;  %v3012_v17 = vadd.f32 %v5506_v39, %v3011_v8  ;;  %v3119_v32 = vadd.f32 %v5521_v27, %v3092_v20 }
 0x276   : > { %v4205_v3 = vpop.f32.mrf.mxu1 }
 0x277   : > { %v3117_v49 = vadd.f32 %v5521_v27, %v3090_v35  ;;  %v3023_v31 = vadd.f32 %v4205_v3, %v5506_v39  ;;  %v3633_v47 = vpack.c.bf16 %v3119_v32, %v3118_v28  ;;  %v3066_v26 = vmax.f32 %v3012_v17, 0.0 }
 0x278   : > { %v3014_v38 = vpop.f32.mrf.mxu1  ;;  %v3095_v6 = vmul.f32 %v5513_v16, %v3068_v23 }
 0x279   : > { %v3628_v51 = vpack.c.bf16 %v3117_v49, %v3116_v30  ;;  %v3069_v37 = vmax.f32 %v3023_v31, 0.0  ;;  %3667 = vst [vmem:[%s5534_s13 + $0x18] sm:$0xff] %v3633_v47   ;;  %v3015_v10 = vadd.f32 %v5506_v39, %v3014_v38  ;;  %v3093_v42 = vmul.f32 %v5513_v16, %v3066_v26 }
 0x27a   : > { %v4208_v25 = vpop.f32.mrf.mxu1  ;;  %v3122_v5 = vadd.f32 %v5521_v27, %v3095_v6 }
 0x27b   : > { %3666 = vst [vmem:[%s5534_s13 + $0x10] sm:$0xff] %v3628_v51   ;;  %v3096_v2 = vmul.f32 %v5513_v16, %v3069_v37  ;;  %v3036_v48 = vadd.f32 %v4208_v25, %v5506_v39  ;;  %v3067_v46 = vmax.f32 %v3015_v10, 0.0  ;;  %v3120_v0 = vadd.f32 %v5521_v27, %v3093_v42 }
 0x27c   : > { %v3027_v13 = vpop.f32.mrf.mxu1 }
 0x27d   : > { %v3123_v41 = vadd.f32 %v5521_v27, %v3096_v2  ;;  %v3072_v4 = vmax.f32 %v3036_v48, 0.0  ;;  %v3028_v61 = vadd.f32 %v5506_v39, %v3027_v13  ;;  %v3094_v14 = vmul.f32 %v5513_v16, %v3067_v46 }
 0x27e   : > { %v4209_v29 = vpop.f32.mrf.mxu1 }
 0x27f   : > { %v3643_v44 = vpack.c.bf16 %v3123_v41, %v3122_v5  ;;  %v3070_v53 = vmax.f32 %v3028_v61, 0.0  ;;  %v3039_v22 = vadd.f32 %v4209_v29, %v5506_v39  ;;  %v3121_v58 = vadd.f32 %v5521_v27, %v3094_v14 }
 0x280   : > { %v3030_v63 = vpop.f32.mrf.mxu1  ;;  %v3099_v56 = vmul.f32 %v5513_v16, %v3072_v4 }
 0x281   : > { %3669 = vst [vmem:[%s5534_s13 + $0x28] sm:$0xff] %v3643_v44   ;;  %v3073_v59 = vmax.f32 %v3039_v22, 0.0  ;;  %v3031_v18 = vadd.f32 %v5506_v39, %v3030_v63  ;;  %v3638_v19 = vpack.c.bf16 %v3121_v58, %v3120_v0  ;;  %v3097_v40 = vmul.f32 %v5513_v16, %v3070_v53 }
 0x282   : > { %v4212_v34 = vpop.f32.mrf.mxu1  ;;  %v3126_v15 = vadd.f32 %v5521_v27, %v3099_v56 }
 0x283   : > { %v3100_v55 = vmul.f32 %v5513_v16, %v3073_v59  ;;  %v3071_v62 = vmax.f32 %v3031_v18, 0.0  ;;  %v3052_v57 = vadd.f32 %v4212_v34, %v5506_v39  ;;  %3668 = vst [vmem:[%s5534_s13 + $0x20] sm:$0xff] %v3638_v19   ;;  %v3124_v24 = vadd.f32 %v5521_v27, %v3097_v40 }
 0x284   : > { %v3043_v43 = vpop.f32.mrf.mxu1 }
 0x285   : > { %v3127_v12 = vadd.f32 %v5521_v27, %v3100_v55  ;;  %v3098_v33 = vmul.f32 %v5513_v16, %v3071_v62  ;;  %v3044_v50 = vadd.f32 %v5506_v39, %v3043_v43  ;;  %v3076_v36 = vmax.f32 %v3052_v57, 0.0 }
 0x286   : > { %v4213_v60 = vpop.f32.mrf.mxu1 }
 0x287   : > { %v3653_v9 = vpack.c.bf16 %v3127_v12, %v3126_v15  ;;  %v3125_v11 = vadd.f32 %v5521_v27, %v3098_v33  ;;  %v3074_v7 = vmax.f32 %v3044_v50, 0.0  ;;  %v3055_v54 = vadd.f32 %v4213_v60, %v5506_v39 }
 0x288   : > { %v3046_v21 = vpop.f32.mrf.mxu1  ;;  %v3103_v45 = vmul.f32 %v5513_v16, %v3076_v36 }
 0x289   : > { %3671 = vst [vmem:[%s5534_s13 + $0x38] sm:$0xff] %v3653_v9   ;;  %v3648_v52 = vpack.c.bf16 %v3125_v11, %v3124_v24  ;;  %v3047_v1 = vadd.f32 %v5506_v39, %v3046_v21  ;;  %v3077_v20 = vmax.f32 %v3055_v54, 0.0  ;;  %v3101_v8 = vmul.f32 %v5513_v16, %v3074_v7 }
 0x28a   : > { %v3130_v28 = vadd.f32 %v5521_v27, %v3103_v45 }
 0x28b   : > { %3670 = vst [vmem:[%s5534_s13 + $0x30] sm:$0xff] %v3648_v52   ;;  %v3075_v35 = vmax.f32 %v3047_v1, 0.0  ;;  %v3104_v23 = vmul.f32 %v5513_v16, %v3077_v20  ;;  %v3128_v3 = vadd.f32 %v5521_v27, %v3101_v8 }
 0x28d   : > { %v3102_v17 = vmul.f32 %v5513_v16, %v3075_v35  ;;  %v3131_v32 = vadd.f32 %v5521_v27, %v3104_v23 }
 0x28f   : > { %v3129_v30 = vadd.f32 %v5521_v27, %v3102_v17  ;;  %v3663_v39 = vpack.c.bf16 %v3131_v32, %v3130_v28 }
 0x291   : > { %v3658_v49 = vpack.c.bf16 %v3129_v30, %v3128_v3  ;;  %3673 = vst [vmem:[%s5534_s13 + $0x48] sm:$0xff] %v3663_v39  }
 0x293   : > { %3672 = vst [vmem:[%s5534_s13 + $0x40] sm:$0xff] %v3658_v49  }
 0x294 PF: > { %s20_s15 = sadd.s32 1, %s4360_s15   ;;  %s5652_s13 = smov %s4356_s14 }
 0x295   : > { %p17_p5 = scmp.ge.s32.totalorder %s20_s15, 4   ;;  %s5653_s14 = smov %s5655_s16 }
 0x297   :  { %19 = sbr.rel (!%p17_p5) target bundleno = 2 (0x2), region = 101 }

</bundles_post_ra>
